<compile_context>
chip_gen: v6e
topology: v6e:2x2x1
jax: 0.10.0
libtpu: 0.0.40
codegen_flags: <defaults>
</compile_context>

<pallas_src>
import jax
import jax.numpy as jnp
from jax.experimental import pallas as pl
from jax.experimental.pallas import tpu as pltpu


def _conv_relu_pool_kernel(p_ref, w_ref, b_ref, o_ref):
    # p_ref : (1, K, 2*HWp) bf16  im2col patches, columns = [even | odd]
    # w_ref : (C_out, K)    bf16  flattened conv weights
    # b_ref : (C_out, 1)    f32   bias
    # o_ref : (1, C_out, HWp) f32 pooled output slab (lane dense)
    hwp = o_ref.shape[2]
    y = jnp.dot(w_ref[...], p_ref[0],
                preferred_element_type=jnp.float32)       # conv on the MXU
    y = y + b_ref[...]                                    # bias (lane bcast)
    pooled = jnp.maximum(y[:, :hwp], y[:, hwp:])          # MaxPool2d((1,2)), VPU
    o_ref[0] = jnp.maximum(pooled, 0.0)                   # ReLU (== relu-then-pool)


def conv_relu_pool(x, w, b, pad_hw):
    """x: (B, C_in, H, W) f32, w: (C_out, C_in, KH, KW), b: (C_out,)."""
    B, C_in, H, W = x.shape
    C_out, _, KH, KW = w.shape
    ph, pw = pad_hw
    xpad = jnp.pad(x, ((0, 0), (0, 0), (ph, ph), (pw, pw)))
    Hp, Wp = H + 2 * ph, W + 2 * pw
    Ho = Hp - KH + 1                  # conv output height (== H here)
    Wc = Wp - KW + 1                  # conv output width
    Wo = Wc // 2                      # width after MaxPool2d((1,2)), floor mode
    K = C_in * KH * KW
    HW = Ho * Wo
    HWp = ((HW + 127) // 128) * 128   # lane-aligned half width (multiple of 128)

    # im2col (plain-JAX glue), with k = ci*KH*KW + kh*KW + kw to match
    # torch weight.reshape(C_out, -1); columns reordered as [even | odd]
    # conv output columns so pooling becomes an elementwise max in-kernel.
    cols = [xpad[:, :, kh:kh + Ho, kw:kw + Wc]
            for kh in range(KH) for kw in range(KW)]
    P = jnp.stack(cols, axis=2).reshape(B, K, Ho, Wc)     # (B, K, Ho, Wc)

    def half(parity):
        q = P[..., parity:2 * Wo:2].reshape(B, K, HW)     # (B, K, Ho*Wo)
        return jnp.pad(q, ((0, 0), (0, 0), (0, HWp - HW)))

    P2 = jnp.concatenate([half(0), half(1)], axis=-1)     # (B, K, 2*HWp)
    P2 = P2.astype(jnp.bfloat16)

    w2 = w.reshape(C_out, K).astype(jnp.bfloat16)
    b2 = b.reshape(C_out, 1).astype(jnp.float32)

    out = pl.pallas_call(
        _conv_relu_pool_kernel,
        out_shape=jax.ShapeDtypeStruct((B, C_out, HWp), jnp.float32),
        grid_spec=pltpu.PrefetchScalarGridSpec(
            num_scalar_prefetch=0,
            grid=(B,),
            in_specs=[
                pl.BlockSpec((1, K, 2 * HWp), lambda bi: (bi, 0, 0)),
                pl.BlockSpec((C_out, K), lambda bi: (0, 0)),
                pl.BlockSpec((C_out, 1), lambda bi: (0, 0)),
            ],
            out_specs=pl.BlockSpec((1, C_out, HWp), lambda bi: (bi, 0, 0)),
        ),
        compiler_params=pltpu.CompilerParams(
            dimension_semantics=("parallel",)),   # v7x: 2 TCs split the batch
    )(P2, w2, b2)

    # strip lane padding and return NCHW
    return out[:, :, :HW].reshape(B, C_out, Ho, Wo)


def _linear_kernel(x_ref, w_ref, b_ref, o_ref):
    # x_ref: (B, F) f32, w_ref: (OUT, F) f32, b_ref: (1, OUT), o_ref: (B, OUT)
    # OUT is tiny (2): keep F on the lane axis and reduce across lanes,
    # avoiding an MXU matmul whose N=2 would pad to 128 lanes in VMEM.
    x = x_ref[...]
    col = jax.lax.broadcasted_iota(jnp.int32, o_ref.shape, 1)      # (B, OUT)
    acc = jnp.zeros(o_ref.shape, jnp.float32)
    for o in range(w_ref.shape[0]):                                # unrolled (OUT=2)
        s = jnp.sum(x * w_ref[o:o + 1, :], axis=-1, keepdims=True)  # (B, 1)
        acc = acc + jnp.where(col == o, s, 0.0)
    o_ref[...] = acc + b_ref[...]


def linear(x, w, b):
    """x: (B, F), w: (OUT, F), b: (OUT,).  Computes x @ w.T + b."""
    B, F = x.shape
    OUT = w.shape[0]
    w2 = jnp.asarray(w, jnp.float32)
    b2 = b.reshape(1, OUT).astype(jnp.float32)
    return pl.pallas_call(
        _linear_kernel,
        out_shape=jax.ShapeDtypeStruct((B, OUT), jnp.float32),
        grid_spec=pltpu.PrefetchScalarGridSpec(
            num_scalar_prefetch=0,
            grid=(1,),
            in_specs=[
                pl.BlockSpec((B, F), lambda i: (0, 0)),
                pl.BlockSpec((OUT, F), lambda i: (0, 0)),
                pl.BlockSpec((1, OUT), lambda i: (0, 0)),
            ],
            out_specs=pl.BlockSpec((B, OUT), lambda i: (0, 0)),
        ),
        compiler_params=pltpu.CompilerParams(
            dimension_semantics=("arbitrary",)),
    )(x.astype(jnp.float32), w2, b2)


def init_params(key):
    k = jax.random.split(key, 6)
    w1 = 0.10 * jax.random.normal(k[0], (16, 1, 3, 20), jnp.float32)
    b1 = 0.10 * jax.random.normal(k[1], (16,), jnp.float32)
    w2 = 0.05 * jax.random.normal(k[2], (32, 16, 3, 20), jnp.float32)
    b2 = 0.05 * jax.random.normal(k[3], (32,), jnp.float32)
    w3 = 0.01 * jax.random.normal(k[4], (2, 23104), jnp.float32)
    b3 = 0.01 * jax.random.normal(k[5], (2,), jnp.float32)
    return (w1, b1, w2, b2, w3, b3)


def cnn_forward(x, params):
    w1, b1, w2, b2, w3, b3 = params
    y = conv_relu_pool(x, w1, b1, (1, 10))      # (B, 16, 19, 75)
    y = conv_relu_pool(y, w2, b2, (1, 10))      # (B, 32, 19, 38)
    flat = y.reshape(y.shape[0], -1)            # NCHW flatten: 32*19*38 = 23104
    return linear(flat, w3, b3)                 # (B, 2)


def cnn_reference(x, params):
    """Pure-JAX reference mirroring the PyTorch module (validation only)."""
    w1, b1, w2, b2, w3, b3 = params

    def block(x, w, b, pad):
        y = jax.lax.conv_general_dilated(
            x, w, (1, 1), ((pad[0], pad[0]), (pad[1], pad[1])),
            dimension_numbers=("NCHW", "OIHW", "NCHW"),
            precision=jax.lax.Precision.HIGHEST)
        y = jnp.maximum(y + b[None, :, None, None], 0.0)
        return jax.lax.reduce_window(y, -jnp.inf, jax.lax.max,
                                     (1, 1, 1, 2), (1, 1, 1, 2), "VALID")

    y = block(x, w1, b1, (1, 10))
    y = block(y, w2, b2, (1, 10))
    flat = y.reshape(y.shape[0], -1)
    return jnp.dot(flat, w3.T, precision=jax.lax.Precision.HIGHEST) + b3[None, :]


if __name__ == "__main__":
    key = jax.random.PRNGKey(0)
    kx, kp = jax.random.split(key)
    # Input shape implied by nn.Linear(23104, 2):
    # (B,1,19,150) -> conv1/pool -> (B,16,19,75) -> conv2/pool -> (B,32,19,38)
    x = jax.random.normal(kx, (2, 1, 19, 150), jnp.float32)
    params = init_params(kp)

    out = jax.jit(cnn_forward)(x, params)
    out = jax.block_until_ready(out)

    ref = cnn_reference(x, params)
    assert out.shape == (2, 2), out.shape
    err = float(jnp.max(jnp.abs(out - ref)))
    assert err < 5e-2, f"max abs error too large: {err}"
    print("KERNEL_OK")
</pallas_src>

<mosaic_0001>
module attributes {stable_mosaic.version = 11 : i64} {
  func.func @_conv_relu_pool_kernel(%arg0: i32, %arg1: memref<1x60x3072xbf16, #tpu.memory_space<vmem>>, %arg2: memref<16x60xbf16, #tpu.memory_space<vmem>>, %arg3: memref<16x1xf32, #tpu.memory_space<vmem>>, %arg4: memref<1x16x1536xf32, #tpu.memory_space<vmem>>) attributes {dimension_semantics = [#tpu.dimension_semantics<parallel>], iteration_bounds = array<i64: 2>, scalar_prefetch = 0 : i64, scratch_operands = 0 : i64, tpu.core_type = #tpu.core_type<tc>, window_params = [{transform_indices = @transform_0, window_bounds = array<i64: 1, 60, 3072>}, {pipeline_mode = #tpu.pipeline_mode<synchronous>, transform_indices = @transform_1, window_bounds = array<i64: 16, 60>}, {pipeline_mode = #tpu.pipeline_mode<synchronous>, transform_indices = @transform_2, window_bounds = array<i64: 16, 1>}, {transform_indices = @transform_3, window_bounds = array<i64: 1, 16, 1536>}]} {
    %c0 = arith.constant 0 : index
    %c0_0 = arith.constant 0 : index
    %0 = vector.load %arg2[%c0, %c0_0] : memref<16x60xbf16, #tpu.memory_space<vmem>>, vector<16x60xbf16>
    %c0_1 = arith.constant 0 : index
    %c0_2 = arith.constant 0 : index
    %c0_3 = arith.constant 0 : index
    %1 = vector.load %arg1[%c0_1, %c0_2, %c0_3] : memref<1x60x3072xbf16, #tpu.memory_space<vmem>>, vector<1x60x3072xbf16>
    %2 = vector.shape_cast %1 : vector<1x60x3072xbf16> to vector<60x3072xbf16>
    %cst = arith.constant dense<0.000000e+00> : vector<16x3072xf32>
    %3 = tpu.matmul %0, %2, %cst {dimension_numbers = #tpu.dot_dimension_numbers<[1], [0], [0], [1], [0, 0, 1, 1], [], []>} : vector<16x60xbf16>, vector<60x3072xbf16>, vector<16x3072xf32> -> vector<16x3072xf32>
    %c0_4 = arith.constant 0 : index
    %c0_5 = arith.constant 0 : index
    %4 = vector.load %arg3[%c0_4, %c0_5] : memref<16x1xf32, #tpu.memory_space<vmem>>, vector<16x1xf32>
    %5 = vector.broadcast %4 : vector<16x1xf32> to vector<16x3072xf32>
    %6 = arith.addf %3, %5 : vector<16x3072xf32>
    %7 = vector.extract_strided_slice %6 {offsets = [0, 0], sizes = [16, 1536], strides = [1, 1]} : vector<16x3072xf32> to vector<16x1536xf32>
    %8 = vector.extract_strided_slice %6 {offsets = [0, 1536], sizes = [16, 1536], strides = [1, 1]} : vector<16x3072xf32> to vector<16x1536xf32>
    %9 = arith.maximumf %7, %8 : vector<16x1536xf32>
    %cst_6 = arith.constant 0.000000e+00 : f32
    %10 = vector.broadcast %cst_6 : f32 to vector<16x1536xf32>
    %11 = arith.maximumf %9, %10 : vector<16x1536xf32>
    %c0_7 = arith.constant 0 : index
    %c0_8 = arith.constant 0 : index
    %c0_9 = arith.constant 0 : index
    %12 = vector.load %arg4[%c0_7, %c0_8, %c0_9] : memref<1x16x1536xf32, #tpu.memory_space<vmem>>, vector<1x16x1536xf32>
    %13 = vector.shape_cast %12 : vector<1x16x1536xf32> to vector<16x1536xf32>
    %14 = vector.shape_cast %11 : vector<16x1536xf32> to vector<1x16x1536xf32>
    tpu.vector_store %arg4[%c0_7, %c0_8, %c0_9], %14 {strides = array<i32>} : memref<1x16x1536xf32, #tpu.memory_space<vmem>>, vector<1x16x1536xf32>,
    return
  }
  func.func @transform_0(%arg0: i32) -> (i32, i32, i32) {
    %c0_i32 = arith.constant 0 : i32
    %c0_i32_0 = arith.constant 0 : i32
    %c0_i32_1 = arith.constant 0 : i32
    return %arg0, %c0_i32, %c0_i32_0 : i32, i32, i32
  }
  func.func @transform_1(%arg0: i32) -> (i32, i32) {
    %c0_i32 = arith.constant 0 : i32
    %c0_i32_0 = arith.constant 0 : i32
    %c0_i32_1 = arith.constant 0 : i32
    return %c0_i32, %c0_i32_0 : i32, i32
  }
  func.func @transform_2(%arg0: i32) -> (i32, i32) {
    %c0_i32 = arith.constant 0 : i32
    %c0_i32_0 = arith.constant 0 : i32
    %c0_i32_1 = arith.constant 0 : i32
    return %c0_i32, %c0_i32_0 : i32, i32
  }
  func.func @transform_3(%arg0: i32) -> (i32, i32, i32) {
    %c0_i32 = arith.constant 0 : i32
    %c0_i32_0 = arith.constant 0 : i32
    %c0_i32_1 = arith.constant 0 : i32
    return %arg0, %c0_i32, %c0_i32_0 : i32, i32, i32
  }
}

module attributes {stable_mosaic.version = 11 : i64} {
  func.func @_conv_relu_pool_kernel(%arg0: i32, %arg1: memref<1x960x1536xbf16, #tpu.memory_space<vmem>>, %arg2: memref<32x960xbf16, #tpu.memory_space<vmem>>, %arg3: memref<32x1xf32, #tpu.memory_space<vmem>>, %arg4: memref<1x32x768xf32, #tpu.memory_space<vmem>>) attributes {dimension_semantics = [#tpu.dimension_semantics<parallel>], iteration_bounds = array<i64: 2>, scalar_prefetch = 0 : i64, scratch_operands = 0 : i64, tpu.core_type = #tpu.core_type<tc>, window_params = [{transform_indices = @transform_0, window_bounds = array<i64: 1, 960, 1536>}, {pipeline_mode = #tpu.pipeline_mode<synchronous>, transform_indices = @transform_1, window_bounds = array<i64: 32, 960>}, {pipeline_mode = #tpu.pipeline_mode<synchronous>, transform_indices = @transform_2, window_bounds = array<i64: 32, 1>}, {transform_indices = @transform_3, window_bounds = array<i64: 1, 32, 768>}]} {
    %c0 = arith.constant 0 : index
    %c0_0 = arith.constant 0 : index
    %0 = vector.load %arg2[%c0, %c0_0] : memref<32x960xbf16, #tpu.memory_space<vmem>>, vector<32x960xbf16>
    %c0_1 = arith.constant 0 : index
    %c0_2 = arith.constant 0 : index
    %c0_3 = arith.constant 0 : index
    %1 = vector.load %arg1[%c0_1, %c0_2, %c0_3] : memref<1x960x1536xbf16, #tpu.memory_space<vmem>>, vector<1x960x1536xbf16>
    %2 = vector.shape_cast %1 : vector<1x960x1536xbf16> to vector<960x1536xbf16>
    %cst = arith.constant dense<0.000000e+00> : vector<32x1536xf32>
    %3 = tpu.matmul %0, %2, %cst {dimension_numbers = #tpu.dot_dimension_numbers<[1], [0], [0], [1], [0, 0, 1, 1], [], []>} : vector<32x960xbf16>, vector<960x1536xbf16>, vector<32x1536xf32> -> vector<32x1536xf32>
    %c0_4 = arith.constant 0 : index
    %c0_5 = arith.constant 0 : index
    %4 = vector.load %arg3[%c0_4, %c0_5] : memref<32x1xf32, #tpu.memory_space<vmem>>, vector<32x1xf32>
    %5 = vector.broadcast %4 : vector<32x1xf32> to vector<32x1536xf32>
    %6 = arith.addf %3, %5 : vector<32x1536xf32>
    %7 = vector.extract_strided_slice %6 {offsets = [0, 0], sizes = [32, 768], strides = [1, 1]} : vector<32x1536xf32> to vector<32x768xf32>
    %8 = vector.extract_strided_slice %6 {offsets = [0, 768], sizes = [32, 768], strides = [1, 1]} : vector<32x1536xf32> to vector<32x768xf32>
    %9 = arith.maximumf %7, %8 : vector<32x768xf32>
    %cst_6 = arith.constant 0.000000e+00 : f32
    %10 = vector.broadcast %cst_6 : f32 to vector<32x768xf32>
    %11 = arith.maximumf %9, %10 : vector<32x768xf32>
    %c0_7 = arith.constant 0 : index
    %c0_8 = arith.constant 0 : index
    %c0_9 = arith.constant 0 : index
    %12 = vector.load %arg4[%c0_7, %c0_8, %c0_9] : memref<1x32x768xf32, #tpu.memory_space<vmem>>, vector<1x32x768xf32>
    %13 = vector.shape_cast %12 : vector<1x32x768xf32> to vector<32x768xf32>
    %14 = vector.shape_cast %11 : vector<32x768xf32> to vector<1x32x768xf32>
    tpu.vector_store %arg4[%c0_7, %c0_8, %c0_9], %14 {strides = array<i32>} : memref<1x32x768xf32, #tpu.memory_space<vmem>>, vector<1x32x768xf32>,
    return
  }
  func.func @transform_0(%arg0: i32) -> (i32, i32, i32) {
    %c0_i32 = arith.constant 0 : i32
    %c0_i32_0 = arith.constant 0 : i32
    %c0_i32_1 = arith.constant 0 : i32
    return %arg0, %c0_i32, %c0_i32_0 : i32, i32, i32
  }
  func.func @transform_1(%arg0: i32) -> (i32, i32) {
    %c0_i32 = arith.constant 0 : i32
    %c0_i32_0 = arith.constant 0 : i32
    %c0_i32_1 = arith.constant 0 : i32
    return %c0_i32, %c0_i32_0 : i32, i32
  }
  func.func @transform_2(%arg0: i32) -> (i32, i32) {
    %c0_i32 = arith.constant 0 : i32
    %c0_i32_0 = arith.constant 0 : i32
    %c0_i32_1 = arith.constant 0 : i32
    return %c0_i32, %c0_i32_0 : i32, i32
  }
  func.func @transform_3(%arg0: i32) -> (i32, i32, i32) {
    %c0_i32 = arith.constant 0 : i32
    %c0_i32_0 = arith.constant 0 : i32
    %c0_i32_1 = arith.constant 0 : i32
    return %arg0, %c0_i32, %c0_i32_0 : i32, i32, i32
  }
}

module attributes {stable_mosaic.version = 11 : i64} {
  func.func @_linear_kernel(%arg0: i32, %arg1: memref<2x23104xf32, #tpu.memory_space<vmem>>, %arg2: memref<2x23104xf32, #tpu.memory_space<vmem>>, %arg3: memref<1x2xf32, #tpu.memory_space<vmem>>, %arg4: memref<2x2xf32, #tpu.memory_space<vmem>>) attributes {dimension_semantics = [#tpu.dimension_semantics<arbitrary>], iteration_bounds = array<i64: 1>, scalar_prefetch = 0 : i64, scratch_operands = 0 : i64, tpu.core_type = #tpu.core_type<tc>, window_params = [{pipeline_mode = #tpu.pipeline_mode<synchronous>, transform_indices = @transform_0, window_bounds = array<i64: 2, 23104>}, {pipeline_mode = #tpu.pipeline_mode<synchronous>, transform_indices = @transform_1, window_bounds = array<i64: 2, 23104>}, {pipeline_mode = #tpu.pipeline_mode<synchronous>, transform_indices = @transform_2, window_bounds = array<i64: 1, 2>}, {pipeline_mode = #tpu.pipeline_mode<synchronous>, transform_indices = @transform_3, window_bounds = array<i64: 2, 2>}]} {
    %c0 = arith.constant 0 : index
    %c0_0 = arith.constant 0 : index
    %0 = vector.load %arg1[%c0, %c0_0] : memref<2x23104xf32, #tpu.memory_space<vmem>>, vector<2x23104xf32>
    %1 = tpu.iota {dimensions = array<i32: 1>} : vector<2x2xi32>
    %cst = arith.constant 0.000000e+00 : f32
    %2 = vector.broadcast %cst : f32 to vector<2x2xf32>
    %c0_1 = arith.constant 0 : index
    %c0_2 = arith.constant 0 : index
    %3 = vector.load %arg2[%c0_1, %c0_2] : memref<2x23104xf32, #tpu.memory_space<vmem>>, vector<1x23104xf32>
    %4 = vector.broadcast %3 : vector<1x23104xf32> to vector<2x23104xf32>
    %5 = arith.mulf %0, %4 : vector<2x23104xf32>
    %cst_3 = arith.constant dense<0.000000e+00> : vector<2xf32>
    %6 = vector.multi_reduction <add>, %5, %cst_3 [1] : vector<2x23104xf32> to vector<2xf32>
    %7 = vector.shape_cast %6 : vector<2xf32> to vector<2x1xf32>
    %c0_i32 = arith.constant 0 : i32
    %8 = vector.broadcast %c0_i32 : i32 to vector<2x2xi32>
    %9 = arith.cmpi eq, %1, %8 : vector<2x2xi32>
    %cst_4 = arith.constant 0.000000e+00 : f32
    %10 = vector.shape_cast %7 : vector<2x1xf32> to vector<2x1xf32>
    %11 = vector.broadcast %10 : vector<2x1xf32> to vector<2x2xf32>
    %12 = vector.broadcast %cst_4 : f32 to vector<2x2xf32>
    %13 = arith.select %9, %11, %12 : vector<2x2xi1>, vector<2x2xf32>
    %14 = arith.addf %2, %13 : vector<2x2xf32>
    %c1 = arith.constant 1 : index
    %c0_5 = arith.constant 0 : index
    %15 = vector.load %arg2[%c1, %c0_5] : memref<2x23104xf32, #tpu.memory_space<vmem>>, vector<1x23104xf32>
    %16 = vector.broadcast %15 : vector<1x23104xf32> to vector<2x23104xf32>
    %17 = arith.mulf %0, %16 : vector<2x23104xf32>
    %cst_6 = arith.constant dense<0.000000e+00> : vector<2xf32>
    %18 = vector.multi_reduction <add>, %17, %cst_6 [1] : vector<2x23104xf32> to vector<2xf32>
    %19 = vector.shape_cast %18 : vector<2xf32> to vector<2x1xf32>
    %c1_i32 = arith.constant 1 : i32
    %20 = vector.broadcast %c1_i32 : i32 to vector<2x2xi32>
    %21 = arith.cmpi eq, %1, %20 : vector<2x2xi32>
    %cst_7 = arith.constant 0.000000e+00 : f32
    %22 = vector.shape_cast %19 : vector<2x1xf32> to vector<2x1xf32>
    %23 = vector.broadcast %22 : vector<2x1xf32> to vector<2x2xf32>
    %24 = vector.broadcast %cst_7 : f32 to vector<2x2xf32>
    %25 = arith.select %21, %23, %24 : vector<2x2xi1>, vector<2x2xf32>
    %26 = arith.addf %14, %25 : vector<2x2xf32>
    %c0_8 = arith.constant 0 : index
    %c0_9 = arith.constant 0 : index
    %27 = vector.load %arg3[%c0_8, %c0_9] : memref<1x2xf32, #tpu.memory_space<vmem>>, vector<1x2xf32>
    %28 = vector.broadcast %27 : vector<1x2xf32> to vector<2x2xf32>
    %29 = arith.addf %26, %28 : vector<2x2xf32>
    %c0_10 = arith.constant 0 : index
    %c0_11 = arith.constant 0 : index
    %30 = vector.load %arg4[%c0_10, %c0_11] : memref<2x2xf32, #tpu.memory_space<vmem>>, vector<2x2xf32>
    tpu.vector_store %arg4[%c0_10, %c0_11], %29 {strides = array<i32>} : memref<2x2xf32, #tpu.memory_space<vmem>>, vector<2x2xf32>,
    return
  }
  func.func @transform_0(%arg0: i32) -> (i32, i32) {
    %c0_i32 = arith.constant 0 : i32
    %c0_i32_0 = arith.constant 0 : i32
    %c0_i32_1 = arith.constant 0 : i32
    return %c0_i32, %c0_i32_0 : i32, i32
  }
  func.func @transform_1(%arg0: i32) -> (i32, i32) {
    %c0_i32 = arith.constant 0 : i32
    %c0_i32_0 = arith.constant 0 : i32
    %c0_i32_1 = arith.constant 0 : i32
    return %c0_i32, %c0_i32_0 : i32, i32
  }
  func.func @transform_2(%arg0: i32) -> (i32, i32) {
    %c0_i32 = arith.constant 0 : i32
    %c0_i32_0 = arith.constant 0 : i32
    %c0_i32_1 = arith.constant 0 : i32
    return %c0_i32, %c0_i32_0 : i32, i32
  }
  func.func @transform_3(%arg0: i32) -> (i32, i32) {
    %c0_i32 = arith.constant 0 : i32
    %c0_i32_0 = arith.constant 0 : i32
    %c0_i32_1 = arith.constant 0 : i32
    return %c0_i32, %c0_i32_0 : i32, i32
  }
}

</mosaic_0001>

<bundles_post_ra>
// kernel: cnn_forward.3
= control target key start
LH: loop header
LB: loop body
LE: loop exit
PB: predicated region body
PF: predicated region fallthrough
CT: control target
= control target key end

     0   :  { %s1635_s12 = smov 0   ;;  %s1952_s0 = inlined_call_operand.vmem [shape: bf16[2,60,3072], index: 0, kind: input, shape index: {}]   ;;  %s1953_s1 = inlined_call_operand.vmem [shape: bf16[16,60], index: 1, kind: input, shape index: {}]   ;;  %s1954_s2 = inlined_call_operand.vmem [shape: f32[16,1], index: 2, kind: input, shape index: {}]   ;;  %s1955_s3 = inlined_call_operand.vmem [shape: f32[2,16,1536], index: 3, kind: output, shape index: {}]  }
   0x1 LB: > { %s1463_s13 = sadd.s32 4294967295, %s1612_s12   ;;  %p1467_p0 = scmp.ge.s32.totalorder %s1612_s12, 1  ;;  %s1612_s12 = sphi %s1635_s12, %s13_s12  }
   0x2   : > { %p137_p1 = scmp.lt.s32.totalorder %s1612_s12, 3 }
   0x4   : > { %p138_p2 = pnand %p1467_p0, %p137_p1 }
   0x5   : > { %p161_p3 = scmp.lt.s32.totalorder (!%p138_p2), %s1463_s13, 1 }
   0x6   : > { %141 = sbr.rel (%p138_p2) target bundleno = 321 (0x141), region = 32 }
   0xb   : > { %v1614_v0 = vmov 0   ;;  %v270_v1 = vld [vmem:[%s1954_s2] sm:$0xff]  ;;  %s1957_s13 = smov (!%p161_p3, %s1463_s13), 1  ;;  %v271_v2 = vld [vmem:[%s1954_s2 + $0x8] sm:$0xff]  ;;  %vm747_vm0 = vcmask 1045504   ;;  %vm743_vm1 = vcmask 490496  }
   0xc   : > { %852 = vmatprep.mubr.bf16.mxu0 %v1614_v0  ;;  %895 = vmatprep.mubr.bf16.mxu1 %v1614_v0  ;;  %s1593_s16 = smul.u32 768, %s1957_s13  ;;  %v1689_v47 = vld [vmem:[%s1953_s1] sm:$0xff]  }
   0xd   : > { %1604 = vset.pattern.permute.xlu0 %v1614_v0  ;;  %s1594_s24 = smul.u32 192, %s1957_s13 }
   0xe   : > { %274 = vperm.xlu0 %1604, %v270_v1   ;;  %s1658_s21 = scalar_lea.vmem %s1952_s0, %s1593_s16 }
   0xf   : > { %v246_v3 = vld [vmem:[%s1658_s21 + $0x240] sm:$0xff]  ;;  %v247_v5 = vld [vmem:[%s1658_s21 + $0x248] sm:$0xff]  ;;  %v248_v35 = vld [vmem:[%s1658_s21 + $0x250] sm:$0xff]  ;;  %s1866_s27 = scalar_lea.vmem %s1955_s3, %s1594_s24 }
  0x10   : > { %v258_v4 = vld [vmem:[%s1658_s21 + $0x2a0] sm:$0x33]  ;;  %v259_v7 = vld [vmem:[%s1658_s21 + $0x2a8] sm:$0x33]  ;;  %v260_v36 = vld [vmem:[%s1658_s21 + $0x2b0] sm:$0x33] }
  0x11   : > { %v1544_v6 = vcombine.high %v246_v3, %v258_v4  ;;  %v1543_v8 = vcombine.low %v246_v3, %v258_v4  ;;  %v222_v9 = vld [vmem:[%s1658_s21 + $0x180] sm:$0xff]  ;;  %v1546_v11 = vcombine.high %v247_v5, %v259_v7  ;;  %v1545_v12 = vcombine.low %v247_v5, %v259_v7  ;;  %v223_v14 = vld [vmem:[%s1658_s21 + $0x188] sm:$0xff]  ;;  %v249_v37 = vld [vmem:[%s1658_s21 + $0x258] sm:$0xff] }
  0x12   : > { %279 = vperm.xlu0 %1604, %v271_v2   ;;  %v234_v10 = vld [vmem:[%s1658_s21 + $0x1e0] sm:$0xff]  ;;  %v235_v15 = vld [vmem:[%s1658_s21 + $0x1e8] sm:$0xff]  ;;  %v261_v38 = vld [vmem:[%s1658_s21 + $0x2b8] sm:$0x33]  ;;  %v1548_v41 = vcombine.high %v248_v35, %v260_v36  ;;  %v1547_v42 = vcombine.low %v248_v35, %v260_v36 }
  0x13   : > { %v1520_v13 = vcombine.high %v222_v9, %v234_v10  ;;  %v198_v16 = vld [vmem:[%s1658_s21 + $0xc0] sm:$0xff]  ;;  %1567 = vmatprep.subr.msk.bf16.mxu0 %vm747_vm0, %v1544_v6  ;;  %v749_v17 = vsel %vm747_vm0, %v1543_v8, 0  ;;  %v1522_v18 = vcombine.high %v223_v14, %v235_v15  ;;  %v199_v20 = vld [vmem:[%s1658_s21 + $0xc8] sm:$0xff]  ;;  %1569 = vmatprep.subr.msk.bf16.mxu1 %vm747_vm0, %v1546_v11  ;;  %v755_v22 = vsel %vm747_vm0, %v1545_v12, 0  ;;  %v224_v45 = vld [vmem:[%s1658_s21 + $0x190] sm:$0xff] }
  0x14   : > { %v210_v19 = vld [vmem:[%s1658_s21 + $0x120] sm:$0xff]  ;;  %v211_v21 = vld [vmem:[%s1658_s21 + $0x128] sm:$0xff]  ;;  %829 = vmatpush1.bf16.msra.mxu0 %v749_v17  ;;  %v1519_v23 = vcombine.low %v222_v9, %v234_v10  ;;  %872 = vmatpush1.bf16.msra.mxu1 %v755_v22  ;;  %v1521_v24 = vcombine.low %v223_v14, %v235_v15  ;;  %v1550_v43 = vcombine.high %v249_v37, %v261_v38  ;;  %v236_v46 = vld [vmem:[%s1658_s21 + $0x1f0] sm:$0xff]  ;;  %v761_v50 = vsel %vm747_vm0, %v1547_v42, 0 }
  0x15   : > { %830 = vmatprep.subr.bf16.mxu0 %v1520_v13  ;;  %v1496_v25 = vcombine.high %v198_v16, %v210_v19  ;;  %873 = vmatprep.subr.bf16.mxu1 %v1522_v18  ;;  %v1498_v26 = vcombine.high %v199_v20, %v211_v21  ;;  %v174_v27 = vld [vmem:[%s1658_s21] sm:$0xff]  ;;  %v175_v29 = vld [vmem:[%s1658_s21 + $0x8] sm:$0xff]  ;;  %v1495_v31 = vcombine.low %v198_v16, %v210_v19  ;;  %v225_v48 = vld [vmem:[%s1658_s21 + $0x198] sm:$0xff] }
  0x16   : > { %v186_v28 = vld [vmem:[%s1658_s21 + $0x60] sm:$0xff]  ;;  %v187_v30 = vld [vmem:[%s1658_s21 + $0x68] sm:$0xff]  ;;  %v1497_v32 = vcombine.low %v199_v20, %v211_v21  ;;  %v1549_v44 = vcombine.low %v249_v37, %v261_v38  ;;  %v237_v49 = vld [vmem:[%s1658_s21 + $0x1f8] sm:$0xff]  ;;  %v1524_v51 = vcombine.high %v224_v45, %v236_v46  ;;  %v1523_v58 = vcombine.low %v224_v45, %v236_v46 }
  0x17   : > { %v1472_v33 = vcombine.high %v174_v27, %v186_v28  ;;  %v1474_v34 = vcombine.high %v175_v29, %v187_v30  ;;  %v1471_v39 = vcombine.low %v174_v27, %v186_v28  ;;  %v1473_v40 = vcombine.low %v175_v29, %v187_v30  ;;  %v200_v54 = vld [vmem:[%s1658_s21 + $0xd0] sm:$0xff]  ;;  %v201_v56 = vld [vmem:[%s1658_s21 + $0xd8] sm:$0xff]  ;;  %v250_v7 = vld [vmem:[%s1658_s21 + $0x260] sm:$0xff] }
  0x18   : > { %831 = vmatpush1.bf16.msra.mxu0 %v1519_v23  ;;  %874 = vmatpush1.bf16.msra.mxu1 %v1521_v24  ;;  %v767_v52 = vsel %vm747_vm0, %v1549_v44, 0  ;;  %v1526_v53 = vcombine.high %v225_v48, %v237_v49  ;;  %v212_v55 = vld [vmem:[%s1658_s21 + $0x130] sm:$0xff]  ;;  %v213_v57 = vld [vmem:[%s1658_s21 + $0x138] sm:$0xff]  ;;  %v1525_v59 = vcombine.low %v225_v48, %v237_v49  ;;  %v262_v8 = vld [vmem:[%s1658_s21 + $0x2c0] sm:$0x33] }
  0x19   : > { %832 = vmatprep.subr.bf16.mxu0 %v1496_v25  ;;  %875 = vmatprep.subr.bf16.mxu1 %v1498_v26  ;;  %v1500_v60 = vcombine.high %v200_v54, %v212_v55  ;;  %v1502_v61 = vcombine.high %v201_v56, %v213_v57  ;;  %v176_v62 = vld [vmem:[%s1658_s21 + $0x10] sm:$0xff]  ;;  %v177_v1 = vld [vmem:[%s1658_s21 + $0x18] sm:$0xff]  ;;  %v1499_v3 = vcombine.low %v200_v54, %v212_v55  ;;  %v251_v9 = vld [vmem:[%s1658_s21 + $0x268] sm:$0xff] }
  0x1a   : > { %v188_v63 = vld [vmem:[%s1658_s21 + $0x70] sm:$0xff]  ;;  %v189_v2 = vld [vmem:[%s1658_s21 + $0x78] sm:$0xff]  ;;  %v1501_v4 = vcombine.low %v201_v56, %v213_v57  ;;  %v263_v10 = vld [vmem:[%s1658_s21 + $0x2c8] sm:$0x33]  ;;  %v1552_v13 = vcombine.high %v250_v7, %v262_v8  ;;  %v1551_v14 = vcombine.low %v250_v7, %v262_v8 }
  0x1b   : > { %v1476_v5 = vcombine.high %v176_v62, %v188_v63  ;;  %v1478_v6 = vcombine.high %v177_v1, %v189_v2  ;;  %v1475_v11 = vcombine.low %v176_v62, %v188_v63  ;;  %v1477_v12 = vcombine.low %v177_v1, %v189_v2  ;;  %v226_v17 = vld [vmem:[%s1658_s21 + $0x1a0] sm:$0xff]  ;;  %v227_v19 = vld [vmem:[%s1658_s21 + $0x1a8] sm:$0xff]  ;;  %v264_v42 = vld [vmem:[%s1658_s21 + $0x2d0] sm:$0x33] }
  0x1c   : > { %833 = vmatpush1.bf16.msra.mxu0 %v1495_v31  ;;  %876 = vmatpush1.bf16.msra.mxu1 %v1497_v32  ;;  %v1554_v15 = vcombine.high %v251_v9, %v263_v10  ;;  %v1553_v16 = vcombine.low %v251_v9, %v263_v10  ;;  %v238_v18 = vld [vmem:[%s1658_s21 + $0x200] sm:$0xff]  ;;  %v239_v20 = vld [vmem:[%s1658_s21 + $0x208] sm:$0xff]  ;;  %v773_v21 = vsel %vm747_vm0, %v1551_v14, 0  ;;  %v265_v44 = vld [vmem:[%s1658_s21 + $0x2d8] sm:$0x33] }
  0x1d   : > { %834 = vmatprep.subr.bf16.mxu0 %v1472_v33  ;;  %877 = vmatprep.subr.bf16.mxu1 %v1474_v34  ;;  %v1528_v22 = vcombine.high %v226_v17, %v238_v18  ;;  %v1530_v24 = vcombine.high %v227_v19, %v239_v20  ;;  %v202_v25 = vld [vmem:[%s1658_s21 + $0xe0] sm:$0xff]  ;;  %v203_v27 = vld [vmem:[%s1658_s21 + $0xe8] sm:$0xff]  ;;  %v1527_v29 = vcombine.low %v226_v17, %v238_v18  ;;  %v229_v54 = vld [vmem:[%s1658_s21 + $0x1b8] sm:$0xff] }
  0x1e   : > { %v779_v23 = vsel %vm747_vm0, %v1553_v16, 0  ;;  %v214_v26 = vld [vmem:[%s1658_s21 + $0x140] sm:$0xff]  ;;  %v215_v28 = vld [vmem:[%s1658_s21 + $0x148] sm:$0xff]  ;;  %v1529_v30 = vcombine.low %v227_v19, %v239_v20  ;;  %v241_v55 = vld [vmem:[%s1658_s21 + $0x218] sm:$0xff] }
  0x1f   : > { %v1504_v31 = vcombine.high %v202_v25, %v214_v26  ;;  %v1506_v32 = vcombine.high %v203_v27, %v215_v28  ;;  %v178_v33 = vld [vmem:[%s1658_s21 + $0x20] sm:$0xff]  ;;  %v179_v35 = vld [vmem:[%s1658_s21 + $0x28] sm:$0xff]  ;;  %v1503_v37 = vcombine.low %v202_v25, %v214_v26  ;;  %v1505_v38 = vcombine.low %v203_v27, %v215_v28  ;;  %v205_v62 = vld [vmem:[%s1658_s21 + $0xf8] sm:$0xff] }
  0x20   : > { %835 = vmatpush1.bf16.msra.mxu0 %v1471_v39  ;;  %878 = vmatpush1.bf16.msra.mxu1 %v1473_v40  ;;  %v190_v34 = vld [vmem:[%s1658_s21 + $0x80] sm:$0xff]  ;;  %v191_v36 = vld [vmem:[%s1658_s21 + $0x88] sm:$0xff]  ;;  %v217_v63 = vld [vmem:[%s1658_s21 + $0x158] sm:$0xff]  ;;  %v1533_v2 = vcombine.low %v229_v54, %v241_v55 }
  0x21   : > { %1571 = vmatprep.subr.msk.bf16.mxu0 %vm747_vm0, %v1548_v41  ;;  %1573 = vmatprep.subr.msk.bf16.mxu1 %vm747_vm0, %v1550_v43  ;;  %v1480_v39 = vcombine.high %v178_v33, %v190_v34  ;;  %v1482_v40 = vcombine.high %v179_v35, %v191_v36  ;;  %v252_v41 = vld [vmem:[%s1658_s21 + $0x270] sm:$0xff]  ;;  %v253_v43 = vld [vmem:[%s1658_s21 + $0x278] sm:$0xff]  ;;  %v1479_v45 = vcombine.low %v178_v33, %v190_v34  ;;  %v266_v14 = vld [vmem:[%s1658_s21 + $0x2e0] sm:$0x33] }
  0x22   : > { %v1481_v46 = vcombine.low %v179_v35, %v191_v36  ;;  %v1556_v48 = vcombine.high %v252_v41, %v264_v42  ;;  %v1555_v49 = vcombine.low %v252_v41, %v264_v42  ;;  %v181_v7 = vld [vmem:[%s1658_s21 + $0x38] sm:$0xff]  ;;  %v1509_v10 = vcombine.low %v205_v62, %v217_v63  ;;  %v267_v16 = vld [vmem:[%s1658_s21 + $0x2e8] sm:$0x33] }
  0x23   : > { %1568 = vmatmul.mubr.msk.bf16.vlgmr.msra.gmra.mxu0 %vm743_vm1, %v1689_v47  ;;  %1570 = vmatmul.mubr.msk.bf16.vlgmr.msra.gmra.mxu1 %vm743_vm1, %v1689_v47  ;;  %v193_v8 = vld [vmem:[%s1658_s21 + $0x98] sm:$0xff]  ;;  %v231_v25 = vld [vmem:[%s1658_s21 + $0x1c8] sm:$0xff] }
  0x24   : > { %915 = vmatpush1.bf16.msra.mxu0 %v761_v50  ;;  %958 = vmatpush1.bf16.msra.mxu1 %v767_v52  ;;  %v1558_v50 = vcombine.high %v253_v43, %v265_v44  ;;  %v228_v52 = vld [vmem:[%s1658_s21 + $0x1b0] sm:$0xff]  ;;  %v785_v56 = vsel %vm747_vm0, %v1555_v49, 0  ;;  %v1485_v18 = vcombine.low %v181_v7, %v193_v8  ;;  %v243_v26 = vld [vmem:[%s1658_s21 + $0x228] sm:$0xff] }
  0x25   : > { %916 = vmatprep.subr.bf16.mxu0 %v1524_v51  ;;  %959 = vmatprep.subr.bf16.mxu1 %v1526_v53  ;;  %v1557_v51 = vcombine.low %v253_v43, %v265_v44  ;;  %v240_v53 = vld [vmem:[%s1658_s21 + $0x210] sm:$0xff]  ;;  %v207_v33 = vld [vmem:[%s1658_s21 + $0x108] sm:$0xff]  ;;  %v1537_v36 = vcombine.low %v231_v25, %v243_v26 }
  0x26   : > { %938 = vmatprep.mubr.bf16.mxu0 %v1614_v0  ;;  %981 = vmatprep.mubr.bf16.mxu1 %v1614_v0  ;;  %v1532_v57 = vcombine.high %v228_v52, %v240_v53  ;;  %v1531_v1 = vcombine.low %v228_v52, %v240_v53  ;;  %v219_v34 = vld [vmem:[%s1658_s21 + $0x168] sm:$0xff]  ;;  %v268_v49 = vld [vmem:[%s1658_s21 + $0x2f0] sm:$0x33] }
  0x27   : > { %v183_v41 = vld [vmem:[%s1658_s21 + $0x48] sm:$0xff]  ;;  %v1513_v44 = vcombine.low %v207_v33, %v219_v34 }
  0x28   : > { %917 = vmatpush1.bf16.msra.mxu0 %v1523_v58  ;;  %960 = vmatpush1.bf16.msra.mxu1 %v1525_v59  ;;  %v791_v58 = vsel %vm747_vm0, %v1557_v51, 0  ;;  %v1534_v59 = vcombine.high %v229_v54, %v241_v55  ;;  %v195_v42 = vld [vmem:[%s1658_s21 + $0xa8] sm:$0xff]  ;;  %v269_v51 = vld [vmem:[%s1658_s21 + $0x2f8] sm:$0x33] }
  0x29   : > { %918 = vmatprep.subr.bf16.mxu0 %v1500_v60  ;;  %961 = vmatprep.subr.bf16.mxu1 %v1502_v61  ;;  %v204_v60 = vld [vmem:[%s1658_s21 + $0xf0] sm:$0xff]  ;;  %v1489_v53 = vcombine.low %v183_v41, %v195_v42 }
  0x2a   : > { %v216_v61 = vld [vmem:[%s1658_s21 + $0x150] sm:$0xff] }
  0x2b   : > { %v1507_v9 = vcombine.low %v204_v60, %v216_v61 }
  0x2c   : > { %919 = vmatpush1.bf16.msra.mxu0 %v1499_v3  ;;  %962 = vmatpush1.bf16.msra.mxu1 %v1501_v4  ;;  %v1508_v3 = vcombine.high %v204_v60, %v216_v61  ;;  %v1510_v4 = vcombine.high %v205_v62, %v217_v63  ;;  %v233_v60 = vld [vmem:[%s1658_s21 + $0x1d8] sm:$0xff] }
  0x2d   : > { %920 = vmatprep.subr.bf16.mxu0 %v1476_v5  ;;  %963 = vmatprep.subr.bf16.mxu1 %v1478_v6  ;;  %v180_v5 = vld [vmem:[%s1658_s21 + $0x30] sm:$0xff]  ;;  %v245_v61 = vld [vmem:[%s1658_s21 + $0x238] sm:$0xff] }
  0x2e   : > { %v192_v6 = vld [vmem:[%s1658_s21 + $0x90] sm:$0xff] }
  0x2f   : > { %v1483_v17 = vcombine.low %v180_v5, %v192_v6 }
  0x30   : > { %921 = vmatpush1.bf16.msra.mxu0 %v1475_v11  ;;  %964 = vmatpush1.bf16.msra.mxu1 %v1477_v12  ;;  %v1484_v11 = vcombine.high %v180_v5, %v192_v6  ;;  %v1486_v12 = vcombine.high %v181_v7, %v193_v8  ;;  %v209_v5 = vld [vmem:[%s1658_s21 + $0x118] sm:$0xff]  ;;  %v1541_v8 = vcombine.low %v233_v60, %v245_v61 }
  0x31   : > { %1575 = vmatprep.subr.msk.bf16.mxu0 %vm747_vm0, %v1552_v13  ;;  %1577 = vmatprep.subr.msk.bf16.mxu1 %vm747_vm0, %v1554_v15  ;;  %v254_v13 = vld [vmem:[%s1658_s21 + $0x280] sm:$0xff]  ;;  %v255_v15 = vld [vmem:[%s1658_s21 + $0x288] sm:$0xff]  ;;  %v221_v6 = vld [vmem:[%s1658_s21 + $0x178] sm:$0xff] }
  0x32   : > { %v1560_v19 = vcombine.high %v254_v13, %v266_v14  ;;  %v1559_v20 = vcombine.low %v254_v13, %v266_v14  ;;  %v185_v13 = vld [vmem:[%s1658_s21 + $0x58] sm:$0xff] }
  0x33   : > { %1572 = vmatmul.mubr.msk.bf16.vlgmr.msra.gmra.mxu0 %vm743_vm1, %v1689_v47  ;;  %1574 = vmatmul.mubr.msk.bf16.vlgmr.msra.gmra.mxu1 %vm743_vm1, %v1689_v47  ;;  %v197_v14 = vld [vmem:[%s1658_s21 + $0xb8] sm:$0xff] }
  0x34   : > { %1001 = vmatpush1.bf16.msra.mxu0 %v773_v21  ;;  %1044 = vmatpush1.bf16.msra.mxu1 %v779_v23  ;;  %v1562_v21 = vcombine.high %v255_v15, %v267_v16  ;;  %v230_v23 = vld [vmem:[%s1658_s21 + $0x1c0] sm:$0xff]  ;;  %v797_v27 = vsel %vm747_vm0, %v1559_v20, 0  ;;  %v1493_v20 = vcombine.low %v185_v13, %v197_v14 }
  0x35   : > { %1002 = vmatprep.subr.bf16.mxu0 %v1528_v22  ;;  %1045 = vmatprep.subr.bf16.mxu1 %v1530_v24  ;;  %v1561_v22 = vcombine.low %v255_v15, %v267_v16  ;;  %v242_v24 = vld [vmem:[%s1658_s21 + $0x220] sm:$0xff]  ;;  %v1517_v16 = vcombine.low %v209_v5, %v221_v6 }
  0x36   : > { %1024 = vmatprep.mubr.bf16.mxu0 %v1614_v0  ;;  %1067 = vmatprep.mubr.bf16.mxu1 %v1614_v0  ;;  %v1536_v28 = vcombine.high %v230_v23, %v242_v24  ;;  %v1535_v35 = vcombine.low %v230_v23, %v242_v24 }
  0x38   : > { %1003 = vmatpush1.bf16.msra.mxu0 %v1527_v29  ;;  %1046 = vmatpush1.bf16.msra.mxu1 %v1529_v30  ;;  %v803_v29 = vsel %vm747_vm0, %v1561_v22, 0  ;;  %v1538_v30 = vcombine.high %v231_v25, %v243_v26 }
  0x39   : > { %1004 = vmatprep.subr.bf16.mxu0 %v1504_v31  ;;  %1047 = vmatprep.subr.bf16.mxu1 %v1506_v32  ;;  %v206_v31 = vld [vmem:[%s1658_s21 + $0x100] sm:$0xff] }
  0x3a   : > { %v218_v32 = vld [vmem:[%s1658_s21 + $0x160] sm:$0xff] }
  0x3b   : > { %v1511_v43 = vcombine.low %v206_v31, %v218_v32 }
  0x3c   : > { %1005 = vmatpush1.bf16.msra.mxu0 %v1503_v37  ;;  %1048 = vmatpush1.bf16.msra.mxu1 %v1505_v38  ;;  %v1512_v37 = vcombine.high %v206_v31, %v218_v32  ;;  %v1514_v38 = vcombine.high %v207_v33, %v219_v34 }
  0x3d   : > { %1006 = vmatprep.subr.bf16.mxu0 %v1480_v39  ;;  %1049 = vmatprep.subr.bf16.mxu1 %v1482_v40  ;;  %v182_v39 = vld [vmem:[%s1658_s21 + $0x40] sm:$0xff] }
  0x3e   : > { %v194_v40 = vld [vmem:[%s1658_s21 + $0xa0] sm:$0xff] }
  0x3f   : > { %v1487_v52 = vcombine.low %v182_v39, %v194_v40 }
  0x40   : > { %1007 = vmatpush1.bf16.msra.mxu0 %v1479_v45  ;;  %1050 = vmatpush1.bf16.msra.mxu1 %v1481_v46  ;;  %v1488_v45 = vcombine.high %v182_v39, %v194_v40  ;;  %v1490_v46 = vcombine.high %v183_v41, %v195_v42 }
  0x41   : > { %1579 = vmatprep.subr.msk.bf16.mxu0 %vm747_vm0, %v1556_v48  ;;  %1581 = vmatprep.subr.msk.bf16.mxu1 %vm747_vm0, %v1558_v50  ;;  %v256_v48 = vld [vmem:[%s1658_s21 + $0x290] sm:$0xff]  ;;  %v257_v50 = vld [vmem:[%s1658_s21 + $0x298] sm:$0xff] }
  0x42   : > { %v1564_v54 = vcombine.high %v256_v48, %v268_v49  ;;  %v1563_v55 = vcombine.low %v256_v48, %v268_v49 }
  0x43   : > { %1576 = vmatmul.mubr.msk.bf16.vlgmr.msra.gmra.mxu0 %vm743_vm1, %v1689_v47  ;;  %1578 = vmatmul.mubr.msk.bf16.vlgmr.msra.gmra.mxu1 %vm743_vm1, %v1689_v47 }
  0x44   : > { %1087 = vmatpush1.bf16.msra.mxu0 %v785_v56  ;;  %1130 = vmatpush1.bf16.msra.mxu1 %v791_v58  ;;  %v1566_v56 = vcombine.high %v257_v50, %v269_v51  ;;  %v232_v58 = vld [vmem:[%s1658_s21 + $0x1d0] sm:$0xff]  ;;  %v809_v62 = vsel %vm747_vm0, %v1563_v55, 0 }
  0x45   : > { %1088 = vmatprep.subr.bf16.mxu0 %v1532_v57  ;;  %1131 = vmatprep.subr.bf16.mxu1 %v1534_v59  ;;  %v1565_v57 = vcombine.low %v257_v50, %v269_v51  ;;  %v244_v59 = vld [vmem:[%s1658_s21 + $0x230] sm:$0xff] }
  0x46   : > { %1110 = vmatprep.mubr.bf16.mxu0 %v1614_v0  ;;  %1153 = vmatprep.mubr.bf16.mxu1 %v1614_v0  ;;  %v1540_v63 = vcombine.high %v232_v58, %v244_v59  ;;  %v1539_v7 = vcombine.low %v232_v58, %v244_v59 }
  0x48   : > { %1089 = vmatpush1.bf16.msra.mxu0 %v1531_v1  ;;  %1132 = vmatpush1.bf16.msra.mxu1 %v1533_v2  ;;  %v815_v1 = vsel %vm747_vm0, %v1565_v57, 0  ;;  %v1542_v2 = vcombine.high %v233_v60, %v245_v61 }
  0x49   : > { %1090 = vmatprep.subr.bf16.mxu0 %v1508_v3  ;;  %1133 = vmatprep.subr.bf16.mxu1 %v1510_v4  ;;  %v208_v3 = vld [vmem:[%s1658_s21 + $0x110] sm:$0xff] }
  0x4a   : > { %v220_v4 = vld [vmem:[%s1658_s21 + $0x170] sm:$0xff] }
  0x4b   : > { %v1515_v15 = vcombine.low %v208_v3, %v220_v4 }
  0x4c   : > { %1091 = vmatpush1.bf16.msra.mxu0 %v1507_v9  ;;  %1134 = vmatpush1.bf16.msra.mxu1 %v1509_v10  ;;  %v1516_v9 = vcombine.high %v208_v3, %v220_v4  ;;  %v1518_v10 = vcombine.high %v209_v5, %v221_v6 }
  0x4d   : > { %1092 = vmatprep.subr.bf16.mxu0 %v1484_v11  ;;  %1135 = vmatprep.subr.bf16.mxu1 %v1486_v12  ;;  %v184_v11 = vld [vmem:[%s1658_s21 + $0x50] sm:$0xff] }
  0x4e   : > { %v196_v12 = vld [vmem:[%s1658_s21 + $0xb0] sm:$0xff] }
  0x50   : > { %1093 = vmatpush1.bf16.msra.mxu0 %v1483_v17  ;;  %1136 = vmatpush1.bf16.msra.mxu1 %v1485_v18  ;;  %v1492_v17 = vcombine.high %v184_v11, %v196_v12  ;;  %v1494_v18 = vcombine.high %v185_v13, %v197_v14 }
  0x51   : > { %1583 = vmatprep.subr.msk.bf16.mxu0 %vm747_vm0, %v1560_v19  ;;  %1585 = vmatprep.subr.msk.bf16.mxu1 %vm747_vm0, %v1562_v21  ;;  %v1491_v19 = vcombine.low %v184_v11, %v196_v12 }
  0x53   : > { %1580 = vmatmul.mubr.msk.bf16.vlgmr.msra.gmra.mxu0 %vm743_vm1, %v1689_v47  ;;  %1582 = vmatmul.mubr.msk.bf16.vlgmr.msra.gmra.mxu1 %vm743_vm1, %v1689_v47 }
  0x54   : > { %1173 = vmatpush1.bf16.msra.mxu0 %v797_v27  ;;  %1216 = vmatpush1.bf16.msra.mxu1 %v803_v29 }
  0x55   : > { %1174 = vmatprep.subr.bf16.mxu0 %v1536_v28  ;;  %1217 = vmatprep.subr.bf16.mxu1 %v1538_v30 }
  0x56   : > { %1196 = vmatprep.mubr.bf16.mxu0 %v1614_v0  ;;  %1239 = vmatprep.mubr.bf16.mxu1 %v1614_v0 }
  0x58   : > { %1175 = vmatpush1.bf16.msra.mxu0 %v1535_v35  ;;  %1218 = vmatpush1.bf16.msra.mxu1 %v1537_v36 }
  0x59   : > { %1176 = vmatprep.subr.bf16.mxu0 %v1512_v37  ;;  %1219 = vmatprep.subr.bf16.mxu1 %v1514_v38 }
  0x5c   : > { %1177 = vmatpush1.bf16.msra.mxu0 %v1511_v43  ;;  %1220 = vmatpush1.bf16.msra.mxu1 %v1513_v44 }
  0x5d   : > { %1178 = vmatprep.subr.bf16.mxu0 %v1488_v45  ;;  %1221 = vmatprep.subr.bf16.mxu1 %v1490_v46 }
  0x60   : > { %1179 = vmatpush1.bf16.msra.mxu0 %v1487_v52  ;;  %1222 = vmatpush1.bf16.msra.mxu1 %v1489_v53 }
  0x61   : > { %1587 = vmatprep.subr.msk.bf16.mxu0 %vm747_vm0, %v1564_v54  ;;  %1589 = vmatprep.subr.msk.bf16.mxu1 %vm747_vm0, %v1566_v56 }
  0x63   : > { %1584 = vmatmul.mubr.msk.bf16.vlgmr.msra.gmra.mxu0 %vm743_vm1, %v1689_v47  ;;  %1586 = vmatmul.mubr.msk.bf16.vlgmr.msra.gmra.mxu1 %vm743_vm1, %v1689_v47 }
  0x64   : > { %1259 = vmatpush1.bf16.msra.mxu0 %v809_v62  ;;  %1302 = vmatpush1.bf16.msra.mxu1 %v815_v1 }
  0x65   : > { %1260 = vmatprep.subr.bf16.mxu0 %v1540_v63  ;;  %1303 = vmatprep.subr.bf16.mxu1 %v1542_v2 }
  0x66   : > { %1282 = vmatprep.mubr.bf16.mxu0 %v1614_v0  ;;  %1325 = vmatprep.mubr.bf16.mxu1 %v1614_v0 }
  0x68   : > { %1261 = vmatpush1.bf16.msra.mxu0 %v1539_v7  ;;  %1304 = vmatpush1.bf16.msra.mxu1 %v1541_v8 }
  0x69   : > { %1262 = vmatprep.subr.bf16.mxu0 %v1516_v9  ;;  %1305 = vmatprep.subr.bf16.mxu1 %v1518_v10 }
  0x6c   : > { %1263 = vmatpush1.bf16.msra.mxu0 %v1515_v15  ;;  %1306 = vmatpush1.bf16.msra.mxu1 %v1517_v16 }
  0x6d   : > { %1264 = vmatprep.subr.bf16.mxu0 %v1492_v17  ;;  %1307 = vmatprep.subr.bf16.mxu1 %v1494_v18 }
  0x70   : > { %1265 = vmatpush1.bf16.msra.mxu0 %v1491_v19  ;;  %1308 = vmatpush1.bf16.msra.mxu1 %v1493_v20 }
  0x73   : > { %1588 = vmatmul.mubr.msk.bf16.vlgmr.msra.gmra.mxu0 %vm743_vm1, %v1689_v47  ;;  %1590 = vmatmul.mubr.msk.bf16.vlgmr.msra.gmra.mxu1 %vm743_vm1, %v1689_v47 }
  0x89   : > { %v1847_v41 = vpop.permute.xlu0 %274 }
  0x8d   : > { %v1857_v50 = vpop.permute.xlu0 %279 }
  0xe3   : > { %v854_v0 = vpop.f32.mrf.mxu0  ;;  %v897_v21 = vpop.f32.mrf.mxu1 }
  0xe4   : > { %v855_v45 = vadd.f32 %v854_v0, %v1847_v41  ;;  %v898_v49 = vadd.f32 %v897_v21, %v1847_v41 }
  0xe5   : > { %v856_v22 = vpop.f32.mrf.mxu0  ;;  %v899_v23 = vpop.f32.mrf.mxu1 }
  0xe6   : > { %v857_v53 = vadd.f32 %v856_v22, %v1847_v41  ;;  %v900_v57 = vadd.f32 %v899_v23, %v1847_v41 }
  0xe7   : > { %v858_v24 = vpop.f32.mrf.mxu0  ;;  %v901_v25 = vpop.f32.mrf.mxu1 }
  0xe8   : > { %v859_v61 = vadd.f32 %v858_v24, %v1857_v50  ;;  %v902_v3 = vadd.f32 %v901_v25, %v1857_v50 }
  0xe9   : > { %v860_v26 = vpop.f32.mrf.mxu0  ;;  %v903_v27 = vpop.f32.mrf.mxu1 }
  0xea   : > { %v861_v8 = vadd.f32 %v860_v26, %v1857_v50  ;;  %v904_v13 = vadd.f32 %v903_v27, %v1857_v50 }
  0xf3   : > { %v1819_v28 = vpop.f32.mrf.mxu0  ;;  %v1821_v29 = vpop.f32.mrf.mxu1 }
  0xf4   : > { %v941_v23 = vadd.f32 %v1819_v28, %v1847_v41  ;;  %v984_v26 = vadd.f32 %v1821_v29, %v1847_v41 }
  0xf5   : > { %v1823_v30 = vpop.f32.mrf.mxu0  ;;  %v1825_v31 = vpop.f32.mrf.mxu1 }
  0xf6   : > { %v986_v28 = vadd.f32 %v1825_v31, %v1847_v41 }
  0xf7   : > { %v1827_v32 = vpop.f32.mrf.mxu0  ;;  %v1829_v47 = vpop.f32.mrf.mxu1 }
  0xf8   : > { %v945_v29 = vadd.f32 %v1827_v32, %v1857_v50 }
  0xf9   : > { %v1831_v33 = vpop.f32.mrf.mxu0  ;;  %v1833_v34 = vpop.f32.mrf.mxu1 }
 0x103   : > { %v1835_v35 = vpop.f32.mrf.mxu0  ;;  %v1837_v36 = vpop.f32.mrf.mxu1 }
 0x105   : > { %v1839_v37 = vpop.f32.mrf.mxu0  ;;  %v1841_v38 = vpop.f32.mrf.mxu1 }
 0x107   : > { %v1843_v39 = vpop.f32.mrf.mxu0  ;;  %v1845_v40 = vpop.f32.mrf.mxu1 }
 0x109   : > { %v1849_v42 = vpop.f32.mrf.mxu0  ;;  %v1851_v43 = vpop.f32.mrf.mxu1 }
 0x113   : > { %v1112_v44 = vpop.f32.mrf.mxu0  ;;  %v1155_v48 = vpop.f32.mrf.mxu1 }
 0x114   : > { %v1113_v46 = vadd.f32 %v1112_v44, %v1847_v41  ;;  %v1156_v51 = vadd.f32 %v1155_v48, %v1847_v41 }
 0x115   : > { %v1114_v52 = vpop.f32.mrf.mxu0  ;;  %v1157_v56 = vpop.f32.mrf.mxu1 }
 0x116   : > { %v1336_v54 = vmax.f32 %v855_v45, %v1113_v46  ;;  %v1115_v55 = vadd.f32 %v1114_v52, %v1847_v41  ;;  %v1338_v58 = vmax.f32 %v898_v49, %v1156_v51  ;;  %v1158_v59 = vadd.f32 %v1157_v56, %v1847_v41 }
 0x117   : > { %v1116_v60 = vpop.f32.mrf.mxu0  ;;  %v1159_v2 = vpop.f32.mrf.mxu1  ;;  %v943_v45 = vadd.f32 %v1823_v30, %v1847_v41 }
 0x118   : > { %v1360_v62 = vmax.f32 %v1336_v54, 0.0  ;;  %v1337_v63 = vmax.f32 %v857_v53, %v1115_v55  ;;  %v1117_v1 = vadd.f32 %v1116_v60, %v1857_v50  ;;  %v1362_v4 = vmax.f32 %v1338_v58, 0.0 }
 0x119   : > { %v1339_v5 = vmax.f32 %v900_v57, %v1158_v59  ;;  %v1160_v6 = vadd.f32 %v1159_v2, %v1857_v50  ;;  %v1118_v7 = vpop.f32.mrf.mxu0  ;;  %v1161_v12 = vpop.f32.mrf.mxu1  ;;  %v988_v57 = vadd.f32 %v1829_v47, %v1857_v50  ;;  %v990_v47 = vadd.f32 %v1833_v34, %v1857_v50 }
 0x11a   : > { %1384 = vst [vmem:[%s1866_s27] sm:$0xff] %v1360_v62  ;;  %v1361_v9 = vmax.f32 %v1337_v63, 0.0  ;;  %v1348_v10 = vmax.f32 %v859_v61, %v1117_v1  ;;  %v1119_v11 = vadd.f32 %v1118_v7, %v1857_v50  ;;  %1386 = vst [vmem:[%s1866_s27 + $0x10] sm:$0xff] %v1362_v4  ;;  %v1162_v16 = vadd.f32 %v1161_v12, %v1857_v50 }
 0x11b   : > { %v1363_v14 = vmax.f32 %v1339_v5, 0.0  ;;  %v1350_v15 = vmax.f32 %v902_v3, %v1160_v6  ;;  %v947_v61 = vadd.f32 %v1831_v33, %v1857_v50  ;;  %v1027_v34 = vadd.f32 %v1835_v35, %v1847_v41 }
 0x11c   : > { %1385 = vst [vmem:[%s1866_s27 + $0x8] sm:$0xff] %v1361_v9  ;;  %v1372_v17 = vmax.f32 %v1348_v10, 0.0  ;;  %v1349_v18 = vmax.f32 %v861_v8, %v1119_v11  ;;  %v1351_v20 = vmax.f32 %v904_v13, %v1162_v16  ;;  %v1070_v13 = vadd.f32 %v1837_v36, %v1847_v41 }
 0x11d   : > { %1387 = vst [vmem:[%s1866_s27 + $0x18] sm:$0xff] %v1363_v14  ;;  %v1374_v19 = vmax.f32 %v1350_v15, 0.0  ;;  %v1029_v16 = vadd.f32 %v1839_v37, %v1847_v41  ;;  %v1072_v35 = vadd.f32 %v1841_v38, %v1847_v41  ;;  %v1031_v36 = vadd.f32 %v1843_v39, %v1857_v50 }
 0x11e   : > { %1396 = vst [vmem:[%s1866_s27 + $0x60] sm:$0xff] %v1372_v17  ;;  %v1373_v0 = vmax.f32 %v1349_v18, 0.0  ;;  %v1375_v21 = vmax.f32 %v1351_v20, 0.0 }
 0x11f   : > { %1398 = vst [vmem:[%s1866_s27 + $0x70] sm:$0xff] %v1374_v19 }
 0x120   : > { %1397 = vst [vmem:[%s1866_s27 + $0x68] sm:$0xff] %v1373_v0  ;;  %1399 = vst [vmem:[%s1866_s27 + $0x78] sm:$0xff] %v1375_v21 }
 0x123   : > { %v1198_v22 = vpop.f32.mrf.mxu0  ;;  %v1241_v25 = vpop.f32.mrf.mxu1 }
 0x124   : > { %v1199_v24 = vadd.f32 %v1198_v22, %v1847_v41  ;;  %v1242_v27 = vadd.f32 %v1241_v25, %v1847_v41  ;;  %v1074_v25 = vadd.f32 %v1845_v40, %v1857_v50  ;;  %v1076_v40 = vadd.f32 %v1851_v43, %v1857_v50 }
 0x125   : > { %v1200_v44 = vpop.f32.mrf.mxu0  ;;  %v1243_v49 = vpop.f32.mrf.mxu1 }
 0x126   : > { %v1340_v46 = vmax.f32 %v941_v23, %v1199_v24  ;;  %v1201_v48 = vadd.f32 %v1200_v44, %v1847_v41  ;;  %v1342_v51 = vmax.f32 %v984_v26, %v1242_v27  ;;  %v1244_v52 = vadd.f32 %v1243_v49, %v1847_v41 }
 0x127   : > { %v1202_v53 = vpop.f32.mrf.mxu0  ;;  %v1245_v56 = vpop.f32.mrf.mxu1  ;;  %v1033_v44 = vadd.f32 %v1849_v42, %v1857_v50 }
 0x128   : > { %v1364_v54 = vmax.f32 %v1340_v46, 0.0  ;;  %v1341_v55 = vmax.f32 %v943_v45, %v1201_v48  ;;  %v1203_v30 = vadd.f32 %v1202_v53, %v1857_v50  ;;  %v1366_v58 = vmax.f32 %v1342_v51, 0.0 }
 0x129   : > { %v1343_v59 = vmax.f32 %v986_v28, %v1244_v52  ;;  %v1246_v31 = vadd.f32 %v1245_v56, %v1857_v50  ;;  %v1204_v60 = vpop.f32.mrf.mxu0  ;;  %v1247_v1 = vpop.f32.mrf.mxu1 }
 0x12a   : > { %1388 = vst [vmem:[%s1866_s27 + $0x20] sm:$0xff] %v1364_v54  ;;  %v1365_v32 = vmax.f32 %v1341_v55, 0.0  ;;  %v1352_v62 = vmax.f32 %v945_v29, %v1203_v30  ;;  %v1205_v63 = vadd.f32 %v1204_v60, %v1857_v50  ;;  %1390 = vst [vmem:[%s1866_s27 + $0x30] sm:$0xff] %v1366_v58  ;;  %v1248_v4 = vadd.f32 %v1247_v1, %v1857_v50 }
 0x12b   : > { %v1367_v2 = vmax.f32 %v1343_v59, 0.0  ;;  %v1354_v3 = vmax.f32 %v988_v57, %v1246_v31 }
 0x12c   : > { %1389 = vst [vmem:[%s1866_s27 + $0x28] sm:$0xff] %v1365_v32  ;;  %v1376_v33 = vmax.f32 %v1352_v62, 0.0  ;;  %v1353_v5 = vmax.f32 %v947_v61, %v1205_v63  ;;  %v1355_v7 = vmax.f32 %v990_v47, %v1248_v4 }
 0x12d   : > { %1391 = vst [vmem:[%s1866_s27 + $0x38] sm:$0xff] %v1367_v2  ;;  %v1378_v6 = vmax.f32 %v1354_v3, 0.0 }
 0x12e   : > { %1400 = vst [vmem:[%s1866_s27 + $0x80] sm:$0xff] %v1376_v33  ;;  %v1377_v8 = vmax.f32 %v1353_v5, 0.0  ;;  %v1379_v9 = vmax.f32 %v1355_v7, 0.0 }
 0x12f   : > { %1402 = vst [vmem:[%s1866_s27 + $0x90] sm:$0xff] %v1378_v6 }
 0x130   : > { %1401 = vst [vmem:[%s1866_s27 + $0x88] sm:$0xff] %v1377_v8  ;;  %1403 = vst [vmem:[%s1866_s27 + $0x98] sm:$0xff] %v1379_v9 }
 0x133   : > { %v1284_v10 = vpop.f32.mrf.mxu0  ;;  %v1327_v12 = vpop.f32.mrf.mxu1 }
 0x134   : > { %v1285_v11 = vadd.f32 %v1284_v10, %v1847_v41  ;;  %v1328_v14 = vadd.f32 %v1327_v12, %v1847_v41 }
 0x135   : > { %v1286_v15 = vpop.f32.mrf.mxu0  ;;  %v1329_v19 = vpop.f32.mrf.mxu1 }
 0x136   : > { %v1344_v17 = vmax.f32 %v1027_v34, %v1285_v11  ;;  %v1287_v18 = vadd.f32 %v1286_v15, %v1847_v41  ;;  %v1346_v20 = vmax.f32 %v1070_v13, %v1328_v14  ;;  %v1330_v0 = vadd.f32 %v1329_v19, %v1847_v41 }
 0x137   : > { %v1288_v21 = vpop.f32.mrf.mxu0  ;;  %v1331_v24 = vpop.f32.mrf.mxu1 }
 0x138   : > { %v1368_v22 = vmax.f32 %v1344_v17, 0.0  ;;  %v1345_v23 = vmax.f32 %v1029_v16, %v1287_v18  ;;  %v1289_v37 = vadd.f32 %v1288_v21, %v1857_v50  ;;  %v1370_v26 = vmax.f32 %v1346_v20, 0.0 }
 0x139   : > { %v1347_v27 = vmax.f32 %v1072_v35, %v1330_v0  ;;  %v1332_v38 = vadd.f32 %v1331_v24, %v1857_v50  ;;  %v1290_v41 = vpop.f32.mrf.mxu0  ;;  %v1333_v48 = vpop.f32.mrf.mxu1 }
 0x13a   : > { %1392 = vst [vmem:[%s1866_s27 + $0x40] sm:$0xff] %v1368_v22  ;;  %v1369_v39 = vmax.f32 %v1345_v23, 0.0  ;;  %v1356_v45 = vmax.f32 %v1031_v36, %v1289_v37  ;;  %v1291_v46 = vadd.f32 %v1290_v41, %v1857_v50  ;;  %1394 = vst [vmem:[%s1866_s27 + $0x50] sm:$0xff] %v1370_v26  ;;  %v1334_v51 = vadd.f32 %v1333_v48, %v1857_v50 }
 0x13b   : > { %v1371_v49 = vmax.f32 %v1347_v27, 0.0  ;;  %v1358_v28 = vmax.f32 %v1074_v25, %v1332_v38 }
 0x13c   : > { %1393 = vst [vmem:[%s1866_s27 + $0x48] sm:$0xff] %v1369_v39  ;;  %v1380_v42 = vmax.f32 %v1356_v45, 0.0  ;;  %v1357_v52 = vmax.f32 %v1033_v44, %v1291_v46  ;;  %v1359_v29 = vmax.f32 %v1076_v40, %v1334_v51 }
 0x13d   : > { %1395 = vst [vmem:[%s1866_s27 + $0x58] sm:$0xff] %v1371_v49  ;;  %v1382_v53 = vmax.f32 %v1358_v28, 0.0 }
 0x13e   : > { %1404 = vst [vmem:[%s1866_s27 + $0xa0] sm:$0xff] %v1380_v42  ;;  %v1381_v54 = vmax.f32 %v1357_v52, 0.0  ;;  %v1383_v55 = vmax.f32 %v1359_v29, 0.0 }
 0x13f   : > { %1406 = vst [vmem:[%s1866_s27 + $0xb0] sm:$0xff] %v1382_v53 }
 0x140   : > { %1405 = vst [vmem:[%s1866_s27 + $0xa8] sm:$0xff] %v1381_v54  ;;  %1407 = vst [vmem:[%s1866_s27 + $0xb8] sm:$0xff] %v1383_v55 }
 0x141 PF: > { %s13_s12 = sadd.s32 1, %s1612_s12  }
 0x142   : > { %p10_p4 = scmp.ge.s32.totalorder %s13_s12, 4  }
 0x144   :  { %12 = sbr.rel (!%p10_p4) target bundleno = 1 (0x1), region = 62 }

// kernel: cnn_forward.4
= control target key start
LH: loop header
LB: loop body
LE: loop exit
PB: predicated region body
PF: predicated region fallthrough
CT: control target
= control target key end

     0   :  { %s7895_s12 = smov 0   ;;  %s9110_s0 = inlined_call_operand.vmem [shape: bf16[2,960,1536], index: 0, kind: input, shape index: {}]   ;;  %s9111_s1 = inlined_call_operand.vmem [shape: bf16[32,960], index: 1, kind: input, shape index: {}]   ;;  %s9112_s2 = inlined_call_operand.vmem [shape: f32[32,1], index: 2, kind: input, shape index: {}]   ;;  %s9113_s3 = inlined_call_operand.vmem [shape: f32[2,32,768], index: 3, kind: output, shape index: {}]  }
   0x1 LB: > { %s6016_s13 = sadd.s32 4294967295, %s7872_s12   ;;  %p6020_p0 = scmp.ge.s32.totalorder %s7872_s12, 1  ;;  %s7872_s12 = sphi %s7895_s12, %s13_s12  }
   0x2   : > { %p137_p1 = scmp.lt.s32.totalorder %s7872_s12, 3 }
   0x4   : > { %p138_p2 = pnand %p6020_p0, %p137_p1 }
   0x6   : > { %141 = sbr.rel (%p138_p2) target bundleno = 955 (0x3bb), region = 32 }
   0xb   : > { %p161_p3 = scmp.lt.s32.totalorder %s6016_s13, 1  ;;  %v172_v0 = vld [vmem:[%s9111_s1] sm:$0xff]  ;;  %v173_v2 = vld [vmem:[%s9111_s1 + $0x8] sm:$0xff]  ;;  %v7874_v16 = vmov 0   ;;  %vm4610_vm0 = vcmask 523264  }
   0xc   : > { %v176_v1 = vld [vmem:[%s9111_s1 + $0x20] sm:$0xff]  ;;  %v177_v4 = vld [vmem:[%s9111_s1 + $0x28] sm:$0xff]  ;;  %6784 = vset.pattern.permute.xlu0 %v7874_v16  ;;  %6785 = vset.pattern.permute.xlu1 %v7874_v16 }
   0xd   : > { %v7912_v3 = vcombine.high %v172_v0, %v176_v1  ;;  %v7917_v5 = vcombine.low %v172_v0, %v176_v1  ;;  %s9125_s13 = smov (!%p161_p3, %s6016_s13), 1  ;;  %v7921_v6 = vcombine.high %v173_v2, %v177_v4  ;;  %v7923_v7 = vcombine.low %v173_v2, %v177_v4  ;;  %v184_v16 = vld [vmem:[%s9111_s1 + $0x60] sm:$0xff] }
   0xe   : > { %s6773_s22 = smul.u32 5760, %s9125_s13 }
   0xf   : > { %4649 = vmatprep.mubr.bf16.mxu0 %v7912_v3  ;;  %4702 = vmatprep.mubr.bf16.mxu1 %v7921_v6  ;;  %s6774_s7 = smul.u32 192, %s9125_s13 }
  0x10   : > { %s7931_s25 = scalar_lea.vmem %s9110_s0, %s6773_s22 }
  0x11   : > { %v6786_v8 = vld [vmem:[%s7931_s25 + $0x2a4] ss:$48 sps:$4 sm:$0xff]   ;;  %v6790_v10 = vld [vmem:[%s7931_s25 + $0x2a0] ss:$48 sps:$4 sm:$0xff]   ;;  %s8992_s9 = scalar_lea.vmem %s9113_s3, %s6774_s7 }
  0x12   : > { %v6788_v9 = vld [vmem:[%s7931_s25 + $0x8a4] ss:$48 sps:$4 sm:$0xff]   ;;  %4617 = vmatprep.subr.bf16.mxu0 %v6786_v8  ;;  %v6791_v11 = vld [vmem:[%s7931_s25 + $0x8a0] ss:$48 sps:$4 sm:$0xff]  }
  0x13   : > { %4670 = vmatprep.subr.bf16.mxu1 %v6788_v9  ;;  %v6792_v12 = vld [vmem:[%s7931_s25 + $0x244] ss:$48 sps:$4 sm:$0xff]   ;;  %4618 = vmatpush1.bf16.msra.mxu0 %v6790_v10  ;;  %v6796_v14 = vld [vmem:[%s7931_s25 + $0x240] ss:$48 sps:$4 sm:$0xff]  }
  0x14   : > { %4671 = vmatpush1.bf16.msra.mxu1 %v6791_v11  ;;  %v6794_v13 = vld [vmem:[%s7931_s25 + $0x844] ss:$48 sps:$4 sm:$0xff]   ;;  %4619 = vmatprep.subr.bf16.mxu0 %v6792_v12  ;;  %v6797_v15 = vld [vmem:[%s7931_s25 + $0x840] ss:$48 sps:$4 sm:$0xff]  }
  0x15   : > { %4672 = vmatprep.subr.bf16.mxu1 %v6794_v13  ;;  %v6798_v17 = vld [vmem:[%s7931_s25 + $0x1e4] ss:$48 sps:$4 sm:$0xff]   ;;  %v6802_v19 = vld [vmem:[%s7931_s25 + $0x1e0] ss:$48 sps:$4 sm:$0xff]  }
  0x16   : > { %v6800_v18 = vld [vmem:[%s7931_s25 + $0x7e4] ss:$48 sps:$4 sm:$0xff]   ;;  %v6803_v20 = vld [vmem:[%s7931_s25 + $0x7e0] ss:$48 sps:$4 sm:$0xff]  }
  0x17   : > { %4620 = vmatpush1.bf16.msra.mxu0 %v6796_v14  ;;  %v6804_v21 = vld [vmem:[%s7931_s25 + $0x184] ss:$48 sps:$4 sm:$0xff]   ;;  %v6808_v23 = vld [vmem:[%s7931_s25 + $0x180] ss:$48 sps:$4 sm:$0xff]  }
  0x18   : > { %4673 = vmatpush1.bf16.msra.mxu1 %v6797_v15  ;;  %4621 = vmatprep.subr.bf16.mxu0 %v6798_v17  ;;  %v6806_v22 = vld [vmem:[%s7931_s25 + $0x784] ss:$48 sps:$4 sm:$0xff]   ;;  %v6809_v24 = vld [vmem:[%s7931_s25 + $0x780] ss:$48 sps:$4 sm:$0xff]   ;;  %v181_v17 = vld [vmem:[%s9111_s1 + $0x48] sm:$0xff] }
  0x19   : > { %4674 = vmatprep.subr.bf16.mxu1 %v6800_v18  ;;  %v6810_v25 = vld [vmem:[%s7931_s25 + $0x124] ss:$48 sps:$4 sm:$0xff]   ;;  %v6814_v27 = vld [vmem:[%s7931_s25 + $0x120] ss:$48 sps:$4 sm:$0xff]   ;;  %v185_v18 = vld [vmem:[%s9111_s1 + $0x68] sm:$0xff] }
  0x1a   : > { %v6812_v26 = vld [vmem:[%s7931_s25 + $0x724] ss:$48 sps:$4 sm:$0xff]   ;;  %v6815_v28 = vld [vmem:[%s7931_s25 + $0x720] ss:$48 sps:$4 sm:$0xff]  }
  0x1b   : > { %4622 = vmatpush1.bf16.msra.mxu0 %v6802_v19  ;;  %v6816_v29 = vld [vmem:[%s7931_s25 + $0xc4] ss:$48 sps:$4 sm:$0xff]   ;;  %v6820_v31 = vld [vmem:[%s7931_s25 + $0xc0] ss:$48 sps:$4 sm:$0xff]  }
  0x1c   : > { %4675 = vmatpush1.bf16.msra.mxu1 %v6803_v20  ;;  %4623 = vmatprep.subr.bf16.mxu0 %v6804_v21  ;;  %v6818_v30 = vld [vmem:[%s7931_s25 + $0x6c4] ss:$48 sps:$4 sm:$0xff]   ;;  %v6821_v32 = vld [vmem:[%s7931_s25 + $0x6c0] ss:$48 sps:$4 sm:$0xff]  }
  0x1d   : > { %4676 = vmatprep.subr.bf16.mxu1 %v6806_v22  ;;  %v6822_v33 = vld [vmem:[%s7931_s25 + $0x64] ss:$48 sps:$4 sm:$0xff]   ;;  %v6826_v35 = vld [vmem:[%s7931_s25 + $0x60] ss:$48 sps:$4 sm:$0xff]  }
  0x1e   : > { %v6824_v34 = vld [vmem:[%s7931_s25 + $0x664] ss:$48 sps:$4 sm:$0xff]   ;;  %v6827_v36 = vld [vmem:[%s7931_s25 + $0x660] ss:$48 sps:$4 sm:$0xff]  }
  0x1f   : > { %4624 = vmatpush1.bf16.msra.mxu0 %v6808_v23  ;;  %v6828_v37 = vld [vmem:[%s7931_s25 + $0x4] ss:$48 sps:$4 sm:$0xff]   ;;  %v6832_v39 = vld [vmem:[%s7931_s25] ss:$48 sps:$4 sm:$0xff]  }
  0x20   : > { %4677 = vmatpush1.bf16.msra.mxu1 %v6809_v24  ;;  %4625 = vmatprep.subr.bf16.mxu0 %v6810_v25  ;;  %v6830_v38 = vld [vmem:[%s7931_s25 + $0x604] ss:$48 sps:$4 sm:$0xff]   ;;  %v6833_v40 = vld [vmem:[%s7931_s25 + $0x600] ss:$48 sps:$4 sm:$0xff]   ;;  %v8017_v24 = vcombine.high %v181_v17, %v185_v18 }
  0x21   : > { %4678 = vmatprep.subr.bf16.mxu1 %v6812_v26  ;;  %v6834_v41 = vld [vmem:[%s7931_s25 + $0x5a4] ss:$48 sps:$4 sm:$0xff]   ;;  %v6838_v43 = vld [vmem:[%s7931_s25 + $0x5a0] ss:$48 sps:$4 sm:$0xff]  }
  0x22   : > { %v6836_v42 = vld [vmem:[%s7931_s25 + $0xba4] ss:$48 sps:$4 sm:$0xff]   ;;  %v6839_v44 = vld [vmem:[%s7931_s25 + $0xba0] ss:$48 sps:$4 sm:$0xff]  }
  0x23   : > { %4626 = vmatpush1.bf16.msra.mxu0 %v6814_v27  ;;  %v6840_v45 = vld [vmem:[%s7931_s25 + $0x544] ss:$48 sps:$4 sm:$0xff]   ;;  %v6844_v47 = vld [vmem:[%s7931_s25 + $0x540] ss:$48 sps:$4 sm:$0xff]  }
  0x24   : > { %4679 = vmatpush1.bf16.msra.mxu1 %v6815_v28  ;;  %4627 = vmatprep.subr.bf16.mxu0 %v6816_v29  ;;  %v6842_v46 = vld [vmem:[%s7931_s25 + $0xb44] ss:$48 sps:$4 sm:$0xff]   ;;  %v6845_v48 = vld [vmem:[%s7931_s25 + $0xb40] ss:$48 sps:$4 sm:$0xff]   ;;  %v8028_v29 = vld [vmem:[%s9111_s1 + $0x18] sm:$0xff] }
  0x25   : > { %4680 = vmatprep.subr.bf16.mxu1 %v6818_v30  ;;  %v6846_v49 = vld [vmem:[%s7931_s25 + $0x4e4] ss:$48 sps:$4 sm:$0xff]   ;;  %v6850_v51 = vld [vmem:[%s7931_s25 + $0x4e0] ss:$48 sps:$4 sm:$0xff]   ;;  %v8033_v30 = vld [vmem:[%s9111_s1 + $0x38] sm:$0xff] }
  0x26   : > { %v6848_v50 = vld [vmem:[%s7931_s25 + $0xae4] ss:$48 sps:$4 sm:$0xff]   ;;  %v6851_v52 = vld [vmem:[%s7931_s25 + $0xae0] ss:$48 sps:$4 sm:$0xff]  }
  0x27   : > { %4628 = vmatpush1.bf16.msra.mxu0 %v6820_v31  ;;  %v6852_v53 = vld [vmem:[%s7931_s25 + $0x484] ss:$48 sps:$4 sm:$0xff]   ;;  %v6856_v55 = vld [vmem:[%s7931_s25 + $0x480] ss:$48 sps:$4 sm:$0xff]  }
  0x28   : > { %4681 = vmatpush1.bf16.msra.mxu1 %v6821_v32  ;;  %4629 = vmatprep.subr.bf16.mxu0 %v6822_v33  ;;  %v6854_v54 = vld [vmem:[%s7931_s25 + $0xa84] ss:$48 sps:$4 sm:$0xff]   ;;  %v6857_v56 = vld [vmem:[%s7931_s25 + $0xa80] ss:$48 sps:$4 sm:$0xff]  }
  0x29   : > { %4682 = vmatprep.subr.bf16.mxu1 %v6824_v34  ;;  %v6858_v57 = vld [vmem:[%s7931_s25 + $0x424] ss:$48 sps:$4 sm:$0xff]   ;;  %v6862_v59 = vld [vmem:[%s7931_s25 + $0x420] ss:$48 sps:$4 sm:$0xff]  }
  0x2a   : > { %v6860_v58 = vld [vmem:[%s7931_s25 + $0xa24] ss:$48 sps:$4 sm:$0xff]   ;;  %v6863_v60 = vld [vmem:[%s7931_s25 + $0xa20] ss:$48 sps:$4 sm:$0xff]  }
  0x2b   : > { %4630 = vmatpush1.bf16.msra.mxu0 %v6826_v35  ;;  %v6864_v61 = vld [vmem:[%s7931_s25 + $0x3c4] ss:$48 sps:$4 sm:$0xff]   ;;  %v6868_v63 = vld [vmem:[%s7931_s25 + $0x3c0] ss:$48 sps:$4 sm:$0xff]  }
  0x2c   : > { %4683 = vmatpush1.bf16.msra.mxu1 %v6827_v36  ;;  %4631 = vmatprep.subr.bf16.mxu0 %v6828_v37  ;;  %v6866_v62 = vld [vmem:[%s7931_s25 + $0x9c4] ss:$48 sps:$4 sm:$0xff]   ;;  %v6869_v0 = vld [vmem:[%s7931_s25 + $0x9c0] ss:$48 sps:$4 sm:$0xff]   ;;  %v8051_v36 = vcombine.low %v181_v17, %v185_v18  ;;  %v6959_v18 = vld [vmem:[%s7931_s25 + $0x2ac] ss:$48 sps:$4 sm:$0xff]  }
  0x2d   : > { %4684 = vmatprep.subr.bf16.mxu1 %v6830_v38  ;;  %v6870_v1 = vld [vmem:[%s7931_s25 + $0x364] ss:$48 sps:$4 sm:$0xff]   ;;  %v6874_v4 = vld [vmem:[%s7931_s25 + $0x360] ss:$48 sps:$4 sm:$0xff]  }
  0x2e   : > { %v6872_v2 = vld [vmem:[%s7931_s25 + $0x964] ss:$48 sps:$4 sm:$0xff]   ;;  %v6875_v8 = vld [vmem:[%s7931_s25 + $0x960] ss:$48 sps:$4 sm:$0xff]  }
  0x2f   : > { %4632 = vmatpush1.bf16.msra.mxu0 %v6832_v39  ;;  %v6876_v9 = vld [vmem:[%s7931_s25 + $0x304] ss:$48 sps:$4 sm:$0xff]   ;;  %v6880_v11 = vld [vmem:[%s7931_s25 + $0x300] ss:$48 sps:$4 sm:$0xff]   ;;  %v8057_v39 = vcombine.high %v8028_v29, %v8033_v30 }
  0x30   : > { %4685 = vmatpush1.bf16.msra.mxu1 %v6833_v40  ;;  %4633 = vmatprep.subr.bf16.mxu0 %v6834_v41  ;;  %v6878_v10 = vld [vmem:[%s7931_s25 + $0x904] ss:$48 sps:$4 sm:$0xff]   ;;  %v6881_v12 = vld [vmem:[%s7931_s25 + $0x900] ss:$48 sps:$4 sm:$0xff]  }
  0x31   : > { %4686 = vmatprep.subr.bf16.mxu1 %v6836_v42  ;;  %v6884_v13 = vld [vmem:[%s7931_s25 + $0xea4] ss:$48 sps:$4 sm:$0xff]   ;;  %v6882_v19 = vld [vmem:[%s7931_s25 + $0xea0] ss:$48 sps:$4 sm:$0xff]  }
  0x32   : > { %v6887_v14 = vld [vmem:[%s7931_s25 + $0x14a4] ss:$48 sps:$4 sm:$0xff]   ;;  %v6885_v20 = vld [vmem:[%s7931_s25 + $0x14a0] ss:$48 sps:$4 sm:$0xff]  }
  0x33   : > { %4634 = vmatpush2.bf16.msra.mxu0 %v6838_v43  ;;  %v180_v15 = vld [vmem:[%s9111_s1 + $0x40] sm:$0xff]  ;;  %v8040_v31 = vld [vmem:[%s9111_s1 + $0x10] sm:$0xff] }
  0x34   : > { %4687 = vmatpush2.bf16.msra.mxu1 %v6839_v44  ;;  %4635 = vmatprep.subr.bf16.mxu0 %v6840_v45  ;;  %v6890_v21 = vld [vmem:[%s7931_s25 + $0xe44] ss:$48 sps:$4 sm:$0xff]   ;;  %v8015_v23 = vcombine.high %v180_v15, %v184_v16  ;;  %v6888_v25 = vld [vmem:[%s7931_s25 + $0xe40] ss:$48 sps:$4 sm:$0xff]   ;;  %v8049_v35 = vcombine.low %v180_v15, %v184_v16 }
  0x35   : > { %4688 = vmatprep.subr.bf16.mxu1 %v6842_v46  ;;  %v6893_v22 = vld [vmem:[%s7931_s25 + $0x1444] ss:$48 sps:$4 sm:$0xff]   ;;  %v6891_v26 = vld [vmem:[%s7931_s25 + $0x1440] ss:$48 sps:$4 sm:$0xff]  }
  0x36   : > { %v6896_v27 = vld [vmem:[%s7931_s25 + $0xde4] ss:$48 sps:$4 sm:$0xff]   ;;  %v6894_v33 = vld [vmem:[%s7931_s25 + $0xde0] ss:$48 sps:$4 sm:$0xff]  }
  0x37   : > { %4636 = vmatpush2.bf16.msra.mxu0 %v6844_v47  ;;  %v6899_v28 = vld [vmem:[%s7931_s25 + $0x13e4] ss:$48 sps:$4 sm:$0xff]   ;;  %v6897_v34 = vld [vmem:[%s7931_s25 + $0x13e0] ss:$48 sps:$4 sm:$0xff]  }
  0x38   : > { %4689 = vmatpush2.bf16.msra.mxu1 %v6845_v48  ;;  %4637 = vmatprep.subr.bf16.mxu0 %v6846_v49  ;;  %v8045_v32 = vld [vmem:[%s9111_s1 + $0x30] sm:$0xff] }
  0x39   : > { %4690 = vmatprep.subr.bf16.mxu1 %v6848_v50  ;;  %v6902_v37 = vld [vmem:[%s7931_s25 + $0xd84] ss:$48 sps:$4 sm:$0xff]   ;;  %v8061_v40 = vcombine.high %v8040_v31, %v8045_v32  ;;  %v6900_v41 = vld [vmem:[%s7931_s25 + $0xd80] ss:$48 sps:$4 sm:$0xff]  }
  0x3a   : > { %v6905_v38 = vld [vmem:[%s7931_s25 + $0x1384] ss:$48 sps:$4 sm:$0xff]   ;;  %v6903_v42 = vld [vmem:[%s7931_s25 + $0x1380] ss:$48 sps:$4 sm:$0xff]  }
  0x3b   : > { %4638 = vmatpush2.bf16.msra.mxu0 %v6850_v51  ;;  %v6908_v43 = vld [vmem:[%s7931_s25 + $0xd24] ss:$48 sps:$4 sm:$0xff]   ;;  %v6906_v45 = vld [vmem:[%s7931_s25 + $0xd20] ss:$48 sps:$4 sm:$0xff]  }
  0x3c   : > { %4691 = vmatpush2.bf16.msra.mxu1 %v6851_v52  ;;  %4639 = vmatprep.subr.bf16.mxu0 %v6852_v53  ;;  %v6911_v44 = vld [vmem:[%s7931_s25 + $0x1324] ss:$48 sps:$4 sm:$0xff]   ;;  %v6909_v46 = vld [vmem:[%s7931_s25 + $0x1320] ss:$48 sps:$4 sm:$0xff]  }
  0x3d   : > { %4692 = vmatprep.subr.bf16.mxu1 %v6854_v54  ;;  %v6914_v47 = vld [vmem:[%s7931_s25 + $0xcc4] ss:$48 sps:$4 sm:$0xff]   ;;  %v6912_v49 = vld [vmem:[%s7931_s25 + $0xcc0] ss:$48 sps:$4 sm:$0xff]  }
  0x3e   : > { %v6917_v48 = vld [vmem:[%s7931_s25 + $0x12c4] ss:$48 sps:$4 sm:$0xff]   ;;  %v6915_v50 = vld [vmem:[%s7931_s25 + $0x12c0] ss:$48 sps:$4 sm:$0xff]  }
  0x3f   : > { %4640 = vmatpush2.bf16.msra.mxu0 %v6856_v55  ;;  %v6920_v51 = vld [vmem:[%s7931_s25 + $0xc64] ss:$48 sps:$4 sm:$0xff]   ;;  %v6918_v53 = vld [vmem:[%s7931_s25 + $0xc60] ss:$48 sps:$4 sm:$0xff]  }
  0x40   : > { %4693 = vmatpush2.bf16.msra.mxu1 %v6857_v56  ;;  %4641 = vmatprep.subr.bf16.mxu0 %v6858_v57  ;;  %v6923_v52 = vld [vmem:[%s7931_s25 + $0x1264] ss:$48 sps:$4 sm:$0xff]   ;;  %v6921_v54 = vld [vmem:[%s7931_s25 + $0x1260] ss:$48 sps:$4 sm:$0xff]  }
  0x41   : > { %4694 = vmatprep.subr.bf16.mxu1 %v6860_v58  ;;  %v6926_v55 = vld [vmem:[%s7931_s25 + $0xc04] ss:$48 sps:$4 sm:$0xff]   ;;  %v6924_v58 = vld [vmem:[%s7931_s25 + $0xc00] ss:$48 sps:$4 sm:$0xff]  }
  0x42   : > { %v6929_v56 = vld [vmem:[%s7931_s25 + $0x1204] ss:$48 sps:$4 sm:$0xff]   ;;  %v6948_v15 = vld [vmem:[%s7931_s25 + $0x1080] ss:$48 sps:$4 sm:$0xff]  }
  0x43   : > { %4642 = vmatpush2.bf16.msra.mxu0 %v6862_v59  ;;  %v908_v57 = vld [vmem:[%s9112_s2] sm:$0xff] }
  0x44   : > { %4695 = vmatpush2.bf16.msra.mxu1 %v6863_v60  ;;  %4643 = vmatprep.subr.bf16.mxu0 %v6864_v61  ;;  %v6927_v59 = vld [vmem:[%s7931_s25 + $0x1200] ss:$48 sps:$4 sm:$0xff]   ;;  %v6932_v60 = vld [vmem:[%s7931_s25 + $0x11a4] ss:$48 sps:$4 sm:$0xff]  }
  0x45   : > { %4696 = vmatprep.subr.bf16.mxu1 %v6866_v62  ;;  %914 = vperm.xlu0 %6784, %v908_v57   ;;  %v6935_v61 = vld [vmem:[%s7931_s25 + $0x1624] ss:$48 sps:$4 sm:$0xff]   ;;  %v909_v62 = vld [vmem:[%s9112_s2 + $0x8] sm:$0xff]  ;;  %v6951_v16 = vld [vmem:[%s7931_s25 + $0x1500] ss:$48 sps:$4 sm:$0xff]  }
  0x46   : > { %v6956_v17 = vld [vmem:[%s7931_s25 + $0x1024] ss:$48 sps:$4 sm:$0xff]  }
  0x47   : > { %4644 = vmatpush2.bf16.msra.mxu0 %v6868_v63  ;;  %v6930_v63 = vld [vmem:[%s7931_s25 + $0x11a0] ss:$48 sps:$4 sm:$0xff]  }
  0x48   : > { %4697 = vmatpush2.bf16.msra.mxu1 %v6869_v0  ;;  %4645 = vmatprep.subr.bf16.mxu0 %v6870_v1  ;;  %v6933_v0 = vld [vmem:[%s7931_s25 + $0x1620] ss:$48 sps:$4 sm:$0xff]   ;;  %v6938_v1 = vld [vmem:[%s7931_s25 + $0x1144] ss:$48 sps:$4 sm:$0xff]  }
  0x49   : > { %4698 = vmatprep.subr.bf16.mxu1 %v6872_v2  ;;  %919 = vperm.xlu0 %6784, %v909_v62   ;;  %v6941_v2 = vld [vmem:[%s7931_s25 + $0x15c4] ss:$48 sps:$4 sm:$0xff]   ;;  %v6993_v62 = vld [vmem:[%s7931_s25 + $0x7e8] ss:$48 sps:$4 sm:$0xff]  }
  0x4b   : > { %4646 = vmatpush2.bf16.msra.mxu0 %v6874_v4  ;;  %v6936_v4 = vld [vmem:[%s7931_s25 + $0x1140] ss:$48 sps:$4 sm:$0xff]  }
  0x4c   : > { %4699 = vmatpush2.bf16.msra.mxu1 %v6875_v8  ;;  %4647 = vmatprep.subr.bf16.mxu0 %v6876_v9  ;;  %v6939_v8 = vld [vmem:[%s7931_s25 + $0x15c0] ss:$48 sps:$4 sm:$0xff]   ;;  %v6944_v9 = vld [vmem:[%s7931_s25 + $0x10e4] ss:$48 sps:$4 sm:$0xff]  }
  0x4d   : > { %4700 = vmatprep.subr.bf16.mxu1 %v6878_v10  ;;  %v6947_v10 = vld [vmem:[%s7931_s25 + $0x1564] ss:$48 sps:$4 sm:$0xff]  }
  0x4f   : > { %4648 = vmatpush2.bf16.msra.mxu0 %v6880_v11  ;;  %v6942_v11 = vld [vmem:[%s7931_s25 + $0x10e0] ss:$48 sps:$4 sm:$0xff]  }
  0x50   : > { %4701 = vmatpush2.bf16.msra.mxu1 %v6881_v12  ;;  %4723 = vmatprep.subr.bf16.mxu0 %v6884_v13  ;;  %v6945_v12 = vld [vmem:[%s7931_s25 + $0x1560] ss:$48 sps:$4 sm:$0xff]   ;;  %v6950_v13 = vld [vmem:[%s7931_s25 + $0x1084] ss:$48 sps:$4 sm:$0xff]  }
  0x51   : > { %4776 = vmatprep.subr.bf16.mxu1 %v6887_v14  ;;  %v6953_v14 = vld [vmem:[%s7931_s25 + $0x1504] ss:$48 sps:$4 sm:$0xff]  }
  0x52   : > { %4650 = vmatmul.mubr.bf16.vlgmr.msra.gmra.mxu0 %v7917_v5 }
  0x53   : > { %4703 = vmatmul.mubr.bf16.vlgmr.msra.gmra.mxu1 %v7923_v7  ;;  %4724 = vmatpush1.bf16.msra.mxu0 %v6882_v19  ;;  %v183_v19 = vld [vmem:[%s9111_s1 + $0x58] sm:$0xff] }
  0x54   : > { %4777 = vmatpush1.bf16.msra.mxu1 %v6885_v20  ;;  %4725 = vmatprep.subr.bf16.mxu0 %v6890_v21  ;;  %v8115_v20 = vcombine.low %v8028_v29, %v8033_v30  ;;  %v187_v21 = vld [vmem:[%s9111_s1 + $0x78] sm:$0xff]  ;;  %v910_v29 = vld [vmem:[%s9112_s2 + $0x10] sm:$0xff] }
  0x55   : > { %4778 = vmatprep.subr.bf16.mxu1 %v6893_v22  ;;  %4659 = vmatprep.mubr.bf16.mxu0 %v8015_v23  ;;  %v6954_v22 = vld [vmem:[%s7931_s25 + $0x1020] ss:$48 sps:$4 sm:$0xff]  }
  0x56   : > { %4712 = vmatprep.mubr.bf16.mxu1 %v8017_v24  ;;  %v6960_v30 = vld [vmem:[%s7931_s25 + $0xfc0] ss:$48 sps:$4 sm:$0xff]   ;;  %924 = vperm.xlu1 %6785, %v910_v29   ;;  %v7026_v29 = vld [vmem:[%s7931_s25 + $0x428] ss:$48 sps:$4 sm:$0xff]  }
  0x57   : > { %4726 = vmatpush1.bf16.msra.mxu0 %v6888_v25  ;;  %v6957_v25 = vld [vmem:[%s7931_s25 + $0x2a8] ss:$48 sps:$4 sm:$0xff]  }
  0x58   : > { %4779 = vmatpush1.bf16.msra.mxu1 %v6891_v26  ;;  %4727 = vmatprep.subr.bf16.mxu0 %v6896_v27  ;;  %v6962_v26 = vld [vmem:[%s7931_s25 + $0xfc4] ss:$48 sps:$4 sm:$0xff]   ;;  %v6965_v27 = vld [vmem:[%s7931_s25 + $0x24c] ss:$48 sps:$4 sm:$0xff]  }
  0x59   : > { %4780 = vmatprep.subr.bf16.mxu1 %v6899_v28  ;;  %v8124_v28 = vcombine.high %v183_v19, %v187_v21 }
  0x5a   : > { %4660 = vmatmul.mubr.bf16.gmra.mxu0 %v8049_v35 }
  0x5b   : > { %4713 = vmatmul.mubr.bf16.gmra.mxu1 %v8051_v36  ;;  %4728 = vmatpush1.bf16.msra.mxu0 %v6894_v33  ;;  %v6963_v33 = vld [vmem:[%s7931_s25 + $0x248] ss:$48 sps:$4 sm:$0xff]  }
  0x5c   : > { %4781 = vmatpush1.bf16.msra.mxu1 %v6897_v34  ;;  %4729 = vmatprep.subr.bf16.mxu0 %v6902_v37  ;;  %v6968_v34 = vld [vmem:[%s7931_s25 + $0xf64] ss:$48 sps:$4 sm:$0xff]   ;;  %v6971_v37 = vld [vmem:[%s7931_s25 + $0x1ec] ss:$48 sps:$4 sm:$0xff]  }
  0x5d   : > { %4782 = vmatprep.subr.bf16.mxu1 %v6905_v38  ;;  %6759 = vmatprep.mubr.msk.bf16.mxu1 %vm4610_vm0, %v8057_v39  ;;  %v911_v38 = vld [vmem:[%s9112_s2 + $0x18] sm:$0xff] }
  0x5e   : > { %4755 = vmatprep.mubr.bf16.mxu0 %v8061_v40  ;;  %929 = vperm.xlu1 %6785, %v911_v38   ;;  %v7035_v38 = vld [vmem:[%s7931_s25 + $0xb48] ss:$48 sps:$4 sm:$0xff]  }
  0x5f   : > { %4730 = vmatpush1.bf16.msra.mxu0 %v6900_v41  ;;  %v6966_v41 = vld [vmem:[%s7931_s25 + $0xf60] ss:$48 sps:$4 sm:$0xff]  }
  0x60   : > { %4783 = vmatpush1.bf16.msra.mxu1 %v6903_v42  ;;  %4731 = vmatprep.subr.bf16.mxu0 %v6908_v43  ;;  %v6969_v42 = vld [vmem:[%s7931_s25 + $0x1e8] ss:$48 sps:$4 sm:$0xff]   ;;  %v8141_v43 = vcombine.low %v183_v19, %v187_v21  ;;  %v7022_v19 = vld [vmem:[%s7931_s25 + $0x48c] ss:$48 sps:$4 sm:$0xff]  }
  0x61   : > { %4784 = vmatprep.subr.bf16.mxu1 %v6911_v44  ;;  %v6974_v44 = vld [vmem:[%s7931_s25 + $0xf04] ss:$48 sps:$4 sm:$0xff]   ;;  %v7025_v21 = vld [vmem:[%s7931_s25 + $0x60c] ss:$48 sps:$4 sm:$0xff]  }
  0x63   : > { %4732 = vmatpush1.bf16.msra.mxu0 %v6906_v45  ;;  %v6977_v45 = vld [vmem:[%s7931_s25 + $0x18c] ss:$48 sps:$4 sm:$0xff]  }
  0x64   : > { %4785 = vmatpush1.bf16.msra.mxu1 %v6909_v46  ;;  %4733 = vmatprep.subr.bf16.mxu0 %v6914_v47  ;;  %v6972_v46 = vld [vmem:[%s7931_s25 + $0xf00] ss:$48 sps:$4 sm:$0xff]   ;;  %v6975_v47 = vld [vmem:[%s7931_s25 + $0x188] ss:$48 sps:$4 sm:$0xff]  }
  0x65   : > { %4786 = vmatprep.subr.bf16.mxu1 %v6917_v48  ;;  %v6980_v48 = vld [vmem:[%s7931_s25 + $0x12c] ss:$48 sps:$4 sm:$0xff]  }
  0x67   : > { %4734 = vmatpush1.bf16.msra.mxu0 %v6912_v49  ;;  %v6983_v49 = vld [vmem:[%s7931_s25 + $0x8ac] ss:$48 sps:$4 sm:$0xff]  }
  0x68   : > { %4787 = vmatpush1.bf16.msra.mxu1 %v6915_v50  ;;  %4735 = vmatprep.subr.bf16.mxu0 %v6920_v51  ;;  %v6978_v50 = vld [vmem:[%s7931_s25 + $0x128] ss:$48 sps:$4 sm:$0xff]  }
  0x69   : > { %4788 = vmatprep.subr.bf16.mxu1 %v6923_v52  ;;  %v6981_v51 = vld [vmem:[%s7931_s25 + $0x8a8] ss:$48 sps:$4 sm:$0xff]   ;;  %v8155_v52 = vcombine.low %v8040_v31, %v8045_v32 }
  0x6a   : > { %v6984_v31 = vld [vmem:[%s7931_s25 + $0xc8] ss:$48 sps:$4 sm:$0xff]  }
  0x6b   : > { %4736 = vmatpush1.bf16.msra.mxu0 %v6918_v53  ;;  %v182_v53 = vld [vmem:[%s9111_s1 + $0x50] sm:$0xff]  ;;  %v6987_v32 = vld [vmem:[%s7931_s25 + $0x848] ss:$48 sps:$4 sm:$0xff]  }
  0x6c   : > { %4789 = vmatpush1.bf16.msra.mxu1 %v6921_v54  ;;  %4737 = vmatprep.subr.bf16.mxu0 %v6926_v55  ;;  %v186_v54 = vld [vmem:[%s9111_s1 + $0x70] sm:$0xff]  ;;  %v6986_v55 = vld [vmem:[%s7931_s25 + $0xcc] ss:$48 sps:$4 sm:$0xff]  }
  0x6d   : > { %4790 = vmatprep.subr.bf16.mxu1 %v6929_v56  ;;  %v6989_v56 = vld [vmem:[%s7931_s25 + $0x84c] ss:$48 sps:$4 sm:$0xff]   ;;  %v8165_v57 = vcombine.high %v182_v53, %v186_v54 }
  0x6f   : > { %4738 = vmatpush1.bf16.msra.mxu0 %v6924_v58  ;;  %v6992_v58 = vld [vmem:[%s7931_s25 + $0x6c] ss:$48 sps:$4 sm:$0xff]  }
  0x70   : > { %4791 = vmatpush1.bf16.msra.mxu1 %v6927_v59  ;;  %4739 = vmatprep.subr.bf16.mxu0 %v6932_v60  ;;  %v6995_v59 = vld [vmem:[%s7931_s25 + $0x7ec] ss:$48 sps:$4 sm:$0xff]   ;;  %v8173_v60 = vcombine.low %v182_v53, %v186_v54  ;;  %v7050_v53 = vld [vmem:[%s7931_s25 + $0xa28] ss:$48 sps:$4 sm:$0xff]  }
  0x71   : > { %4800 = vmatprep.subr.bf16.mxu1 %v6935_v61  ;;  %v6990_v61 = vld [vmem:[%s7931_s25 + $0x68] ss:$48 sps:$4 sm:$0xff]  }
  0x72   : > { %v7053_v54 = vld [vmem:[%s7931_s25 + $0xea8] ss:$48 sps:$4 sm:$0xff]  }
  0x73   : > { %4740 = vmatpush2.bf16.msra.mxu0 %v6930_v63  ;;  %v6998_v63 = vld [vmem:[%s7931_s25 + $0xc] ss:$48 sps:$4 sm:$0xff]  }
  0x74   : > { %4801 = vmatpush2.bf16.msra.mxu1 %v6933_v0  ;;  %4741 = vmatprep.subr.bf16.mxu0 %v6938_v1  ;;  %v7001_v0 = vld [vmem:[%s7931_s25 + $0x78c] ss:$48 sps:$4 sm:$0xff]   ;;  %v6996_v1 = vld [vmem:[%s7931_s25 + $0x8] ss:$48 sps:$4 sm:$0xff]  }
  0x75   : > { %4802 = vmatprep.subr.bf16.mxu1 %v6941_v2  ;;  %v6999_v2 = vld [vmem:[%s7931_s25 + $0x788] ss:$48 sps:$4 sm:$0xff]  }
  0x77   : > { %4742 = vmatpush2.bf16.msra.mxu0 %v6936_v4  ;;  %v7004_v4 = vld [vmem:[%s7931_s25 + $0x5ac] ss:$48 sps:$4 sm:$0xff]  }
  0x78   : > { %4803 = vmatpush2.bf16.msra.mxu1 %v6939_v8  ;;  %4743 = vmatprep.subr.bf16.mxu0 %v6944_v9  ;;  %v7007_v8 = vld [vmem:[%s7931_s25 + $0x72c] ss:$48 sps:$4 sm:$0xff]   ;;  %v7002_v9 = vld [vmem:[%s7931_s25 + $0x5a8] ss:$48 sps:$4 sm:$0xff]  }
  0x79   : > { %4804 = vmatprep.subr.bf16.mxu1 %v6947_v10  ;;  %v7005_v10 = vld [vmem:[%s7931_s25 + $0x728] ss:$48 sps:$4 sm:$0xff]  }
  0x7b   : > { %4744 = vmatpush2.bf16.msra.mxu0 %v6942_v11  ;;  %v7010_v11 = vld [vmem:[%s7931_s25 + $0x54c] ss:$48 sps:$4 sm:$0xff]  }
  0x7c   : > { %4805 = vmatpush2.bf16.msra.mxu1 %v6945_v12  ;;  %4745 = vmatprep.subr.bf16.mxu0 %v6950_v13  ;;  %v7013_v12 = vld [vmem:[%s7931_s25 + $0x6cc] ss:$48 sps:$4 sm:$0xff]   ;;  %v7008_v13 = vld [vmem:[%s7931_s25 + $0x548] ss:$48 sps:$4 sm:$0xff]  }
  0x7d   : > { %4806 = vmatprep.subr.bf16.mxu1 %v6953_v14  ;;  %v7011_v14 = vld [vmem:[%s7931_s25 + $0x6c8] ss:$48 sps:$4 sm:$0xff]  }
  0x7f   : > { %4746 = vmatpush2.bf16.msra.mxu0 %v6948_v15  ;;  %v7016_v15 = vld [vmem:[%s7931_s25 + $0x4ec] ss:$48 sps:$4 sm:$0xff]  }
  0x80   : > { %4807 = vmatpush2.bf16.msra.mxu1 %v6951_v16  ;;  %4747 = vmatprep.subr.bf16.mxu0 %v6956_v17  ;;  %v7019_v16 = vld [vmem:[%s7931_s25 + $0x66c] ss:$48 sps:$4 sm:$0xff]   ;;  %v7014_v17 = vld [vmem:[%s7931_s25 + $0x4e8] ss:$48 sps:$4 sm:$0xff]  }
  0x81   : > { %4829 = vmatprep.subr.bf16.mxu1 %v6959_v18  ;;  %v7017_v18 = vld [vmem:[%s7931_s25 + $0x668] ss:$48 sps:$4 sm:$0xff]  }
  0x83   : > { %4809 = vmatmul.mubr.bf16.vlgmr.msra.gmra.mxu1 %v8115_v20  ;;  %4748 = vmatpush2.bf16.msra.mxu0 %v6954_v22  ;;  %v7020_v22 = vld [vmem:[%s7931_s25 + $0x488] ss:$48 sps:$4 sm:$0xff]  }
  0x84   : > { %4830 = vmatpush1.bf16.msra.mxu1 %v6957_v25  ;;  %4749 = vmatprep.subr.bf16.mxu0 %v6962_v26  ;;  %v7023_v25 = vld [vmem:[%s7931_s25 + $0x608] ss:$48 sps:$4 sm:$0xff]   ;;  %v7028_v26 = vld [vmem:[%s7931_s25 + $0x42c] ss:$48 sps:$4 sm:$0xff]  }
  0x85   : > { %4831 = vmatprep.subr.bf16.mxu1 %v6965_v27  ;;  %6760 = vmatprep.mubr.msk.bf16.mxu1 %vm4610_vm0, %v8124_v28  ;;  %v7031_v27 = vld [vmem:[%s7931_s25 + $0xbac] ss:$48 sps:$4 sm:$0xff]  }
  0x87   : > { %4750 = vmatpush2.bf16.msra.mxu0 %v6960_v30  ;;  %v7029_v30 = vld [vmem:[%s7931_s25 + $0xba8] ss:$48 sps:$4 sm:$0xff]  }
  0x88   : > { %4832 = vmatpush1.bf16.msra.mxu1 %v6963_v33  ;;  %4751 = vmatprep.subr.bf16.mxu0 %v6968_v34  ;;  %v7034_v33 = vld [vmem:[%s7931_s25 + $0x3cc] ss:$48 sps:$4 sm:$0xff]  }
  0x89   : > { %4833 = vmatprep.subr.bf16.mxu1 %v6971_v37  ;;  %v7037_v34 = vld [vmem:[%s7931_s25 + $0xb4c] ss:$48 sps:$4 sm:$0xff]   ;;  %v7032_v37 = vld [vmem:[%s7931_s25 + $0x3c8] ss:$48 sps:$4 sm:$0xff]  }
  0x8b   : > { %4819 = vmatmul.mubr.bf16.gmra.mxu1 %v8141_v43  ;;  %4752 = vmatpush2.bf16.msra.mxu0 %v6966_v41  ;;  %v7040_v41 = vld [vmem:[%s7931_s25 + $0x36c] ss:$48 sps:$4 sm:$0xff]  }
  0x8c   : > { %4834 = vmatpush1.bf16.msra.mxu1 %v6969_v42  ;;  %4753 = vmatprep.subr.bf16.mxu0 %v6974_v44  ;;  %v7043_v42 = vld [vmem:[%s7931_s25 + $0xaec] ss:$48 sps:$4 sm:$0xff]   ;;  %v7038_v44 = vld [vmem:[%s7931_s25 + $0x368] ss:$48 sps:$4 sm:$0xff]  }
  0x8d   : > { %4835 = vmatprep.subr.bf16.mxu1 %v6977_v45  ;;  %4861 = vmatprep.mubr.bf16.mxu1 %v7912_v3  ;;  %v7041_v45 = vld [vmem:[%s7931_s25 + $0xae8] ss:$48 sps:$4 sm:$0xff]  }
  0x8f   : > { %4754 = vmatpush2.bf16.msra.mxu0 %v6972_v46  ;;  %v7046_v46 = vld [vmem:[%s7931_s25 + $0x30c] ss:$48 sps:$4 sm:$0xff]  }
  0x90   : > { %4836 = vmatpush1.bf16.msra.mxu1 %v6975_v47  ;;  %4882 = vmatprep.subr.bf16.mxu0 %v6983_v49  ;;  %v7049_v47 = vld [vmem:[%s7931_s25 + $0xa8c] ss:$48 sps:$4 sm:$0xff]   ;;  %v7047_v49 = vld [vmem:[%s7931_s25 + $0xa88] ss:$48 sps:$4 sm:$0xff]  }
  0x91   : > { %4837 = vmatprep.subr.bf16.mxu1 %v6980_v48  ;;  %v7044_v48 = vld [vmem:[%s7931_s25 + $0x308] ss:$48 sps:$4 sm:$0xff]  }
  0x92   : > { %4756 = vmatmul.mubr.bf16.vlgmr.msra.gmra.mxu0 %v8155_v52 }
  0x93   : > { %4883 = vmatpush1.bf16.msra.mxu0 %v6981_v51  ;;  %4765 = vmatprep.mubr.bf16.mxu0 %v8165_v57  ;;  %v7055_v51 = vld [vmem:[%s7931_s25 + $0xeac] ss:$48 sps:$4 sm:$0xff]  }
  0x94   : > { %4838 = vmatpush1.bf16.msra.mxu1 %v6978_v50  ;;  %4884 = vmatprep.subr.bf16.mxu0 %v6989_v56  ;;  %v7052_v50 = vld [vmem:[%s7931_s25 + $0xa2c] ss:$48 sps:$4 sm:$0xff]  }
  0x95   : > { %4839 = vmatprep.subr.bf16.mxu1 %v6986_v55  ;;  %v7058_v55 = vld [vmem:[%s7931_s25 + $0x9cc] ss:$48 sps:$4 sm:$0xff]  }
  0x96   : > { %v7061_v56 = vld [vmem:[%s7931_s25 + $0xe4c] ss:$48 sps:$4 sm:$0xff]  }
  0x97   : > { %4885 = vmatpush1.bf16.msra.mxu0 %v6987_v32  ;;  %v7059_v32 = vld [vmem:[%s7931_s25 + $0xe48] ss:$48 sps:$4 sm:$0xff]  }
  0x98   : > { %4840 = vmatpush1.bf16.msra.mxu1 %v6984_v31  ;;  %4886 = vmatprep.subr.bf16.mxu0 %v6995_v59  ;;  %v7056_v31 = vld [vmem:[%s7931_s25 + $0x9c8] ss:$48 sps:$4 sm:$0xff]   ;;  %v7067_v59 = vld [vmem:[%s7931_s25 + $0xdec] ss:$48 sps:$4 sm:$0xff]  }
  0x99   : > { %4841 = vmatprep.subr.bf16.mxu1 %v6992_v58  ;;  %v7064_v58 = vld [vmem:[%s7931_s25 + $0x96c] ss:$48 sps:$4 sm:$0xff]  }
  0x9a   : > { %4766 = vmatmul.mubr.bf16.gmra.mxu0 %v8173_v60 }
  0x9b   : > { %4887 = vmatpush1.bf16.msra.mxu0 %v6993_v62  ;;  %4914 = vmatprep.mubr.bf16.mxu0 %v7921_v6  ;;  %v7065_v62 = vld [vmem:[%s7931_s25 + $0xde8] ss:$48 sps:$4 sm:$0xff]  }
  0x9c   : > { %4842 = vmatpush1.bf16.msra.mxu1 %v6990_v61  ;;  %4888 = vmatprep.subr.bf16.mxu0 %v7001_v0  ;;  %v7062_v61 = vld [vmem:[%s7931_s25 + $0x968] ss:$48 sps:$4 sm:$0xff]   ;;  %v7073_v0 = vld [vmem:[%s7931_s25 + $0xd8c] ss:$48 sps:$4 sm:$0xff]  }
  0x9d   : > { %4843 = vmatprep.subr.bf16.mxu1 %v6998_v63  ;;  %v7070_v63 = vld [vmem:[%s7931_s25 + $0x90c] ss:$48 sps:$4 sm:$0xff]  }
  0x9f   : > { %4889 = vmatpush1.bf16.msra.mxu0 %v6999_v2  ;;  %v7071_v2 = vld [vmem:[%s7931_s25 + $0xd88] ss:$48 sps:$4 sm:$0xff]  }
  0xa0   : > { %4844 = vmatpush1.bf16.msra.mxu1 %v6996_v1  ;;  %4890 = vmatprep.subr.bf16.mxu0 %v7007_v8  ;;  %v7068_v1 = vld [vmem:[%s7931_s25 + $0x908] ss:$48 sps:$4 sm:$0xff]   ;;  %v7079_v8 = vld [vmem:[%s7931_s25 + $0x14ac] ss:$48 sps:$4 sm:$0xff]  }
  0xa1   : > { %4845 = vmatprep.subr.bf16.mxu1 %v7004_v4  ;;  %v7076_v4 = vld [vmem:[%s7931_s25 + $0xd2c] ss:$48 sps:$4 sm:$0xff]  }
  0xa3   : > { %4891 = vmatpush1.bf16.msra.mxu0 %v7005_v10  ;;  %v7077_v10 = vld [vmem:[%s7931_s25 + $0x14a8] ss:$48 sps:$4 sm:$0xff]  }
  0xa4   : > { %4846 = vmatpush2.bf16.msra.mxu1 %v7002_v9  ;;  %4892 = vmatprep.subr.bf16.mxu0 %v7013_v12  ;;  %v7074_v9 = vld [vmem:[%s7931_s25 + $0xd28] ss:$48 sps:$4 sm:$0xff]   ;;  %v7085_v12 = vld [vmem:[%s7931_s25 + $0x144c] ss:$48 sps:$4 sm:$0xff]  }
  0xa5   : > { %4847 = vmatprep.subr.bf16.mxu1 %v7010_v11  ;;  %v7082_v11 = vld [vmem:[%s7931_s25 + $0xccc] ss:$48 sps:$4 sm:$0xff]  }
  0xa7   : > { %4893 = vmatpush1.bf16.msra.mxu0 %v7011_v14  ;;  %v7083_v14 = vld [vmem:[%s7931_s25 + $0x1448] ss:$48 sps:$4 sm:$0xff]  }
  0xa8   : > { %4848 = vmatpush2.bf16.msra.mxu1 %v7008_v13  ;;  %4894 = vmatprep.subr.bf16.mxu0 %v7019_v16  ;;  %v7080_v13 = vld [vmem:[%s7931_s25 + $0xcc8] ss:$48 sps:$4 sm:$0xff]   ;;  %v7091_v16 = vld [vmem:[%s7931_s25 + $0x13ec] ss:$48 sps:$4 sm:$0xff]  }
  0xa9   : > { %4849 = vmatprep.subr.bf16.mxu1 %v7016_v15  ;;  %v7088_v15 = vld [vmem:[%s7931_s25 + $0xc6c] ss:$48 sps:$4 sm:$0xff]  }
  0xab   : > { %4895 = vmatpush1.bf16.msra.mxu0 %v7017_v18  ;;  %v7089_v18 = vld [vmem:[%s7931_s25 + $0x13e8] ss:$48 sps:$4 sm:$0xff]  }
  0xac   : > { %4850 = vmatpush2.bf16.msra.mxu1 %v7014_v17  ;;  %4896 = vmatprep.subr.bf16.mxu0 %v7025_v21  ;;  %v7086_v17 = vld [vmem:[%s7931_s25 + $0xc68] ss:$48 sps:$4 sm:$0xff]   ;;  %v7097_v21 = vld [vmem:[%s7931_s25 + $0x138c] ss:$48 sps:$4 sm:$0xff]  }
  0xad   : > { %4851 = vmatprep.subr.bf16.mxu1 %v7022_v19  ;;  %v7094_v19 = vld [vmem:[%s7931_s25 + $0xc0c] ss:$48 sps:$4 sm:$0xff]  }
  0xaf   : > { %4897 = vmatpush1.bf16.msra.mxu0 %v7023_v25  ;;  %v7095_v25 = vld [vmem:[%s7931_s25 + $0x1388] ss:$48 sps:$4 sm:$0xff]  }
  0xb0   : > { %4852 = vmatpush2.bf16.msra.mxu1 %v7020_v22  ;;  %4898 = vmatprep.subr.bf16.mxu0 %v7031_v27  ;;  %v7092_v22 = vld [vmem:[%s7931_s25 + $0xc08] ss:$48 sps:$4 sm:$0xff]   ;;  %v7103_v27 = vld [vmem:[%s7931_s25 + $0x132c] ss:$48 sps:$4 sm:$0xff]  }
  0xb1   : > { %4853 = vmatprep.subr.bf16.mxu1 %v7028_v26  ;;  %v7100_v26 = vld [vmem:[%s7931_s25 + $0x11ac] ss:$48 sps:$4 sm:$0xff]  }
  0xb3   : > { %4899 = vmatpush2.bf16.msra.mxu0 %v7029_v30  ;;  %v7101_v30 = vld [vmem:[%s7931_s25 + $0x1328] ss:$48 sps:$4 sm:$0xff]  }
  0xb4   : > { %4854 = vmatpush2.bf16.msra.mxu1 %v7026_v29  ;;  %4900 = vmatprep.subr.bf16.mxu0 %v7037_v34  ;;  %v7098_v29 = vld [vmem:[%s7931_s25 + $0x11a8] ss:$48 sps:$4 sm:$0xff]   ;;  %v7109_v34 = vld [vmem:[%s7931_s25 + $0x12cc] ss:$48 sps:$4 sm:$0xff]  }
  0xb5   : > { %4855 = vmatprep.subr.bf16.mxu1 %v7034_v33  ;;  %v7106_v33 = vld [vmem:[%s7931_s25 + $0x114c] ss:$48 sps:$4 sm:$0xff]  }
  0xb7   : > { %4901 = vmatpush2.bf16.msra.mxu0 %v7035_v38  ;;  %v7107_v38 = vld [vmem:[%s7931_s25 + $0x12c8] ss:$48 sps:$4 sm:$0xff]  }
  0xb8   : > { %4856 = vmatpush2.bf16.msra.mxu1 %v7032_v37  ;;  %4902 = vmatprep.subr.bf16.mxu0 %v7043_v42  ;;  %v7104_v37 = vld [vmem:[%s7931_s25 + $0x1148] ss:$48 sps:$4 sm:$0xff]   ;;  %v7115_v42 = vld [vmem:[%s7931_s25 + $0x126c] ss:$48 sps:$4 sm:$0xff]  }
  0xb9   : > { %4857 = vmatprep.subr.bf16.mxu1 %v7040_v41  ;;  %v7112_v41 = vld [vmem:[%s7931_s25 + $0x10ec] ss:$48 sps:$4 sm:$0xff]  }
  0xbb   : > { %4903 = vmatpush2.bf16.msra.mxu0 %v7041_v45  ;;  %v7113_v45 = vld [vmem:[%s7931_s25 + $0x1268] ss:$48 sps:$4 sm:$0xff]  }
  0xbc   : > { %4858 = vmatpush2.bf16.msra.mxu1 %v7038_v44  ;;  %4904 = vmatprep.subr.bf16.mxu0 %v7049_v47  ;;  %v7110_v44 = vld [vmem:[%s7931_s25 + $0x10e8] ss:$48 sps:$4 sm:$0xff]   ;;  %v7121_v47 = vld [vmem:[%s7931_s25 + $0x120c] ss:$48 sps:$4 sm:$0xff]  }
  0xbd   : > { %4859 = vmatprep.subr.bf16.mxu1 %v7046_v46  ;;  %v7118_v46 = vld [vmem:[%s7931_s25 + $0x108c] ss:$48 sps:$4 sm:$0xff]  }
  0xbf   : > { %4905 = vmatpush2.bf16.msra.mxu0 %v7047_v49  ;;  %v7119_v49 = vld [vmem:[%s7931_s25 + $0x1208] ss:$48 sps:$4 sm:$0xff]  }
  0xc0   : > { %4860 = vmatpush2.bf16.msra.mxu1 %v7044_v48  ;;  %4906 = vmatprep.subr.bf16.mxu0 %v7052_v50  ;;  %v7116_v48 = vld [vmem:[%s7931_s25 + $0x1088] ss:$48 sps:$4 sm:$0xff]   ;;  %v7124_v50 = vld [vmem:[%s7931_s25 + $0x102c] ss:$48 sps:$4 sm:$0xff]  }
  0xc1   : > { %4935 = vmatprep.subr.bf16.mxu1 %v7055_v51  ;;  %v7127_v51 = vld [vmem:[%s7931_s25 + $0x162c] ss:$48 sps:$4 sm:$0xff]  }
  0xc3   : > { %4862 = vmatmul.mubr.bf16.vlgmr.msra.gmra.mxu1 %v7917_v5  ;;  %4907 = vmatpush2.bf16.msra.mxu0 %v7050_v53  ;;  %v7122_v53 = vld [vmem:[%s7931_s25 + $0x1028] ss:$48 sps:$4 sm:$0xff]  }
  0xc4   : > { %4936 = vmatpush1.bf16.msra.mxu1 %v7053_v54  ;;  %4908 = vmatprep.subr.bf16.mxu0 %v7058_v55  ;;  %v7125_v54 = vld [vmem:[%s7931_s25 + $0x1628] ss:$48 sps:$4 sm:$0xff]   ;;  %v7130_v55 = vld [vmem:[%s7931_s25 + $0xfcc] ss:$48 sps:$4 sm:$0xff]  }
  0xc5   : > { %4937 = vmatprep.subr.bf16.mxu1 %v7061_v56  ;;  %4871 = vmatprep.mubr.bf16.mxu1 %v8015_v23  ;;  %v7133_v56 = vld [vmem:[%s7931_s25 + $0x15cc] ss:$48 sps:$4 sm:$0xff]  }
  0xc7   : > { %4909 = vmatpush2.bf16.msra.mxu0 %v7056_v31  ;;  %v7128_v31 = vld [vmem:[%s7931_s25 + $0xfc8] ss:$48 sps:$4 sm:$0xff]  }
  0xc8   : > { %4938 = vmatpush1.bf16.msra.mxu1 %v7059_v32  ;;  %4910 = vmatprep.subr.bf16.mxu0 %v7064_v58  ;;  %v7131_v32 = vld [vmem:[%s7931_s25 + $0x15c8] ss:$48 sps:$4 sm:$0xff]   ;;  %v7136_v58 = vld [vmem:[%s7931_s25 + $0xf6c] ss:$48 sps:$4 sm:$0xff]  }
  0xc9   : > { %4939 = vmatprep.subr.bf16.mxu1 %v7067_v59  ;;  %v7139_v59 = vld [vmem:[%s7931_s25 + $0x156c] ss:$48 sps:$4 sm:$0xff]  }
  0xcb   : > { %4872 = vmatmul.mubr.bf16.gmra.mxu1 %v8049_v35  ;;  %4911 = vmatpush2.bf16.msra.mxu0 %v7062_v61  ;;  %v7134_v61 = vld [vmem:[%s7931_s25 + $0xf68] ss:$48 sps:$4 sm:$0xff]  }
  0xcc   : > { %4940 = vmatpush1.bf16.msra.mxu1 %v7065_v62  ;;  %4912 = vmatprep.subr.bf16.mxu0 %v7070_v63  ;;  %v7137_v62 = vld [vmem:[%s7931_s25 + $0x1568] ss:$48 sps:$4 sm:$0xff]   ;;  %v7142_v63 = vld [vmem:[%s7931_s25 + $0xf0c] ss:$48 sps:$4 sm:$0xff]  }
  0xcd   : > { %4941 = vmatprep.subr.bf16.mxu1 %v7073_v0  ;;  %4967 = vmatprep.mubr.bf16.mxu1 %v8061_v40  ;;  %v7145_v0 = vld [vmem:[%s7931_s25 + $0x150c] ss:$48 sps:$4 sm:$0xff]  }
  0xcf   : > { %4913 = vmatpush2.bf16.msra.mxu0 %v7068_v1  ;;  %v7140_v1 = vld [vmem:[%s7931_s25 + $0xf08] ss:$48 sps:$4 sm:$0xff]  }
  0xd0   : > { %4942 = vmatpush1.bf16.msra.mxu1 %v7071_v2  ;;  %4988 = vmatprep.subr.bf16.mxu0 %v7079_v8  ;;  %v7143_v2 = vld [vmem:[%s7931_s25 + $0x1508] ss:$48 sps:$4 sm:$0xff]   ;;  %v7151_v8 = vld [vmem:[%s7931_s25 + $0x8b4] ss:$48 sps:$4 sm:$0xff]  }
  0xd1   : > { %4943 = vmatprep.subr.bf16.mxu1 %v7076_v4  ;;  %v7148_v4 = vld [vmem:[%s7931_s25 + $0x2b4] ss:$48 sps:$4 sm:$0xff]  }
  0xd2   : > { %4915 = vmatmul.mubr.bf16.vlgmr.msra.gmra.mxu0 %v7923_v7 }
  0xd3   : > { %4989 = vmatpush1.bf16.msra.mxu0 %v7077_v10  ;;  %4924 = vmatprep.mubr.bf16.mxu0 %v8017_v24  ;;  %v7149_v10 = vld [vmem:[%s7931_s25 + $0x8b0] ss:$48 sps:$4 sm:$0xff]  }
  0xd4   : > { %4944 = vmatpush1.bf16.msra.mxu1 %v7074_v9  ;;  %4990 = vmatprep.subr.bf16.mxu0 %v7085_v12  ;;  %v7146_v9 = vld [vmem:[%s7931_s25 + $0x2b0] ss:$48 sps:$4 sm:$0xff]   ;;  %v7157_v12 = vld [vmem:[%s7931_s25 + $0x854] ss:$48 sps:$4 sm:$0xff]  }
  0xd5   : > { %4945 = vmatprep.subr.bf16.mxu1 %v7082_v11  ;;  %v7154_v11 = vld [vmem:[%s7931_s25 + $0x254] ss:$48 sps:$4 sm:$0xff]  }
  0xd7   : > { %4991 = vmatpush1.bf16.msra.mxu0 %v7083_v14  ;;  %v7155_v14 = vld [vmem:[%s7931_s25 + $0x850] ss:$48 sps:$4 sm:$0xff]  }
  0xd8   : > { %4946 = vmatpush1.bf16.msra.mxu1 %v7080_v13  ;;  %4992 = vmatprep.subr.bf16.mxu0 %v7091_v16  ;;  %v7152_v13 = vld [vmem:[%s7931_s25 + $0x250] ss:$48 sps:$4 sm:$0xff]   ;;  %v7163_v16 = vld [vmem:[%s7931_s25 + $0x7f4] ss:$48 sps:$4 sm:$0xff]  }
  0xd9   : > { %4947 = vmatprep.subr.bf16.mxu1 %v7088_v15  ;;  %v7160_v15 = vld [vmem:[%s7931_s25 + $0x1f4] ss:$48 sps:$4 sm:$0xff]  }
  0xda   : > { %4925 = vmatmul.mubr.bf16.gmra.mxu0 %v8051_v36 }
  0xdb   : > { %4993 = vmatpush1.bf16.msra.mxu0 %v7089_v18  ;;  %6761 = vmatprep.mubr.msk.bf16.mxu0 %vm4610_vm0, %v8057_v39  ;;  %v7161_v18 = vld [vmem:[%s7931_s25 + $0x7f0] ss:$48 sps:$4 sm:$0xff]  }
  0xdc   : > { %4948 = vmatpush1.bf16.msra.mxu1 %v7086_v17  ;;  %4994 = vmatprep.subr.bf16.mxu0 %v7097_v21  ;;  %v7158_v17 = vld [vmem:[%s7931_s25 + $0x1f0] ss:$48 sps:$4 sm:$0xff]   ;;  %v7169_v21 = vld [vmem:[%s7931_s25 + $0x794] ss:$48 sps:$4 sm:$0xff]  }
  0xdd   : > { %4949 = vmatprep.subr.bf16.mxu1 %v7094_v19  ;;  %v7166_v19 = vld [vmem:[%s7931_s25 + $0x194] ss:$48 sps:$4 sm:$0xff]  }
  0xdf   : > { %4995 = vmatpush1.bf16.msra.mxu0 %v7095_v25  ;;  %v7167_v25 = vld [vmem:[%s7931_s25 + $0x790] ss:$48 sps:$4 sm:$0xff]  }
  0xe0   : > { %4950 = vmatpush1.bf16.msra.mxu1 %v7092_v22  ;;  %4996 = vmatprep.subr.bf16.mxu0 %v7103_v27  ;;  %v7164_v22 = vld [vmem:[%s7931_s25 + $0x190] ss:$48 sps:$4 sm:$0xff]   ;;  %v7175_v27 = vld [vmem:[%s7931_s25 + $0x734] ss:$48 sps:$4 sm:$0xff]  }
  0xe1   : > { %4951 = vmatprep.subr.bf16.mxu1 %v7100_v26  ;;  %v7172_v26 = vld [vmem:[%s7931_s25 + $0x134] ss:$48 sps:$4 sm:$0xff]  }
  0xe3   : > { %4997 = vmatpush1.bf16.msra.mxu0 %v7101_v30  ;;  %v7170_v30 = vld [vmem:[%s7931_s25 + $0x130] ss:$48 sps:$4 sm:$0xff]  }
  0xe4   : > { %4952 = vmatpush2.bf16.msra.mxu1 %v7098_v29  ;;  %4998 = vmatprep.subr.bf16.mxu0 %v7109_v34  ;;  %v8313_v29 = vpop.permute.xlu0 %914  ;;  %v7178_v34 = vld [vmem:[%s7931_s25 + $0xd4] ss:$48 sps:$4 sm:$0xff]  }
  0xe5   : > { %4953 = vmatprep.subr.bf16.mxu1 %v7106_v33  ;;  %v7173_v33 = vld [vmem:[%s7931_s25 + $0x730] ss:$48 sps:$4 sm:$0xff]  }
  0xe7   : > { %4999 = vmatpush1.bf16.msra.mxu0 %v7107_v38 }
  0xe8   : > { %4954 = vmatpush2.bf16.msra.mxu1 %v7104_v37  ;;  %5000 = vmatprep.subr.bf16.mxu0 %v7115_v42  ;;  %v7181_v37 = vld [vmem:[%s7931_s25 + $0x6d4] ss:$48 sps:$4 sm:$0xff]   ;;  %v7176_v42 = vld [vmem:[%s7931_s25 + $0xd0] ss:$48 sps:$4 sm:$0xff]  }
  0xe9   : > { %4955 = vmatprep.subr.bf16.mxu1 %v7112_v41 }
  0xeb   : > { %5001 = vmatpush1.bf16.msra.mxu0 %v7113_v45 }
  0xec   : > { %4956 = vmatpush2.bf16.msra.mxu1 %v7110_v44  ;;  %5002 = vmatprep.subr.bf16.mxu0 %v7121_v47  ;;  %v7179_v44 = vld [vmem:[%s7931_s25 + $0x6d0] ss:$48 sps:$4 sm:$0xff]   ;;  %v7184_v47 = vld [vmem:[%s7931_s25 + $0x74] ss:$48 sps:$4 sm:$0xff]  }
  0xed   : > { %4957 = vmatprep.subr.bf16.mxu1 %v7118_v46  ;;  %v8324_v46 = vpop.permute.xlu0 %919 }
  0xef   : > { %5003 = vmatpush1.bf16.msra.mxu0 %v7119_v49 }
  0xf0   : > { %4958 = vmatpush2.bf16.msra.mxu1 %v7116_v48  ;;  %5012 = vmatprep.subr.bf16.mxu0 %v7127_v51 }
  0xf1   : > { %4959 = vmatprep.subr.bf16.mxu1 %v7124_v50  ;;  %v7187_v50 = vld [vmem:[%s7931_s25 + $0x674] ss:$48 sps:$4 sm:$0xff]  }
  0xf3   : > { %5013 = vmatpush2.bf16.msra.mxu0 %v7125_v54  ;;  %v8331_v54 = vpop.permute.xlu1 %924 }
  0xf4   : > { %4960 = vmatpush2.bf16.msra.mxu1 %v7122_v53  ;;  %5014 = vmatprep.subr.bf16.mxu0 %v7133_v56 }
  0xf5   : > { %4961 = vmatprep.subr.bf16.mxu1 %v7130_v55 }
  0xf7   : > { %5015 = vmatpush2.bf16.msra.mxu0 %v7131_v32  ;;  %v7185_v32 = vld [vmem:[%s7931_s25 + $0x670] ss:$48 sps:$4 sm:$0xff]  }
  0xf8   : > { %4962 = vmatpush2.bf16.msra.mxu1 %v7128_v31  ;;  %5016 = vmatprep.subr.bf16.mxu0 %v7139_v59  ;;  %v7182_v31 = vld [vmem:[%s7931_s25 + $0x70] ss:$48 sps:$4 sm:$0xff]  }
  0xf9   : > { %4963 = vmatprep.subr.bf16.mxu1 %v7136_v58 }
  0xfb   : > { %5017 = vmatpush2.bf16.msra.mxu0 %v7137_v62 }
  0xfc   : > { %4964 = vmatpush2.bf16.msra.mxu1 %v7134_v61  ;;  %5018 = vmatprep.subr.bf16.mxu0 %v7145_v0  ;;  %v7193_v0 = vld [vmem:[%s7931_s25 + $0x614] ss:$48 sps:$4 sm:$0xff]  }
  0xfd   : > { %4965 = vmatprep.subr.bf16.mxu1 %v7142_v63  ;;  %v7190_v63 = vld [vmem:[%s7931_s25 + $0x14] ss:$48 sps:$4 sm:$0xff]  }
  0xff   : > { %5019 = vmatpush2.bf16.msra.mxu0 %v7143_v2 }
 0x100   : > { %4966 = vmatpush2.bf16.msra.mxu1 %v7140_v1  ;;  %5041 = vmatprep.subr.bf16.mxu0 %v7148_v4 }
 0x101   : > { %5094 = vmatprep.subr.bf16.mxu1 %v7151_v8 }
 0x102   : > { %5021 = vmatmul.mubr.bf16.vlgmr.msra.gmra.mxu0 %v8115_v20 }
 0x103   : > { %4968 = vmatmul.mubr.bf16.vlgmr.msra.gmra.mxu1 %v8155_v52  ;;  %5042 = vmatpush1.bf16.msra.mxu0 %v7146_v9 }
 0x104   : > { %5095 = vmatpush1.bf16.msra.mxu1 %v7149_v10  ;;  %5043 = vmatprep.subr.bf16.mxu0 %v7154_v11  ;;  %v7188_v10 = vld [vmem:[%s7931_s25 + $0x10] ss:$48 sps:$4 sm:$0xff]  }
 0x105   : > { %5096 = vmatprep.subr.bf16.mxu1 %v7157_v12  ;;  %4977 = vmatprep.mubr.bf16.mxu1 %v8165_v57  ;;  %v7191_v11 = vld [vmem:[%s7931_s25 + $0x610] ss:$48 sps:$4 sm:$0xff]  }
 0x106   : > { %6762 = vmatprep.mubr.msk.bf16.mxu0 %vm4610_vm0, %v8124_v28 }
 0x107   : > { %5044 = vmatpush1.bf16.msra.mxu0 %v7152_v13  ;;  %v8348_v13 = vpop.permute.xlu1 %929 }
 0x108   : > { %5097 = vmatpush1.bf16.msra.mxu1 %v7155_v14  ;;  %5045 = vmatprep.subr.bf16.mxu0 %v7160_v15  ;;  %v7196_v14 = vld [vmem:[%s7931_s25 + $0x5b4] ss:$48 sps:$4 sm:$0xff]  }
 0x109   : > { %5098 = vmatprep.subr.bf16.mxu1 %v7163_v16  ;;  %v7199_v15 = vld [vmem:[%s7931_s25 + $0xbb4] ss:$48 sps:$4 sm:$0xff]  }
 0x10a   : > { %5031 = vmatmul.mubr.bf16.gmra.mxu0 %v8141_v43 }
 0x10b   : > { %4978 = vmatmul.mubr.bf16.gmra.mxu1 %v8173_v60  ;;  %5046 = vmatpush1.bf16.msra.mxu0 %v7158_v17 }
 0x10c   : > { %5099 = vmatpush1.bf16.msra.mxu1 %v7161_v18  ;;  %5047 = vmatprep.subr.bf16.mxu0 %v7166_v19 }
 0x10d   : > { %5100 = vmatprep.subr.bf16.mxu1 %v7169_v21  ;;  %5073 = vmatprep.mubr.bf16.mxu0 %v7912_v3 }
 0x10e   : > { %5126 = vmatprep.mubr.bf16.mxu1 %v7921_v6 }
 0x10f   : > { %5048 = vmatpush1.bf16.msra.mxu0 %v7164_v22 }
 0x110   : > { %5101 = vmatpush1.bf16.msra.mxu1 %v7167_v25  ;;  %5049 = vmatprep.subr.bf16.mxu0 %v7172_v26  ;;  %v7194_v25 = vld [vmem:[%s7931_s25 + $0x5b0] ss:$48 sps:$4 sm:$0xff]  }
 0x111   : > { %5102 = vmatprep.subr.bf16.mxu1 %v7175_v27  ;;  %v7197_v26 = vld [vmem:[%s7931_s25 + $0xbb0] ss:$48 sps:$4 sm:$0xff]  }
 0x112   : > { %v4651_v38 = vpop.f32.mrf.mxu0 }
 0x113   : > { %v4704_v41 = vpop.f32.mrf.mxu1  ;;  %v4652_v45 = vadd.f32 %v4651_v38, %v8313_v29  ;;  %5050 = vmatpush1.bf16.msra.mxu0 %v7170_v30 }
 0x114   : > { %5103 = vmatpush1.bf16.msra.mxu1 %v7173_v33  ;;  %v4653_v48 = vpop.f32.mrf.mxu0  ;;  %5051 = vmatprep.subr.bf16.mxu0 %v7178_v34  ;;  %v7202_v33 = vld [vmem:[%s7931_s25 + $0x554] ss:$48 sps:$4 sm:$0xff]  }
 0x115   : > { %v4706_v49 = vpop.f32.mrf.mxu1  ;;  %5104 = vmatprep.subr.bf16.mxu1 %v7181_v37  ;;  %v8328_v51 = vadd.f32 %v4704_v41, %v4652_v45  ;;  %v4654_v53 = vadd.f32 %v4653_v48, %v8313_v29  ;;  %v7205_v34 = vld [vmem:[%s7931_s25 + $0xb54] ss:$48 sps:$4 sm:$0xff]   ;;  %v7203_v45 = vld [vmem:[%s7931_s25 + $0xb50] ss:$48 sps:$4 sm:$0xff]  }
 0x116   : > { %v4655_v55 = vpop.f32.mrf.mxu0  ;;  %v7208_v48 = vld [vmem:[%s7931_s25 + $0x4f4] ss:$48 sps:$4 sm:$0xff]  }
 0x117   : > { %v4708_v56 = vpop.f32.mrf.mxu1  ;;  %v8335_v58 = vadd.f32 %v4706_v49, %v4654_v53  ;;  %v4656_v59 = vadd.f32 %v4655_v55, %v8324_v46  ;;  %5052 = vmatpush1.bf16.msra.mxu0 %v7176_v42  ;;  %v7211_v49 = vld [vmem:[%s7931_s25 + $0xaf4] ss:$48 sps:$4 sm:$0xff]   ;;  %v7209_v53 = vld [vmem:[%s7931_s25 + $0xaf0] ss:$48 sps:$4 sm:$0xff]  }
 0x118   : > { %5105 = vmatpush1.bf16.msra.mxu1 %v7179_v44  ;;  %v4657_v61 = vpop.f32.mrf.mxu0  ;;  %5053 = vmatprep.subr.bf16.mxu0 %v7184_v47  ;;  %v7200_v44 = vld [vmem:[%s7931_s25 + $0x550] ss:$48 sps:$4 sm:$0xff]   ;;  %v7214_v55 = vld [vmem:[%s7931_s25 + $0x494] ss:$48 sps:$4 sm:$0xff]  }
 0x119   : > { %v4710_v62 = vpop.f32.mrf.mxu1  ;;  %5106 = vmatprep.subr.bf16.mxu1 %v7187_v50  ;;  %v8340_v1 = vadd.f32 %v4708_v56, %v4656_v59  ;;  %v4658_v2 = vadd.f32 %v4657_v61, %v8324_v46  ;;  %v7206_v50 = vld [vmem:[%s7931_s25 + $0x4f0] ss:$48 sps:$4 sm:$0xff]   ;;  %v7217_v56 = vld [vmem:[%s7931_s25 + $0xa94] ss:$48 sps:$4 sm:$0xff]  }
 0x11a   : > { %v4661_v4 = vpop.f32.mrf.mxu0  ;;  %v7220_v59 = vld [vmem:[%s7931_s25 + $0x434] ss:$48 sps:$4 sm:$0xff]  }
 0x11b   : > { %v4714_v8 = vpop.f32.mrf.mxu1  ;;  %v8343_v9 = vadd.f32 %v4710_v62, %v4658_v2  ;;  %5054 = vmatpush1.bf16.msra.mxu0 %v7182_v31  ;;  %v4662_v12 = vadd.f32 %v4661_v4, %v8331_v54  ;;  %v7212_v31 = vld [vmem:[%s7931_s25 + $0x490] ss:$48 sps:$4 sm:$0xff]   ;;  %v7223_v61 = vld [vmem:[%s7931_s25 + $0xa34] ss:$48 sps:$4 sm:$0xff]  }
 0x11c   : > { %5107 = vmatpush1.bf16.msra.mxu1 %v7185_v32  ;;  %5055 = vmatprep.subr.bf16.mxu0 %v7190_v63  ;;  %v4663_v16 = vpop.f32.mrf.mxu0  ;;  %v7215_v32 = vld [vmem:[%s7931_s25 + $0xa90] ss:$48 sps:$4 sm:$0xff]   ;;  %v7229_v2 = vld [vmem:[%s7931_s25 + $0x9d4] ss:$48 sps:$4 sm:$0xff]  }
 0x11d   : > { %5108 = vmatprep.subr.bf16.mxu1 %v7193_v0  ;;  %v4716_v17 = vpop.f32.mrf.mxu1  ;;  %v4664_v18 = vadd.f32 %v4663_v16, %v8331_v54  ;;  %v8353_v19 = vadd.f32 %v4714_v8, %v4662_v12  ;;  %v7218_v62 = vld [vmem:[%s7931_s25 + $0x430] ss:$48 sps:$4 sm:$0xff]   ;;  %v7226_v0 = vld [vmem:[%s7931_s25 + $0x3d4] ss:$48 sps:$4 sm:$0xff]  }
 0x11e   : > { %v4665_v21 = vpop.f32.mrf.mxu0  ;;  %v7221_v63 = vld [vmem:[%s7931_s25 + $0xa30] ss:$48 sps:$4 sm:$0xff]   ;;  %v7241_v16 = vld [vmem:[%s7931_s25 + $0x914] ss:$48 sps:$4 sm:$0xff]  }
 0x11f   : > { %v4718_v22 = vpop.f32.mrf.mxu1  ;;  %5056 = vmatpush1.bf16.msra.mxu0 %v7188_v10  ;;  %v8357_v27 = vadd.f32 %v4716_v17, %v4664_v18  ;;  %v4666_v30 = vadd.f32 %v4665_v21, %v8348_v13  ;;  %v7224_v4 = vld [vmem:[%s7931_s25 + $0x3d0] ss:$48 sps:$4 sm:$0xff]   ;;  %v7232_v10 = vld [vmem:[%s7931_s25 + $0x374] ss:$48 sps:$4 sm:$0xff]  }
 0x120   : > { %5109 = vmatpush1.bf16.msra.mxu1 %v7191_v11  ;;  %5057 = vmatprep.subr.bf16.mxu0 %v7196_v14  ;;  %v4667_v37 = vpop.f32.mrf.mxu0  ;;  %v7227_v8 = vld [vmem:[%s7931_s25 + $0x9d0] ss:$48 sps:$4 sm:$0xff]   ;;  %v7235_v11 = vld [vmem:[%s7931_s25 + $0x974] ss:$48 sps:$4 sm:$0xff]  }
 0x121   : > { %5110 = vmatprep.subr.bf16.mxu1 %v7199_v15  ;;  %v4720_v38 = vpop.f32.mrf.mxu1  ;;  %v4668_v41 = vadd.f32 %v4667_v37, %v8348_v13  ;;  %v8363_v42 = vadd.f32 %v4718_v22, %v4666_v30  ;;  %v7230_v12 = vld [vmem:[%s7931_s25 + $0x370] ss:$48 sps:$4 sm:$0xff]   ;;  %v7238_v15 = vld [vmem:[%s7931_s25 + $0x314] ss:$48 sps:$4 sm:$0xff]  }
 0x122   : > { %v7233_v14 = vld [vmem:[%s7931_s25 + $0x970] ss:$48 sps:$4 sm:$0xff]   ;;  %v7244_v21 = vld [vmem:[%s7931_s25 + $0xeb4] ss:$48 sps:$4 sm:$0xff]  }
 0x123   : > { %5058 = vmatpush2.bf16.msra.mxu0 %v7194_v25  ;;  %v8367_v47 = vadd.f32 %v4720_v38, %v4668_v41  ;;  %v7236_v17 = vld [vmem:[%s7931_s25 + $0x310] ss:$48 sps:$4 sm:$0xff]   ;;  %v7247_v22 = vld [vmem:[%s7931_s25 + $0x14b4] ss:$48 sps:$4 sm:$0xff]  }
 0x124   : > { %5111 = vmatpush2.bf16.msra.mxu1 %v7197_v26  ;;  %5059 = vmatprep.subr.bf16.mxu0 %v7202_v33  ;;  %v7239_v18 = vld [vmem:[%s7931_s25 + $0x910] ss:$48 sps:$4 sm:$0xff]   ;;  %v7250_v30 = vld [vmem:[%s7931_s25 + $0xe54] ss:$48 sps:$4 sm:$0xff]  }
 0x125   : > { %5112 = vmatprep.subr.bf16.mxu1 %v7205_v34  ;;  %v7242_v25 = vld [vmem:[%s7931_s25 + $0xeb0] ss:$48 sps:$4 sm:$0xff]   ;;  %v7253_v33 = vld [vmem:[%s7931_s25 + $0x1454] ss:$48 sps:$4 sm:$0xff]  }
 0x126   : > { %v7245_v26 = vld [vmem:[%s7931_s25 + $0x14b0] ss:$48 sps:$4 sm:$0xff]   ;;  %v7256_v38 = vld [vmem:[%s7931_s25 + $0xdf4] ss:$48 sps:$4 sm:$0xff]  }
 0x127   : > { %5060 = vmatpush2.bf16.msra.mxu0 %v7200_v44  ;;  %v7248_v34 = vld [vmem:[%s7931_s25 + $0xe50] ss:$48 sps:$4 sm:$0xff]   ;;  %v7259_v41 = vld [vmem:[%s7931_s25 + $0x13f4] ss:$48 sps:$4 sm:$0xff]  }
 0x128   : > { %5113 = vmatpush2.bf16.msra.mxu1 %v7203_v45  ;;  %5061 = vmatprep.subr.bf16.mxu0 %v7208_v48  ;;  %v7251_v37 = vld [vmem:[%s7931_s25 + $0x1450] ss:$48 sps:$4 sm:$0xff]  }
 0x129   : > { %5114 = vmatprep.subr.bf16.mxu1 %v7211_v49  ;;  %v7254_v44 = vld [vmem:[%s7931_s25 + $0xdf0] ss:$48 sps:$4 sm:$0xff]   ;;  %v7262_v49 = vld [vmem:[%s7931_s25 + $0xd94] ss:$48 sps:$4 sm:$0xff]  }
 0x12a   : > { %v7257_v45 = vld [vmem:[%s7931_s25 + $0x13f0] ss:$48 sps:$4 sm:$0xff]  }
 0x12b   : > { %5062 = vmatpush2.bf16.msra.mxu0 %v7206_v50  ;;  %v7265_v50 = vld [vmem:[%s7931_s25 + $0x1394] ss:$48 sps:$4 sm:$0xff]  }
 0x12c   : > { %5115 = vmatpush2.bf16.msra.mxu1 %v7209_v53  ;;  %5063 = vmatprep.subr.bf16.mxu0 %v7214_v55  ;;  %v7260_v53 = vld [vmem:[%s7931_s25 + $0xd90] ss:$48 sps:$4 sm:$0xff]  }
 0x12d   : > { %5116 = vmatprep.subr.bf16.mxu1 %v7217_v56  ;;  %v7263_v55 = vld [vmem:[%s7931_s25 + $0x1390] ss:$48 sps:$4 sm:$0xff]  }
 0x12f   : > { %5064 = vmatpush2.bf16.msra.mxu0 %v7212_v31  ;;  %v7268_v31 = vld [vmem:[%s7931_s25 + $0xd34] ss:$48 sps:$4 sm:$0xff]  }
 0x130   : > { %5117 = vmatpush2.bf16.msra.mxu1 %v7215_v32  ;;  %5065 = vmatprep.subr.bf16.mxu0 %v7220_v59  ;;  %v7271_v32 = vld [vmem:[%s7931_s25 + $0x1334] ss:$48 sps:$4 sm:$0xff]   ;;  %v7266_v59 = vld [vmem:[%s7931_s25 + $0xd30] ss:$48 sps:$4 sm:$0xff]  }
 0x131   : > { %5118 = vmatprep.subr.bf16.mxu1 %v7223_v61  ;;  %v7269_v61 = vld [vmem:[%s7931_s25 + $0x1330] ss:$48 sps:$4 sm:$0xff]  }
 0x133   : > { %5066 = vmatpush2.bf16.msra.mxu0 %v7218_v62 }
 0x134   : > { %5119 = vmatpush2.bf16.msra.mxu1 %v7221_v63  ;;  %5067 = vmatprep.subr.bf16.mxu0 %v7226_v0  ;;  %v7274_v63 = vld [vmem:[%s7931_s25 + $0xcd4] ss:$48 sps:$4 sm:$0xff]  }
 0x135   : > { %5120 = vmatprep.subr.bf16.mxu1 %v7229_v2  ;;  %v7277_v0 = vld [vmem:[%s7931_s25 + $0x12d4] ss:$48 sps:$4 sm:$0xff]  }
 0x137   : > { %5068 = vmatpush2.bf16.msra.mxu0 %v7224_v4 }
 0x138   : > { %5121 = vmatpush2.bf16.msra.mxu1 %v7227_v8  ;;  %5069 = vmatprep.subr.bf16.mxu0 %v7232_v10  ;;  %v7272_v10 = vld [vmem:[%s7931_s25 + $0xcd0] ss:$48 sps:$4 sm:$0xff]  }
 0x139   : > { %5122 = vmatprep.subr.bf16.mxu1 %v7235_v11  ;;  %v7275_v11 = vld [vmem:[%s7931_s25 + $0x12d0] ss:$48 sps:$4 sm:$0xff]  }
 0x13b   : > { %5070 = vmatpush2.bf16.msra.mxu0 %v7230_v12 }
 0x13c   : > { %5123 = vmatpush2.bf16.msra.mxu1 %v7233_v14  ;;  %5071 = vmatprep.subr.bf16.mxu0 %v7238_v15  ;;  %v7280_v14 = vld [vmem:[%s7931_s25 + $0xc74] ss:$48 sps:$4 sm:$0xff]  }
 0x13d   : > { %5124 = vmatprep.subr.bf16.mxu1 %v7241_v16  ;;  %v7283_v15 = vld [vmem:[%s7931_s25 + $0x1274] ss:$48 sps:$4 sm:$0xff]  }
 0x13f   : > { %5072 = vmatpush2.bf16.msra.mxu0 %v7236_v17 }
 0x140   : > { %5125 = vmatpush2.bf16.msra.mxu1 %v7239_v18  ;;  %5147 = vmatprep.subr.bf16.mxu0 %v7244_v21 }
 0x141   : > { %5200 = vmatprep.subr.bf16.mxu1 %v7247_v22 }
 0x142   : > { %5074 = vmatmul.mubr.bf16.vlgmr.msra.gmra.mxu0 %v7917_v5 }
 0x143   : > { %5127 = vmatmul.mubr.bf16.vlgmr.msra.gmra.mxu1 %v7923_v7  ;;  %5148 = vmatpush1.bf16.msra.mxu0 %v7242_v25  ;;  %v4810_v48 = vpop.f32.mrf.mxu1  ;;  %v7278_v25 = vld [vmem:[%s7931_s25 + $0xc70] ss:$48 sps:$4 sm:$0xff]  }
 0x144   : > { %5201 = vmatpush1.bf16.msra.mxu1 %v7245_v26  ;;  %5149 = vmatprep.subr.bf16.mxu0 %v7250_v30  ;;  %v7281_v26 = vld [vmem:[%s7931_s25 + $0x1270] ss:$48 sps:$4 sm:$0xff]  }
 0x145   : > { %5202 = vmatprep.subr.bf16.mxu1 %v7253_v33  ;;  %5083 = vmatprep.mubr.bf16.mxu0 %v8015_v23  ;;  %v4812_v56 = vpop.f32.mrf.mxu1 }
 0x146   : > { %5136 = vmatprep.mubr.bf16.mxu1 %v8017_v24 }
 0x147   : > { %5150 = vmatpush1.bf16.msra.mxu0 %v7248_v34  ;;  %v4814_v62 = vpop.f32.mrf.mxu1  ;;  %v7286_v34 = vld [vmem:[%s7931_s25 + $0xc14] ss:$48 sps:$4 sm:$0xff]  }
 0x148   : > { %5203 = vmatpush1.bf16.msra.mxu1 %v7251_v37  ;;  %5151 = vmatprep.subr.bf16.mxu0 %v7256_v38  ;;  %v7289_v37 = vld [vmem:[%s7931_s25 + $0x1214] ss:$48 sps:$4 sm:$0xff]  }
 0x149   : > { %5204 = vmatprep.subr.bf16.mxu1 %v7259_v41  ;;  %v4816_v2 = vpop.f32.mrf.mxu1 }
 0x14a   : > { %5084 = vmatmul.mubr.bf16.gmra.mxu0 %v8049_v35 }
 0x14b   : > { %5137 = vmatmul.mubr.bf16.gmra.mxu1 %v8051_v36  ;;  %5152 = vmatpush1.bf16.msra.mxu0 %v7254_v44  ;;  %v4820_v16 = vpop.f32.mrf.mxu1 }
 0x14c   : > { %5205 = vmatpush1.bf16.msra.mxu1 %v7257_v45  ;;  %5153 = vmatprep.subr.bf16.mxu0 %v7262_v49  ;;  %v7284_v45 = vld [vmem:[%s7931_s25 + $0xc10] ss:$48 sps:$4 sm:$0xff]  }
 0x14d   : > { %5206 = vmatprep.subr.bf16.mxu1 %v7265_v50  ;;  %6763 = vmatprep.mubr.msk.bf16.mxu1 %vm4610_vm0, %v8057_v39  ;;  %v4822_v33 = vpop.f32.mrf.mxu1 }
 0x14e   : > { %5179 = vmatprep.mubr.bf16.mxu0 %v8061_v40 }
 0x14f   : > { %5154 = vmatpush1.bf16.msra.mxu0 %v7260_v53  ;;  %v4824_v50 = vpop.f32.mrf.mxu1  ;;  %v7292_v53 = vld [vmem:[%s7931_s25 + $0x11b4] ss:$48 sps:$4 sm:$0xff]  }
 0x150   : > { %5207 = vmatpush1.bf16.msra.mxu1 %v7263_v55  ;;  %5155 = vmatprep.subr.bf16.mxu0 %v7268_v31  ;;  %v7295_v55 = vld [vmem:[%s7931_s25 + $0x1634] ss:$48 sps:$4 sm:$0xff]  }
 0x151   : > { %5208 = vmatprep.subr.bf16.mxu1 %v7271_v32 }
 0x152   : > { %v4757_v4 = vpop.f32.mrf.mxu0 }
 0x153   : > { %v4758_v8 = vadd.f32 %v4757_v4, %v8328_v51  ;;  %5156 = vmatpush1.bf16.msra.mxu0 %v7266_v59  ;;  %v7290_v59 = vld [vmem:[%s7931_s25 + $0x11b0] ss:$48 sps:$4 sm:$0xff]  }
 0x154   : > { %5209 = vmatpush1.bf16.msra.mxu1 %v7269_v61  ;;  %v4759_v12 = vpop.f32.mrf.mxu0  ;;  %5157 = vmatprep.subr.bf16.mxu0 %v7274_v63  ;;  %v7293_v61 = vld [vmem:[%s7931_s25 + $0x1630] ss:$48 sps:$4 sm:$0xff]   ;;  %v4826_v63 = vpop.f32.mrf.mxu1 }
 0x155   : > { %5210 = vmatprep.subr.bf16.mxu1 %v7277_v0  ;;  %v8429_v17 = vadd.f32 %v4810_v48, %v4758_v8  ;;  %v4760_v18 = vadd.f32 %v4759_v12, %v8335_v58  ;;  %v7287_v48 = vld [vmem:[%s7931_s25 + $0x1210] ss:$48 sps:$4 sm:$0xff]   ;;  %v7301_v0 = vld [vmem:[%s7931_s25 + $0x15d4] ss:$48 sps:$4 sm:$0xff]  }
 0x156   : > { %v4761_v21 = vpop.f32.mrf.mxu0  ;;  %v7296_v8 = vld [vmem:[%s7931_s25 + $0x1150] ss:$48 sps:$4 sm:$0xff]   ;;  %v7307_v12 = vld [vmem:[%s7931_s25 + $0x1574] ss:$48 sps:$4 sm:$0xff]  }
 0x157   : > { %v8432_v51 = vadd.f32 %v4812_v56, %v4760_v18  ;;  %v4762_v22 = vadd.f32 %v4761_v21, %v8340_v1  ;;  %5158 = vmatpush1.bf16.msra.mxu0 %v7272_v10  ;;  %v7299_v10 = vld [vmem:[%s7931_s25 + $0x15d0] ss:$48 sps:$4 sm:$0xff]  }
 0x158   : > { %5211 = vmatpush1.bf16.msra.mxu1 %v7275_v11  ;;  %v4763_v30 = vpop.f32.mrf.mxu0  ;;  %5159 = vmatprep.subr.bf16.mxu0 %v7280_v14  ;;  %v7304_v11 = vld [vmem:[%s7931_s25 + $0x10f4] ss:$48 sps:$4 sm:$0xff]   ;;  %v7305_v14 = vld [vmem:[%s7931_s25 + $0x1570] ss:$48 sps:$4 sm:$0xff]  }
 0x159   : > { %5212 = vmatprep.subr.bf16.mxu1 %v7283_v15  ;;  %v8439_v58 = vadd.f32 %v4814_v62, %v4762_v22  ;;  %v4764_v38 = vadd.f32 %v4763_v30, %v8343_v9  ;;  %v7310_v15 = vld [vmem:[%s7931_s25 + $0x1094] ss:$48 sps:$4 sm:$0xff]   ;;  %v7308_v18 = vld [vmem:[%s7931_s25 + $0x1090] ss:$48 sps:$4 sm:$0xff]   ;;  %v7317_v30 = vld [vmem:[%s7931_s25 + $0x2b8] ss:$48 sps:$4 sm:$0xff]  }
 0x15a   : > { %v4767_v41 = vpop.f32.mrf.mxu0  ;;  %v7311_v21 = vld [vmem:[%s7931_s25 + $0x1510] ss:$48 sps:$4 sm:$0xff]   ;;  %v7316_v22 = vld [vmem:[%s7931_s25 + $0x1034] ss:$48 sps:$4 sm:$0xff]  }
 0x15b   : > { %v8442_v1 = vadd.f32 %v4816_v2, %v4764_v38  ;;  %v4768_v44 = vadd.f32 %v4767_v41, %v8353_v19  ;;  %5160 = vmatpush1.bf16.msra.mxu0 %v7278_v25  ;;  %v7319_v25 = vld [vmem:[%s7931_s25 + $0x2bc] ss:$48 sps:$4 sm:$0xff]   ;;  %v7323_v38 = vld [vmem:[%s7931_s25 + $0x258] ss:$48 sps:$4 sm:$0xff]   ;;  %v7328_v41 = vld [vmem:[%s7931_s25 + $0xf74] ss:$48 sps:$4 sm:$0xff]  }
 0x15c   : > { %5213 = vmatpush1.bf16.msra.mxu1 %v7281_v26  ;;  %v4769_v49 = vpop.f32.mrf.mxu0  ;;  %5161 = vmatprep.subr.bf16.mxu0 %v7286_v34  ;;  %v7314_v26 = vld [vmem:[%s7931_s25 + $0x1030] ss:$48 sps:$4 sm:$0xff]   ;;  %v7325_v34 = vld [vmem:[%s7931_s25 + $0x25c] ss:$48 sps:$4 sm:$0xff]  }
 0x15d   : > { %5214 = vmatprep.subr.bf16.mxu1 %v7289_v37  ;;  %v4770_v9 = vadd.f32 %v4769_v49, %v8357_v27  ;;  %v8450_v56 = vadd.f32 %v4820_v16, %v4768_v44  ;;  %v7298_v27 = vld [vmem:[%s7931_s25 + $0x1154] ss:$48 sps:$4 sm:$0xff]   ;;  %v7320_v37 = vld [vmem:[%s7931_s25 + $0xfd0] ss:$48 sps:$4 sm:$0xff]   ;;  %v7331_v44 = vld [vmem:[%s7931_s25 + $0x1fc] ss:$48 sps:$4 sm:$0xff]  }
 0x15e   : > { %v4771_v31 = vpop.f32.mrf.mxu0  ;;  %v7313_v16 = vld [vmem:[%s7931_s25 + $0x1514] ss:$48 sps:$4 sm:$0xff]  }
 0x15f   : > { %v4772_v19 = vadd.f32 %v4771_v31, %v8363_v42  ;;  %v8453_v32 = vadd.f32 %v4822_v33, %v4770_v9  ;;  %5162 = vmatpush1.bf16.msra.mxu0 %v7284_v45  ;;  %v7322_v33 = vld [vmem:[%s7931_s25 + $0xfd4] ss:$48 sps:$4 sm:$0xff]   ;;  %v7326_v45 = vld [vmem:[%s7931_s25 + $0xf70] ss:$48 sps:$4 sm:$0xff]   ;;  %v7340_v9 = vld [vmem:[%s7931_s25 + $0x13c] ss:$48 sps:$4 sm:$0xff]  }
 0x160   : > { %5215 = vmatpush1.bf16.msra.mxu1 %v7287_v48  ;;  %v4773_v62 = vpop.f32.mrf.mxu0  ;;  %5163 = vmatprep.subr.bf16.mxu0 %v7292_v53  ;;  %v7329_v48 = vld [vmem:[%s7931_s25 + $0x1f8] ss:$48 sps:$4 sm:$0xff]   ;;  %v7334_v49 = vld [vmem:[%s7931_s25 + $0xf14] ss:$48 sps:$4 sm:$0xff]   ;;  %v7332_v53 = vld [vmem:[%s7931_s25 + $0xf10] ss:$48 sps:$4 sm:$0xff]  }
 0x161   : > { %5224 = vmatprep.subr.bf16.mxu1 %v7295_v55  ;;  %v4774_v42 = vadd.f32 %v4773_v62, %v8367_v47  ;;  %v8460_v2 = vadd.f32 %v4824_v50, %v4772_v19  ;;  %v7302_v47 = vld [vmem:[%s7931_s25 + $0x10f0] ss:$48 sps:$4 sm:$0xff]   ;;  %v7337_v50 = vld [vmem:[%s7931_s25 + $0x19c] ss:$48 sps:$4 sm:$0xff]   ;;  %v7335_v55 = vld [vmem:[%s7931_s25 + $0x198] ss:$48 sps:$4 sm:$0xff]  }
 0x162   : > { %v7343_v31 = vld [vmem:[%s7931_s25 + $0x8bc] ss:$48 sps:$4 sm:$0xff]   ;;  %v7338_v19 = vld [vmem:[%s7931_s25 + $0x138] ss:$48 sps:$4 sm:$0xff]  }
 0x163   : > { %v8462_v4 = vadd.f32 %v4826_v63, %v4774_v42  ;;  %5164 = vmatpush2.bf16.msra.mxu0 %v7290_v59  ;;  %v7341_v59 = vld [vmem:[%s7931_s25 + $0x8b8] ss:$48 sps:$4 sm:$0xff]   ;;  %v7349_v62 = vld [vmem:[%s7931_s25 + $0x85c] ss:$48 sps:$4 sm:$0xff]  }
 0x164   : > { %5225 = vmatpush2.bf16.msra.mxu1 %v7293_v61  ;;  %5165 = vmatprep.subr.bf16.mxu0 %v7298_v27  ;;  %v7346_v61 = vld [vmem:[%s7931_s25 + $0xdc] ss:$48 sps:$4 sm:$0xff]   ;;  %v7344_v63 = vld [vmem:[%s7931_s25 + $0xd8] ss:$48 sps:$4 sm:$0xff]  }
 0x165   : > { %5226 = vmatprep.subr.bf16.mxu1 %v7301_v0  ;;  %v7347_v27 = vld [vmem:[%s7931_s25 + $0x858] ss:$48 sps:$4 sm:$0xff]  }
 0x167   : > { %5166 = vmatpush2.bf16.msra.mxu0 %v7296_v8  ;;  %v7352_v8 = vld [vmem:[%s7931_s25 + $0x7c] ss:$48 sps:$4 sm:$0xff]  }
 0x168   : > { %5227 = vmatpush2.bf16.msra.mxu1 %v7299_v10  ;;  %5167 = vmatprep.subr.bf16.mxu0 %v7304_v11  ;;  %v7355_v10 = vld [vmem:[%s7931_s25 + $0x7fc] ss:$48 sps:$4 sm:$0xff]   ;;  %v7350_v11 = vld [vmem:[%s7931_s25 + $0x78] ss:$48 sps:$4 sm:$0xff]  }
 0x169   : > { %5228 = vmatprep.subr.bf16.mxu1 %v7307_v12  ;;  %v7353_v12 = vld [vmem:[%s7931_s25 + $0x7f8] ss:$48 sps:$4 sm:$0xff]  }
 0x16b   : > { %5168 = vmatpush2.bf16.msra.mxu0 %v7302_v47 }
 0x16c   : > { %5229 = vmatpush2.bf16.msra.mxu1 %v7305_v14  ;;  %5169 = vmatprep.subr.bf16.mxu0 %v7310_v15  ;;  %v7358_v14 = vld [vmem:[%s7931_s25 + $0x1c] ss:$48 sps:$4 sm:$0xff]  }
 0x16d   : > { %5230 = vmatprep.subr.bf16.mxu1 %v7313_v16  ;;  %v7361_v15 = vld [vmem:[%s7931_s25 + $0x79c] ss:$48 sps:$4 sm:$0xff]   ;;  %v7356_v16 = vld [vmem:[%s7931_s25 + $0x18] ss:$48 sps:$4 sm:$0xff]  }
 0x16f   : > { %5170 = vmatpush2.bf16.msra.mxu0 %v7308_v18  ;;  %v7359_v18 = vld [vmem:[%s7931_s25 + $0x798] ss:$48 sps:$4 sm:$0xff]  }
 0x170   : > { %5231 = vmatpush2.bf16.msra.mxu1 %v7311_v21  ;;  %5171 = vmatprep.subr.bf16.mxu0 %v7316_v22  ;;  %v7364_v22 = vld [vmem:[%s7931_s25 + $0x5bc] ss:$48 sps:$4 sm:$0xff]  }
 0x171   : > { %5253 = vmatprep.subr.bf16.mxu1 %v7319_v25  ;;  %v7367_v25 = vld [vmem:[%s7931_s25 + $0x73c] ss:$48 sps:$4 sm:$0xff]  }
 0x173   : > { %5233 = vmatmul.mubr.bf16.vlgmr.msra.gmra.mxu1 %v8115_v20  ;;  %5172 = vmatpush2.bf16.msra.mxu0 %v7314_v26 }
 0x174   : > { %5254 = vmatpush1.bf16.msra.mxu1 %v7317_v30  ;;  %5173 = vmatprep.subr.bf16.mxu0 %v7322_v33  ;;  %v7362_v30 = vld [vmem:[%s7931_s25 + $0x5b8] ss:$48 sps:$4 sm:$0xff]  }
 0x175   : > { %5255 = vmatprep.subr.bf16.mxu1 %v7325_v34  ;;  %6764 = vmatprep.mubr.msk.bf16.mxu1 %vm4610_vm0, %v8124_v28  ;;  %v7365_v33 = vld [vmem:[%s7931_s25 + $0x738] ss:$48 sps:$4 sm:$0xff]   ;;  %v7370_v34 = vld [vmem:[%s7931_s25 + $0x55c] ss:$48 sps:$4 sm:$0xff]  }
 0x177   : > { %5174 = vmatpush2.bf16.msra.mxu0 %v7320_v37  ;;  %v7373_v37 = vld [vmem:[%s7931_s25 + $0x6dc] ss:$48 sps:$4 sm:$0xff]  }
 0x178   : > { %5256 = vmatpush1.bf16.msra.mxu1 %v7323_v38  ;;  %5175 = vmatprep.subr.bf16.mxu0 %v7328_v41 }
 0x179   : > { %5257 = vmatprep.subr.bf16.mxu1 %v7331_v44 }
 0x17b   : > { %5243 = vmatmul.mubr.bf16.gmra.mxu1 %v8141_v43  ;;  %5176 = vmatpush2.bf16.msra.mxu0 %v7326_v45 }
 0x17c   : > { %5258 = vmatpush1.bf16.msra.mxu1 %v7329_v48  ;;  %5177 = vmatprep.subr.bf16.mxu0 %v7334_v49  ;;  %v7368_v49 = vld [vmem:[%s7931_s25 + $0x558] ss:$48 sps:$4 sm:$0xff]  }
 0x17d   : > { %5259 = vmatprep.subr.bf16.mxu1 %v7337_v50  ;;  %5285 = vmatprep.mubr.bf16.mxu1 %v7912_v3  ;;  %v7371_v50 = vld [vmem:[%s7931_s25 + $0x6d8] ss:$48 sps:$4 sm:$0xff]  }
 0x17f   : > { %5178 = vmatpush2.bf16.msra.mxu0 %v7332_v53 }
 0x180   : > { %5260 = vmatpush1.bf16.msra.mxu1 %v7335_v55  ;;  %5306 = vmatprep.subr.bf16.mxu0 %v7343_v31  ;;  %v7376_v55 = vld [vmem:[%s7931_s25 + $0x4fc] ss:$48 sps:$4 sm:$0xff]  }
 0x181   : > { %5261 = vmatprep.subr.bf16.mxu1 %v7340_v9  ;;  %v7379_v9 = vld [vmem:[%s7931_s25 + $0x67c] ss:$48 sps:$4 sm:$0xff]  }
 0x182   : > { %5180 = vmatmul.mubr.bf16.vlgmr.msra.gmra.mxu0 %v8155_v52 }
 0x183   : > { %v4863_v0 = vpop.f32.mrf.mxu1  ;;  %5307 = vmatpush1.bf16.msra.mxu0 %v7341_v59  ;;  %5189 = vmatprep.mubr.bf16.mxu0 %v8165_v57 }
 0x184   : > { %5262 = vmatpush1.bf16.msra.mxu1 %v7338_v19  ;;  %5308 = vmatprep.subr.bf16.mxu0 %v7349_v62  ;;  %v4864_v38 = vadd.f32 %v4863_v0, %v8313_v29  ;;  %v7377_v0 = vld [vmem:[%s7931_s25 + $0x678] ss:$48 sps:$4 sm:$0xff]  }
 0x185   : > { %v4865_v42 = vpop.f32.mrf.mxu1  ;;  %5263 = vmatprep.subr.bf16.mxu1 %v7346_v61 }
 0x186   : > { %v4866_v45 = vadd.f32 %v4865_v42, %v8313_v29 }
 0x187   : > { %5309 = vmatpush1.bf16.msra.mxu0 %v7347_v27  ;;  %v4867_v47 = vpop.f32.mrf.mxu1  ;;  %v7374_v27 = vld [vmem:[%s7931_s25 + $0x4f8] ss:$48 sps:$4 sm:$0xff]  }
 0x188   : > { %5264 = vmatpush1.bf16.msra.mxu1 %v7344_v63  ;;  %5310 = vmatprep.subr.bf16.mxu0 %v7355_v10  ;;  %v4868_v31 = vadd.f32 %v4867_v47, %v8324_v46  ;;  %v7382_v10 = vld [vmem:[%s7931_s25 + $0x49c] ss:$48 sps:$4 sm:$0xff]  }
 0x189   : > { %5265 = vmatprep.subr.bf16.mxu1 %v7352_v8  ;;  %v4869_v21 = vpop.f32.mrf.mxu1 }
 0x18a   : > { %5190 = vmatmul.mubr.bf16.gmra.mxu0 %v8173_v60  ;;  %v4870_v62 = vadd.f32 %v4869_v21, %v8324_v46 }
 0x18b   : > { %5311 = vmatpush1.bf16.msra.mxu0 %v7353_v12  ;;  %5338 = vmatprep.mubr.bf16.mxu0 %v7921_v6  ;;  %v4873_v26 = vpop.f32.mrf.mxu1 }
 0x18c   : > { %5266 = vmatpush1.bf16.msra.mxu1 %v7350_v11  ;;  %5312 = vmatprep.subr.bf16.mxu0 %v7361_v15  ;;  %v4874_v42 = vadd.f32 %v4873_v26, %v8331_v54  ;;  %v7385_v11 = vld [vmem:[%s7931_s25 + $0x61c] ss:$48 sps:$4 sm:$0xff]  }
 0x18d   : > { %5267 = vmatprep.subr.bf16.mxu1 %v7358_v14  ;;  %v4875_v44 = vpop.f32.mrf.mxu1  ;;  %v7391_v26 = vld [vmem:[%s7931_s25 + $0xbbc] ss:$48 sps:$4 sm:$0xff]  }
 0x18e   : > { %v4876_v47 = vadd.f32 %v4875_v44, %v8331_v54 }
 0x18f   : > { %5313 = vmatpush1.bf16.msra.mxu0 %v7359_v18  ;;  %v4877_v61 = vpop.f32.mrf.mxu1  ;;  %v7383_v18 = vld [vmem:[%s7931_s25 + $0x618] ss:$48 sps:$4 sm:$0xff]  }
 0x190   : > { %5268 = vmatpush1.bf16.msra.mxu1 %v7356_v16  ;;  %5314 = vmatprep.subr.bf16.mxu0 %v7367_v25  ;;  %v7380_v16 = vld [vmem:[%s7931_s25 + $0x498] ss:$48 sps:$4 sm:$0xff]   ;;  %v7388_v25 = vld [vmem:[%s7931_s25 + $0x43c] ss:$48 sps:$4 sm:$0xff]  }
 0x191   : > { %5269 = vmatprep.subr.bf16.mxu1 %v7364_v22  ;;  %v4879_v15 = vpop.f32.mrf.mxu1  ;;  %v4878_v22 = vadd.f32 %v4877_v61, %v8348_v13  ;;  %v7398_v61 = vld [vmem:[%s7931_s25 + $0x378] ss:$48 sps:$4 sm:$0xff]  }
 0x192   : > { %v4916_v41 = vpop.f32.mrf.mxu0 }
 0x193   : > { %v8523_v48 = vadd.f32 %v4916_v41, %v4864_v38  ;;  %5315 = vmatpush1.bf16.msra.mxu0 %v7365_v33  ;;  %v7386_v38 = vld [vmem:[%s7931_s25 + $0x438] ss:$48 sps:$4 sm:$0xff]  }
 0x194   : > { %5270 = vmatpush2.bf16.msra.mxu1 %v7362_v30  ;;  %v4918_v53 = vpop.f32.mrf.mxu0  ;;  %5316 = vmatprep.subr.bf16.mxu0 %v7373_v37  ;;  %v7389_v41 = vld [vmem:[%s7931_s25 + $0xbb8] ss:$48 sps:$4 sm:$0xff]  }
 0x195   : > { %5271 = vmatprep.subr.bf16.mxu1 %v7370_v34  ;;  %v8530_v19 = vadd.f32 %v4918_v53, %v4866_v45  ;;  %v4880_v34 = vadd.f32 %v4879_v15, %v8348_v13  ;;  %v7394_v45 = vld [vmem:[%s7931_s25 + $0x3dc] ss:$48 sps:$4 sm:$0xff]  }
 0x196   : > { %v4920_v59 = vpop.f32.mrf.mxu0  ;;  %v7418_v15 = vld [vmem:[%s7931_s25 + $0x9dc] ss:$48 sps:$4 sm:$0xff]  }
 0x197   : > { %v8533_v63 = vadd.f32 %v4920_v59, %v4868_v31  ;;  %5317 = vmatpush1.bf16.msra.mxu0 %v7371_v50  ;;  %v7400_v31 = vld [vmem:[%s7931_s25 + $0x37c] ss:$48 sps:$4 sm:$0xff]  }
 0x198   : > { %5272 = vmatpush2.bf16.msra.mxu1 %v7368_v49  ;;  %v4922_v8 = vpop.f32.mrf.mxu0  ;;  %5318 = vmatprep.subr.bf16.mxu0 %v7379_v9  ;;  %v7397_v49 = vld [vmem:[%s7931_s25 + $0xb5c] ss:$48 sps:$4 sm:$0xff]   ;;  %v7395_v9 = vld [vmem:[%s7931_s25 + $0xb58] ss:$48 sps:$4 sm:$0xff]  }
 0x199   : > { %5273 = vmatprep.subr.bf16.mxu1 %v7376_v55  ;;  %v8540_v12 = vadd.f32 %v4922_v8, %v4870_v62  ;;  %v7392_v55 = vld [vmem:[%s7931_s25 + $0x3d8] ss:$48 sps:$4 sm:$0xff]   ;;  %v7403_v59 = vld [vmem:[%s7931_s25 + $0xafc] ss:$48 sps:$4 sm:$0xff]  }
 0x19a   : > { %v4926_v14 = vpop.f32.mrf.mxu0  ;;  %v7401_v62 = vld [vmem:[%s7931_s25 + $0xaf8] ss:$48 sps:$4 sm:$0xff]  }
 0x19b   : > { %5319 = vmatpush1.bf16.msra.mxu0 %v7377_v0  ;;  %v8545_v21 = vadd.f32 %v4926_v14, %v4874_v42  ;;  %v7409_v0 = vld [vmem:[%s7931_s25 + $0xa9c] ss:$48 sps:$4 sm:$0xff]   ;;  %v7404_v42 = vld [vmem:[%s7931_s25 + $0x318] ss:$48 sps:$4 sm:$0xff]  }
 0x19c   : > { %5274 = vmatpush2.bf16.msra.mxu1 %v7374_v27  ;;  %5320 = vmatprep.subr.bf16.mxu0 %v7385_v11  ;;  %v4928_v30 = vpop.f32.mrf.mxu0  ;;  %v7406_v27 = vld [vmem:[%s7931_s25 + $0x31c] ss:$48 sps:$4 sm:$0xff]   ;;  %v7407_v8 = vld [vmem:[%s7931_s25 + $0xa98] ss:$48 sps:$4 sm:$0xff]  }
 0x19d   : > { %5275 = vmatprep.subr.bf16.mxu1 %v7382_v10  ;;  %v8550_v33 = vadd.f32 %v4928_v30, %v4876_v47  ;;  %v7412_v10 = vld [vmem:[%s7931_s25 + $0xa3c] ss:$48 sps:$4 sm:$0xff]   ;;  %v7410_v47 = vld [vmem:[%s7931_s25 + $0xa38] ss:$48 sps:$4 sm:$0xff]  }
 0x19e   : > { %v4930_v37 = vpop.f32.mrf.mxu0  ;;  %v7415_v11 = vld [vmem:[%s7931_s25 + $0xebc] ss:$48 sps:$4 sm:$0xff]   ;;  %v7413_v14 = vld [vmem:[%s7931_s25 + $0xeb8] ss:$48 sps:$4 sm:$0xff]  }
 0x19f   : > { %5321 = vmatpush1.bf16.msra.mxu0 %v7383_v18  ;;  %v8555_v44 = vadd.f32 %v4930_v37, %v4878_v22  ;;  %v7416_v18 = vld [vmem:[%s7931_s25 + $0x9d8] ss:$48 sps:$4 sm:$0xff]   ;;  %v7430_v37 = vld [vmem:[%s7931_s25 + $0x91c] ss:$48 sps:$4 sm:$0xff]  }
 0x1a0   : > { %5276 = vmatpush2.bf16.msra.mxu1 %v7380_v16  ;;  %5322 = vmatprep.subr.bf16.mxu0 %v7391_v26  ;;  %v4932_v50 = vpop.f32.mrf.mxu0  ;;  %v7421_v16 = vld [vmem:[%s7931_s25 + $0xe5c] ss:$48 sps:$4 sm:$0xff]   ;;  %v7419_v22 = vld [vmem:[%s7931_s25 + $0xe58] ss:$48 sps:$4 sm:$0xff]  }
 0x1a1   : > { %5277 = vmatprep.subr.bf16.mxu1 %v7388_v25  ;;  %v8559_v53 = vadd.f32 %v4932_v50, %v4880_v34  ;;  %v7424_v25 = vld [vmem:[%s7931_s25 + $0x97c] ss:$48 sps:$4 sm:$0xff]   ;;  %v7422_v30 = vld [vmem:[%s7931_s25 + $0x978] ss:$48 sps:$4 sm:$0xff]  }
 0x1a2   : > { %v7427_v26 = vld [vmem:[%s7931_s25 + $0xdfc] ss:$48 sps:$4 sm:$0xff]   ;;  %v7425_v34 = vld [vmem:[%s7931_s25 + $0xdf8] ss:$48 sps:$4 sm:$0xff]  }
 0x1a3   : > { %5323 = vmatpush2.bf16.msra.mxu0 %v7389_v41  ;;  %v7428_v41 = vld [vmem:[%s7931_s25 + $0x918] ss:$48 sps:$4 sm:$0xff]   ;;  %v7439_v50 = vld [vmem:[%s7931_s25 + $0x14bc] ss:$48 sps:$4 sm:$0xff]  }
 0x1a4   : > { %5278 = vmatpush2.bf16.msra.mxu1 %v7386_v38  ;;  %5324 = vmatprep.subr.bf16.mxu0 %v7397_v49  ;;  %v7433_v38 = vld [vmem:[%s7931_s25 + $0xd9c] ss:$48 sps:$4 sm:$0xff]  }
 0x1a5   : > { %5279 = vmatprep.subr.bf16.mxu1 %v7394_v45  ;;  %v7431_v45 = vld [vmem:[%s7931_s25 + $0xd98] ss:$48 sps:$4 sm:$0xff]   ;;  %v7436_v49 = vld [vmem:[%s7931_s25 + $0xd3c] ss:$48 sps:$4 sm:$0xff]  }
 0x1a7   : > { %5325 = vmatpush2.bf16.msra.mxu0 %v7395_v9  ;;  %v7437_v9 = vld [vmem:[%s7931_s25 + $0x14b8] ss:$48 sps:$4 sm:$0xff]  }
 0x1a8   : > { %5280 = vmatpush2.bf16.msra.mxu1 %v7392_v55  ;;  %5326 = vmatprep.subr.bf16.mxu0 %v7403_v59  ;;  %v7434_v55 = vld [vmem:[%s7931_s25 + $0xd38] ss:$48 sps:$4 sm:$0xff]   ;;  %v7445_v59 = vld [vmem:[%s7931_s25 + $0x145c] ss:$48 sps:$4 sm:$0xff]  }
 0x1a9   : > { %5281 = vmatprep.subr.bf16.mxu1 %v7400_v31  ;;  %v7442_v31 = vld [vmem:[%s7931_s25 + $0xcdc] ss:$48 sps:$4 sm:$0xff]  }
 0x1ab   : > { %5327 = vmatpush2.bf16.msra.mxu0 %v7401_v62 }
 0x1ac   : > { %5282 = vmatpush2.bf16.msra.mxu1 %v7398_v61  ;;  %5328 = vmatprep.subr.bf16.mxu0 %v7409_v0  ;;  %v7440_v0 = vld [vmem:[%s7931_s25 + $0xcd8] ss:$48 sps:$4 sm:$0xff]  }
 0x1ad   : > { %5283 = vmatprep.subr.bf16.mxu1 %v7406_v27 }
 0x1af   : > { %5329 = vmatpush2.bf16.msra.mxu0 %v7407_v8 }
 0x1b0   : > { %5284 = vmatpush2.bf16.msra.mxu1 %v7404_v42  ;;  %5330 = vmatprep.subr.bf16.mxu0 %v7412_v10  ;;  %v7443_v42 = vld [vmem:[%s7931_s25 + $0x1458] ss:$48 sps:$4 sm:$0xff]  }
 0x1b1   : > { %5359 = vmatprep.subr.bf16.mxu1 %v7415_v11  ;;  %v7448_v11 = vld [vmem:[%s7931_s25 + $0xc7c] ss:$48 sps:$4 sm:$0xff]  }
 0x1b3   : > { %5286 = vmatmul.mubr.bf16.vlgmr.msra.gmra.mxu1 %v7917_v5  ;;  %5331 = vmatpush2.bf16.msra.mxu0 %v7410_v47  ;;  %v7451_v47 = vld [vmem:[%s7931_s25 + $0x13fc] ss:$48 sps:$4 sm:$0xff]  }
 0x1b4   : > { %5360 = vmatpush1.bf16.msra.mxu1 %v7413_v14  ;;  %5332 = vmatprep.subr.bf16.mxu0 %v7418_v15 }
 0x1b5   : > { %5361 = vmatprep.subr.bf16.mxu1 %v7421_v16  ;;  %5295 = vmatprep.mubr.bf16.mxu1 %v8015_v23 }
 0x1b7   : > { %5333 = vmatpush2.bf16.msra.mxu0 %v7416_v18 }
 0x1b8   : > { %5362 = vmatpush1.bf16.msra.mxu1 %v7419_v22  ;;  %5334 = vmatprep.subr.bf16.mxu0 %v7424_v25  ;;  %v7446_v25 = vld [vmem:[%s7931_s25 + $0xc78] ss:$48 sps:$4 sm:$0xff]  }
 0x1b9   : > { %5363 = vmatprep.subr.bf16.mxu1 %v7427_v26  ;;  %v7449_v26 = vld [vmem:[%s7931_s25 + $0x13f8] ss:$48 sps:$4 sm:$0xff]  }
 0x1bb   : > { %5296 = vmatmul.mubr.bf16.gmra.mxu1 %v8049_v35  ;;  %5335 = vmatpush2.bf16.msra.mxu0 %v7422_v30 }
 0x1bc   : > { %5364 = vmatpush1.bf16.msra.mxu1 %v7425_v34  ;;  %5336 = vmatprep.subr.bf16.mxu0 %v7430_v37  ;;  %v7454_v37 = vld [vmem:[%s7931_s25 + $0xc1c] ss:$48 sps:$4 sm:$0xff]  }
 0x1bd   : > { %5365 = vmatprep.subr.bf16.mxu1 %v7433_v38  ;;  %5391 = vmatprep.mubr.bf16.mxu1 %v8061_v40 }
 0x1bf   : > { %5337 = vmatpush2.bf16.msra.mxu0 %v7428_v41 }
 0x1c0   : > { %5366 = vmatpush1.bf16.msra.mxu1 %v7431_v45  ;;  %5412 = vmatprep.subr.bf16.mxu0 %v7439_v50 }
 0x1c1   : > { %5367 = vmatprep.subr.bf16.mxu1 %v7436_v49 }
 0x1c2   : > { %v5022_v62 = vpop.f32.mrf.mxu0  ;;  %5339 = vmatmul.mubr.bf16.vlgmr.msra.gmra.mxu0 %v7923_v7 }
 0x1c3   : > { %v4969_v61 = vpop.f32.mrf.mxu1  ;;  %5413 = vmatpush1.bf16.msra.mxu0 %v7437_v9  ;;  %5348 = vmatprep.mubr.bf16.mxu0 %v8017_v24  ;;  %v7455_v9 = vld [vmem:[%s7931_s25 + $0x1398] ss:$48 sps:$4 sm:$0xff]  }
 0x1c4   : > { %v4970_v27 = vadd.f32 %v4969_v61, %v8523_v48  ;;  %5368 = vmatpush1.bf16.msra.mxu1 %v7434_v55  ;;  %v5024_v10 = vpop.f32.mrf.mxu0  ;;  %5414 = vmatprep.subr.bf16.mxu0 %v7445_v59  ;;  %v7452_v55 = vld [vmem:[%s7931_s25 + $0xc18] ss:$48 sps:$4 sm:$0xff]   ;;  %v7460_v61 = vld [vmem:[%s7931_s25 + $0x11bc] ss:$48 sps:$4 sm:$0xff]  }
 0x1c5   : > { %v4971_v8 = vpop.f32.mrf.mxu1  ;;  %5369 = vmatprep.subr.bf16.mxu1 %v7442_v31 }
 0x1c6   : > { %v8603_v14 = vadd.f32 %v5022_v62, %v4970_v27  ;;  %v4972_v15 = vadd.f32 %v4971_v8, %v8530_v19  ;;  %v5026_v16 = vpop.f32.mrf.mxu0  ;;  %v7457_v19 = vld [vmem:[%s7931_s25 + $0x139c] ss:$48 sps:$4 sm:$0xff]  }
 0x1c7   : > { %v4973_v48 = vpop.f32.mrf.mxu1  ;;  %5415 = vmatpush1.bf16.msra.mxu0 %v7443_v42 }
 0x1c8   : > { %v8607_v18 = vadd.f32 %v5024_v10, %v4972_v15  ;;  %v4974_v22 = vadd.f32 %v4973_v48, %v8533_v63  ;;  %5370 = vmatpush1.bf16.msra.mxu1 %v7440_v0  ;;  %v5028_v34 = vpop.f32.mrf.mxu0  ;;  %5416 = vmatprep.subr.bf16.mxu0 %v7451_v47  ;;  %v7458_v10 = vld [vmem:[%s7931_s25 + $0x11b8] ss:$48 sps:$4 sm:$0xff]   ;;  %v7466_v15 = vld [vmem:[%s7931_s25 + $0x115c] ss:$48 sps:$4 sm:$0xff]  }
 0x1c9   : > { %v4975_v30 = vpop.f32.mrf.mxu1  ;;  %5371 = vmatprep.subr.bf16.mxu1 %v7448_v11  ;;  %v7461_v11 = vld [vmem:[%s7931_s25 + $0x1338] ss:$48 sps:$4 sm:$0xff]   ;;  %v7469_v48 = vld [vmem:[%s7931_s25 + $0x12dc] ss:$48 sps:$4 sm:$0xff]  }
 0x1ca   : > { %v8614_v38 = vadd.f32 %v5026_v16, %v4974_v22  ;;  %v4976_v41 = vadd.f32 %v4975_v30, %v8540_v12  ;;  %v5032_v63 = vpop.f32.mrf.mxu0  ;;  %5349 = vmatmul.mubr.bf16.gmra.mxu0 %v8051_v36  ;;  %v7463_v12 = vld [vmem:[%s7931_s25 + $0x133c] ss:$48 sps:$4 sm:$0xff]  }
 0x1cb   : > { %v4979_v45 = vpop.f32.mrf.mxu1  ;;  %5417 = vmatpush1.bf16.msra.mxu0 %v7449_v26  ;;  %6765 = vmatprep.mubr.msk.bf16.mxu0 %vm4610_vm0, %v8057_v39  ;;  %v7467_v26 = vld [vmem:[%s7931_s25 + $0x12d8] ss:$48 sps:$4 sm:$0xff]   ;;  %v7472_v30 = vld [vmem:[%s7931_s25 + $0x10fc] ss:$48 sps:$4 sm:$0xff]  }
 0x1cc   : > { %v8618_v49 = vadd.f32 %v5028_v34, %v4976_v41  ;;  %v4980_v50 = vadd.f32 %v4979_v45, %v8545_v21  ;;  %5372 = vmatpush1.bf16.msra.mxu1 %v7446_v25  ;;  %v5034_v59 = vpop.f32.mrf.mxu0  ;;  %5418 = vmatprep.subr.bf16.mxu0 %v7457_v19  ;;  %v7464_v25 = vld [vmem:[%s7931_s25 + $0x1158] ss:$48 sps:$4 sm:$0xff]   ;;  %v7475_v34 = vld [vmem:[%s7931_s25 + $0x127c] ss:$48 sps:$4 sm:$0xff]  }
 0x1cd   : > { %v4981_v31 = vpop.f32.mrf.mxu1  ;;  %5373 = vmatprep.subr.bf16.mxu1 %v7454_v37  ;;  %v7473_v37 = vld [vmem:[%s7931_s25 + $0x1278] ss:$48 sps:$4 sm:$0xff]   ;;  %v7478_v19 = vld [vmem:[%s7931_s25 + $0x109c] ss:$48 sps:$4 sm:$0xff]  }
 0x1ce   : > { %v4982_v62 = vadd.f32 %v4981_v31, %v8550_v33  ;;  %v8626_v27 = vadd.f32 %v5032_v63, %v4980_v50  ;;  %v5036_v0 = vpop.f32.mrf.mxu0  ;;  %v7481_v41 = vld [vmem:[%s7931_s25 + $0x121c] ss:$48 sps:$4 sm:$0xff]   ;;  %v7476_v45 = vld [vmem:[%s7931_s25 + $0x1098] ss:$48 sps:$4 sm:$0xff]  }
 0x1cf   : > { %v4983_v21 = vpop.f32.mrf.mxu1  ;;  %5419 = vmatpush1.bf16.msra.mxu0 %v7455_v9  ;;  %v7479_v63 = vld [vmem:[%s7931_s25 + $0x1218] ss:$48 sps:$4 sm:$0xff]   ;;  %v7484_v50 = vld [vmem:[%s7931_s25 + $0x103c] ss:$48 sps:$4 sm:$0xff]  }
 0x1d0   : > { %v4984_v42 = vadd.f32 %v4983_v21, %v8555_v44  ;;  %v8631_v8 = vadd.f32 %v5034_v59, %v4982_v62  ;;  %5374 = vmatpush1.bf16.msra.mxu1 %v7452_v55  ;;  %v5038_v47 = vpop.f32.mrf.mxu0  ;;  %5420 = vmatprep.subr.bf16.mxu0 %v7463_v12  ;;  %v7487_v55 = vld [vmem:[%s7931_s25 + $0x163c] ss:$48 sps:$4 sm:$0xff]   ;;  %v7482_v9 = vld [vmem:[%s7931_s25 + $0x1038] ss:$48 sps:$4 sm:$0xff]  }
 0x1d1   : > { %v4985_v33 = vpop.f32.mrf.mxu1  ;;  %5375 = vmatprep.subr.bf16.mxu1 %v7460_v61  ;;  %v7485_v31 = vld [vmem:[%s7931_s25 + $0x1638] ss:$48 sps:$4 sm:$0xff]   ;;  %v7490_v59 = vld [vmem:[%s7931_s25 + $0xfdc] ss:$48 sps:$4 sm:$0xff]  }
 0x1d2   : > { %v4986_v44 = vadd.f32 %v4985_v33, %v8559_v53  ;;  %v8638_v16 = vadd.f32 %v5036_v0, %v4984_v42  ;;  %v7470_v53 = vld [vmem:[%s7931_s25 + $0x10f8] ss:$48 sps:$4 sm:$0xff]   ;;  %v7493_v61 = vld [vmem:[%s7931_s25 + $0x15dc] ss:$48 sps:$4 sm:$0xff]  }
 0x1d3   : > { %5421 = vmatpush1.bf16.msra.mxu0 %v7461_v11  ;;  %v7488_v12 = vld [vmem:[%s7931_s25 + $0xfd8] ss:$48 sps:$4 sm:$0xff]   ;;  %v7496_v21 = vld [vmem:[%s7931_s25 + $0xf7c] ss:$48 sps:$4 sm:$0xff]  }
 0x1d4   : > { %v8640_v22 = vadd.f32 %v5038_v47, %v4986_v44  ;;  %5376 = vmatpush2.bf16.msra.mxu1 %v7458_v10  ;;  %5422 = vmatprep.subr.bf16.mxu0 %v7469_v48  ;;  %v7491_v62 = vld [vmem:[%s7931_s25 + $0x15d8] ss:$48 sps:$4 sm:$0xff]   ;;  %v7499_v0 = vld [vmem:[%s7931_s25 + $0x157c] ss:$48 sps:$4 sm:$0xff]   ;;  %v7508_v48 = vld [vmem:[%s7931_s25 + $0x2c4] ss:$48 sps:$4 sm:$0xff]  }
 0x1d5   : > { %5377 = vmatprep.subr.bf16.mxu1 %v7466_v15  ;;  %v7494_v42 = vld [vmem:[%s7931_s25 + $0xf78] ss:$48 sps:$4 sm:$0xff]   ;;  %v7502_v11 = vld [vmem:[%s7931_s25 + $0xf1c] ss:$48 sps:$4 sm:$0xff]   ;;  %v7511_v44 = vld [vmem:[%s7931_s25 + $0x8c4] ss:$48 sps:$4 sm:$0xff]  }
 0x1d6   : > { %v7497_v10 = vld [vmem:[%s7931_s25 + $0x1578] ss:$48 sps:$4 sm:$0xff]   ;;  %v7505_v33 = vld [vmem:[%s7931_s25 + $0x151c] ss:$48 sps:$4 sm:$0xff]  }
 0x1d7   : > { %5423 = vmatpush1.bf16.msra.mxu0 %v7467_v26  ;;  %v7500_v47 = vld [vmem:[%s7931_s25 + $0xf18] ss:$48 sps:$4 sm:$0xff]   ;;  %v7509_v26 = vld [vmem:[%s7931_s25 + $0x8c0] ss:$48 sps:$4 sm:$0xff]  }
 0x1d8   : > { %5378 = vmatpush2.bf16.msra.mxu1 %v7464_v25  ;;  %5424 = vmatprep.subr.bf16.mxu0 %v7475_v34  ;;  %v7503_v15 = vld [vmem:[%s7931_s25 + $0x1518] ss:$48 sps:$4 sm:$0xff]   ;;  %v7506_v25 = vld [vmem:[%s7931_s25 + $0x2c0] ss:$48 sps:$4 sm:$0xff]   ;;  %v7517_v34 = vld [vmem:[%s7931_s25 + $0x864] ss:$48 sps:$4 sm:$0xff]  }
 0x1d9   : > { %5379 = vmatprep.subr.bf16.mxu1 %v7472_v30  ;;  %v7514_v30 = vld [vmem:[%s7931_s25 + $0x264] ss:$48 sps:$4 sm:$0xff]  }
 0x1db   : > { %5425 = vmatpush1.bf16.msra.mxu0 %v7473_v37  ;;  %v7515_v37 = vld [vmem:[%s7931_s25 + $0x860] ss:$48 sps:$4 sm:$0xff]  }
 0x1dc   : > { %5380 = vmatpush2.bf16.msra.mxu1 %v7470_v53  ;;  %5426 = vmatprep.subr.bf16.mxu0 %v7481_v41  ;;  %v7512_v53 = vld [vmem:[%s7931_s25 + $0x260] ss:$48 sps:$4 sm:$0xff]   ;;  %v7523_v41 = vld [vmem:[%s7931_s25 + $0x804] ss:$48 sps:$4 sm:$0xff]  }
 0x1dd   : > { %5381 = vmatprep.subr.bf16.mxu1 %v7478_v19  ;;  %v7520_v19 = vld [vmem:[%s7931_s25 + $0x204] ss:$48 sps:$4 sm:$0xff]  }
 0x1df   : > { %5427 = vmatpush1.bf16.msra.mxu0 %v7479_v63  ;;  %v7521_v63 = vld [vmem:[%s7931_s25 + $0x800] ss:$48 sps:$4 sm:$0xff]  }
 0x1e0   : > { %5382 = vmatpush2.bf16.msra.mxu1 %v7476_v45  ;;  %5436 = vmatprep.subr.bf16.mxu0 %v7487_v55  ;;  %v7518_v45 = vld [vmem:[%s7931_s25 + $0x200] ss:$48 sps:$4 sm:$0xff]   ;;  %v7529_v55 = vld [vmem:[%s7931_s25 + $0x7a4] ss:$48 sps:$4 sm:$0xff]  }
 0x1e1   : > { %5383 = vmatprep.subr.bf16.mxu1 %v7484_v50  ;;  %v7526_v50 = vld [vmem:[%s7931_s25 + $0x1a4] ss:$48 sps:$4 sm:$0xff]  }
 0x1e3   : > { %5437 = vmatpush2.bf16.msra.mxu0 %v7485_v31  ;;  %v7527_v31 = vld [vmem:[%s7931_s25 + $0x7a0] ss:$48 sps:$4 sm:$0xff]  }
 0x1e4   : > { %5384 = vmatpush2.bf16.msra.mxu1 %v7482_v9  ;;  %5438 = vmatprep.subr.bf16.mxu0 %v7493_v61  ;;  %v7524_v9 = vld [vmem:[%s7931_s25 + $0x1a0] ss:$48 sps:$4 sm:$0xff]   ;;  %v7535_v61 = vld [vmem:[%s7931_s25 + $0x744] ss:$48 sps:$4 sm:$0xff]  }
 0x1e5   : > { %5385 = vmatprep.subr.bf16.mxu1 %v7490_v59  ;;  %v7532_v59 = vld [vmem:[%s7931_s25 + $0x144] ss:$48 sps:$4 sm:$0xff]  }
 0x1e7   : > { %5439 = vmatpush2.bf16.msra.mxu0 %v7491_v62  ;;  %v7533_v62 = vld [vmem:[%s7931_s25 + $0x740] ss:$48 sps:$4 sm:$0xff]  }
 0x1e8   : > { %5386 = vmatpush2.bf16.msra.mxu1 %v7488_v12  ;;  %5440 = vmatprep.subr.bf16.mxu0 %v7499_v0  ;;  %v7530_v12 = vld [vmem:[%s7931_s25 + $0x140] ss:$48 sps:$4 sm:$0xff]   ;;  %v7541_v0 = vld [vmem:[%s7931_s25 + $0x6e4] ss:$48 sps:$4 sm:$0xff]  }
 0x1e9   : > { %5387 = vmatprep.subr.bf16.mxu1 %v7496_v21  ;;  %v7538_v21 = vld [vmem:[%s7931_s25 + $0xe4] ss:$48 sps:$4 sm:$0xff]  }
 0x1eb   : > { %5441 = vmatpush2.bf16.msra.mxu0 %v7497_v10 }
 0x1ec   : > { %5388 = vmatpush2.bf16.msra.mxu1 %v7494_v42  ;;  %5442 = vmatprep.subr.bf16.mxu0 %v7505_v33  ;;  %v7536_v33 = vld [vmem:[%s7931_s25 + $0xe0] ss:$48 sps:$4 sm:$0xff]  }
 0x1ed   : > { %5389 = vmatprep.subr.bf16.mxu1 %v7502_v11 }
 0x1ef   : > { %5443 = vmatpush2.bf16.msra.mxu0 %v7503_v15 }
 0x1f0   : > { %5390 = vmatpush2.bf16.msra.mxu1 %v7500_v47  ;;  %5465 = vmatprep.subr.bf16.mxu0 %v7508_v48  ;;  %v7539_v47 = vld [vmem:[%s7931_s25 + $0x6e0] ss:$48 sps:$4 sm:$0xff]  }
 0x1f1   : > { %5518 = vmatprep.subr.bf16.mxu1 %v7511_v44  ;;  %v7544_v44 = vld [vmem:[%s7931_s25 + $0x84] ss:$48 sps:$4 sm:$0xff]  }
 0x1f2   : > { %5445 = vmatmul.mubr.bf16.vlgmr.msra.gmra.mxu0 %v8115_v20 }
 0x1f3   : > { %5392 = vmatmul.mubr.bf16.vlgmr.msra.gmra.mxu1 %v8155_v52  ;;  %5466 = vmatpush1.bf16.msra.mxu0 %v7506_v25  ;;  %v7547_v25 = vld [vmem:[%s7931_s25 + $0x684] ss:$48 sps:$4 sm:$0xff]  }
 0x1f4   : > { %5519 = vmatpush1.bf16.msra.mxu1 %v7509_v26  ;;  %5467 = vmatprep.subr.bf16.mxu0 %v7514_v30 }
 0x1f5   : > { %5520 = vmatprep.subr.bf16.mxu1 %v7517_v34  ;;  %5401 = vmatprep.mubr.bf16.mxu1 %v8165_v57 }
 0x1f6   : > { %6766 = vmatprep.mubr.msk.bf16.mxu0 %vm4610_vm0, %v8124_v28 }
 0x1f7   : > { %5468 = vmatpush1.bf16.msra.mxu0 %v7512_v53 }
 0x1f8   : > { %5521 = vmatpush1.bf16.msra.mxu1 %v7515_v37  ;;  %5469 = vmatprep.subr.bf16.mxu0 %v7520_v19 }
 0x1f9   : > { %5522 = vmatprep.subr.bf16.mxu1 %v7523_v41  ;;  %v7542_v41 = vld [vmem:[%s7931_s25 + $0x80] ss:$48 sps:$4 sm:$0xff]  }
 0x1fa   : > { %5455 = vmatmul.mubr.bf16.gmra.mxu0 %v8141_v43 }
 0x1fb   : > { %5402 = vmatmul.mubr.bf16.gmra.mxu1 %v8173_v60  ;;  %5470 = vmatpush1.bf16.msra.mxu0 %v7518_v45  ;;  %v7545_v45 = vld [vmem:[%s7931_s25 + $0x680] ss:$48 sps:$4 sm:$0xff]  }
 0x1fc   : > { %5523 = vmatpush1.bf16.msra.mxu1 %v7521_v63  ;;  %5471 = vmatprep.subr.bf16.mxu0 %v7526_v50 }
 0x1fd   : > { %5524 = vmatprep.subr.bf16.mxu1 %v7529_v55  ;;  %5497 = vmatprep.mubr.bf16.mxu0 %v7912_v3  ;;  %v7550_v55 = vld [vmem:[%s7931_s25 + $0x24] ss:$48 sps:$4 sm:$0xff]  }
 0x1fe   : > { %5550 = vmatprep.mubr.bf16.mxu1 %v7921_v6 }
 0x1ff   : > { %5472 = vmatpush1.bf16.msra.mxu0 %v7524_v9  ;;  %v7553_v9 = vld [vmem:[%s7931_s25 + $0x624] ss:$48 sps:$4 sm:$0xff]  }
 0x200   : > { %5525 = vmatpush1.bf16.msra.mxu1 %v7527_v31  ;;  %5473 = vmatprep.subr.bf16.mxu0 %v7532_v59 }
 0x201   : > { %5526 = vmatprep.subr.bf16.mxu1 %v7535_v61 }
 0x202   : > { %v5075_v42 = vpop.f32.mrf.mxu0 }
 0x203   : > { %v5128_v10 = vpop.f32.mrf.mxu1  ;;  %v5076_v11 = vadd.f32 %v5075_v42, %v8313_v29  ;;  %5474 = vmatpush1.bf16.msra.mxu0 %v7530_v12 }
 0x204   : > { %5527 = vmatpush1.bf16.msra.mxu1 %v7533_v62  ;;  %v5077_v15 = vpop.f32.mrf.mxu0  ;;  %5475 = vmatprep.subr.bf16.mxu0 %v7538_v21  ;;  %v7548_v21 = vld [vmem:[%s7931_s25 + $0x20] ss:$48 sps:$4 sm:$0xff]  }
 0x205   : > { %v5130_v48 = vpop.f32.mrf.mxu1  ;;  %5528 = vmatprep.subr.bf16.mxu1 %v7541_v0  ;;  %v8704_v26 = vadd.f32 %v5128_v10, %v5076_v11  ;;  %v5078_v30 = vadd.f32 %v5077_v15, %v8313_v29  ;;  %v7551_v0 = vld [vmem:[%s7931_s25 + $0x620] ss:$48 sps:$4 sm:$0xff]   ;;  %v7556_v10 = vld [vmem:[%s7931_s25 + $0x5c4] ss:$48 sps:$4 sm:$0xff]  }
 0x206   : > { %v5079_v34 = vpop.f32.mrf.mxu0  ;;  %v7559_v11 = vld [vmem:[%s7931_s25 + $0xbc4] ss:$48 sps:$4 sm:$0xff]  }
 0x207   : > { %v5132_v53 = vpop.f32.mrf.mxu1  ;;  %v8707_v37 = vadd.f32 %v5130_v48, %v5078_v30  ;;  %v5080_v19 = vadd.f32 %v5079_v34, %v8324_v46  ;;  %5476 = vmatpush1.bf16.msra.mxu0 %v7536_v33  ;;  %v7554_v30 = vld [vmem:[%s7931_s25 + $0x5c0] ss:$48 sps:$4 sm:$0xff]  }
 0x208   : > { %5529 = vmatpush1.bf16.msra.mxu1 %v7539_v47  ;;  %v5081_v63 = vpop.f32.mrf.mxu0  ;;  %5477 = vmatprep.subr.bf16.mxu0 %v7544_v44  ;;  %v7557_v34 = vld [vmem:[%s7931_s25 + $0xbc0] ss:$48 sps:$4 sm:$0xff]  }
 0x209   : > { %v5134_v50 = vpop.f32.mrf.mxu1  ;;  %5530 = vmatprep.subr.bf16.mxu1 %v7547_v25  ;;  %v8714_v31 = vadd.f32 %v5132_v53, %v5080_v19  ;;  %v5082_v59 = vadd.f32 %v5081_v63, %v8324_v46 }
 0x20a   : > { %v5085_v61 = vpop.f32.mrf.mxu0 }
 0x20b   : > { %v5138_v12 = vpop.f32.mrf.mxu1  ;;  %v8717_v62 = vadd.f32 %v5134_v50, %v5082_v59  ;;  %5478 = vmatpush1.bf16.msra.mxu0 %v7542_v41  ;;  %v5086_v42 = vadd.f32 %v5085_v61, %v8331_v54  ;;  %v7562_v41 = vld [vmem:[%s7931_s25 + $0x564] ss:$48 sps:$4 sm:$0xff]   ;;  %v7560_v59 = vld [vmem:[%s7931_s25 + $0x560] ss:$48 sps:$4 sm:$0xff]  }
 0x20c   : > { %5531 = vmatpush1.bf16.msra.mxu1 %v7545_v45  ;;  %5479 = vmatprep.subr.bf16.mxu0 %v7550_v55  ;;  %v5087_v33 = vpop.f32.mrf.mxu0  ;;  %v7565_v45 = vld [vmem:[%s7931_s25 + $0xb64] ss:$48 sps:$4 sm:$0xff]   ;;  %v7563_v61 = vld [vmem:[%s7931_s25 + $0xb60] ss:$48 sps:$4 sm:$0xff]  }
 0x20d   : > { %5532 = vmatprep.subr.bf16.mxu1 %v7553_v9  ;;  %v5140_v47 = vpop.f32.mrf.mxu1  ;;  %v5088_v15 = vadd.f32 %v5087_v33, %v8331_v54  ;;  %v8725_v48 = vadd.f32 %v5138_v12, %v5086_v42  ;;  %v7566_v42 = vld [vmem:[%s7931_s25 + $0x500] ss:$48 sps:$4 sm:$0xff]   ;;  %v7577_v33 = vld [vmem:[%s7931_s25 + $0xaa4] ss:$48 sps:$4 sm:$0xff]  }
 0x20e   : > { %v5089_v44 = vpop.f32.mrf.mxu0 }
 0x20f   : > { %v5142_v25 = vpop.f32.mrf.mxu1  ;;  %5480 = vmatpush1.bf16.msra.mxu0 %v7548_v21  ;;  %v5090_v53 = vadd.f32 %v5089_v44, %v8348_v13  ;;  %v8730_v19 = vadd.f32 %v5140_v47, %v5088_v15  ;;  %v7568_v21 = vld [vmem:[%s7931_s25 + $0x504] ss:$48 sps:$4 sm:$0xff]   ;;  %v7572_v47 = vld [vmem:[%s7931_s25 + $0x4a0] ss:$48 sps:$4 sm:$0xff]  }
 0x210   : > { %5533 = vmatpush1.bf16.msra.mxu1 %v7551_v0  ;;  %5481 = vmatprep.subr.bf16.mxu0 %v7556_v10  ;;  %v5091_v63 = vpop.f32.mrf.mxu0  ;;  %v7571_v0 = vld [vmem:[%s7931_s25 + $0xb04] ss:$48 sps:$4 sm:$0xff]   ;;  %v7569_v10 = vld [vmem:[%s7931_s25 + $0xb00] ss:$48 sps:$4 sm:$0xff]  }
 0x211   : > { %5534 = vmatprep.subr.bf16.mxu1 %v7559_v11  ;;  %v5144_v50 = vpop.f32.mrf.mxu1  ;;  %v5092_v55 = vadd.f32 %v5091_v63, %v8348_v13  ;;  %v8735_v9 = vadd.f32 %v5142_v25, %v5090_v53  ;;  %v7574_v11 = vld [vmem:[%s7931_s25 + $0x4a4] ss:$48 sps:$4 sm:$0xff]   ;;  %v7575_v15 = vld [vmem:[%s7931_s25 + $0xaa0] ss:$48 sps:$4 sm:$0xff]  }
 0x212   : > { %v7580_v44 = vld [vmem:[%s7931_s25 + $0x444] ss:$48 sps:$4 sm:$0xff]   ;;  %v7587_v63 = vld [vmem:[%s7931_s25 + $0x9e0] ss:$48 sps:$4 sm:$0xff]  }
 0x213   : > { %5482 = vmatpush2.bf16.msra.mxu0 %v7554_v30  ;;  %v8739_v12 = vadd.f32 %v5144_v50, %v5092_v55  ;;  %v7583_v25 = vld [vmem:[%s7931_s25 + $0xa44] ss:$48 sps:$4 sm:$0xff]   ;;  %v7578_v30 = vld [vmem:[%s7931_s25 + $0x440] ss:$48 sps:$4 sm:$0xff]  }
 0x214   : > { %5535 = vmatpush2.bf16.msra.mxu1 %v7557_v34  ;;  %5483 = vmatprep.subr.bf16.mxu0 %v7562_v41  ;;  %v7581_v34 = vld [vmem:[%s7931_s25 + $0xa40] ss:$48 sps:$4 sm:$0xff]   ;;  %v7586_v53 = vld [vmem:[%s7931_s25 + $0x3e4] ss:$48 sps:$4 sm:$0xff]  }
 0x215   : > { %5536 = vmatprep.subr.bf16.mxu1 %v7565_v45  ;;  %v7589_v41 = vld [vmem:[%s7931_s25 + $0x9e4] ss:$48 sps:$4 sm:$0xff]   ;;  %v7584_v45 = vld [vmem:[%s7931_s25 + $0x3e0] ss:$48 sps:$4 sm:$0xff]  }
 0x216   : > { %v7592_v50 = vld [vmem:[%s7931_s25 + $0x384] ss:$48 sps:$4 sm:$0xff]  }
 0x217   : > { %5484 = vmatpush2.bf16.msra.mxu0 %v7560_v59  ;;  %v7595_v55 = vld [vmem:[%s7931_s25 + $0x984] ss:$48 sps:$4 sm:$0xff]   ;;  %v7590_v59 = vld [vmem:[%s7931_s25 + $0x380] ss:$48 sps:$4 sm:$0xff]  }
 0x218   : > { %5537 = vmatpush2.bf16.msra.mxu1 %v7563_v61  ;;  %5485 = vmatprep.subr.bf16.mxu0 %v7568_v21  ;;  %v7593_v61 = vld [vmem:[%s7931_s25 + $0x980] ss:$48 sps:$4 sm:$0xff]   ;;  %v7598_v21 = vld [vmem:[%s7931_s25 + $0x324] ss:$48 sps:$4 sm:$0xff]  }
 0x219   : > { %5538 = vmatprep.subr.bf16.mxu1 %v7571_v0  ;;  %v7601_v0 = vld [vmem:[%s7931_s25 + $0x924] ss:$48 sps:$4 sm:$0xff]  }
 0x21b   : > { %5486 = vmatpush2.bf16.msra.mxu0 %v7566_v42  ;;  %v7596_v42 = vld [vmem:[%s7931_s25 + $0x320] ss:$48 sps:$4 sm:$0xff]  }
 0x21c   : > { %5539 = vmatpush2.bf16.msra.mxu1 %v7569_v10  ;;  %5487 = vmatprep.subr.bf16.mxu0 %v7574_v11  ;;  %v7599_v10 = vld [vmem:[%s7931_s25 + $0x920] ss:$48 sps:$4 sm:$0xff]   ;;  %v7604_v11 = vld [vmem:[%s7931_s25 + $0xec4] ss:$48 sps:$4 sm:$0xff]  }
 0x21d   : > { %5540 = vmatprep.subr.bf16.mxu1 %v7577_v33  ;;  %v7607_v33 = vld [vmem:[%s7931_s25 + $0x14c4] ss:$48 sps:$4 sm:$0xff]  }
 0x21f   : > { %5488 = vmatpush2.bf16.msra.mxu0 %v7572_v47  ;;  %v7602_v47 = vld [vmem:[%s7931_s25 + $0xec0] ss:$48 sps:$4 sm:$0xff]  }
 0x220   : > { %5541 = vmatpush2.bf16.msra.mxu1 %v7575_v15  ;;  %5489 = vmatprep.subr.bf16.mxu0 %v7580_v44  ;;  %v7605_v15 = vld [vmem:[%s7931_s25 + $0x14c0] ss:$48 sps:$4 sm:$0xff]   ;;  %v7610_v44 = vld [vmem:[%s7931_s25 + $0xe64] ss:$48 sps:$4 sm:$0xff]  }
 0x221   : > { %5542 = vmatprep.subr.bf16.mxu1 %v7583_v25  ;;  %v7613_v25 = vld [vmem:[%s7931_s25 + $0x1464] ss:$48 sps:$4 sm:$0xff]  }
 0x223   : > { %5490 = vmatpush2.bf16.msra.mxu0 %v7578_v30  ;;  %v7608_v30 = vld [vmem:[%s7931_s25 + $0xe60] ss:$48 sps:$4 sm:$0xff]  }
 0x224   : > { %5543 = vmatpush2.bf16.msra.mxu1 %v7581_v34  ;;  %5491 = vmatprep.subr.bf16.mxu0 %v7586_v53  ;;  %v7611_v34 = vld [vmem:[%s7931_s25 + $0x1460] ss:$48 sps:$4 sm:$0xff]   ;;  %v7616_v53 = vld [vmem:[%s7931_s25 + $0xe04] ss:$48 sps:$4 sm:$0xff]  }
 0x225   : > { %5544 = vmatprep.subr.bf16.mxu1 %v7589_v41  ;;  %v7619_v41 = vld [vmem:[%s7931_s25 + $0x1404] ss:$48 sps:$4 sm:$0xff]  }
 0x227   : > { %5492 = vmatpush2.bf16.msra.mxu0 %v7584_v45 }
 0x228   : > { %5545 = vmatpush2.bf16.msra.mxu1 %v7587_v63  ;;  %5493 = vmatprep.subr.bf16.mxu0 %v7592_v50  ;;  %v7614_v63 = vld [vmem:[%s7931_s25 + $0xe00] ss:$48 sps:$4 sm:$0xff]  }
 0x229   : > { %5546 = vmatprep.subr.bf16.mxu1 %v7595_v55  ;;  %v7617_v50 = vld [vmem:[%s7931_s25 + $0x1400] ss:$48 sps:$4 sm:$0xff]   ;;  %v7622_v55 = vld [vmem:[%s7931_s25 + $0xda4] ss:$48 sps:$4 sm:$0xff]  }
 0x22b   : > { %5494 = vmatpush2.bf16.msra.mxu0 %v7590_v59  ;;  %v7625_v59 = vld [vmem:[%s7931_s25 + $0x13a4] ss:$48 sps:$4 sm:$0xff]  }
 0x22c   : > { %5547 = vmatpush2.bf16.msra.mxu1 %v7593_v61  ;;  %5495 = vmatprep.subr.bf16.mxu0 %v7598_v21  ;;  %v7620_v21 = vld [vmem:[%s7931_s25 + $0xda0] ss:$48 sps:$4 sm:$0xff]  }
 0x22d   : > { %5548 = vmatprep.subr.bf16.mxu1 %v7601_v0  ;;  %v7623_v0 = vld [vmem:[%s7931_s25 + $0x13a0] ss:$48 sps:$4 sm:$0xff]  }
 0x22f   : > { %5496 = vmatpush2.bf16.msra.mxu0 %v7596_v42  ;;  %v7628_v42 = vld [vmem:[%s7931_s25 + $0xd44] ss:$48 sps:$4 sm:$0xff]  }
 0x230   : > { %5549 = vmatpush2.bf16.msra.mxu1 %v7599_v10  ;;  %5571 = vmatprep.subr.bf16.mxu0 %v7604_v11  ;;  %v7631_v10 = vld [vmem:[%s7931_s25 + $0x1344] ss:$48 sps:$4 sm:$0xff]  }
 0x231   : > { %5624 = vmatprep.subr.bf16.mxu1 %v7607_v33  ;;  %v7626_v33 = vld [vmem:[%s7931_s25 + $0xd40] ss:$48 sps:$4 sm:$0xff]  }
 0x232   : > { %5498 = vmatmul.mubr.bf16.vlgmr.msra.gmra.mxu0 %v7917_v5 }
 0x233   : > { %5551 = vmatmul.mubr.bf16.vlgmr.msra.gmra.mxu1 %v7923_v7  ;;  %5572 = vmatpush1.bf16.msra.mxu0 %v7602_v47  ;;  %v5234_v45 = vpop.f32.mrf.mxu1  ;;  %v7629_v47 = vld [vmem:[%s7931_s25 + $0x1340] ss:$48 sps:$4 sm:$0xff]  }
 0x234   : > { %5625 = vmatpush1.bf16.msra.mxu1 %v7605_v15  ;;  %5573 = vmatprep.subr.bf16.mxu0 %v7610_v44  ;;  %v7634_v15 = vld [vmem:[%s7931_s25 + $0xce4] ss:$48 sps:$4 sm:$0xff]  }
 0x235   : > { %5626 = vmatprep.subr.bf16.mxu1 %v7613_v25  ;;  %5507 = vmatprep.mubr.bf16.mxu0 %v8015_v23  ;;  %v5236_v61 = vpop.f32.mrf.mxu1  ;;  %v7637_v44 = vld [vmem:[%s7931_s25 + $0x12e4] ss:$48 sps:$4 sm:$0xff]  }
 0x236   : > { %5560 = vmatprep.mubr.bf16.mxu1 %v8017_v24 }
 0x237   : > { %5574 = vmatpush1.bf16.msra.mxu0 %v7608_v30  ;;  %v5238_v11 = vpop.f32.mrf.mxu1 }
 0x238   : > { %5627 = vmatpush1.bf16.msra.mxu1 %v7611_v34  ;;  %5575 = vmatprep.subr.bf16.mxu0 %v7616_v53  ;;  %v7632_v53 = vld [vmem:[%s7931_s25 + $0xce0] ss:$48 sps:$4 sm:$0xff]  }
 0x239   : > { %5628 = vmatprep.subr.bf16.mxu1 %v7619_v41  ;;  %v5240_v25 = vpop.f32.mrf.mxu1  ;;  %v7635_v41 = vld [vmem:[%s7931_s25 + $0x12e0] ss:$48 sps:$4 sm:$0xff]  }
 0x23a   : > { %5508 = vmatmul.mubr.bf16.gmra.mxu0 %v8049_v35 }
 0x23b   : > { %5561 = vmatmul.mubr.bf16.gmra.mxu1 %v8051_v36  ;;  %5576 = vmatpush1.bf16.msra.mxu0 %v7614_v63 }
 0x23c   : > { %5629 = vmatpush1.bf16.msra.mxu1 %v7617_v50  ;;  %5577 = vmatprep.subr.bf16.mxu0 %v7622_v55  ;;  %v7640_v50 = vld [vmem:[%s7931_s25 + $0xc84] ss:$48 sps:$4 sm:$0xff]  }
 0x23d   : > { %5630 = vmatprep.subr.bf16.mxu1 %v7625_v59  ;;  %6767 = vmatprep.mubr.msk.bf16.mxu1 %vm4610_vm0, %v8057_v39  ;;  %v7643_v55 = vld [vmem:[%s7931_s25 + $0x1284] ss:$48 sps:$4 sm:$0xff]   ;;  %v5244_v59 = vpop.f32.mrf.mxu1 }
 0x23e   : > { %5603 = vmatprep.mubr.bf16.mxu0 %v8061_v40 }
 0x23f   : > { %5578 = vmatpush1.bf16.msra.mxu0 %v7620_v21 }
 0x240   : > { %5631 = vmatpush1.bf16.msra.mxu1 %v7623_v0  ;;  %5579 = vmatprep.subr.bf16.mxu0 %v7628_v42 }
 0x241   : > { %5632 = vmatprep.subr.bf16.mxu1 %v7631_v10 }
 0x242   : > { %v5181_v30 = vpop.f32.mrf.mxu0 }
 0x243   : > { %v5182_v34 = vadd.f32 %v5181_v30, %v8704_v26  ;;  %5580 = vmatpush1.bf16.msra.mxu0 %v7626_v33  ;;  %v7638_v33 = vld [vmem:[%s7931_s25 + $0xc80] ss:$48 sps:$4 sm:$0xff]   ;;  %v7649_v30 = vld [vmem:[%s7931_s25 + $0x1224] ss:$48 sps:$4 sm:$0xff]  }
 0x244   : > { %5633 = vmatpush1.bf16.msra.mxu1 %v7629_v47  ;;  %v5183_v63 = vpop.f32.mrf.mxu0  ;;  %5581 = vmatprep.subr.bf16.mxu0 %v7634_v15  ;;  %v7641_v47 = vld [vmem:[%s7931_s25 + $0x1280] ss:$48 sps:$4 sm:$0xff]  }
 0x245   : > { %5634 = vmatprep.subr.bf16.mxu1 %v7637_v44  ;;  %v8801_v21 = vadd.f32 %v5234_v45, %v5182_v34  ;;  %v5184_v0 = vadd.f32 %v5183_v63, %v8707_v37  ;;  %v5246_v44 = vpop.f32.mrf.mxu1  ;;  %v7646_v45 = vld [vmem:[%s7931_s25 + $0xc24] ss:$48 sps:$4 sm:$0xff]   ;;  %v7647_v63 = vld [vmem:[%s7931_s25 + $0x1220] ss:$48 sps:$4 sm:$0xff]  }
 0x246   : > { %v5185_v42 = vpop.f32.mrf.mxu0 }
 0x247   : > { %v8804_v26 = vadd.f32 %v5236_v61, %v5184_v0  ;;  %v5186_v10 = vadd.f32 %v5185_v42, %v8714_v31  ;;  %5582 = vmatpush1.bf16.msra.mxu0 %v7632_v53  ;;  %v7655_v0 = vld [vmem:[%s7931_s25 + $0x1644] ss:$48 sps:$4 sm:$0xff]  }
 0x248   : > { %5635 = vmatpush1.bf16.msra.mxu1 %v7635_v41  ;;  %v5187_v15 = vpop.f32.mrf.mxu0  ;;  %5583 = vmatprep.subr.bf16.mxu0 %v7640_v50  ;;  %v7644_v41 = vld [vmem:[%s7931_s25 + $0xc20] ss:$48 sps:$4 sm:$0xff]  }
 0x249   : > { %5636 = vmatprep.subr.bf16.mxu1 %v7643_v55  ;;  %v8811_v37 = vadd.f32 %v5238_v11, %v5186_v10  ;;  %v5188_v61 = vadd.f32 %v5187_v15, %v8717_v62  ;;  %v5248_v55 = vpop.f32.mrf.mxu1  ;;  %v7652_v11 = vld [vmem:[%s7931_s25 + $0x11c4] ss:$48 sps:$4 sm:$0xff]  }
 0x24a   : > { %v5191_v34 = vpop.f32.mrf.mxu0 }
 0x24b   : > { %v8814_v31 = vadd.f32 %v5240_v25, %v5188_v61  ;;  %v5192_v53 = vadd.f32 %v5191_v34, %v8725_v48  ;;  %5584 = vmatpush1.bf16.msra.mxu0 %v7638_v33  ;;  %v7650_v33 = vld [vmem:[%s7931_s25 + $0x11c0] ss:$48 sps:$4 sm:$0xff]  }
 0x24c   : > { %5637 = vmatpush1.bf16.msra.mxu1 %v7641_v47  ;;  %v5193_v50 = vpop.f32.mrf.mxu0  ;;  %5585 = vmatprep.subr.bf16.mxu0 %v7646_v45  ;;  %v7653_v47 = vld [vmem:[%s7931_s25 + $0x1640] ss:$48 sps:$4 sm:$0xff]   ;;  %v5250_v45 = vpop.f32.mrf.mxu1 }
 0x24d   : > { %9114 = vst [vmem:[#allocation2_spill] sm:$0xff] %v8814_v31  ;;  %5638 = vmatprep.subr.bf16.mxu1 %v7649_v30  ;;  %v5194_v62 = vadd.f32 %v5193_v50, %v8730_v19  ;;  %v8822_v25 = vadd.f32 %v5244_v59, %v5192_v53  ;;  %v7658_v19 = vld [vmem:[%s7931_s25 + $0x1164] ss:$48 sps:$4 sm:$0xff]   ;;  %v7656_v61 = vld [vmem:[%s7931_s25 + $0x1160] ss:$48 sps:$4 sm:$0xff]  }
 0x24e   : > { %v5195_v42 = vpop.f32.mrf.mxu0  ;;  %v7661_v59 = vld [vmem:[%s7931_s25 + $0x15e4] ss:$48 sps:$4 sm:$0xff]   ;;  %v7659_v34 = vld [vmem:[%s7931_s25 + $0x15e0] ss:$48 sps:$4 sm:$0xff]   ;;  %v7806_v31 = vld [vmem:[%s7931_s25 + $0xc88] ss:$48 sps:$4 sm:$0xff]  }
 0x24f   : > { %9115 = vst [vmem:[#allocation3_spill] sm:$0xff] %v8822_v25  ;;  %v5196_v48 = vadd.f32 %v5195_v42, %v8735_v9  ;;  %v8825_v10 = vadd.f32 %v5246_v44, %v5194_v62  ;;  %5586 = vmatpush1.bf16.msra.mxu0 %v7644_v41  ;;  %v7664_v53 = vld [vmem:[%s7931_s25 + $0x1104] ss:$48 sps:$4 sm:$0xff]   ;;  %v7679_v42 = vld [vmem:[%s7931_s25 + $0x2cc] ss:$48 sps:$4 sm:$0xff]  }
 0x250   : > { %5639 = vmatpush1.bf16.msra.mxu1 %v7647_v63  ;;  %v5197_v15 = vpop.f32.mrf.mxu0  ;;  %5587 = vmatprep.subr.bf16.mxu0 %v7652_v11  ;;  %v7667_v41 = vld [vmem:[%s7931_s25 + $0x1584] ss:$48 sps:$4 sm:$0xff]   ;;  %v7665_v63 = vld [vmem:[%s7931_s25 + $0x1580] ss:$48 sps:$4 sm:$0xff]  }
 0x251   : > { %9116 = vst [vmem:[#allocation4_spill] sm:$0xff] %v8825_v10  ;;  %5648 = vmatprep.subr.bf16.mxu1 %v7655_v0  ;;  %v5198_v9 = vadd.f32 %v5197_v15, %v8739_v12  ;;  %v8832_v44 = vadd.f32 %v5248_v55, %v5196_v48  ;;  %v7662_v12 = vld [vmem:[%s7931_s25 + $0x1100] ss:$48 sps:$4 sm:$0xff]   ;;  %v7670_v50 = vld [vmem:[%s7931_s25 + $0x10a4] ss:$48 sps:$4 sm:$0xff]  }
 0x252   : > { %v7673_v55 = vld [vmem:[%s7931_s25 + $0x1524] ss:$48 sps:$4 sm:$0xff]   ;;  %v7668_v11 = vld [vmem:[%s7931_s25 + $0x10a0] ss:$48 sps:$4 sm:$0xff]   ;;  %v7685_v15 = vld [vmem:[%s7931_s25 + $0x26c] ss:$48 sps:$4 sm:$0xff]  }
 0x253   : > { %9117 = vst [vmem:[#allocation5_spill] sm:$0xff] %v8832_v44  ;;  %v8834_v30 = vadd.f32 %v5250_v45, %v5198_v9  ;;  %5588 = vmatpush2.bf16.msra.mxu0 %v7650_v33  ;;  %v7671_v0 = vld [vmem:[%s7931_s25 + $0x1520] ss:$48 sps:$4 sm:$0xff]   ;;  %v7676_v62 = vld [vmem:[%s7931_s25 + $0x1044] ss:$48 sps:$4 sm:$0xff]  }
 0x254   : > { %5649 = vmatpush2.bf16.msra.mxu1 %v7653_v47  ;;  %5589 = vmatprep.subr.bf16.mxu0 %v7658_v19  ;;  %v7674_v48 = vld [vmem:[%s7931_s25 + $0x1040] ss:$48 sps:$4 sm:$0xff]   ;;  %v7677_v33 = vld [vmem:[%s7931_s25 + $0x2c8] ss:$48 sps:$4 sm:$0xff]   ;;  %v7682_v47 = vld [vmem:[%s7931_s25 + $0xfe4] ss:$48 sps:$4 sm:$0xff]  }
 0x255   : > { %9118 = vst [vmem:[#allocation6_spill] sm:$0xff] %v8834_v30  ;;  %5650 = vmatprep.subr.bf16.mxu1 %v7661_v59  ;;  %v7680_v45 = vld [vmem:[%s7931_s25 + $0xfe0] ss:$48 sps:$4 sm:$0xff]   ;;  %v7683_v19 = vld [vmem:[%s7931_s25 + $0x268] ss:$48 sps:$4 sm:$0xff]  }
 0x256   : > { %v7688_v59 = vld [vmem:[%s7931_s25 + $0xf84] ss:$48 sps:$4 sm:$0xff]   ;;  %v7691_v9 = vld [vmem:[%s7931_s25 + $0x20c] ss:$48 sps:$4 sm:$0xff]   ;;  %v7803_v10 = vld [vmem:[%s7931_s25 + $0x1468] ss:$48 sps:$4 sm:$0xff]  }
 0x257   : > { %5590 = vmatpush2.bf16.msra.mxu0 %v7656_v61  ;;  %v7686_v61 = vld [vmem:[%s7931_s25 + $0xf80] ss:$48 sps:$4 sm:$0xff]  }
 0x258   : > { %5651 = vmatpush2.bf16.msra.mxu1 %v7659_v34  ;;  %5591 = vmatprep.subr.bf16.mxu0 %v7664_v53  ;;  %v7689_v34 = vld [vmem:[%s7931_s25 + $0x208] ss:$48 sps:$4 sm:$0xff]   ;;  %v7694_v53 = vld [vmem:[%s7931_s25 + $0xf24] ss:$48 sps:$4 sm:$0xff]  }
 0x259   : > { %5652 = vmatprep.subr.bf16.mxu1 %v7667_v41  ;;  %v7697_v41 = vld [vmem:[%s7931_s25 + $0x1ac] ss:$48 sps:$4 sm:$0xff]  }
 0x25b   : > { %5592 = vmatpush2.bf16.msra.mxu0 %v7662_v12  ;;  %v7692_v12 = vld [vmem:[%s7931_s25 + $0xf20] ss:$48 sps:$4 sm:$0xff]  }
 0x25c   : > { %5653 = vmatpush2.bf16.msra.mxu1 %v7665_v63  ;;  %5593 = vmatprep.subr.bf16.mxu0 %v7670_v50  ;;  %v7695_v63 = vld [vmem:[%s7931_s25 + $0x1a8] ss:$48 sps:$4 sm:$0xff]   ;;  %v7700_v50 = vld [vmem:[%s7931_s25 + $0x14c] ss:$48 sps:$4 sm:$0xff]  }
 0x25d   : > { %5654 = vmatprep.subr.bf16.mxu1 %v7673_v55  ;;  %v7703_v55 = vld [vmem:[%s7931_s25 + $0x8cc] ss:$48 sps:$4 sm:$0xff]  }
 0x25f   : > { %5594 = vmatpush2.bf16.msra.mxu0 %v7668_v11  ;;  %v7698_v11 = vld [vmem:[%s7931_s25 + $0x148] ss:$48 sps:$4 sm:$0xff]  }
 0x260   : > { %5655 = vmatpush2.bf16.msra.mxu1 %v7671_v0  ;;  %5595 = vmatprep.subr.bf16.mxu0 %v7676_v62  ;;  %v7701_v0 = vld [vmem:[%s7931_s25 + $0x8c8] ss:$48 sps:$4 sm:$0xff]   ;;  %v7706_v62 = vld [vmem:[%s7931_s25 + $0xec] ss:$48 sps:$4 sm:$0xff]  }
 0x261   : > { %5677 = vmatprep.subr.bf16.mxu1 %v7679_v42  ;;  %v7709_v42 = vld [vmem:[%s7931_s25 + $0x86c] ss:$48 sps:$4 sm:$0xff]  }
 0x263   : > { %5657 = vmatmul.mubr.bf16.vlgmr.msra.gmra.mxu1 %v8115_v20  ;;  %5596 = vmatpush2.bf16.msra.mxu0 %v7674_v48  ;;  %v7704_v48 = vld [vmem:[%s7931_s25 + $0xe8] ss:$48 sps:$4 sm:$0xff]  }
 0x264   : > { %5678 = vmatpush1.bf16.msra.mxu1 %v7677_v33  ;;  %5597 = vmatprep.subr.bf16.mxu0 %v7682_v47  ;;  %v7712_v33 = vld [vmem:[%s7931_s25 + $0x8c] ss:$48 sps:$4 sm:$0xff]  }
 0x265   : > { %5679 = vmatprep.subr.bf16.mxu1 %v7685_v15  ;;  %6768 = vmatprep.mubr.msk.bf16.mxu1 %vm4610_vm0, %v8124_v28  ;;  %v7715_v47 = vld [vmem:[%s7931_s25 + $0x80c] ss:$48 sps:$4 sm:$0xff]   ;;  %v7710_v15 = vld [vmem:[%s7931_s25 + $0x88] ss:$48 sps:$4 sm:$0xff]  }
 0x267   : > { %5598 = vmatpush2.bf16.msra.mxu0 %v7680_v45  ;;  %v7713_v45 = vld [vmem:[%s7931_s25 + $0x808] ss:$48 sps:$4 sm:$0xff]  }
 0x268   : > { %5680 = vmatpush1.bf16.msra.mxu1 %v7683_v19  ;;  %5599 = vmatprep.subr.bf16.mxu0 %v7688_v59  ;;  %v7718_v19 = vld [vmem:[%s7931_s25 + $0x2c] ss:$48 sps:$4 sm:$0xff]  }
 0x269   : > { %5681 = vmatprep.subr.bf16.mxu1 %v7691_v9  ;;  %v7721_v59 = vld [vmem:[%s7931_s25 + $0x7ac] ss:$48 sps:$4 sm:$0xff]   ;;  %v7716_v9 = vld [vmem:[%s7931_s25 + $0x28] ss:$48 sps:$4 sm:$0xff]  }
 0x26b   : > { %5667 = vmatmul.mubr.bf16.gmra.mxu1 %v8141_v43  ;;  %5600 = vmatpush2.bf16.msra.mxu0 %v7686_v61  ;;  %v7719_v61 = vld [vmem:[%s7931_s25 + $0x7a8] ss:$48 sps:$4 sm:$0xff]  }
 0x26c   : > { %5682 = vmatpush1.bf16.msra.mxu1 %v7689_v34  ;;  %5601 = vmatprep.subr.bf16.mxu0 %v7694_v53  ;;  %v7724_v34 = vld [vmem:[%s7931_s25 + $0x5cc] ss:$48 sps:$4 sm:$0xff]  }
 0x26d   : > { %5683 = vmatprep.subr.bf16.mxu1 %v7697_v41  ;;  %5709 = vmatprep.mubr.bf16.mxu1 %v7912_v3  ;;  %v7707_v3 = vld [vmem:[%s7931_s25 + $0x868] ss:$48 sps:$4 sm:$0xff]   ;;  %v7727_v53 = vld [vmem:[%s7931_s25 + $0x74c] ss:$48 sps:$4 sm:$0xff]  }
 0x26e   : > { %v7722_v41 = vld [vmem:[%s7931_s25 + $0x5c8] ss:$48 sps:$4 sm:$0xff]  }
 0x26f   : > { %5602 = vmatpush2.bf16.msra.mxu0 %v7692_v12  ;;  %v7725_v12 = vld [vmem:[%s7931_s25 + $0x748] ss:$48 sps:$4 sm:$0xff]  }
 0x270   : > { %5684 = vmatpush1.bf16.msra.mxu1 %v7695_v63  ;;  %5730 = vmatprep.subr.bf16.mxu0 %v7703_v55  ;;  %v7730_v63 = vld [vmem:[%s7931_s25 + $0x56c] ss:$48 sps:$4 sm:$0xff]   ;;  %v7728_v55 = vld [vmem:[%s7931_s25 + $0x568] ss:$48 sps:$4 sm:$0xff]  }
 0x271   : > { %5685 = vmatprep.subr.bf16.mxu1 %v7700_v50  ;;  %v7733_v50 = vld [vmem:[%s7931_s25 + $0x6ec] ss:$48 sps:$4 sm:$0xff]  }
 0x272   : > { %5604 = vmatmul.mubr.bf16.vlgmr.msra.gmra.mxu0 %v8155_v52 }
 0x273   : > { %5731 = vmatpush1.bf16.msra.mxu0 %v7701_v0  ;;  %5613 = vmatprep.mubr.bf16.mxu0 %v8165_v57  ;;  %v7739_v0 = vld [vmem:[%s7931_s25 + $0x68c] ss:$48 sps:$4 sm:$0xff]  }
 0x274   : > { %5686 = vmatpush1.bf16.msra.mxu1 %v7698_v11  ;;  %5732 = vmatprep.subr.bf16.mxu0 %v7709_v42  ;;  %v7731_v11 = vld [vmem:[%s7931_s25 + $0x6e8] ss:$48 sps:$4 sm:$0xff]  }
 0x275   : > { %5687 = vmatprep.subr.bf16.mxu1 %v7706_v62  ;;  %v7734_v62 = vld [vmem:[%s7931_s25 + $0x508] ss:$48 sps:$4 sm:$0xff]  }
 0x276   : > { %v7737_v42 = vld [vmem:[%s7931_s25 + $0x688] ss:$48 sps:$4 sm:$0xff]  }
 0x277   : > { %5733 = vmatpush1.bf16.msra.mxu0 %v7707_v3  ;;  %v7745_v3 = vld [vmem:[%s7931_s25 + $0x62c] ss:$48 sps:$4 sm:$0xff]  }
 0x278   : > { %5688 = vmatpush1.bf16.msra.mxu1 %v7704_v48  ;;  %5734 = vmatprep.subr.bf16.mxu0 %v7715_v47  ;;  %v7742_v48 = vld [vmem:[%s7931_s25 + $0x4ac] ss:$48 sps:$4 sm:$0xff]   ;;  %v7743_v47 = vld [vmem:[%s7931_s25 + $0x628] ss:$48 sps:$4 sm:$0xff]  }
 0x279   : > { %5689 = vmatprep.subr.bf16.mxu1 %v7712_v33  ;;  %v7740_v33 = vld [vmem:[%s7931_s25 + $0x4a8] ss:$48 sps:$4 sm:$0xff]  }
 0x27a   : > { %5614 = vmatmul.mubr.bf16.gmra.mxu0 %v8173_v60 }
 0x27b   : > { %5735 = vmatpush1.bf16.msra.mxu0 %v7713_v45  ;;  %5762 = vmatprep.mubr.bf16.mxu0 %v7921_v6  ;;  %v7736_v6 = vld [vmem:[%s7931_s25 + $0x50c] ss:$48 sps:$4 sm:$0xff]  }
 0x27c   : > { %5690 = vmatpush1.bf16.msra.mxu1 %v7710_v15  ;;  %5736 = vmatprep.subr.bf16.mxu0 %v7721_v59  ;;  %v7748_v15 = vld [vmem:[%s7931_s25 + $0x44c] ss:$48 sps:$4 sm:$0xff]   ;;  %v7749_v59 = vld [vmem:[%s7931_s25 + $0xbc8] ss:$48 sps:$4 sm:$0xff]  }
 0x27d   : > { %5691 = vmatprep.subr.bf16.mxu1 %v7718_v19  ;;  %v7751_v45 = vld [vmem:[%s7931_s25 + $0xbcc] ss:$48 sps:$4 sm:$0xff]   ;;  %v7746_v19 = vld [vmem:[%s7931_s25 + $0x448] ss:$48 sps:$4 sm:$0xff]  }
 0x27f   : > { %5737 = vmatpush1.bf16.msra.mxu0 %v7719_v61  ;;  %v7757_v61 = vld [vmem:[%s7931_s25 + $0xb6c] ss:$48 sps:$4 sm:$0xff]  }
 0x280   : > { %5692 = vmatpush1.bf16.msra.mxu1 %v7716_v9  ;;  %5738 = vmatprep.subr.bf16.mxu0 %v7727_v53  ;;  %v7754_v9 = vld [vmem:[%s7931_s25 + $0x3ec] ss:$48 sps:$4 sm:$0xff]   ;;  %v7755_v53 = vld [vmem:[%s7931_s25 + $0xb68] ss:$48 sps:$4 sm:$0xff]  }
 0x281   : > { %5693 = vmatprep.subr.bf16.mxu1 %v7724_v34  ;;  %v7752_v34 = vld [vmem:[%s7931_s25 + $0x3e8] ss:$48 sps:$4 sm:$0xff]  }
 0x283   : > { %5739 = vmatpush1.bf16.msra.mxu0 %v7725_v12  ;;  %v7763_v12 = vld [vmem:[%s7931_s25 + $0xb0c] ss:$48 sps:$4 sm:$0xff]  }
 0x284   : > { %5694 = vmatpush2.bf16.msra.mxu1 %v7722_v41  ;;  %5740 = vmatprep.subr.bf16.mxu0 %v7733_v50  ;;  %v7760_v41 = vld [vmem:[%s7931_s25 + $0x38c] ss:$48 sps:$4 sm:$0xff]   ;;  %v8915_v50 = vpop.f32.mrf.mxu0 }
 0x285   : > { %5695 = vmatprep.subr.bf16.mxu1 %v7730_v63  ;;  %v8913_v63 = vpop.f32.mrf.mxu1 }
 0x287   : > { %5741 = vmatpush1.bf16.msra.mxu0 %v7731_v11  ;;  %v7761_v11 = vld [vmem:[%s7931_s25 + $0xb08] ss:$48 sps:$4 sm:$0xff]  }
 0x288   : > { %5696 = vmatpush2.bf16.msra.mxu1 %v7728_v55  ;;  %5742 = vmatprep.subr.bf16.mxu0 %v7739_v0  ;;  %v7758_v55 = vld [vmem:[%s7931_s25 + $0x388] ss:$48 sps:$4 sm:$0xff]   ;;  %v7769_v0 = vld [vmem:[%s7931_s25 + $0xaac] ss:$48 sps:$4 sm:$0xff]  }
 0x289   : > { %5697 = vmatprep.subr.bf16.mxu1 %v7736_v6  ;;  %v7766_v6 = vld [vmem:[%s7931_s25 + $0x32c] ss:$48 sps:$4 sm:$0xff]  }
 0x28b   : > { %5743 = vmatpush1.bf16.msra.mxu0 %v7737_v42  ;;  %v8923_v42 = vpop.f32.mrf.mxu0 }
 0x28c   : > { %5698 = vmatpush2.bf16.msra.mxu1 %v7734_v62  ;;  %5744 = vmatprep.subr.bf16.mxu0 %v7745_v3  ;;  %v8921_v62 = vpop.f32.mrf.mxu1  ;;  %v7767_v3 = vld [vmem:[%s7931_s25 + $0xaa8] ss:$48 sps:$4 sm:$0xff]  }
 0x28d   : > { %5699 = vmatprep.subr.bf16.mxu1 %v7742_v48  ;;  %v7764_v48 = vld [vmem:[%s7931_s25 + $0x328] ss:$48 sps:$4 sm:$0xff]  }
 0x28f   : > { %5745 = vmatpush1.bf16.msra.mxu0 %v7743_v47  ;;  %v7775_v47 = vld [vmem:[%s7931_s25 + $0xecc] ss:$48 sps:$4 sm:$0xff]  }
 0x290   : > { %5700 = vmatpush2.bf16.msra.mxu1 %v7740_v33  ;;  %5746 = vmatprep.subr.bf16.mxu0 %v7751_v45  ;;  %v7772_v33 = vld [vmem:[%s7931_s25 + $0xa4c] ss:$48 sps:$4 sm:$0xff]   ;;  %v8929_v45 = vpop.f32.mrf.mxu0 }
 0x291   : > { %5701 = vmatprep.subr.bf16.mxu1 %v7748_v15  ;;  %v5291_v15 = vpop.f32.mrf.mxu1 }
 0x293   : > { %5747 = vmatpush2.bf16.msra.mxu0 %v7749_v59  ;;  %v7773_v59 = vld [vmem:[%s7931_s25 + $0xec8] ss:$48 sps:$4 sm:$0xff]  }
 0x294   : > { %5702 = vmatpush2.bf16.msra.mxu1 %v7746_v19  ;;  %5748 = vmatprep.subr.bf16.mxu0 %v7757_v61  ;;  %v7770_v19 = vld [vmem:[%s7931_s25 + $0xa48] ss:$48 sps:$4 sm:$0xff]   ;;  %v7781_v61 = vld [vmem:[%s7931_s25 + $0xe6c] ss:$48 sps:$4 sm:$0xff]  }
 0x295   : > { %5703 = vmatprep.subr.bf16.mxu1 %v7754_v9  ;;  %v7778_v9 = vld [vmem:[%s7931_s25 + $0x9ec] ss:$48 sps:$4 sm:$0xff]  }
 0x297   : > { %5749 = vmatpush2.bf16.msra.mxu0 %v7755_v53  ;;  %v8935_v53 = vpop.f32.mrf.mxu0 }
 0x298   : > { %5704 = vmatpush2.bf16.msra.mxu1 %v7752_v34  ;;  %5750 = vmatprep.subr.bf16.mxu0 %v7763_v12  ;;  %v5293_v34 = vpop.f32.mrf.mxu1  ;;  %v7779_v12 = vld [vmem:[%s7931_s25 + $0xe68] ss:$48 sps:$4 sm:$0xff]  }
 0x299   : > { %5705 = vmatprep.subr.bf16.mxu1 %v7760_v41  ;;  %v7776_v41 = vld [vmem:[%s7931_s25 + $0x9e8] ss:$48 sps:$4 sm:$0xff]   ;;  %v5294_v25 = vadd.f32 %v5293_v34, %v8324_v46 }
 0x29b   : > { %5751 = vmatpush2.bf16.msra.mxu0 %v7761_v11  ;;  %v8940_v11 = vpop.f32.mrf.mxu0 }
 0x29c   : > { %5706 = vmatpush2.bf16.msra.mxu1 %v7758_v55  ;;  %5752 = vmatprep.subr.bf16.mxu0 %v7769_v0  ;;  %v5297_v55 = vpop.f32.mrf.mxu1  ;;  %v7787_v0 = vld [vmem:[%s7931_s25 + $0xe0c] ss:$48 sps:$4 sm:$0xff]  }
 0x29d   : > { %5707 = vmatprep.subr.bf16.mxu1 %v7766_v6  ;;  %v7784_v6 = vld [vmem:[%s7931_s25 + $0x98c] ss:$48 sps:$4 sm:$0xff]  }
 0x29f   : > { %5753 = vmatpush2.bf16.msra.mxu0 %v7767_v3  ;;  %v5299_v3 = vpop.f32.mrf.mxu1 }
 0x2a0   : > { %5708 = vmatpush2.bf16.msra.mxu1 %v7764_v48  ;;  %5754 = vmatprep.subr.bf16.mxu0 %v7772_v33  ;;  %v7785_v48 = vld [vmem:[%s7931_s25 + $0xe08] ss:$48 sps:$4 sm:$0xff]   ;;  %v8947_v33 = vpop.f32.mrf.mxu0  ;;  %v5300_v34 = vadd.f32 %v5299_v3, %v8331_v54  ;;  %v7817_v3 = vld [vmem:[%s7931_s25 + $0x13ac] ss:$48 sps:$4 sm:$0xff]  }
 0x2a1   : > { %5783 = vmatprep.subr.bf16.mxu1 %v7775_v47  ;;  %v7790_v47 = vld [vmem:[%s7931_s25 + $0x92c] ss:$48 sps:$4 sm:$0xff]  }
 0x2a3   : > { %5710 = vmatmul.mubr.bf16.vlgmr.msra.gmra.mxu1 %v7917_v5  ;;  %5755 = vmatpush2.bf16.msra.mxu0 %v7770_v19  ;;  %v7782_v5 = vld [vmem:[%s7931_s25 + $0x988] ss:$48 sps:$4 sm:$0xff]   ;;  %v7793_v19 = vld [vmem:[%s7931_s25 + $0xdac] ss:$48 sps:$4 sm:$0xff]  }
 0x2a4   : > { %5784 = vmatpush1.bf16.msra.mxu1 %v7773_v59  ;;  %5756 = vmatprep.subr.bf16.mxu0 %v7778_v9  ;;  %v7791_v59 = vld [vmem:[%s7931_s25 + $0xda8] ss:$48 sps:$4 sm:$0xff]   ;;  %v5301_v9 = vpop.f32.mrf.mxu1 }
 0x2a5   : > { %5785 = vmatprep.subr.bf16.mxu1 %v7781_v61  ;;  %5719 = vmatprep.mubr.bf16.mxu1 %v8015_v23  ;;  %v7788_v23 = vld [vmem:[%s7931_s25 + $0x928] ss:$48 sps:$4 sm:$0xff]   ;;  %v8954_v61 = vpop.f32.mrf.mxu0 }
 0x2a7   : > { %5757 = vmatpush2.bf16.msra.mxu0 %v7776_v41  ;;  %v7796_v41 = vld [vmem:[%s7931_s25 + $0xd4c] ss:$48 sps:$4 sm:$0xff]  }
 0x2a8   : > { %5786 = vmatpush1.bf16.msra.mxu1 %v7779_v12  ;;  %5758 = vmatprep.subr.bf16.mxu0 %v7784_v6  ;;  %v7799_v12 = vld [vmem:[%s7931_s25 + $0x14cc] ss:$48 sps:$4 sm:$0xff]   ;;  %v5288_v6 = vadd.f32 %v8913_v63, %v8313_v29 }
 0x2a9   : > { %5787 = vmatprep.subr.bf16.mxu1 %v7787_v0  ;;  %v7797_v0 = vld [vmem:[%s7931_s25 + $0x14c8] ss:$48 sps:$4 sm:$0xff]  }
 0x2aa   : > { %v5341_v30 = vadd.f32 %v8915_v50, %v5288_v6 }
 0x2ab   : > { %5720 = vmatmul.mubr.bf16.gmra.mxu1 %v8049_v35  ;;  %5759 = vmatpush2.bf16.msra.mxu0 %v7782_v5  ;;  %v7794_v35 = vld [vmem:[%s7931_s25 + $0xd48] ss:$48 sps:$4 sm:$0xff]   ;;  %v5303_v5 = vpop.f32.mrf.mxu1 }
 0x2ac   : > { %5788 = vmatpush1.bf16.msra.mxu1 %v7785_v48  ;;  %5760 = vmatprep.subr.bf16.mxu0 %v7790_v47  ;;  %v8963_v48 = vpop.f32.mrf.mxu0  ;;  %v7802_v47 = vld [vmem:[%s7931_s25 + $0xcec] ss:$48 sps:$4 sm:$0xff]  }
 0x2ad   : > { %5789 = vmatprep.subr.bf16.mxu1 %v7793_v19  ;;  %5815 = vmatprep.mubr.bf16.mxu1 %v8061_v40  ;;  %v7805_v19 = vld [vmem:[%s7931_s25 + $0x146c] ss:$48 sps:$4 sm:$0xff]   ;;  %v5290_v40 = vadd.f32 %v8921_v62, %v8313_v29  ;;  %v5298_v62 = vadd.f32 %v5297_v55, %v8331_v54 }
 0x2af   : > { %5761 = vmatpush2.bf16.msra.mxu0 %v7788_v23  ;;  %v5343_v44 = vadd.f32 %v8923_v42, %v5290_v40 }
 0x2b0   : > { %5790 = vmatpush1.bf16.msra.mxu1 %v7791_v59  ;;  %5836 = vmatprep.subr.bf16.mxu0 %v7799_v12  ;;  %v5292_v59 = vadd.f32 %v5291_v15, %v8324_v46  ;;  %v7800_v12 = vld [vmem:[%s7931_s25 + $0xce8] ss:$48 sps:$4 sm:$0xff]   ;;  %v7811_v15 = vld [vmem:[%s7931_s25 + $0x140c] ss:$48 sps:$4 sm:$0xff]  }
 0x2b1   : > { %5791 = vmatprep.subr.bf16.mxu1 %v7796_v41 }
 0x2b2   : > { %v5446_v23 = vpop.f32.mrf.mxu0  ;;  %5763 = vmatmul.mubr.bf16.vlgmr.msra.gmra.mxu0 %v7923_v7  ;;  %v7808_v7 = vld [vmem:[%s7931_s25 + $0xc8c] ss:$48 sps:$4 sm:$0xff]   ;;  %v5345_v42 = vadd.f32 %v8929_v45, %v5292_v59  ;;  %v7809_v45 = vld [vmem:[%s7931_s25 + $0x1408] ss:$48 sps:$4 sm:$0xff]  }
 0x2b3   : > { %v5393_v63 = vpop.f32.mrf.mxu1  ;;  %5837 = vmatpush1.bf16.msra.mxu0 %v7797_v0  ;;  %5772 = vmatprep.mubr.bf16.mxu0 %v8017_v24  ;;  %v5347_v0 = vadd.f32 %v8935_v53, %v5294_v25  ;;  %v5302_v24 = vadd.f32 %v5301_v9, %v8348_v13  ;;  %v5353_v9 = vadd.f32 %v8947_v33, %v5300_v34 }
 0x2b4   : > { %v5394_v41 = vadd.f32 %v5393_v63, %v5341_v30  ;;  %5792 = vmatpush1.bf16.msra.mxu1 %v7794_v35  ;;  %v5448_v6 = vpop.f32.mrf.mxu0  ;;  %5838 = vmatprep.subr.bf16.mxu0 %v7805_v19 }
 0x2b5   : > { %v5395_v50 = vpop.f32.mrf.mxu1  ;;  %5793 = vmatprep.subr.bf16.mxu1 %v7802_v47  ;;  %v5355_v33 = vadd.f32 %v8954_v61, %v5302_v24 }
 0x2b6   : > { %v5447_v30 = vadd.f32 %v5446_v23, %v5394_v41  ;;  %v5396_v35 = vadd.f32 %v5395_v50, %v5343_v44  ;;  %v5450_v40 = vpop.f32.mrf.mxu0  ;;  %v5351_v44 = vadd.f32 %v8940_v11, %v5298_v62  ;;  %v5304_v41 = vadd.f32 %v5303_v5, %v8348_v13 }
 0x2b7   : > { %v5397_v55 = vpop.f32.mrf.mxu1  ;;  %5839 = vmatpush1.bf16.msra.mxu0 %v7803_v10 }
 0x2b8   : > { %v5889_v47 = vmax.f32 %v8429_v17, %v5447_v30  ;;  %v5449_v19 = vadd.f32 %v5448_v6, %v5396_v35  ;;  %v5398_v63 = vadd.f32 %v5397_v55, %v5345_v42  ;;  %5794 = vmatpush1.bf16.msra.mxu1 %v7800_v12  ;;  %v5452_v53 = vpop.f32.mrf.mxu0  ;;  %5840 = vmatprep.subr.bf16.mxu0 %v7811_v15  ;;  %v7814_v17 = vld [vmem:[%s7931_s25 + $0xc2c] ss:$48 sps:$4 sm:$0xff]   ;;  %v7812_v15 = vld [vmem:[%s7931_s25 + $0xc28] ss:$48 sps:$4 sm:$0xff]  }
 0x2b9   : > { %v5399_v25 = vpop.f32.mrf.mxu1  ;;  %5795 = vmatprep.subr.bf16.mxu1 %v7808_v7  ;;  %v7815_v42 = vld [vmem:[%s7931_s25 + $0x13a8] ss:$48 sps:$4 sm:$0xff]   ;;  %v7823_v35 = vld [vmem:[%s7931_s25 + $0x134c] ss:$48 sps:$4 sm:$0xff]   ;;  %v5357_v61 = vadd.f32 %v8963_v48, %v5304_v41 }
 0x2ba   : > { %v5913_v23 = vmax.f32 %v5889_v47, 0.0  ;;  %v5890_v10 = vmax.f32 %v8432_v51, %v5449_v19  ;;  %v5451_v11 = vadd.f32 %v5450_v40, %v5398_v63  ;;  %v5400_v59 = vadd.f32 %v5399_v25, %v5347_v0  ;;  %v5456_v62 = vpop.f32.mrf.mxu0  ;;  %5773 = vmatmul.mubr.bf16.gmra.mxu0 %v8051_v36  ;;  %v7820_v36 = vld [vmem:[%s7931_s25 + $0x11cc] ss:$48 sps:$4 sm:$0xff]  }
 0x2bb   : > { %v5403_v12 = vpop.f32.mrf.mxu1  ;;  %5841 = vmatpush1.bf16.msra.mxu0 %v7809_v45  ;;  %6769 = vmatprep.mubr.msk.bf16.mxu0 %vm4610_vm0, %v8057_v39  ;;  %v7826_v48 = vld [vmem:[%s7931_s25 + $0x116c] ss:$48 sps:$4 sm:$0xff]  }
 0x2bc   : > { %5937 = vst [vmem:[%s8992_s9] sm:$0xff] %v5913_v23  ;;  %v5914_v50 = vmax.f32 %v5890_v10, 0.0  ;;  %v5895_v6 = vmax.f32 %v8439_v58, %v5451_v11  ;;  %v5453_v7 = vadd.f32 %v5452_v53, %v5400_v59  ;;  %v5404_v51 = vadd.f32 %v5403_v12, %v5351_v44  ;;  %5796 = vmatpush1.bf16.msra.mxu1 %v7806_v31  ;;  %v5458_v30 = vpop.f32.mrf.mxu0  ;;  %v7821_v44 = vld [vmem:[%s7931_s25 + $0x1348] ss:$48 sps:$4 sm:$0xff]   ;;  %v7829_v25 = vld [vmem:[%s7931_s25 + $0x12ec] ss:$48 sps:$4 sm:$0xff]  }
 0x2bd   : > { %v5405_v5 = vpop.f32.mrf.mxu1  ;;  %5797 = vmatprep.subr.bf16.mxu1 %v7814_v17  ;;  %5842 = vmatprep.subr.bf16.mxu0 %v7817_v3  ;;  %v7824_v59 = vld [vmem:[%s7931_s25 + $0x1168] ss:$48 sps:$4 sm:$0xff]   ;;  %v7835_v41 = vld [vmem:[%s7931_s25 + $0x128c] ss:$48 sps:$4 sm:$0xff]  }
 0x2be   : > { %5938 = vst [vmem:[%s8992_s9 + $0x8] sm:$0xff] %v5914_v50  ;;  %v5919_v0 = vmax.f32 %v5895_v6, 0.0  ;;  %v5896_v58 = vmax.f32 %v8442_v1, %v5453_v7  ;;  %v5406_v34 = vadd.f32 %v5405_v5, %v5353_v9  ;;  %v5457_v31 = vadd.f32 %v5456_v62, %v5404_v51  ;;  %v5460_v40 = vpop.f32.mrf.mxu0  ;;  %v7818_v1 = vld [vmem:[%s7931_s25 + $0x11c8] ss:$48 sps:$4 sm:$0xff]   ;;  %v7838_v7 = vld [vmem:[%s7931_s25 + $0x10ac] ss:$48 sps:$4 sm:$0xff]  }
 0x2bf   : > { %v5407_v55 = vpop.f32.mrf.mxu1  ;;  %5843 = vmatpush1.bf16.msra.mxu0 %v7815_v42  ;;  %v7827_v9 = vld [vmem:[%s7931_s25 + $0x12e8] ss:$48 sps:$4 sm:$0xff]   ;;  %v7841_v51 = vld [vmem:[%s7931_s25 + $0x122c] ss:$48 sps:$4 sm:$0xff]  }
 0x2c0   : > { %5943 = vst [vmem:[%s8992_s9 + $0x30] sm:$0xff] %v5919_v0  ;;  %v5920_v47 = vmax.f32 %v5896_v58, 0.0  ;;  %v5901_v19 = vmax.f32 %v8450_v56, %v5457_v31  ;;  %v5408_v63 = vadd.f32 %v5407_v55, %v5355_v33  ;;  %v5459_v45 = vadd.f32 %v5458_v30, %v5406_v34  ;;  %5798 = vmatpush1.bf16.msra.mxu1 %v7812_v15  ;;  %v5462_v39 = vpop.f32.mrf.mxu0  ;;  %v7830_v50 = vld [vmem:[%s7931_s25 + $0x1108] ss:$48 sps:$4 sm:$0xff]   ;;  %v7844_v42 = vld [vmem:[%s7931_s25 + $0x104c] ss:$48 sps:$4 sm:$0xff]  }
 0x2c1   : > { %v5409_v24 = vpop.f32.mrf.mxu1  ;;  %5799 = vmatprep.subr.bf16.mxu1 %v7820_v36  ;;  %5844 = vmatprep.subr.bf16.mxu0 %v7823_v35  ;;  %v7833_v6 = vld [vmem:[%s7931_s25 + $0x1288] ss:$48 sps:$4 sm:$0xff]   ;;  %v7847_v33 = vld [vmem:[%s7931_s25 + $0x164c] ss:$48 sps:$4 sm:$0xff]  }
 0x2c2   : > { %5944 = vst [vmem:[%s8992_s9 + $0x38] sm:$0xff] %v5920_v47  ;;  %v5925_v53 = vmax.f32 %v5901_v19, 0.0  ;;  %v5902_v56 = vmax.f32 %v8453_v32, %v5459_v45  ;;  %v5410_v17 = vadd.f32 %v5409_v24, %v5357_v61  ;;  %v5461_v3 = vadd.f32 %v5460_v40, %v5408_v63  ;;  %v7832_v32 = vld [vmem:[%s7931_s25 + $0x110c] ss:$48 sps:$4 sm:$0xff]   ;;  %v7839_v15 = vld [vmem:[%s7931_s25 + $0x1228] ss:$48 sps:$4 sm:$0xff]  }
 0x2c3   : > { %5845 = vmatpush1.bf16.msra.mxu0 %v7821_v44  ;;  %v7842_v5 = vld [vmem:[%s7931_s25 + $0x1048] ss:$48 sps:$4 sm:$0xff]   ;;  %v7850_v36 = vld [vmem:[%s7931_s25 + $0xfec] ss:$48 sps:$4 sm:$0xff]  }
 0x2c4   : > { %5949 = vst [vmem:[%s8992_s9 + $0x60] sm:$0xff] %v5925_v53  ;;  %v5926_v23 = vmax.f32 %v5902_v56, 0.0  ;;  %v5907_v10 = vmax.f32 %v8460_v2, %v5461_v3  ;;  %v5463_v11 = vadd.f32 %v5462_v39, %v5410_v17  ;;  %5800 = vmatpush2.bf16.msra.mxu1 %v7818_v1  ;;  %5846 = vmatprep.subr.bf16.mxu0 %v7829_v25  ;;  %v7845_v30 = vld [vmem:[%s7931_s25 + $0x1648] ss:$48 sps:$4 sm:$0xff]   ;;  %v7853_v35 = vld [vmem:[%s7931_s25 + $0x15ec] ss:$48 sps:$4 sm:$0xff]  }
 0x2c5   : > { %5801 = vmatprep.subr.bf16.mxu1 %v7826_v48  ;;  %v7848_v0 = vld [vmem:[%s7931_s25 + $0xfe8] ss:$48 sps:$4 sm:$0xff]   ;;  %v7856_v34 = vld [vmem:[%s7931_s25 + $0xf8c] ss:$48 sps:$4 sm:$0xff]  }
 0x2c6   : > { %5950 = vst [vmem:[%s8992_s9 + $0x68] sm:$0xff] %v5926_v23  ;;  %v5931_v12 = vmax.f32 %v5907_v10, 0.0  ;;  %v5908_v2 = vmax.f32 %v8462_v4, %v5463_v11  ;;  %v7836_v4 = vld [vmem:[%s7931_s25 + $0x10a8] ss:$48 sps:$4 sm:$0xff]   ;;  %v7859_v31 = vld [vmem:[%s7931_s25 + $0x158c] ss:$48 sps:$4 sm:$0xff]  }
 0x2c7   : > { %5847 = vmatpush1.bf16.msra.mxu0 %v7827_v9  ;;  %v7851_v58 = vld [vmem:[%s7931_s25 + $0x15e8] ss:$48 sps:$4 sm:$0xff]   ;;  %v7862_v40 = vld [vmem:[%s7931_s25 + $0xf2c] ss:$48 sps:$4 sm:$0xff]  }
 0x2c8   : > { %5955 = vst [vmem:[%s8992_s9 + $0x90] sm:$0xff] %v5931_v12  ;;  %v5932_v62 = vmax.f32 %v5908_v2, 0.0  ;;  %5802 = vmatpush2.bf16.msra.mxu1 %v7824_v59  ;;  %5848 = vmatprep.subr.bf16.mxu0 %v7835_v41  ;;  %v7854_v61 = vld [vmem:[%s7931_s25 + $0xf88] ss:$48 sps:$4 sm:$0xff]   ;;  %v7865_v47 = vld [vmem:[%s7931_s25 + $0x152c] ss:$48 sps:$4 sm:$0xff]  }
 0x2c9   : > { %5803 = vmatprep.subr.bf16.mxu1 %v7832_v32  ;;  %v7857_v55 = vld [vmem:[%s7931_s25 + $0x1588] ss:$48 sps:$4 sm:$0xff]  }
 0x2ca   : > { %5956 = vst [vmem:[%s8992_s9 + $0x98] sm:$0xff] %v5932_v62  ;;  %v7860_v19 = vld [vmem:[%s7931_s25 + $0xf28] ss:$48 sps:$4 sm:$0xff]  }
 0x2cb   : > { %5849 = vmatpush1.bf16.msra.mxu0 %v7833_v6  ;;  %v7863_v63 = vld [vmem:[%s7931_s25 + $0x1528] ss:$48 sps:$4 sm:$0xff]  }
 0x2cc   : > { %5804 = vmatpush2.bf16.msra.mxu1 %v7830_v50  ;;  %5850 = vmatprep.subr.bf16.mxu0 %v7841_v51 }
 0x2cd   : > { %5805 = vmatprep.subr.bf16.mxu1 %v7838_v7 }
 0x2cf   : > { %5851 = vmatpush1.bf16.msra.mxu0 %v7839_v15 }
 0x2d0   : > { %5806 = vmatpush2.bf16.msra.mxu1 %v7836_v4  ;;  %5860 = vmatprep.subr.bf16.mxu0 %v7847_v33 }
 0x2d1   : > { %5807 = vmatprep.subr.bf16.mxu1 %v7844_v42 }
 0x2d3   : > { %5861 = vmatpush2.bf16.msra.mxu0 %v7845_v30 }
 0x2d4   : > { %5808 = vmatpush2.bf16.msra.mxu1 %v7842_v5  ;;  %5862 = vmatprep.subr.bf16.mxu0 %v7853_v35 }
 0x2d5   : > { %5809 = vmatprep.subr.bf16.mxu1 %v7850_v36 }
 0x2d7   : > { %5863 = vmatpush2.bf16.msra.mxu0 %v7851_v58 }
 0x2d8   : > { %5810 = vmatpush2.bf16.msra.mxu1 %v7848_v0  ;;  %5864 = vmatprep.subr.bf16.mxu0 %v7859_v31 }
 0x2d9   : > { %5811 = vmatprep.subr.bf16.mxu1 %v7856_v34 }
 0x2db   : > { %5865 = vmatpush2.bf16.msra.mxu0 %v7857_v55 }
 0x2dc   : > { %5812 = vmatpush2.bf16.msra.mxu1 %v7854_v61  ;;  %5866 = vmatprep.subr.bf16.mxu0 %v7865_v47 }
 0x2dd   : > { %5813 = vmatprep.subr.bf16.mxu1 %v7862_v40 }
 0x2df   : > { %5867 = vmatpush2.bf16.msra.mxu0 %v7863_v63 }
 0x2e0   : > { %5814 = vmatpush2.bf16.msra.mxu1 %v7860_v19 }
 0x2e2   : > { %5869 = vmatmul.mubr.bf16.vlgmr.msra.gmra.mxu0 %v8115_v20 }
 0x2e3   : > { %5816 = vmatmul.mubr.bf16.vlgmr.msra.gmra.mxu1 %v8155_v52  ;;  %6770 = vmatprep.mubr.msk.bf16.mxu0 %vm4610_vm0, %v8124_v28 }
 0x2e4   : > { %5825 = vmatprep.mubr.bf16.mxu1 %v8165_v57 }
 0x2ea   : > { %5879 = vmatmul.mubr.bf16.gmra.mxu0 %v8141_v43 }
 0x2eb   : > { %5826 = vmatmul.mubr.bf16.gmra.mxu1 %v8173_v60 }
 0x2f2   : > { %v5499_v24 = vpop.f32.mrf.mxu0 }
 0x2f3   : > { %v5552_v45 = vpop.f32.mrf.mxu1  ;;  %v5500_v60 = vadd.f32 %v5499_v24, %v8313_v29 }
 0x2f4   : > { %v5501_v25 = vpop.f32.mrf.mxu0 }
 0x2f5   : > { %v5554_v1 = vpop.f32.mrf.mxu1  ;;  %v5502_v11 = vadd.f32 %v5501_v25, %v8313_v29  ;;  %v5553_v9 = vadd.f32 %v5552_v45, %v5500_v60 }
 0x2f6   : > { %v5503_v52 = vpop.f32.mrf.mxu0 }
 0x2f7   : > { %v5556_v44 = vpop.f32.mrf.mxu1  ;;  %v5504_v32 = vadd.f32 %v5503_v52, %v8324_v46  ;;  %v5555_v2 = vadd.f32 %v5554_v1, %v5502_v11 }
 0x2f8   : > { %v5505_v20 = vpop.f32.mrf.mxu0 }
 0x2f9   : > { %v5558_v39 = vpop.f32.mrf.mxu1  ;;  %v5506_v62 = vadd.f32 %v5505_v20, %v8324_v46  ;;  %v5557_v4 = vadd.f32 %v5556_v44, %v5504_v32 }
 0x2fa   : > { %v5509_v17 = vpop.f32.mrf.mxu0 }
 0x2fb   : > { %v5562_v48 = vpop.f32.mrf.mxu1  ;;  %v5510_v6 = vadd.f32 %v5509_v17, %v8331_v54  ;;  %v5559_v30 = vadd.f32 %v5558_v39, %v5506_v62 }
 0x2fc   : > { %v5511_v23 = vpop.f32.mrf.mxu0 }
 0x2fd   : > { %v5564_v53 = vpop.f32.mrf.mxu1  ;;  %v5512_v33 = vadd.f32 %v5511_v23, %v8331_v54  ;;  %v5563_v58 = vadd.f32 %v5562_v48, %v5510_v6 }
 0x2fe   : > { %v5513_v10 = vpop.f32.mrf.mxu0 }
 0x2ff   : > { %v5566_v56 = vpop.f32.mrf.mxu1  ;;  %v5514_v34 = vadd.f32 %v5513_v10, %v8348_v13  ;;  %v5565_v63 = vadd.f32 %v5564_v53, %v5512_v33 }
 0x300   : > { %v5515_v59 = vpop.f32.mrf.mxu0 }
 0x301   : > { %v5568_v57 = vpop.f32.mrf.mxu1  ;;  %v5516_v45 = vadd.f32 %v5515_v59, %v8348_v13  ;;  %v5567_v48 = vadd.f32 %v5566_v56, %v5514_v34 }
 0x323   : > { %v5658_v3 = vpop.f32.mrf.mxu1 }
 0x325   : > { %v5660_v28 = vpop.f32.mrf.mxu1 }
 0x327   : > { %v5662_v43 = vpop.f32.mrf.mxu1 }
 0x329   : > { %v5664_v41 = vpop.f32.mrf.mxu1 }
 0x32b   : > { %v5668_v51 = vpop.f32.mrf.mxu1 }
 0x32d   : > { %v5670_v61 = vpop.f32.mrf.mxu1 }
 0x32f   : > { %v5672_v52 = vpop.f32.mrf.mxu1 }
 0x332   : > { %v5605_v12 = vpop.f32.mrf.mxu0 }
 0x333   : > { %v5606_v50 = vadd.f32 %v5605_v12, %v5553_v9 }
 0x334   : > { %v5607_v7 = vpop.f32.mrf.mxu0 }
 0x335   : > { %v5659_v15 = vadd.f32 %v5658_v3, %v5606_v50  ;;  %v5608_v42 = vadd.f32 %v5607_v7, %v5555_v2  ;;  %v5569_v3 = vadd.f32 %v5568_v57, %v5516_v45 }
 0x336   : > { %v5609_v5 = vpop.f32.mrf.mxu0 }
 0x337   : > { %v5891_v36 = vmax.f32 %v8603_v14, %v5659_v15  ;;  %v5661_v35 = vadd.f32 %v5660_v28, %v5608_v42  ;;  %v5610_v0 = vadd.f32 %v5609_v5, %v5557_v4 }
 0x338   : > { %v5611_v31 = vpop.f32.mrf.mxu0 }
 0x339   : > { %v5915_v55 = vmax.f32 %v5891_v36, 0.0  ;;  %v5892_v40 = vmax.f32 %v8607_v18, %v5661_v35  ;;  %v5663_v47 = vadd.f32 %v5662_v43, %v5610_v0  ;;  %v5612_v19 = vadd.f32 %v5611_v31, %v5559_v30  ;;  %v5674_v43 = vpop.f32.mrf.mxu1 }
 0x33a   : > { %v5615_v1 = vpop.f32.mrf.mxu0 }
 0x33b   : > { %5939 = vst [vmem:[%s8992_s9 + $0x10] sm:$0xff] %v5915_v55  ;;  %v5916_v14 = vmax.f32 %v5892_v40, 0.0  ;;  %v5897_v44 = vmax.f32 %v8614_v38, %v5663_v47  ;;  %v5665_v24 = vadd.f32 %v5664_v41, %v5612_v19  ;;  %v5616_v39 = vadd.f32 %v5615_v1, %v5563_v58 }
 0x33c   : > { %v5617_v25 = vpop.f32.mrf.mxu0 }
 0x33d   : > { %5940 = vst [vmem:[%s8992_s9 + $0x18] sm:$0xff] %v5916_v14  ;;  %v5921_v20 = vmax.f32 %v5897_v44, 0.0  ;;  %v5898_v18 = vmax.f32 %v8618_v49, %v5665_v24  ;;  %v5618_v17 = vadd.f32 %v5617_v25, %v5565_v63  ;;  %v5669_v53 = vadd.f32 %v5668_v51, %v5616_v39 }
 0x33e   : > { %v5619_v23 = vpop.f32.mrf.mxu0 }
 0x33f   : > { %5945 = vst [vmem:[%s8992_s9 + $0x40] sm:$0xff] %v5921_v20  ;;  %v5922_v28 = vmax.f32 %v5898_v18, 0.0  ;;  %v5903_v38 = vmax.f32 %v8626_v27, %v5669_v53  ;;  %v5620_v10 = vadd.f32 %v5619_v23, %v5567_v48  ;;  %v5671_v56 = vadd.f32 %v5670_v61, %v5618_v17 }
 0x340   : > { %v5621_v60 = vpop.f32.mrf.mxu0 }
 0x341   : > { %5946 = vst [vmem:[%s8992_s9 + $0x48] sm:$0xff] %v5922_v28  ;;  %v5927_v11 = vmax.f32 %v5903_v38, 0.0  ;;  %v5904_v49 = vmax.f32 %v8631_v8, %v5671_v56  ;;  %v5622_v59 = vadd.f32 %v5621_v60, %v5569_v3  ;;  %v5673_v9 = vadd.f32 %v5672_v52, %v5620_v10 }
 0x343   : > { %5951 = vst [vmem:[%s8992_s9 + $0x70] sm:$0xff] %v5927_v11  ;;  %v5928_v57 = vmax.f32 %v5904_v49, 0.0  ;;  %v5909_v32 = vmax.f32 %v8638_v16, %v5673_v9  ;;  %v5675_v41 = vadd.f32 %v5674_v43, %v5622_v59 }
 0x345   : > { %5952 = vst [vmem:[%s8992_s9 + $0x78] sm:$0xff] %v5928_v57  ;;  %v5933_v12 = vmax.f32 %v5909_v32, 0.0  ;;  %v5910_v27 = vmax.f32 %v8640_v22, %v5675_v41  ;;  %v9119_v41 = vld [vmem:[#allocation2_spill] sm:$0xff] }
 0x347   : > { %5957 = vst [vmem:[%s8992_s9 + $0xa0] sm:$0xff] %v5933_v12  ;;  %v5934_v2 = vmax.f32 %v5910_v27, 0.0 }
 0x349   : > { %5958 = vst [vmem:[%s8992_s9 + $0xa8] sm:$0xff] %v5934_v2 }
 0x363   : > { %v5711_v62 = vpop.f32.mrf.mxu1 }
 0x364   : > { %v5712_v35 = vadd.f32 %v5711_v62, %v8313_v29 }
 0x365   : > { %v5713_v6 = vpop.f32.mrf.mxu1 }
 0x366   : > { %v5714_v58 = vadd.f32 %v5713_v6, %v8313_v29 }
 0x367   : > { %v5715_v51 = vpop.f32.mrf.mxu1 }
 0x368   : > { %v5716_v55 = vadd.f32 %v5715_v51, %v8324_v46 }
 0x369   : > { %v5717_v4 = vpop.f32.mrf.mxu1 }
 0x36a   : > { %v5718_v1 = vadd.f32 %v5717_v4, %v8324_v46 }
 0x36b   : > { %v5721_v42 = vpop.f32.mrf.mxu1 }
 0x36c   : > { %v5722_v19 = vadd.f32 %v5721_v42, %v8331_v54  ;;  %v9121_v42 = vld [vmem:[#allocation4_spill] sm:$0xff] }
 0x36d   : > { %v5723_v5 = vpop.f32.mrf.mxu1 }
 0x36e   : > { %v5724_v39 = vadd.f32 %v5723_v5, %v8331_v54 }
 0x36f   : > { %v5725_v30 = vpop.f32.mrf.mxu1 }
 0x370   : > { %v5726_v53 = vadd.f32 %v5725_v30, %v8348_v13 }
 0x371   : > { %v5727_v22 = vpop.f32.mrf.mxu1 }
 0x372   : > { %v5764_v50 = vpop.f32.mrf.mxu0  ;;  %v5728_v56 = vadd.f32 %v5727_v22, %v8348_v13 }
 0x373   : > { %v5765_v34 = vadd.f32 %v5764_v50, %v5712_v35  ;;  %v9122_v35 = vld [vmem:[#allocation5_spill] sm:$0xff] }
 0x374   : > { %v5766_v7 = vpop.f32.mrf.mxu0 }
 0x375   : > { %v5767_v40 = vadd.f32 %v5766_v7, %v5714_v58 }
 0x376   : > { %v5768_v8 = vpop.f32.mrf.mxu0 }
 0x377   : > { %v5769_v14 = vadd.f32 %v5768_v8, %v5716_v55 }
 0x378   : > { %v5770_v15 = vpop.f32.mrf.mxu0 }
 0x379   : > { %v5771_v25 = vadd.f32 %v5770_v15, %v5718_v1 }
 0x37a   : > { %v5774_v33 = vpop.f32.mrf.mxu0 }
 0x37b   : > { %v5775_v17 = vadd.f32 %v5774_v33, %v5722_v19 }
 0x37c   : > { %v5776_v16 = vpop.f32.mrf.mxu0 }
 0x37d   : > { %v5777_v54 = vadd.f32 %v5776_v16, %v5724_v39 }
 0x37e   : > { %v5778_v36 = vpop.f32.mrf.mxu0 }
 0x37f   : > { %v5779_v9 = vadd.f32 %v5778_v36, %v5726_v53 }
 0x380   : > { %v5780_v0 = vpop.f32.mrf.mxu0 }
 0x381   : > { %v5781_v13 = vadd.f32 %v5780_v0, %v5728_v56 }
 0x3a2   : > { %v5870_v61 = vpop.f32.mrf.mxu0 }
 0x3a3   : > { %v5817_v31 = vpop.f32.mrf.mxu1 }
 0x3a4   : > { %v5818_v47 = vadd.f32 %v5817_v31, %v5765_v34  ;;  %v5872_v45 = vpop.f32.mrf.mxu0  ;;  %v9123_v34 = vld [vmem:[#allocation6_spill] sm:$0xff] }
 0x3a5   : > { %v5819_v63 = vpop.f32.mrf.mxu1 }
 0x3a6   : > { %v5871_v44 = vadd.f32 %v5870_v61, %v5818_v47  ;;  %v5820_v24 = vadd.f32 %v5819_v63, %v5767_v40  ;;  %v5874_v29 = vpop.f32.mrf.mxu0 }
 0x3a7   : > { %v5821_v48 = vpop.f32.mrf.mxu1 }
 0x3a8   : > { %v5893_v52 = vmax.f32 %v8801_v21, %v5871_v44  ;;  %v5873_v20 = vadd.f32 %v5872_v45, %v5820_v24  ;;  %v5822_v18 = vadd.f32 %v5821_v48, %v5769_v14  ;;  %v5876_v23 = vpop.f32.mrf.mxu0 }
 0x3a9   : > { %v5823_v3 = vpop.f32.mrf.mxu1 }
 0x3aa   : > { %v5917_v28 = vmax.f32 %v5893_v52, 0.0  ;;  %v5894_v46 = vmax.f32 %v8804_v26, %v5873_v20  ;;  %v5875_v38 = vadd.f32 %v5874_v29, %v5822_v18  ;;  %v5824_v10 = vadd.f32 %v5823_v3, %v5771_v25  ;;  %v5880_v43 = vpop.f32.mrf.mxu0 }
 0x3ab   : > { %v5827_v60 = vpop.f32.mrf.mxu1 }
 0x3ac   : > { %5941 = vst [vmem:[%s8992_s9 + $0x20] sm:$0xff] %v5917_v28  ;;  %v5918_v21 = vmax.f32 %v5894_v46, 0.0  ;;  %v5899_v11 = vmax.f32 %v8811_v37, %v5875_v38  ;;  %v5877_v49 = vadd.f32 %v5876_v23, %v5824_v10  ;;  %v5828_v59 = vadd.f32 %v5827_v60, %v5775_v17  ;;  %v5882_v32 = vpop.f32.mrf.mxu0  ;;  %v9120_v37 = vld [vmem:[#allocation3_spill] sm:$0xff] }
 0x3ad   : > { %v5829_v57 = vpop.f32.mrf.mxu1 }
 0x3ae   : > { %5942 = vst [vmem:[%s8992_s9 + $0x28] sm:$0xff] %v5918_v21  ;;  %v5923_v26 = vmax.f32 %v5899_v11, 0.0  ;;  %v5900_v12 = vmax.f32 %v9119_v41, %v5877_v49  ;;  %v5881_v27 = vadd.f32 %v5880_v43, %v5828_v59  ;;  %v5830_v2 = vadd.f32 %v5829_v57, %v5777_v54  ;;  %v5884_v50 = vpop.f32.mrf.mxu0 }
 0x3af   : > { %v5831_v62 = vpop.f32.mrf.mxu1 }
 0x3b0   : > { %5947 = vst [vmem:[%s8992_s9 + $0x50] sm:$0xff] %v5923_v26  ;;  %v5924_v6 = vmax.f32 %v5900_v12, 0.0  ;;  %v5905_v7 = vmax.f32 %v9120_v37, %v5881_v27  ;;  %v5883_v51 = vadd.f32 %v5882_v32, %v5830_v2  ;;  %v5832_v8 = vadd.f32 %v5831_v62, %v5779_v9  ;;  %v5886_v30 = vpop.f32.mrf.mxu0 }
 0x3b1   : > { %v5833_v4 = vpop.f32.mrf.mxu1 }
 0x3b2   : > { %5948 = vst [vmem:[%s8992_s9 + $0x58] sm:$0xff] %v5924_v6  ;;  %v5929_v15 = vmax.f32 %v5905_v7, 0.0  ;;  %v5906_v33 = vmax.f32 %v9121_v42, %v5883_v51  ;;  %v5885_v5 = vadd.f32 %v5884_v50, %v5832_v8  ;;  %v5834_v16 = vadd.f32 %v5833_v4, %v5781_v13 }
 0x3b4   : > { %5953 = vst [vmem:[%s8992_s9 + $0x80] sm:$0xff] %v5929_v15  ;;  %v5930_v36 = vmax.f32 %v5906_v33, 0.0  ;;  %v5911_v22 = vmax.f32 %v9122_v35, %v5885_v5  ;;  %v5887_v0 = vadd.f32 %v5886_v30, %v5834_v16 }
 0x3b6   : > { %5954 = vst [vmem:[%s8992_s9 + $0x88] sm:$0xff] %v5930_v36  ;;  %v5935_v58 = vmax.f32 %v5911_v22, 0.0  ;;  %v5912_v31 = vmax.f32 %v9123_v34, %v5887_v0 }
 0x3b8   : > { %5959 = vst [vmem:[%s8992_s9 + $0xb0] sm:$0xff] %v5935_v58  ;;  %v5936_v61 = vmax.f32 %v5912_v31, 0.0 }
 0x3ba   : > { %5960 = vst [vmem:[%s8992_s9 + $0xb8] sm:$0xff] %v5936_v61 }
 0x3bb PF: > { %s13_s12 = sadd.s32 1, %s7872_s12  }
 0x3bc   : > { %p10_p4 = scmp.ge.s32.totalorder %s13_s12, 4  }
 0x3be   :  { %12 = sbr.rel (!%p10_p4) target bundleno = 1 (0x1), region = 62 }

// kernel: cnn_forward.5
= control target key start
LH: loop header
LB: loop body
LE: loop exit
PB: predicated region body
PF: predicated region fallthrough
CT: control target
= control target key end

     0   :  { %8 = vsyncpa [#allocation3], 0  ;;  %v9075_v0 = vlaneseq  ;;  %v6248_v2 = vmov 1983009808   ;;  %vm2718_vm0 = vcmask 1041408   ;;  %vm3078_vm1 = vcmask 517120   ;;  %s9071_s0 = inlined_call_operand.vmem [shape: f32[2,23104], index: 0, kind: input, shape index: {}]   ;;  %s9072_s1 = inlined_call_operand.vmem [shape: f32[2,23104], index: 1, kind: input, shape index: {}]   ;;  %s9073_s2 = inlined_call_operand.vmem [shape: f32[1,2], index: 2, kind: input, shape index: {}]   ;;  %s9074_s3 = inlined_call_operand.hbm [shape: f32[2,2], index: 3, kind: output, shape index: {}]  }
   0x1   :  { %v858_v3 = vunpack.c.l.s4 %v6248_v2  ;;  %v63_v8 = vld [vmem:[%s9072_s1] ss:$2 sm:$0xff]  ;;  %v6132_v27 = vld [vmem:[%s9072_s1 + $0x10] ss:$2 sm:$0xff]  ;;  %s6249_s18 = smov [#allocation2]   ;;  %vm6116_vm4 = vcmask 9216  }
   0x2   :  { %v132_v1 = vshrl.u32 %v9075_v0, 7  ;;  %v15_v31 = vld [vmem:[%s9071_s0] sm:$0xff]  ;;  %v16_v43 = vld [vmem:[%s9071_s0 + $0x8] sm:$0xff]  ;;  %v6333_v54 = vld [vmem:[%s9072_s1 + $0x30] ss:$2 sm:$0xff]  ;;  %s6124_s19 = sshll.u32 %s6249_s18, 4  ;;  %s6125_s19 = int_to_ptr.vmem [resolvable:$true] %s6124_s19 }
   0x3   :  { %v859_v9 = vunpack.c.0.s8 %v858_v3  ;;  %v6321_v45 = vld [vmem:[%s9072_s1 + $0x20] ss:$2 sm:$0xff]  ;;  %s6226_s20 = scalar_lea.vmem %s6125_s19, 32  ;;  %p6231_p1 = scmp.lt.s32.totalorder %s6125_s19, %s6125_s19 }
   0x4   :  { %v6271_v4 = vsub.s32 0, %v132_v1  ;;  %v6273_v5 = vsub.s32 1, %v132_v1  ;;  %v6275_v6 = vsub.s32 2, %v132_v1  ;;  %v6277_v7 = vsub.s32 3, %v132_v1  ;;  %p6227_p0 = scmp.ne.s32.totalorder %s6125_s19, %s6226_s20  ;;  %p6232_p2 = scmp.lt.s32.totalorder %s6226_s20, %s6226_s20 }
   0x5   :  { %v6286_v14 = vsub.s32 4, %v132_v1  ;;  %v6288_v15 = vsub.s32 5, %v132_v1  ;;  %v6290_v16 = vsub.s32 6, %v132_v1  ;;  %v6292_v17 = vsub.s32 7, %v132_v1 }
   0x6   :  { %v134_v10 = vrot.slane %v63_v8, %v6271_v4  ;;  %v138_v11 = vrot.slane %v63_v8, %v6273_v5  ;;  %v142_v12 = vrot.slane %v63_v8, %v6275_v6  ;;  %v146_v13 = vrot.slane %v63_v8, %v6277_v7  ;;  %p6233_p3 = por %p6232_p2, %p6231_p1 }
   0x7   :  { %v6294_v20 = vsub.s32 %v859_v9, %v132_v1  ;;  %v150_v21 = vrot.slane %v63_v8, %v6286_v14  ;;  %v154_v22 = vrot.slane %v63_v8, %v6288_v15  ;;  %v158_v23 = vrot.slane %v63_v8, %v6290_v16 }
   0x8   :  { %v855_v18 = vcombine.low %v134_v10, %v138_v11  ;;  %v856_v19 = vcombine.low %v142_v12, %v146_v13  ;;  %v162_v24 = vrot.slane %v63_v8, %v6292_v17  ;;  %v166_v32 = vrot.slane %v6132_v27, %v6271_v4  ;;  %v17_v8 = vld [vmem:[%s9071_s0 + $0x10] sm:$0xff]  ;;  %p6234_p4 = pnand %p6233_p3, %p6227_p0 }
   0x9   :  { %v872_v28 = vcombine.low %v150_v21, %v154_v22  ;;  %v170_v33 = vrot.slane %v6132_v27, %v6273_v5  ;;  %v174_v34 = vrot.slane %v6132_v27, %v6275_v6  ;;  %v178_v35 = vrot.slane %v6132_v27, %v6277_v7  ;;  %v6366_v22 = vld [vmem:[%s9072_s1 + $0x40] ss:$2 sm:$0xff] }
   0xa   :  { %v863_v25 = vrot.slane %v855_v18, %v6294_v20  ;;  %v870_v26 = vrot.slane %v856_v19, %v6294_v20  ;;  %v873_v29 = vcombine.low %v158_v23, %v162_v24  ;;  %v182_v46 = vrot.slane %v6132_v27, %v6286_v14 }
   0xb   :  { %v880_v36 = vrot.slane %v872_v28, %v6294_v20  ;;  %v889_v40 = vcombine.low %v166_v32, %v170_v33  ;;  %v890_v41 = vcombine.low %v174_v34, %v178_v35  ;;  %v186_v47 = vrot.slane %v6132_v27, %v6288_v15 }
   0xc   :  { %v871_v30 = vcombine.low %v863_v25, %v870_v26  ;;  %v887_v37 = vrot.slane %v873_v29, %v6294_v20  ;;  %v190_v48 = vrot.slane %v6132_v27, %v6290_v16  ;;  %v194_v49 = vrot.slane %v6132_v27, %v6292_v17 }
   0xd   :  { %v897_v50 = vrot.slane %v889_v40, %v6294_v20  ;;  %v904_v51 = vrot.slane %v890_v41, %v6294_v20  ;;  %v198_v55 = vrot.slane %v6321_v45, %v6271_v4  ;;  %v202_v56 = vrot.slane %v6321_v45, %v6273_v5 }
   0xe   :  { %v1673_v38 = vmul.f32 %v871_v30, %v15_v31  ;;  %v888_v39 = vcombine.low %v880_v36, %v887_v37  ;;  %v206_v57 = vrot.slane %v6321_v45, %v6275_v6  ;;  %v210_v59 = vrot.slane %v6321_v45, %v6277_v7 }
   0xf   :  { %v214_v60 = vrot.slane %v6321_v45, %v6286_v14  ;;  %v906_v61 = vcombine.low %v182_v46, %v186_v47  ;;  %v907_v62 = vcombine.low %v190_v48, %v194_v49  ;;  %v905_v63 = vcombine.low %v897_v50, %v904_v51  ;;  %v18_v48 = vld [vmem:[%s9071_s0 + $0x18] sm:$0xff] }
  0x10   :  { %v1765_v42 = vcombine.high %v1673_v38, %v1673_v38  ;;  %v1772_v44 = vrot.slane %v1673_v38, %v6294_v20  ;;  %v1674_v52 = vmul.f32 %v888_v39, %v16_v43  ;;  %v218_v9 = vrot.slane %v6321_v45, %v6288_v15 }
  0x11   :  { %v222_v10 = vrot.slane %v6321_v45, %v6290_v16  ;;  %v226_v11 = vrot.slane %v6321_v45, %v6292_v17  ;;  %v230_v12 = vrot.slane %v6333_v54, %v6271_v4  ;;  %v234_v13 = vrot.slane %v6333_v54, %v6273_v5 }
  0x12   :  { %v1779_v53 = vrot.slane %v1765_v42, %v6294_v20  ;;  %v1780_v58 = vcombine.high %v1772_v44, %v1772_v44  ;;  %v1782_v2 = vcombine.high %v1674_v52, %v1674_v52  ;;  %v1789_v3 = vrot.slane %v1674_v52, %v6294_v20 }
  0x13   :  { %v238_v18 = vrot.slane %v6333_v54, %v6275_v6  ;;  %v2719_v19 = vsel %vm2718_vm0, %v1772_v44, 0.0  ;;  %v914_v23 = vrot.slane %v906_v61, %v6294_v20  ;;  %v921_v24 = vrot.slane %v907_v62, %v6294_v20 }
  0x14   :  { %v1781_v1 = vcombine.high %v1779_v53, %v1779_v53  ;;  %v2720_v21 = vsel %vm2718_vm0, %v1780_v58, 0.0  ;;  %v2722_v26 = vsel %vm2718_vm0, %v1779_v53, 0.0  ;;  %v1675_v27 = vmul.f32 %v905_v63, %v17_v8  ;;  %v6400_v53 = vld [vmem:[%s9072_s1 + $0x50] ss:$2 sm:$0xff] }
  0x15   :  { %v2721_v25 = vadd.f32 %v2720_v21, %v2719_v19  ;;  %v1796_v28 = vrot.slane %v1782_v2, %v6294_v20  ;;  %v1797_v29 = vcombine.high %v1789_v3, %v1789_v3  ;;  %v242_v31 = vrot.slane %v6333_v54, %v6277_v7 }
  0x16   :  { %v2724_v30 = vsel %vm2718_vm0, %v1781_v1, 0.0  ;;  %v246_v32 = vrot.slane %v6333_v54, %v6286_v14  ;;  %v250_v33 = vrot.slane %v6333_v54, %v6288_v15  ;;  %v254_v35 = vrot.slane %v6333_v54, %v6290_v16 }
  0x17   :  { %v2723_v34 = vadd.f32 %v2722_v26, %v2721_v25  ;;  %v258_v36 = vrot.slane %v6333_v54, %v6292_v17  ;;  %v262_v37 = vrot.slane %v6366_v22, %v6271_v4  ;;  %v2726_v38 = vsel %vm2718_vm0, %v1789_v3, 0.0  ;;  %v6424_v25 = vld [vmem:[%s9072_s1 + $0x60] ss:$2 sm:$0xff] }
  0x18   :  { %v922_v39 = vcombine.low %v914_v23, %v921_v24  ;;  %v923_v40 = vcombine.low %v198_v55, %v202_v56  ;;  %v924_v41 = vcombine.low %v206_v57, %v210_v59  ;;  %v1798_v43 = vcombine.high %v1796_v28, %v1796_v28 }
  0x19   :  { %v2725_v42 = vadd.f32 %v2724_v30, %v2723_v34  ;;  %v1799_v44 = vcombine.high %v1675_v27, %v1675_v27  ;;  %v1806_v46 = vrot.slane %v1675_v27, %v6294_v20  ;;  %v2728_v47 = vsel %vm2718_vm0, %v1797_v29, 0.0 }
  0x1a   :  { %v266_v49 = vrot.slane %v6366_v22, %v6273_v5  ;;  %v270_v50 = vrot.slane %v6366_v22, %v6275_v6  ;;  %v274_v51 = vrot.slane %v6366_v22, %v6277_v7  ;;  %v278_v55 = vrot.slane %v6366_v22, %v6286_v14 }
  0x1b   :  { %v2727_v52 = vadd.f32 %v2726_v38, %v2725_v42  ;;  %v282_v56 = vrot.slane %v6366_v22, %v6288_v15  ;;  %v286_v57 = vrot.slane %v6366_v22, %v6290_v16  ;;  %v2730_v58 = vsel %vm2718_vm0, %v1796_v28, 0.0 }
  0x1c   :  { %v290_v59 = vrot.slane %v6366_v22, %v6292_v17  ;;  %v931_v61 = vrot.slane %v923_v40, %v6294_v20  ;;  %v938_v62 = vrot.slane %v924_v41, %v6294_v20  ;;  %v1676_v1 = vmul.f32 %v922_v39, %v18_v48 }
  0x1d   :  { %v2729_v63 = vadd.f32 %v2728_v47, %v2727_v52  ;;  %v1813_v2 = vrot.slane %v1799_v44, %v6294_v20  ;;  %v1814_v3 = vcombine.high %v1806_v46, %v1806_v46  ;;  %v2732_v8 = vsel %vm2718_vm0, %v1798_v43, 0.0  ;;  %v19_v44 = vld [vmem:[%s9071_s0 + $0x20] sm:$0xff]  ;;  %v6457_v52 = vld [vmem:[%s9072_s1 + $0x70] ss:$2 sm:$0xff] }
  0x1e   :  { %v294_v19 = vrot.slane %v6400_v53, %v6271_v4  ;;  %v298_v21 = vrot.slane %v6400_v53, %v6273_v5  ;;  %v302_v23 = vrot.slane %v6400_v53, %v6275_v6  ;;  %v306_v26 = vrot.slane %v6400_v53, %v6277_v7 }
  0x1f   :  { %v2731_v24 = vadd.f32 %v2730_v58, %v2729_v63  ;;  %v310_v27 = vrot.slane %v6400_v53, %v6286_v14  ;;  %v314_v28 = vrot.slane %v6400_v53, %v6288_v15  ;;  %v2734_v29 = vsel %vm2718_vm0, %v1806_v46, 0.0 }
  0x20   :  { %v939_v30 = vcombine.low %v931_v61, %v938_v62  ;;  %v940_v34 = vcombine.low %v214_v60, %v218_v9  ;;  %v941_v38 = vcombine.low %v222_v10, %v226_v11  ;;  %v1815_v40 = vcombine.high %v1813_v2, %v1813_v2 }
  0x21   :  { %v2733_v39 = vadd.f32 %v2732_v8, %v2731_v24  ;;  %v1816_v41 = vcombine.high %v1676_v1, %v1676_v1  ;;  %v1823_v42 = vrot.slane %v1676_v1, %v6294_v20  ;;  %v2736_v43 = vsel %vm2718_vm0, %v1814_v3, 0.0 }
  0x22   :  { %v318_v46 = vrot.slane %v6400_v53, %v6290_v16  ;;  %v322_v47 = vrot.slane %v6400_v53, %v6292_v17  ;;  %v326_v45 = vrot.slane %v6424_v25, %v6271_v4  ;;  %v330_v9 = vrot.slane %v6424_v25, %v6273_v5 }
  0x23   :  { %v2735_v60 = vadd.f32 %v2734_v29, %v2733_v39  ;;  %v334_v10 = vrot.slane %v6424_v25, %v6275_v6  ;;  %v338_v11 = vrot.slane %v6424_v25, %v6277_v7  ;;  %v2738_v48 = vsel %vm2718_vm0, %v1813_v2, 0.0 }
  0x24   :  { %v342_v58 = vrot.slane %v6424_v25, %v6286_v14  ;;  %v948_v61 = vrot.slane %v940_v34, %v6294_v20  ;;  %v955_v62 = vrot.slane %v941_v38, %v6294_v20  ;;  %v1677_v1 = vmul.f32 %v939_v30, %v19_v44 }
  0x25   :  { %v2737_v63 = vadd.f32 %v2736_v43, %v2735_v60  ;;  %v1830_v3 = vrot.slane %v1816_v41, %v6294_v20  ;;  %v1831_v8 = vcombine.high %v1823_v42, %v1823_v42  ;;  %v2740_v24 = vsel %vm2718_vm0, %v1815_v40, 0.0  ;;  %v6481_v41 = vld [vmem:[%s9072_s1 + $0x80] ss:$2 sm:$0xff] }
  0x26   :  { %v346_v2 = vrot.slane %v6424_v25, %v6288_v15  ;;  %v350_v29 = vrot.slane %v6424_v25, %v6290_v16  ;;  %v354_v39 = vrot.slane %v6424_v25, %v6292_v17  ;;  %v2742_v40 = vsel %vm2718_vm0, %v1823_v42, 0.0 }
  0x27   :  { %v2739_v0 = vadd.f32 %v2738_v48, %v2737_v63  ;;  %v956_v43 = vcombine.low %v948_v61, %v955_v62  ;;  %v957_v44 = vcombine.low %v230_v12, %v234_v13  ;;  %v958_v42 = vcombine.low %v238_v18, %v242_v31  ;;  %v20_v62 = vld [vmem:[%s9071_s0 + $0x28] sm:$0xff] }
  0x28   :  { %v1832_v48 = vcombine.high %v1830_v3, %v1830_v3  ;;  %v1833_v63 = vcombine.high %v1677_v1, %v1677_v1  ;;  %v1840_v38 = vrot.slane %v1677_v1, %v6294_v20  ;;  %v2744_v61 = vsel %vm2718_vm0, %v1831_v8, 0.0 }
  0x29   :  { %v2741_v60 = vadd.f32 %v2740_v24, %v2739_v0  ;;  %v2746_v24 = vsel %vm2718_vm0, %v1830_v3, 0.0  ;;  %v965_v13 = vrot.slane %v957_v44, %v6294_v20  ;;  %v972_v34 = vrot.slane %v958_v42, %v6294_v20  ;;  %v6528_v44 = vld [vmem:[%s9072_s1 + $0x90] ss:$2 sm:$0xff] }
  0x2a   :  { %v1848_v31 = vcombine.high %v1840_v38, %v1840_v38  ;;  %v2748_v30 = vsel %vm2718_vm0, %v1832_v48, 0.0  ;;  %v398_v1 = vrot.slane %v6481_v41, %v6275_v6  ;;  %v402_v3 = vrot.slane %v6481_v41, %v6277_v7 }
  0x2b   :  { %v2743_v0 = vadd.f32 %v2742_v40, %v2741_v60  ;;  %v1678_v40 = vmul.f32 %v956_v43, %v20_v62  ;;  %v1847_v60 = vrot.slane %v1833_v63, %v6294_v20  ;;  %v410_v43 = vrot.slane %v6481_v41, %v6288_v15 }
  0x2c   :  { %v2750_v63 = vsel %vm2718_vm0, %v1840_v38, 0.0  ;;  %v974_v62 = vcombine.low %v246_v32, %v250_v33 }
  0x2d   :  { %v2745_v18 = vadd.f32 %v2744_v61, %v2743_v0  ;;  %v973_v61 = vcombine.low %v965_v13, %v972_v34  ;;  %v1850_v42 = vcombine.high %v1678_v40, %v1678_v40  ;;  %v1857_v38 = vrot.slane %v1678_v40, %v6294_v20  ;;  %v21_v13 = vld [vmem:[%s9071_s0 + $0x30] sm:$0xff] }
  0x2e   :  { %v2752_v34 = vsel %vm2718_vm0, %v1848_v31, 0.0  ;;  %v2754_v40 = vsel %vm2718_vm0, %v1847_v60, 0.0 }
  0x2f   :  { %v2747_v12 = vadd.f32 %v2746_v24, %v2745_v18  ;;  %v975_v18 = vcombine.low %v254_v35, %v258_v36  ;;  %v1849_v24 = vcombine.high %v1847_v60, %v1847_v60  ;;  %v6563_v36 = vld [vmem:[%s9072_s1 + $0xa0] ss:$2 sm:$0xff]  ;;  %v1679_v33 = vmul.f32 %v973_v61, %v21_v13 }
  0x30   :  { %v1864_v48 = vrot.slane %v1850_v42, %v6294_v20  ;;  %v458_v54 = vrot.slane %v6563_v36, %v6273_v5  ;;  %v991_v13 = vcombine.low %v262_v37, %v266_v49  ;;  %v6629_v37 = vld [vmem:[%s9072_s1 + $0xc0] ss:$2 sm:$0xff] }
  0x31   :  { %v2749_v0 = vadd.f32 %v2748_v30, %v2747_v12  ;;  %v1865_v30 = vcombine.high %v1857_v38, %v1857_v38  ;;  %v2756_v8 = vsel %vm2718_vm0, %v1849_v24, 0.0  ;;  %v450_v12 = vrot.slane %v6528_v44, %v6292_v17  ;;  %v6594_v24 = vld [vmem:[%s9072_s1 + $0xb0] ss:$2 sm:$0xff] }
  0x32   :  { %v1874_v42 = vrot.slane %v1679_v33, %v6294_v20  ;;  %v506_v61 = vrot.slane %v6594_v24, %v6288_v15  ;;  %v510_v49 = vrot.slane %v6594_v24, %v6290_v16 }
  0x33   :  { %v2751_v35 = vadd.f32 %v2750_v63, %v2749_v0  ;;  %v982_v63 = vrot.slane %v974_v62, %v6294_v20  ;;  %v989_v0 = vrot.slane %v975_v18, %v6294_v20  ;;  %v2758_v18 = vsel %vm2718_vm0, %v1857_v38, 0.0 }
  0x34   :  { %v992_v38 = vcombine.low %v270_v50, %v274_v51  ;;  %v1882_v62 = vcombine.high %v1874_v42, %v1874_v42 }
  0x35   :  { %v2753_v32 = vadd.f32 %v2752_v34, %v2751_v35  ;;  %v990_v34 = vcombine.low %v982_v63, %v989_v0  ;;  %v1866_v35 = vcombine.high %v1864_v48, %v1864_v48  ;;  %v2760_v63 = vsel %vm2718_vm0, %v1865_v30, 0.0  ;;  %v22_v0 = vld [vmem:[%s9071_s0 + $0x38] sm:$0xff] }
  0x37   :  { %v2755_v31 = vadd.f32 %v2754_v40, %v2753_v32  ;;  %v1867_v40 = vcombine.high %v1679_v33, %v1679_v33  ;;  %v1680_v50 = vmul.f32 %v990_v34, %v22_v0  ;;  %v2764_v30 = vsel %vm2718_vm0, %v1866_v35, 0.0 }
  0x38   :  { %v2766_v35 = vsel %vm2718_vm0, %v1874_v42, 0.0  ;;  %v1009_v0 = vcombine.low %v286_v57, %v290_v59  ;;  %v6665_v42 = vld [vmem:[%s9072_s1 + $0xd0] ss:$2 sm:$0xff] }
  0x39   :  { %v2757_v32 = vadd.f32 %v2756_v8, %v2755_v31  ;;  %v2762_v31 = vsel %vm2718_vm0, %v1864_v48, 0.0  ;;  %v1881_v33 = vrot.slane %v1867_v40, %v6294_v20  ;;  %v502_v48 = vrot.slane %v6594_v24, %v6286_v14 }
  0x3a   :  { %v1023_v34 = vrot.slane %v1009_v0, %v6294_v20  ;;  %v562_v22 = vrot.slane %v6665_v42, %v6277_v7 }
  0x3b   :  { %v2759_v51 = vadd.f32 %v2758_v18, %v2757_v32  ;;  %v999_v18 = vrot.slane %v991_v13, %v6294_v20  ;;  %v1006_v32 = vrot.slane %v992_v38, %v6294_v20  ;;  %v514_v13 = vrot.slane %v6594_v24, %v6292_v17 }
  0x3d   :  { %v2761_v8 = vadd.f32 %v2760_v63, %v2759_v51  ;;  %v1007_v40 = vcombine.low %v999_v18, %v1006_v32  ;;  %v1008_v63 = vcombine.low %v278_v55, %v282_v56  ;;  %v1891_v18 = vrot.slane %v1680_v50, %v6294_v20  ;;  %v23_v55 = vld [vmem:[%s9071_s0 + $0x40] sm:$0xff] }
  0x3e   :  { %v2768_v32 = vsel %vm2718_vm0, %v1882_v62, 0.0  ;;  %v554_v62 = vrot.slane %v6665_v42, %v6273_v5 }
  0x3f   :  { %v2763_v60 = vadd.f32 %v2762_v31, %v2761_v8  ;;  %v1883_v8 = vcombine.high %v1881_v33, %v1881_v33  ;;  %v1884_v31 = vcombine.high %v1680_v50, %v1680_v50  ;;  %v1016_v56 = vrot.slane %v1008_v63, %v6294_v20  ;;  %v6700_v63 = vld [vmem:[%s9072_s1 + $0xe0] ss:$2 sm:$0xff] }
  0x41   :  { %v2765_v51 = vadd.f32 %v2764_v30, %v2763_v60  ;;  %v2770_v30 = vsel %vm2718_vm0, %v1881_v33, 0.0  ;;  %v1899_v60 = vcombine.high %v1891_v18, %v1891_v18  ;;  %v2772_v38 = vsel %vm2718_vm0, %v1883_v8, 0.0 }
  0x43   :  { %v2767_v59 = vadd.f32 %v2766_v35, %v2765_v51  ;;  %v1681_v35 = vmul.f32 %v1007_v40, %v23_v55  ;;  %v1898_v51 = vrot.slane %v1884_v31, %v6294_v20  ;;  %v2774_v31 = vsel %vm2718_vm0, %v1891_v18, 0.0 }
  0x44   :  { %v1025_v55 = vcombine.low %v294_v19, %v298_v21 }
  0x45   :  { %v2769_v57 = vadd.f32 %v2768_v32, %v2767_v59  ;;  %v1024_v32 = vcombine.low %v1016_v56, %v1023_v34  ;;  %v1901_v8 = vcombine.high %v1681_v35, %v1681_v35  ;;  %v1908_v18 = vrot.slane %v1681_v35, %v6294_v20  ;;  %v24_v56 = vld [vmem:[%s9071_s0 + $0x48] sm:$0xff] }
  0x46   :  { %v2776_v34 = vsel %vm2718_vm0, %v1899_v60, 0.0  ;;  %v2778_v21 = vsel %vm2718_vm0, %v1898_v51, 0.0 }
  0x47   :  { %v2771_v50 = vadd.f32 %v2770_v30, %v2769_v57  ;;  %v1026_v57 = vcombine.low %v302_v23, %v306_v26  ;;  %v1900_v30 = vcombine.high %v1898_v51, %v1898_v51  ;;  %v1682_v40 = vmul.f32 %v1024_v32, %v24_v56 }
  0x48   :  { %v1915_v0 = vrot.slane %v1901_v8, %v6294_v20  ;;  %v1916_v60 = vcombine.high %v1908_v18, %v1908_v18  ;;  %v610_v51 = vrot.slane %v6700_v63, %v6292_v17  ;;  %v1042_v56 = vcombine.low %v310_v27, %v314_v28 }
  0x49   :  { %v2773_v59 = vadd.f32 %v2772_v38, %v2771_v50  ;;  %v6735_v38 = vld [vmem:[%s9072_s1 + $0xf0] ss:$2 sm:$0xff]  ;;  %v2780_v33 = vsel %vm2718_vm0, %v1900_v30, 0.0  ;;  %v606_v50 = vrot.slane %v6700_v63, %v6290_v16  ;;  %v6766_v30 = vld [vmem:[%s9072_s1 + $0x100] ss:$2 sm:$0xff]  ;;  %v1925_v32 = vrot.slane %v1682_v40, %v6294_v20 }
  0x4a   :  { %v666_v53 = vrot.slane %v6766_v30, %v6288_v15 }
  0x4b   :  { %v2775_v26 = vadd.f32 %v2774_v31, %v2773_v59  ;;  %v1033_v31 = vrot.slane %v1025_v55, %v6294_v20  ;;  %v1040_v59 = vrot.slane %v1026_v57, %v6294_v20  ;;  %v618_v55 = vrot.slane %v6735_v38, %v6273_v5 }
  0x4c   :  { %v2782_v57 = vsel %vm2718_vm0, %v1908_v18, 0.0  ;;  %v1043_v18 = vcombine.low %v318_v46, %v322_v47  ;;  %v1933_v28 = vcombine.high %v1925_v32, %v1925_v32 }
  0x4d   :  { %v2777_v19 = vadd.f32 %v2776_v34, %v2775_v26  ;;  %v1041_v34 = vcombine.low %v1033_v31, %v1040_v59  ;;  %v1918_v26 = vcombine.high %v1682_v40, %v1682_v40  ;;  %v2784_v31 = vsel %vm2718_vm0, %v1916_v60, 0.0  ;;  %v25_v59 = vld [vmem:[%s9071_s0 + $0x50] sm:$0xff] }
  0x4e   :  { %v6801_v60 = vld [vmem:[%s9072_s1 + $0x110] ss:$2 sm:$0xff] }
  0x4f   :  { %v2779_v23 = vadd.f32 %v2778_v21, %v2777_v19  ;;  %v1917_v21 = vcombine.high %v1915_v0, %v1915_v0  ;;  %v1683_v27 = vmul.f32 %v1041_v34, %v25_v59  ;;  %v1060_v59 = vcombine.low %v334_v10, %v338_v11 }
  0x51   :  { %v2781_v19 = vadd.f32 %v2780_v33, %v2779_v23  ;;  %v2786_v23 = vsel %vm2718_vm0, %v1915_v0, 0.0  ;;  %v1932_v33 = vrot.slane %v1918_v26, %v6294_v20  ;;  %v2788_v40 = vsel %vm2718_vm0, %v1917_v21, 0.0 }
  0x52   :  { %v658_v0 = vrot.slane %v6766_v30, %v6277_v7  ;;  %v2790_v21 = vsel %vm2718_vm0, %v1925_v32, 0.0  ;;  %v1942_v32 = vrot.slane %v1683_v27, %v6294_v20 }
  0x53   :  { %v2783_v46 = vadd.f32 %v2782_v57, %v2781_v19  ;;  %v1050_v57 = vrot.slane %v1042_v56, %v6294_v20  ;;  %v1057_v19 = vrot.slane %v1043_v18, %v6294_v20 }
  0x55   :  { %v2785_v47 = vadd.f32 %v2784_v31, %v2783_v46  ;;  %v1058_v26 = vcombine.low %v1050_v57, %v1057_v19  ;;  %v1059_v31 = vcombine.low %v326_v45, %v330_v9  ;;  %v2792_v57 = vsel %vm2718_vm0, %v1933_v28, 0.0  ;;  %v26_v19 = vld [vmem:[%s9071_s0 + $0x58] sm:$0xff] }
  0x56   :  { %v2794_v9 = vsel %vm2718_vm0, %v1932_v33, 0.0 }
  0x57   :  { %v2787_v35 = vadd.f32 %v2786_v23, %v2785_v47  ;;  %v1934_v47 = vcombine.high %v1932_v33, %v1932_v33  ;;  %v1935_v23 = vcombine.high %v1683_v27, %v1683_v27  ;;  %v1684_v45 = vmul.f32 %v1058_v26, %v26_v19 }
  0x58   :  { %v1950_v27 = vcombine.high %v1942_v32, %v1942_v32  ;;  %v1077_v19 = vcombine.low %v350_v29, %v354_v39 }
  0x59   :  { %v2789_v46 = vadd.f32 %v2788_v40, %v2787_v35  ;;  %v6848_v35 = vld [vmem:[%s9072_s1 + $0x120] ss:$2 sm:$0xff]  ;;  %v1949_v56 = vrot.slane %v1935_v23, %v6294_v20  ;;  %v2796_v34 = vsel %vm2718_vm0, %v1934_v47, 0.0  ;;  %v2798_v23 = vsel %vm2718_vm0, %v1942_v32, 0.0 }
  0x5a   :  { %v1959_v32 = vrot.slane %v1684_v45, %v6294_v20 }
  0x5b   :  { %v2791_v11 = vadd.f32 %v2790_v21, %v2789_v46  ;;  %v1067_v21 = vrot.slane %v1059_v31, %v6294_v20  ;;  %v1074_v46 = vrot.slane %v1060_v59, %v6294_v20  ;;  %v6872_v31 = vld [vmem:[%s9072_s1 + $0x130] ss:$2 sm:$0xff]  ;;  %v1952_v59 = vcombine.high %v1684_v45, %v1684_v45 }
  0x5d   :  { %v2793_v18 = vadd.f32 %v2792_v57, %v2791_v11  ;;  %v1075_v57 = vcombine.low %v1067_v21, %v1074_v46  ;;  %v1951_v11 = vcombine.high %v1949_v56, %v1949_v56  ;;  %v2800_v21 = vsel %vm2718_vm0, %v1950_v27, 0.0  ;;  %v27_v46 = vld [vmem:[%s9071_s0 + $0x60] sm:$0xff] }
  0x5e   :  { %v6914_v27 = vld [vmem:[%s9072_s1 + $0x140] ss:$2 sm:$0xff] }
  0x5f   :  { %v2795_v10 = vadd.f32 %v2794_v9, %v2793_v18  ;;  %v1076_v18 = vcombine.low %v342_v58, %v346_v2  ;;  %v1685_v58 = vmul.f32 %v1075_v57, %v27_v46  ;;  %v1967_v2 = vcombine.high %v1959_v32, %v1959_v32 }
  0x60   :  { %v2804_v45 = vsel %vm2718_vm0, %v1951_v11, 0.0  ;;  %v6938_v11 = vld [vmem:[%s9072_s1 + $0x150] ss:$2 sm:$0xff]  ;;  %v9076_v46 = vrot.slane %v6457_v52, %v6273_v5 }
  0x61   :  { %v2797_v9 = vadd.f32 %v2796_v34, %v2795_v10  ;;  %v2802_v10 = vsel %vm2718_vm0, %v1949_v56, 0.0  ;;  %v1966_v34 = vrot.slane %v1952_v59, %v6294_v20  ;;  %v9079_v59 = vrot.slane %v6457_v52, %v6275_v6 }
  0x62   :  { %v1969_v47 = vcombine.high %v1685_v58, %v1685_v58  ;;  %v1976_v25 = vrot.slane %v1685_v58, %v6294_v20 }
  0x63   :  { %v2799_v29 = vadd.f32 %v2798_v23, %v2797_v9  ;;  %v1084_v23 = vrot.slane %v1076_v18, %v6294_v20  ;;  %v1091_v9 = vrot.slane %v1077_v19, %v6294_v20  ;;  %v2806_v19 = vsel %vm2718_vm0, %v1959_v32, 0.0 }
  0x64   :  { %v1968_v57 = vcombine.high %v1966_v34, %v1966_v34 }
  0x65   :  { %v2801_v39 = vadd.f32 %v2800_v21, %v2799_v29  ;;  %v1092_v21 = vcombine.low %v1084_v23, %v1091_v9  ;;  %v9077_v29 = vrot.slane %v6457_v52, %v6271_v4  ;;  %v2808_v23 = vsel %vm2718_vm0, %v1967_v2, 0.0  ;;  %v28_v9 = vld [vmem:[%s9071_s0 + $0x68] sm:$0xff] }
  0x66   :  { %v2812_v26 = vsel %vm2718_vm0, %v1968_v57, 0.0  ;;  %v9083_v2 = vrot.slane %v6457_v52, %v6290_v16 }
  0x67   :  { %v2803_v40 = vadd.f32 %v2802_v10, %v2801_v39  ;;  %v1093_v39 = vcombine.low %v9077_v29, %v9076_v46  ;;  %v9078_v10 = vrot.slane %v6457_v52, %v6277_v7 }
  0x69   :  { %v1094_v32 = vcombine.low %v9079_v59, %v9078_v10  ;;  %v2805_v18 = vadd.f32 %v2804_v45, %v2803_v40  ;;  %v2810_v10 = vsel %vm2718_vm0, %v1966_v34, 0.0  ;;  %v1101_v29 = vrot.slane %v1093_v39, %v6294_v20  ;;  %v6985_v39 = vld [vmem:[%s9072_s1 + $0x160] ss:$2 sm:$0x1f] }
  0x6a   :  { %v1984_v45 = vcombine.high %v1976_v25, %v1976_v25 }
  0x6b   :  { %v2807_v40 = vadd.f32 %v2806_v19, %v2805_v18  ;;  %v1108_v56 = vrot.slane %v1094_v32, %v6294_v20  ;;  %v1686_v18 = vmul.f32 %v1092_v21, %v28_v9  ;;  %v1983_v19 = vrot.slane %v1969_v47, %v6294_v20 }
  0x6c   :  { %v2814_v32 = vsel %vm2718_vm0, %v1976_v25, 0.0  ;;  %v9080_v9 = vrot.slane %v6457_v52, %v6288_v15 }
  0x6d   :  { %v2809_v59 = vadd.f32 %v2808_v23, %v2807_v40  ;;  %v1109_v23 = vcombine.low %v1101_v29, %v1108_v56  ;;  %v1985_v58 = vcombine.high %v1983_v19, %v1983_v19  ;;  %v1986_v21 = vcombine.high %v1686_v18, %v1686_v18  ;;  %v29_v29 = vld [vmem:[%s9071_s0 + $0x70] sm:$0xff] }
  0x6e   :  { %v1993_v25 = vrot.slane %v1686_v18, %v6294_v20  ;;  %v2816_v56 = vsel %vm2718_vm0, %v1984_v45, 0.0  ;;  %v1128_v45 = vcombine.low %v398_v1, %v402_v3  ;;  %v9086_v18 = vrot.slane %v6481_v41, %v6286_v14 }
  0x6f   :  { %v2811_v46 = vadd.f32 %v2810_v10, %v2809_v59  ;;  %v9081_v59 = vrot.slane %v6457_v52, %v6286_v14  ;;  %v9082_v10 = vrot.slane %v6457_v52, %v6292_v17  ;;  %v9084_v52 = vrot.slane %v6481_v41, %v6273_v5 }
  0x70   :  { %v1687_v34 = vmul.f32 %v1109_v23, %v29_v29  ;;  %v2820_v28 = vsel %vm2718_vm0, %v1985_v58, 0.0 }
  0x71   :  { %v1110_v40 = vcombine.low %v9081_v59, %v9080_v9  ;;  %v1111_v57 = vcombine.low %v9083_v2, %v9082_v10  ;;  %v2813_v47 = vadd.f32 %v2812_v26, %v2811_v46  ;;  %v9085_v26 = vrot.slane %v6481_v41, %v6271_v4 }
  0x72   :  { %v1144_v10 = vcombine.low %v9086_v18, %v410_v43  ;;  %v9087_v9 = vrot.slane %v6481_v41, %v6292_v17  ;;  %v2000_v43 = vrot.slane %v1986_v21, %v6294_v20  ;;  %v2001_v18 = vcombine.high %v1993_v25, %v1993_v25 }
  0x73   :  { %v1127_v46 = vcombine.low %v9085_v26, %v9084_v52  ;;  %v2815_v2 = vadd.f32 %v2814_v32, %v2813_v47  ;;  %v9088_v47 = vrot.slane %v6481_v41, %v6290_v16  ;;  %v2818_v52 = vsel %vm2718_vm0, %v1983_v19, 0.0 }
  0x74   :  { %v1118_v1 = vrot.slane %v1110_v40, %v6294_v20  ;;  %v1125_v3 = vrot.slane %v1111_v57, %v6294_v20  ;;  %v9089_v41 = vrot.slane %v6528_v44, %v6273_v5  ;;  %v9090_v19 = vrot.slane %v6528_v44, %v6271_v4 }
  0x75   :  { %v1145_v32 = vcombine.low %v9088_v47, %v9087_v9  ;;  %v2817_v59 = vadd.f32 %v2816_v56, %v2815_v2  ;;  %v1135_v33 = vrot.slane %v1127_v46, %v6294_v20  ;;  %v9091_v40 = vrot.slane %v6528_v44, %v6277_v7 }
  0x76   :  { %v1161_v9 = vcombine.low %v9090_v19, %v9089_v41  ;;  %v9092_v57 = vrot.slane %v6528_v44, %v6275_v6  ;;  %v1142_v56 = vrot.slane %v1128_v45, %v6294_v20  ;;  %v1152_v58 = vrot.slane %v1144_v10, %v6294_v20  ;;  %v30_v10 = vld [vmem:[%s9071_s0 + $0x78] sm:$0xff] }
  0x77   :  { %v2819_v21 = vadd.f32 %v2818_v52, %v2817_v59  ;;  %v1159_v29 = vrot.slane %v1145_v32, %v6294_v20  ;;  %v2822_v46 = vsel %vm2718_vm0, %v1993_v25, 0.0  ;;  %v850_v2 = vrot.slane %v6985_v39, %v6277_v7 }
  0x78   :  { %v1162_v23 = vcombine.low %v9092_v57, %v9091_v40  ;;  %v1126_v41 = vcombine.low %v1118_v1, %v1125_v3  ;;  %v2002_v26 = vcombine.high %v2000_v43, %v2000_v43  ;;  %v2003_v8 = vcombine.high %v1687_v34, %v1687_v34 }
  0x79   :  { %v2821_v19 = vadd.f32 %v2820_v28, %v2819_v21  ;;  %v2010_v59 = vrot.slane %v1687_v34, %v6294_v20  ;;  %v2824_v45 = vsel %vm2718_vm0, %v2001_v18, 0.0  ;;  %v1169_v25 = vrot.slane %v1161_v9, %v6294_v20 }
  0x7a   :  { %v1176_v32 = vrot.slane %v1162_v23, %v6294_v20  ;;  %v9093_v52 = vrot.slane %v6528_v44, %v6288_v15  ;;  %v9094_v28 = vrot.slane %v6528_v44, %v6286_v14  ;;  %v1143_v40 = vcombine.low %v1135_v33, %v1142_v56 }
  0x7b   :  { %v2823_v3 = vadd.f32 %v2822_v46, %v2821_v19  ;;  %v7080_v34 = vcombine.low %v1152_v58, %v1159_v29  ;;  %v9095_v18 = vrot.slane %v6528_v44, %v6290_v16  ;;  %v2826_v57 = vsel %vm2718_vm0, %v2000_v43, 0.0 }
  0x7c   :  { %v1178_v1 = vcombine.low %v9094_v28, %v9093_v52  ;;  %v9096_v23 = vrot.slane %v6563_v36, %v6271_v4  ;;  %v9097_v33 = vrot.slane %v6563_v36, %v6277_v7  ;;  %v9098_v56 = vrot.slane %v6563_v36, %v6275_v6 }
  0x7d   :  { %v1179_v9 = vcombine.low %v9095_v18, %v450_v12  ;;  %v9099_v44 = vrot.slane %v6563_v36, %v6288_v15  ;;  %v9100_v12 = vrot.slane %v6563_v36, %v6286_v14  ;;  %v2825_v29 = vadd.f32 %v2824_v45, %v2823_v3 }
  0x7e   :  { %v1195_v21 = vcombine.low %v9096_v23, %v458_v54  ;;  %v1196_v58 = vcombine.low %v9098_v56, %v9097_v33  ;;  %v1688_v46 = vmul.f32 %v1126_v41, %v30_v10  ;;  %v2017_v19 = vrot.slane %v2003_v8, %v6294_v20 }
  0x7f   :  { %v1212_v43 = vcombine.low %v9100_v12, %v9099_v44  ;;  %v2018_v52 = vcombine.high %v2010_v59, %v2010_v59  ;;  %v2828_v54 = vsel %vm2718_vm0, %v2002_v26, 0.0  ;;  %v7109_v28 = vcombine.low %v1169_v25, %v1176_v32 }
  0x80   :  { %v1186_v18 = vrot.slane %v1178_v1, %v6294_v20  ;;  %v9101_v23 = vrot.slane %v6563_v36, %v6292_v17  ;;  %v9102_v33 = vrot.slane %v6563_v36, %v6290_v16  ;;  %v2827_v47 = vadd.f32 %v2826_v57, %v2825_v29 }
  0x81   :  { %v1193_v45 = vrot.slane %v1179_v9, %v6294_v20  ;;  %v9103_v8 = vrot.slane %v6594_v24, %v6273_v5  ;;  %v9104_v26 = vrot.slane %v6594_v24, %v6271_v4  ;;  %v9105_v10 = vrot.slane %v6594_v24, %v6277_v7 }
  0x82   :  { %v1213_v56 = vcombine.low %v9102_v33, %v9101_v23  ;;  %v9106_v25 = vrot.slane %v6594_v24, %v6275_v6  ;;  %v2830_v36 = vsel %vm2718_vm0, %v2010_v59, 0.0  ;;  %v1203_v1 = vrot.slane %v1195_v21, %v6294_v20  ;;  %v31_v33 = vld [vmem:[%s9071_s0 + $0x80] sm:$0xff] }
  0x83   :  { %v1229_v41 = vcombine.low %v9104_v26, %v9103_v8  ;;  %v1210_v3 = vrot.slane %v1196_v58, %v6294_v20  ;;  %v1220_v9 = vrot.slane %v1212_v43, %v6294_v20  ;;  %v2829_v57 = vadd.f32 %v2828_v54, %v2827_v47 }
  0x84   :  { %v1230_v32 = vcombine.low %v9106_v25, %v9105_v10  ;;  %v2019_v44 = vcombine.high %v2017_v19, %v2017_v19  ;;  %v2020_v12 = vcombine.high %v1688_v46, %v1688_v46  ;;  %v2027_v29 = vrot.slane %v1688_v46, %v6294_v20 }
  0x85   :  { %v2832_v23 = vsel %vm2718_vm0, %v2018_v52, 0.0  ;;  %v1227_v8 = vrot.slane %v1213_v56, %v6294_v20  ;;  %v1246_v59 = vcombine.low %v502_v48, %v506_v61  ;;  %v1247_v47 = vcombine.low %v510_v49, %v514_v13 }
  0x86   :  { %v2831_v21 = vadd.f32 %v2830_v36, %v2829_v57  ;;  %v7153_v58 = vcombine.low %v1186_v18, %v1193_v45  ;;  %v1237_v43 = vrot.slane %v1229_v41, %v6294_v20  ;;  %v1244_v46 = vrot.slane %v1230_v32, %v6294_v20 }
  0x87   :  { %v2834_v52 = vsel %vm2718_vm0, %v2017_v19, 0.0  ;;  %v7158_v54 = vcombine.low %v1203_v1, %v1210_v3  ;;  %v9107_v61 = vrot.slane %v6629_v37, %v6273_v5  ;;  %v9108_v48 = vrot.slane %v6629_v37, %v6271_v4 }
  0x88   :  { %v9109_v24 = vrot.slane %v6629_v37, %v6277_v7  ;;  %v9110_v49 = vrot.slane %v6629_v37, %v6275_v6  ;;  %v2833_v18 = vadd.f32 %v2832_v23, %v2831_v21  ;;  %v1689_v45 = vmul.f32 %v1143_v40, %v31_v33 }
  0x89   :  { %v1263_v56 = vcombine.low %v9108_v48, %v9107_v61  ;;  %v2034_v19 = vrot.slane %v2020_v12, %v6294_v20  ;;  %v2035_v26 = vcombine.high %v2027_v29, %v2027_v29  ;;  %v2836_v41 = vsel %vm2718_vm0, %v2019_v44, 0.0 }
  0x8a   :  { %v1264_v13 = vcombine.low %v9110_v49, %v9109_v24  ;;  %v7174_v10 = vcombine.low %v1220_v9, %v1227_v8  ;;  %v1254_v25 = vrot.slane %v1246_v59, %v6294_v20  ;;  %v1261_v32 = vrot.slane %v1247_v47, %v6294_v20 }
  0x8b   :  { %v2835_v36 = vadd.f32 %v2834_v52, %v2833_v18  ;;  %v7178_v1 = vcombine.low %v1237_v43, %v1244_v46  ;;  %v9111_v3 = vrot.slane %v6629_v37, %v6288_v15  ;;  %v9112_v40 = vrot.slane %v6629_v37, %v6286_v14 }
  0x8c   :  { %v9113_v12 = vrot.slane %v6629_v37, %v6292_v17  ;;  %v9114_v9 = vrot.slane %v6629_v37, %v6290_v16  ;;  %v2838_v23 = vsel %vm2718_vm0, %v2027_v29, 0.0  ;;  %v1271_v33 = vrot.slane %v1263_v56, %v6294_v20  ;;  %v32_v29 = vld [vmem:[%s9071_s0 + $0x88] sm:$0xff] }
  0x8d   :  { %v1280_v57 = vcombine.low %v9112_v40, %v9111_v3  ;;  %v1278_v8 = vrot.slane %v1264_v13, %v6294_v20  ;;  %v9115_v59 = vrot.slane %v6665_v42, %v6271_v4  ;;  %v2837_v21 = vadd.f32 %v2836_v41, %v2835_v36 }
  0x8e   :  { %v1281_v44 = vcombine.low %v9114_v9, %v9113_v12  ;;  %v2036_v43 = vcombine.high %v2034_v19, %v2034_v19  ;;  %v2037_v46 = vcombine.high %v1689_v45, %v1689_v45  ;;  %v2044_v52 = vrot.slane %v1689_v45, %v6294_v20 }
  0x8f   :  { %v1297_v47 = vcombine.low %v9115_v59, %v554_v62  ;;  %v2840_v37 = vsel %vm2718_vm0, %v2035_v26, 0.0  ;;  %v7206_v61 = vcombine.low %v1254_v25, %v1261_v32  ;;  %v9116_v48 = vrot.slane %v6665_v42, %v6275_v6 }
  0x90   :  { %v9117_v56 = vrot.slane %v6665_v42, %v6288_v15  ;;  %v9118_v24 = vrot.slane %v6665_v42, %v6286_v14  ;;  %v2839_v13 = vadd.f32 %v2838_v23, %v2837_v21  ;;  %v1288_v18 = vrot.slane %v1280_v57, %v6294_v20 }
  0x91   :  { %v1298_v62 = vcombine.low %v9116_v48, %v562_v22  ;;  %v1295_v45 = vrot.slane %v1281_v44, %v6294_v20  ;;  %v9119_v26 = vrot.slane %v6665_v42, %v6292_v17  ;;  %v9120_v41 = vrot.slane %v6665_v42, %v6290_v16 }
  0x92   :  { %v1314_v49 = vcombine.low %v9118_v24, %v9117_v56  ;;  %v2842_v22 = vsel %vm2718_vm0, %v2034_v19, 0.0  ;;  %v7229_v32 = vcombine.low %v1271_v33, %v1278_v8  ;;  %v9121_v36 = vrot.slane %v6700_v63, %v6273_v5 }
  0x93   :  { %v1315_v25 = vcombine.low %v9120_v41, %v9119_v26  ;;  %v9122_v3 = vrot.slane %v6700_v63, %v6271_v4  ;;  %v9123_v57 = vrot.slane %v6700_v63, %v6277_v7  ;;  %v9124_v12 = vrot.slane %v6700_v63, %v6275_v6 }
  0x94   :  { %v2841_v42 = vadd.f32 %v2840_v37, %v2839_v13  ;;  %v1690_v44 = vmul.f32 %v7080_v34, %v32_v29  ;;  %v2051_v19 = vrot.slane %v2037_v46, %v6294_v20  ;;  %v2052_v23 = vcombine.high %v2044_v52, %v2044_v52 }
  0x95   :  { %v1331_v40 = vcombine.low %v9122_v3, %v9121_v36  ;;  %v1332_v9 = vcombine.low %v9124_v12, %v9123_v57  ;;  %v2844_v33 = vsel %vm2718_vm0, %v2036_v43, 0.0  ;;  %v1305_v8 = vrot.slane %v1297_v47, %v6294_v20 }
  0x96   :  { %v1312_v59 = vrot.slane %v1298_v62, %v6294_v20  ;;  %v1322_v21 = vrot.slane %v1314_v49, %v6294_v20  ;;  %v2843_v48 = vadd.f32 %v2842_v22, %v2841_v42  ;;  %v1329_v56 = vrot.slane %v1315_v25, %v6294_v20 }
  0x97   :  { %v9125_v24 = vrot.slane %v6700_v63, %v6288_v15  ;;  %v9126_v34 = vrot.slane %v6700_v63, %v6286_v14  ;;  %v1349_v47 = vcombine.low %v606_v50, %v610_v51  ;;  %v2846_v43 = vsel %vm2718_vm0, %v2044_v52, 0.0  ;;  %v33_v50 = vld [vmem:[%s9071_s0 + $0x90] sm:$0xff] }
  0x98   :  { %v1339_v46 = vrot.slane %v1331_v40, %v6294_v20  ;;  %v1346_v29 = vrot.slane %v1332_v9, %v6294_v20  ;;  %v9127_v62 = vrot.slane %v6735_v38, %v6271_v4  ;;  %v2845_v13 = vadd.f32 %v2844_v33, %v2843_v48 }
  0x99   :  { %v1348_v37 = vcombine.low %v9126_v34, %v9125_v24  ;;  %v2053_v26 = vcombine.high %v2051_v19, %v2051_v19  ;;  %v2054_v41 = vcombine.high %v1690_v44, %v1690_v44  ;;  %v2061_v25 = vrot.slane %v1690_v44, %v6294_v20 }
  0x9a   :  { %v1365_v49 = vcombine.low %v9127_v62, %v618_v55  ;;  %v2848_v63 = vsel %vm2718_vm0, %v2052_v23, 0.0  ;;  %v7276_v51 = vcombine.low %v1288_v18, %v1295_v45  ;;  %v7278_v52 = vcombine.low %v1305_v8, %v1312_v59 }
  0x9b   :  { %v9128_v22 = vrot.slane %v6735_v38, %v6277_v7  ;;  %v9129_v55 = vrot.slane %v6735_v38, %v6275_v6  ;;  %v2847_v3 = vadd.f32 %v2846_v43, %v2845_v13  ;;  %v7286_v40 = vcombine.low %v1322_v21, %v1329_v56 }
  0x9c   :  { %v1356_v57 = vrot.slane %v1348_v37, %v6294_v20  ;;  %v1363_v12 = vrot.slane %v1349_v47, %v6294_v20  ;;  %v2850_v9 = vsel %vm2718_vm0, %v2051_v19, 0.0  ;;  %v7291_v18 = vcombine.low %v1339_v46, %v1346_v29 }
  0x9d   :  { %v1366_v36 = vcombine.low %v9129_v55, %v9128_v22  ;;  %v1373_v45 = vrot.slane %v1365_v49, %v6294_v20  ;;  %v9130_v42 = vrot.slane %v6735_v38, %v6288_v15  ;;  %v9131_v44 = vrot.slane %v6735_v38, %v6286_v14 }
  0x9e   :  { %v2849_v33 = vadd.f32 %v2848_v63, %v2847_v3  ;;  %v1691_v8 = vmul.f32 %v7109_v28, %v33_v50  ;;  %v2068_v59 = vrot.slane %v2054_v41, %v6294_v20  ;;  %v2069_v21 = vcombine.high %v2061_v25, %v2061_v25 }
  0x9f   :  { %v1382_v23 = vcombine.low %v9131_v44, %v9130_v42  ;;  %v2852_v48 = vsel %vm2718_vm0, %v2053_v26, 0.0  ;;  %v1380_v19 = vrot.slane %v1366_v36, %v6294_v20  ;;  %v9132_v56 = vrot.slane %v6735_v38, %v6292_v17  ;;  %v34_v36 = vld [vmem:[%s9071_s0 + $0x98] sm:$0xff] }
  0xa0   :  { %v9133_v24 = vrot.slane %v6735_v38, %v6290_v16  ;;  %v9134_v37 = vrot.slane %v6766_v30, %v6273_v5  ;;  %v9135_v28 = vrot.slane %v6766_v30, %v6271_v4  ;;  %v2851_v43 = vadd.f32 %v2850_v9, %v2849_v33 }
  0xa1   :  { %v9136_v46 = vrot.slane %v6766_v30, %v6275_v6  ;;  %v9137_v38 = vrot.slane %v6766_v30, %v6286_v14  ;;  %v9138_v49 = vrot.slane %v6766_v30, %v6292_v17  ;;  %v9139_v13 = vrot.slane %v6766_v30, %v6290_v16 }
  0xa2   :  { %v1383_v34 = vcombine.low %v9133_v24, %v9132_v56  ;;  %v1399_v47 = vcombine.low %v9135_v28, %v9134_v37  ;;  %v2854_v41 = vsel %vm2718_vm0, %v2061_v25, 0.0  ;;  %v7335_v63 = vcombine.low %v1356_v57, %v1363_v12 }
  0xa3   :  { %v1400_v29 = vcombine.low %v9136_v46, %v658_v0  ;;  %v1416_v62 = vcombine.low %v9137_v38, %v666_v53  ;;  %v1417_v26 = vcombine.low %v9139_v13, %v9138_v49  ;;  %v9140_v0 = vrot.slane %v6801_v60, %v6273_v5 }
  0xa4   :  { %v9141_v50 = vrot.slane %v6801_v60, %v6271_v4  ;;  %v2071_v55 = vcombine.high %v1691_v8, %v1691_v8  ;;  %v2853_v53 = vadd.f32 %v2852_v48, %v2851_v43  ;;  %v9142_v30 = vrot.slane %v6801_v60, %v6277_v7 }
  0xa5   :  { %v9143_v25 = vrot.slane %v6801_v60, %v6275_v6  ;;  %v2070_v57 = vcombine.high %v2068_v59, %v2068_v59  ;;  %v2078_v12 = vrot.slane %v1691_v8, %v6294_v20  ;;  %v2856_v9 = vsel %vm2718_vm0, %v2069_v21, 0.0 }
  0xa6   :  { %v1433_v22 = vcombine.low %v9141_v50, %v9140_v0  ;;  %v1390_v42 = vrot.slane %v1382_v23, %v6294_v20  ;;  %v1397_v44 = vrot.slane %v1383_v34, %v6294_v20  ;;  %v1407_v33 = vrot.slane %v1399_v47, %v6294_v20 }
  0xa7   :  { %v1434_v3 = vcombine.low %v9143_v25, %v9142_v30  ;;  %v2855_v48 = vadd.f32 %v2854_v41, %v2853_v53  ;;  %v1414_v56 = vrot.slane %v1400_v29, %v6294_v20  ;;  %v1424_v24 = vrot.slane %v1416_v62, %v6294_v20 }
  0xa8   :  { %v1431_v37 = vrot.slane %v1417_v26, %v6294_v20  ;;  %v2858_v28 = vsel %vm2718_vm0, %v2068_v59, 0.0  ;;  %v9144_v8 = vrot.slane %v6801_v60, %v6288_v15  ;;  %v9145_v21 = vrot.slane %v6801_v60, %v6286_v14 }
  0xa9   :  { %v1692_v34 = vmul.f32 %v7153_v58, %v34_v36  ;;  %v2085_v47 = vrot.slane %v2071_v55, %v6294_v20  ;;  %v2857_v43 = vadd.f32 %v2856_v9, %v2855_v48  ;;  %v1441_v46 = vrot.slane %v1433_v22, %v6294_v20  ;;  %v35_v36 = vld [vmem:[%s9071_s0 + $0xa0] sm:$0xff] }
  0xaa   :  { %v1450_v23 = vcombine.low %v9145_v21, %v9144_v8  ;;  %v1448_v29 = vrot.slane %v1434_v3, %v6294_v20  ;;  %v2086_v38 = vcombine.high %v2078_v12, %v2078_v12  ;;  %v2860_v62 = vsel %vm2718_vm0, %v2070_v57, 0.0 }
  0xab   :  { %v7372_v59 = vcombine.low %v1373_v45, %v1380_v19  ;;  %v7374_v49 = vcombine.low %v1390_v42, %v1397_v44  ;;  %v9146_v13 = vrot.slane %v6801_v60, %v6292_v17  ;;  %v9147_v58 = vrot.slane %v6801_v60, %v6290_v16 }
  0xac   :  { %v2859_v41 = vadd.f32 %v2858_v28, %v2857_v43  ;;  %v7382_v0 = vcombine.low %v1407_v33, %v1414_v56  ;;  %v9148_v50 = vrot.slane %v6848_v35, %v6273_v5  ;;  %v9149_v22 = vrot.slane %v6848_v35, %v6271_v4 }
  0xad   :  { %v1451_v26 = vcombine.low %v9147_v58, %v9146_v13  ;;  %v9150_v19 = vrot.slane %v6848_v35, %v6277_v7  ;;  %v9151_v55 = vrot.slane %v6848_v35, %v6275_v6  ;;  %v2862_v60 = vsel %vm2718_vm0, %v2078_v12, 0.0 }
  0xae   :  { %v1467_v45 = vcombine.low %v9149_v22, %v9148_v50  ;;  %v2087_v30 = vcombine.high %v2085_v47, %v2085_v47  ;;  %v2088_v25 = vcombine.high %v1692_v34, %v1692_v34  ;;  %v2095_v3 = vrot.slane %v1692_v34, %v6294_v20 }
  0xaf   :  { %v1468_v53 = vcombine.low %v9151_v55, %v9150_v19  ;;  %v2861_v57 = vadd.f32 %v2860_v62, %v2859_v41  ;;  %v7401_v9 = vcombine.low %v1424_v24, %v1431_v37  ;;  %v7403_v42 = vcombine.low %v1441_v46, %v1448_v29 }
  0xb0   :  { %v1458_v44 = vrot.slane %v1450_v23, %v6294_v20  ;;  %v2864_v33 = vsel %vm2718_vm0, %v2086_v38, 0.0  ;;  %v1465_v48 = vrot.slane %v1451_v26, %v6294_v20  ;;  %v9152_v12 = vrot.slane %v6848_v35, %v6288_v15  ;;  %v7423_v23 = vld [vmem:[%s9072_s1 + $0x1] ss:$2 sm:$0xff] }
  0xb1   :  { %v9153_v56 = vrot.slane %v6848_v35, %v6286_v14  ;;  %v9154_v8 = vrot.slane %v6848_v35, %v6292_v17  ;;  %v9155_v24 = vrot.slane %v6848_v35, %v6290_v16  ;;  %v2863_v21 = vadd.f32 %v2862_v60, %v2861_v57 }
  0xb2   :  { %v1475_v34 = vrot.slane %v1467_v45, %v6294_v20  ;;  %v1482_v43 = vrot.slane %v1468_v53, %v6294_v20  ;;  %v1693_v46 = vmul.f32 %v7158_v54, %v35_v36  ;;  %v2866_v29 = vsel %vm2718_vm0, %v2085_v47, 0.0 }
  0xb3   :  { %v1484_v28 = vcombine.low %v9153_v56, %v9152_v12  ;;  %v1485_v37 = vcombine.low %v9155_v24, %v9154_v8  ;;  %v2102_v38 = vrot.slane %v2088_v25, %v6294_v20  ;;  %v2103_v62 = vcombine.high %v2095_v3, %v2095_v3 }
  0xb4   :  { %v2865_v13 = vadd.f32 %v2864_v33, %v2863_v21  ;;  %v2868_v35 = vsel %vm2718_vm0, %v2087_v30, 0.0  ;;  %v3158_v58 = vrot.slane %v7423_v23, %v6271_v4  ;;  %v3162_v26 = vrot.slane %v7423_v23, %v6273_v5 }
  0xb5   :  { %v3166_v41 = vrot.slane %v7423_v23, %v6275_v6  ;;  %v3170_v54 = vrot.slane %v7423_v23, %v6277_v7  ;;  %v7439_v50 = vcombine.low %v1458_v44, %v1465_v48  ;;  %v9156_v47 = vrot.slane %v6872_v31, %v6273_v5 }
  0xb6   :  { %v9157_v22 = vrot.slane %v6872_v31, %v6271_v4  ;;  %v9158_v19 = vrot.slane %v6872_v31, %v6277_v7  ;;  %v9159_v55 = vrot.slane %v6872_v31, %v6275_v6  ;;  %v2867_v60 = vadd.f32 %v2866_v29, %v2865_v13 }
  0xb7   :  { %v1492_v36 = vrot.slane %v1484_v28, %v6294_v20  ;;  %v1499_v30 = vrot.slane %v1485_v37, %v6294_v20  ;;  %v9160_v25 = vrot.slane %v6872_v31, %v6288_v15  ;;  %v9161_v57 = vrot.slane %v6872_v31, %v6286_v14  ;;  %v36_v28 = vld [vmem:[%s9071_s0 + $0xa8] sm:$0xff] }
  0xb8   :  { %v1501_v45 = vcombine.low %v9157_v22, %v9156_v47  ;;  %v1502_v53 = vcombine.low %v9159_v55, %v9158_v19  ;;  %v2870_v33 = vsel %vm2718_vm0, %v2095_v3, 0.0  ;;  %v7462_v48 = vcombine.low %v1475_v34, %v1482_v43 }
  0xb9   :  { %v1518_v44 = vcombine.low %v9161_v57, %v9160_v25  ;;  %v2105_v12 = vcombine.high %v1693_v46, %v1693_v46  ;;  %v2112_v56 = vrot.slane %v1693_v46, %v6294_v20  ;;  %v2869_v8 = vadd.f32 %v2868_v35, %v2867_v60 }
  0xba   :  { %v2104_v24 = vcombine.high %v2102_v38, %v2102_v38  ;;  %v2872_v37 = vsel %vm2718_vm0, %v2103_v62, 0.0  ;;  %v3879_v21 = vcombine.low %v3158_v58, %v3162_v26  ;;  %v3880_v29 = vcombine.low %v3166_v41, %v3170_v54 }
  0xbb   :  { %v1509_v13 = vrot.slane %v1501_v45, %v6294_v20  ;;  %v1516_v47 = vrot.slane %v1502_v53, %v6294_v20  ;;  %v9162_v3 = vrot.slane %v6872_v31, %v6292_v17  ;;  %v9163_v34 = vrot.slane %v6872_v31, %v6290_v16 }
  0xbc   :  { %v2871_v46 = vadd.f32 %v2870_v33, %v2869_v8  ;;  %v7477_v35 = vcombine.low %v1492_v36, %v1499_v30  ;;  %v1526_v22 = vrot.slane %v1518_v44, %v6294_v20  ;;  %v9164_v62 = vrot.slane %v6914_v27, %v6273_v5 }
  0xbd   :  { %v1519_v43 = vcombine.low %v9163_v34, %v9162_v3  ;;  %v9165_v58 = vrot.slane %v6914_v27, %v6271_v4  ;;  %v2874_v41 = vsel %vm2718_vm0, %v2102_v38, 0.0  ;;  %v9166_v54 = vrot.slane %v6914_v27, %v6277_v7  ;;  %v37_v3 = vld [vmem:[%s9071_s0 + $0xb0] sm:$0xff] }
  0xbe   :  { %v9167_v31 = vrot.slane %v6914_v27, %v6275_v6  ;;  %v1694_v19 = vmul.f32 %v7174_v10, %v36_v28  ;;  %v2119_v55 = vrot.slane %v2105_v12, %v6294_v20  ;;  %v2873_v53 = vadd.f32 %v2872_v37, %v2871_v46 }
  0xbf   :  { %v1535_v26 = vcombine.low %v9165_v58, %v9164_v62  ;;  %v2120_v60 = vcombine.high %v2112_v56, %v2112_v56  ;;  %v2876_v36 = vsel %vm2718_vm0, %v2104_v24, 0.0  ;;  %v3887_v30 = vrot.slane %v3879_v21, %v6294_v20 }
  0xc0   :  { %v1536_v45 = vcombine.low %v9167_v31, %v9166_v54  ;;  %v3894_v25 = vrot.slane %v3880_v29, %v6294_v20  ;;  %v1533_v38 = vrot.slane %v1519_v43, %v6294_v20  ;;  %v9168_v57 = vrot.slane %v6914_v27, %v6288_v15 }
  0xc1   :  { %v9169_v44 = vrot.slane %v6914_v27, %v6286_v14  ;;  %v9170_v10 = vrot.slane %v6914_v27, %v6292_v17  ;;  %v9171_v12 = vrot.slane %v6914_v27, %v6290_v16  ;;  %v2875_v28 = vadd.f32 %v2874_v41, %v2873_v53 }
  0xc2   :  { %v7511_v24 = vcombine.low %v1509_v13, %v1516_v47  ;;  %v1543_v37 = vrot.slane %v1535_v26, %v6294_v20  ;;  %v2122_v21 = vcombine.high %v1694_v19, %v1694_v19  ;;  %v2878_v29 = vsel %vm2718_vm0, %v2112_v56, 0.0 }
  0xc3   :  { %v1552_v33 = vcombine.low %v9169_v44, %v9168_v57  ;;  %v1553_v8 = vcombine.low %v9171_v12, %v9170_v10  ;;  %v1550_v34 = vrot.slane %v1536_v45, %v6294_v20  ;;  %v9172_v43 = vrot.slane %v6938_v11, %v6273_v5 }
  0xc4   :  { %v9173_v27 = vrot.slane %v6938_v11, %v6271_v4  ;;  %v2129_v13 = vrot.slane %v1694_v19, %v6294_v20  ;;  %v2877_v47 = vadd.f32 %v2876_v36, %v2875_v28  ;;  %v9174_v62 = vrot.slane %v6938_v11, %v6277_v7 }
  0xc5   :  { %v9175_v56 = vrot.slane %v6938_v11, %v6275_v6  ;;  %v2121_v26 = vcombine.high %v2119_v55, %v2119_v55  ;;  %v2880_v41 = vsel %vm2718_vm0, %v2120_v60, 0.0  ;;  %v3895_v54 = vcombine.low %v3887_v30, %v3894_v25 }
  0xc6   :  { %v1569_v46 = vcombine.low %v9173_v27, %v9172_v43  ;;  %v7533_v31 = vcombine.low %v1526_v22, %v1533_v38  ;;  %v1560_v45 = vrot.slane %v1552_v33, %v6294_v20  ;;  %v1567_v53 = vrot.slane %v1553_v8, %v6294_v20 }
  0xc7   :  { %v1570_v58 = vcombine.low %v9175_v56, %v9174_v62  ;;  %v2879_v57 = vadd.f32 %v2878_v29, %v2877_v47  ;;  %v9176_v19 = vrot.slane %v6938_v11, %v6288_v15  ;;  %v9177_v36 = vrot.slane %v6938_v11, %v6286_v14 }
  0xc8   :  { %v1695_v10 = vmul.f32 %v7178_v1, %v37_v3  ;;  %v2136_v12 = vrot.slane %v2122_v21, %v6294_v20  ;;  %v2882_v60 = vsel %vm2718_vm0, %v2119_v55, 0.0  ;;  %v2137_v22 = vcombine.high %v2129_v13, %v2129_v13  ;;  %v6180_v55 = vld [vmem:[%s9071_s0] sm:$0xff] }
  0xc9   :  { %v1586_v44 = vcombine.low %v9177_v36, %v9176_v19  ;;  %v2881_v30 = vadd.f32 %v2880_v41, %v2879_v57  ;;  %v3174_v25 = vrot.slane %v7423_v23, %v6286_v14  ;;  %v3178_v38 = vrot.slane %v7423_v23, %v6288_v15 }
  0xca   :  { %v2884_v33 = vsel %vm2718_vm0, %v2121_v26, 0.0  ;;  %v3182_v8 = vrot.slane %v7423_v23, %v6290_v16  ;;  %v3186_v1 = vrot.slane %v7423_v23, %v6292_v17  ;;  %v4697_v28 = vmul.f32 %v6180_v55, %v3895_v54 }
  0xcb   :  { %v7558_v21 = vcombine.low %v1543_v37, %v1550_v34  ;;  %v1577_v29 = vrot.slane %v1569_v46, %v6294_v20  ;;  %v9178_v3 = vrot.slane %v6938_v11, %v6292_v17  ;;  %v9179_v43 = vrot.slane %v6938_v11, %v6290_v16 }
  0xcc   :  { %v2883_v47 = vadd.f32 %v2882_v60, %v2881_v30  ;;  %v1584_v62 = vrot.slane %v1570_v58, %v6294_v20  ;;  %v9180_v23 = vrot.slane %v6985_v39, %v6273_v5  ;;  %v9181_v56 = vrot.slane %v6985_v39, %v6271_v4  ;;  %v38_v58 = vld [vmem:[%s9071_s0 + $0xb8] sm:$0xff] }
  0xcd   :  { %v1587_v27 = vcombine.low %v9179_v43, %v9178_v3  ;;  %v9182_v34 = vrot.slane %v6985_v39, %v6275_v6  ;;  %v2886_v11 = vsel %vm2718_vm0, %v2129_v13, 0.0  ;;  %v2138_v26 = vcombine.high %v2136_v12, %v2136_v12 }
  0xce   :  { %v1603_v37 = vcombine.low %v9181_v56, %v9180_v23  ;;  %v2139_v41 = vcombine.high %v1695_v10, %v1695_v10  ;;  %v2146_v54 = vrot.slane %v1695_v10, %v6294_v20  ;;  %v2885_v57 = vadd.f32 %v2884_v33, %v2883_v47 }
  0xcf   :  { %v1604_v46 = vcombine.low %v9182_v34, %v850_v2  ;;  %v2888_v19 = vsel %vm2718_vm0, %v2137_v22, 0.0  ;;  %v3896_v36 = vcombine.low %v3174_v25, %v3178_v38  ;;  %v3897_v60 = vcombine.low %v3182_v8, %v3186_v1  ;;  %v40_v34 = vld [vmem:[%s9071_s0 + $0xc8] sm:$0xff] }
  0xd0   :  { %v4796_v30 = vrot.slane %v4697_v28, %v6294_v20  ;;  %v7587_v55 = vcombine.low %v1560_v45, %v1567_v53  ;;  %v1594_v2 = vrot.slane %v1586_v44, %v6294_v20  ;;  %v1601_v13 = vrot.slane %v1587_v27, %v6294_v20  ;;  %v39_v53 = vld [vmem:[%s9071_s0 + $0xc0] sm:$0xff] }
  0xd1   :  { %v2887_v3 = vadd.f32 %v2886_v11, %v2885_v57  ;;  %v1611_v43 = vrot.slane %v1603_v37, %v6294_v20  ;;  %v1618_v23 = vrot.slane %v1604_v46, %v6294_v20  ;;  %v1696_v10 = vmul.f32 %v7206_v61, %v38_v58  ;;  %v41_v46 = vld [vmem:[%s9071_s0 + $0xd0] sm:$0xff] }
  0xd2   :  { %v2890_v33 = vsel %vm2718_vm0, %v2136_v12, 0.0  ;;  %v2153_v22 = vrot.slane %v2139_v41, %v6294_v20  ;;  %v2154_v25 = vcombine.high %v2146_v54, %v2146_v54  ;;  %v2892_v45 = vsel %vm2718_vm0, %v2138_v26, 0.0  ;;  %v7627_v57 = vld [vmem:[%s9072_s1 + $0x11] ss:$2 sm:$0xff] }
  0xd3   :  { %v2889_v38 = vadd.f32 %v2888_v19, %v2887_v3  ;;  %v3904_v44 = vrot.slane %v3896_v36, %v6294_v20  ;;  %v3911_v8 = vrot.slane %v3897_v60, %v6294_v20  ;;  %v4789_v1 = vcombine.high %v4697_v28, %v4697_v28 }
  0xd4   :  { %v4804_v27 = vcombine.high %v4796_v30, %v4796_v30  ;;  %v7602_v47 = vcombine.low %v1577_v29, %v1584_v62  ;;  %v9183_v61 = vrot.slane %v6985_v39, %v6286_v14  ;;  %v2156_v56 = vcombine.high %v1696_v10, %v1696_v10 }
  0xd5   :  { %v2891_v37 = vadd.f32 %v2890_v33, %v2889_v38  ;;  %v7616_v28 = vcombine.low %v1594_v2, %v1601_v13  ;;  %v7618_v29 = vcombine.low %v1611_v43, %v1618_v23  ;;  %v2163_v62 = vrot.slane %v1696_v10, %v6294_v20  ;;  %v42_v43 = vld [vmem:[%s9071_s0 + $0xd8] sm:$0xff]  ;;  %v43_v23 = vld [vmem:[%s9071_s0 + $0xe0] sm:$0xff] }
  0xd6   :  { %v7608_v12 = vrot.slane %v9183_v61, %v6294_v20  ;;  %v2894_v39 = vsel %vm2718_vm0, %v2146_v54, 0.0  ;;  %v1697_v11 = vmul.f32 %v7229_v32, %v39_v53  ;;  %v2155_v58 = vcombine.high %v2153_v22, %v2153_v22 }
  0xd7   :  { %v2893_v26 = vadd.f32 %v2892_v45, %v2891_v37  ;;  %v2896_v41 = vsel %vm2718_vm0, %v2154_v25, 0.0  ;;  %v3912_v19 = vcombine.low %v3904_v44, %v3911_v8  ;;  %v4803_v36 = vrot.slane %v4789_v1, %v6294_v20  ;;  %v45_v25 = vld [vmem:[%s9071_s0 + $0xf0] sm:$0xff]  ;;  %v6181_v8 = vld [vmem:[%s9071_s0 + $0x8] sm:$0xff] }
  0xd8   :  { %v5742_v60 = vsel %vm2718_vm0, %v4796_v30, 0.0  ;;  %v5743_v2 = vsel %vm2718_vm0, %v4804_v27, 0.0  ;;  %v7633_v54 = vmul.f32 %v7276_v51, %v40_v34  ;;  %v7636_v32 = vmul.f32 %v7278_v52, %v41_v46  ;;  %v44_v30 = vld [vmem:[%s9071_s0 + $0xe8] sm:$0xff] }
  0xd9   :  { %v2170_v13 = vrot.slane %v2156_v56, %v6294_v20  ;;  %v2895_v3 = vadd.f32 %v2894_v39, %v2893_v26  ;;  %v2171_v51 = vcombine.high %v2163_v62, %v2163_v62  ;;  %v2898_v10 = vsel %vm2718_vm0, %v2153_v22, 0.0  ;;  %v46_v39 = vld [vmem:[%s9071_s0 + $0xf8] sm:$0xff] }
  0xda   :  { %v3190_v52 = vrot.slane %v7627_v57, %v6271_v4  ;;  %v3194_v33 = vrot.slane %v7627_v57, %v6273_v5  ;;  %v3198_v45 = vrot.slane %v7627_v57, %v6275_v6  ;;  %v3202_v53 = vrot.slane %v7627_v57, %v6277_v7 }
  0xdb   :  { %v2897_v38 = vadd.f32 %v2896_v41, %v2895_v3  ;;  %v5744_v44 = vadd.f32 %v5743_v2, %v5742_v60  ;;  %v2900_v22 = vsel %vm2718_vm0, %v2155_v58, 0.0  ;;  %v4698_v1 = vmul.f32 %v6181_v8, %v3912_v19  ;;  %v47_v58 = vld [vmem:[%s9071_s0 + $0x100] sm:$0xff]  ;;  %v49_v19 = vld [vmem:[%s9071_s0 + $0x110] sm:$0xff]  ;;  %v54_v8 = vld [vmem:[%s9071_s0 + $0x138] sm:$0xff] }
  0xdc   :  { %v4805_v27 = vcombine.high %v4803_v36, %v4803_v36  ;;  %v5745_v61 = vsel %vm2718_vm0, %v4803_v36, 0.0  ;;  %v7666_v56 = vmul.f32 %v7286_v40, %v42_v43  ;;  %v7669_v37 = vmul.f32 %v7291_v18, %v43_v23  ;;  %v48_v40 = vld [vmem:[%s9071_s0 + $0x108] sm:$0xff] }
  0xdd   :  { %v7672_v34 = vmul.f32 %v7335_v63, %v44_v30  ;;  %v2899_v46 = vadd.f32 %v2898_v10, %v2897_v38  ;;  %v7684_v26 = vmul.f32 %v7372_v59, %v45_v25  ;;  %v2173_v18 = vcombine.high %v1697_v11, %v1697_v11 }
  0xde   :  { %v2180_v63 = vrot.slane %v1697_v11, %v6294_v20  ;;  %v2902_v41 = vsel %vm2718_vm0, %v2163_v62, 0.0  ;;  %v3913_v60 = vcombine.low %v3190_v52, %v3194_v33  ;;  %v3914_v2 = vcombine.low %v3198_v45, %v3202_v53  ;;  %v50_v52 = vld [vmem:[%s9071_s0 + $0x118] sm:$0xff]  ;;  %v53_v45 = vld [vmem:[%s9071_s0 + $0x130] sm:$0xff] }
  0xdf   :  { %v2901_v36 = vadd.f32 %v2900_v22, %v2899_v46  ;;  %v5746_v3 = vadd.f32 %v5745_v61, %v5744_v44  ;;  %v2172_v43 = vcombine.high %v2170_v13, %v2170_v13  ;;  %v2904_v23 = vsel %vm2718_vm0, %v2171_v51, 0.0  ;;  %v51_v51 = vld [vmem:[%s9071_s0 + $0x120] sm:$0xff] }
  0xe0   :  { %v4813_v30 = vrot.slane %v4698_v1, %v6294_v20  ;;  %v5747_v59 = vsel %vm2718_vm0, %v4805_v27, 0.0  ;;  %v7695_v10 = vmul.f32 %v7374_v49, %v46_v39  ;;  %v7698_v62 = vmul.f32 %v7382_v0, %v47_v58 }
  0xe1   :  { %v7701_v11 = vmul.f32 %v7401_v9, %v48_v40  ;;  %v2903_v25 = vadd.f32 %v2902_v41, %v2901_v36  ;;  %v7710_v33 = vmul.f32 %v7403_v42, %v49_v19  ;;  %v2187_v49 = vrot.slane %v2173_v18, %v6294_v20  ;;  %v52_v9 = vld [vmem:[%s9071_s0 + $0x128] sm:$0xff]  ;;  %v55_v41 = vld [vmem:[%s9071_s0 + $0x140] sm:$0xff] }
  0xe2   :  { %v2188_v38 = vcombine.high %v2180_v63, %v2180_v63  ;;  %v2906_v0 = vsel %vm2718_vm0, %v2170_v13, 0.0  ;;  %v3921_v44 = vrot.slane %v3913_v60, %v6294_v20  ;;  %v3928_v22 = vrot.slane %v3914_v2, %v6294_v20 }
  0xe3   :  { %v2905_v53 = vadd.f32 %v2904_v23, %v2903_v25  ;;  %v5748_v42 = vadd.f32 %v5747_v59, %v5746_v3  ;;  %v2908_v13 = vsel %vm2718_vm0, %v2172_v43, 0.0  ;;  %v4806_v27 = vcombine.high %v4698_v1, %v4698_v1  ;;  %v56_v1 = vld [vmem:[%s9071_s0 + $0x148] sm:$0xff]  ;;  %v57_v25 = vld [vmem:[%s9071_s0 + $0x150] sm:$0xff] }
  0xe4   :  { %v4821_v61 = vcombine.high %v4813_v30, %v4813_v30  ;;  %v5749_v46 = vsel %vm2718_vm0, %v4813_v30, 0.0  ;;  %v7728_v39 = vmul.f32 %v7439_v50, %v50_v52  ;;  %v7731_v58 = vmul.f32 %v7462_v48, %v51_v51  ;;  %v58_v52 = vld [vmem:[%s9071_s0 + $0x158] sm:$0xff] }
  0xe5   :  { %v2190_v40 = vcombine.high %v7633_v54, %v7633_v54  ;;  %v2907_v18 = vadd.f32 %v2906_v0, %v2905_v53  ;;  %v7742_v19 = vmul.f32 %v7477_v35, %v52_v9  ;;  %v7745_v50 = vmul.f32 %v7511_v24, %v53_v45  ;;  %v59_v0 = vld [vmem:[%s9071_s0 + $0x160] sm:$0xff] }
  0xe6   :  { %v2197_v48 = vrot.slane %v7633_v54, %v6294_v20  ;;  %v2910_v36 = vsel %vm2718_vm0, %v2180_v63, 0.0  ;;  %v7751_v60 = vmul.f32 %v7533_v31, %v54_v8  ;;  %v2189_v2 = vcombine.high %v2187_v49, %v2187_v49 }
  0xe7   :  { %v2909_v3 = vadd.f32 %v2908_v13, %v2907_v18  ;;  %v5750_v43 = vadd.f32 %v5749_v46, %v5748_v42  ;;  %v2912_v23 = vsel %vm2718_vm0, %v2188_v38, 0.0  ;;  %v3929_v30 = vcombine.low %v3921_v44, %v3928_v22  ;;  %v6182_v22 = vld [vmem:[%s9071_s0 + $0x10] sm:$0xff] }
  0xe8   :  { %v4820_v35 = vrot.slane %v4806_v27, %v6294_v20  ;;  %v5751_v59 = vsel %vm2718_vm0, %v4821_v61, 0.0  ;;  %v7757_v24 = vmul.f32 %v7558_v21, %v55_v41  ;;  %v7760_v54 = vmul.f32 %v7587_v55, %v56_v1 }
  0xe9   :  { %v2204_v63 = vrot.slane %v2190_v40, %v6294_v20  ;;  %v2911_v31 = vadd.f32 %v2910_v36, %v2909_v3  ;;  %v2205_v51 = vcombine.high %v2197_v48, %v2197_v48  ;;  %v2914_v38 = vsel %vm2718_vm0, %v2187_v49, 0.0 }
  0xea   :  { %v3206_v21 = vrot.slane %v7627_v57, %v6286_v14  ;;  %v3210_v55 = vrot.slane %v7627_v57, %v6288_v15  ;;  %v3214_v45 = vrot.slane %v7627_v57, %v6290_v16  ;;  %v3218_v53 = vrot.slane %v7627_v57, %v6292_v17 }
  0xeb   :  { %v2913_v9 = vadd.f32 %v2912_v23, %v2911_v31  ;;  %v5752_v44 = vadd.f32 %v5751_v59, %v5750_v43  ;;  %v2916_v49 = vsel %vm2718_vm0, %v2189_v2, 0.0  ;;  %v4699_v42 = vmul.f32 %v6182_v22, %v3929_v30  ;;  %v60_v59 = vld [vmem:[%s9071_s0 + $0x168] sm:$0x3] }
  0xec   :  { %v4822_v8 = vcombine.high %v4820_v35, %v4820_v35  ;;  %v5753_v13 = vsel %vm2718_vm0, %v4820_v35, 0.0  ;;  %v7787_v27 = vmul.f32 %v7602_v47, %v57_v25  ;;  %v7790_v61 = vmul.f32 %v7616_v28, %v58_v52 }
  0xed   :  { %v2207_v57 = vcombine.high %v7636_v32, %v7636_v32  ;;  %v2915_v46 = vadd.f32 %v2914_v38, %v2913_v9  ;;  %v7795_v40 = vmul.f32 %v7618_v29, %v59_v0  ;;  %v2214_v18 = vrot.slane %v7636_v32, %v6294_v20 }
  0xee   :  { %v2224_v41 = vcombine.high %v7666_v56, %v7666_v56  ;;  %v2918_v1 = vsel %vm2718_vm0, %v2197_v48, 0.0  ;;  %v3930_v36 = vcombine.low %v3206_v21, %v3210_v55  ;;  %v3931_v2 = vcombine.low %v3214_v45, %v3218_v53 }
  0xef   :  { %v2917_v47 = vadd.f32 %v2916_v49, %v2915_v46  ;;  %v5754_v28 = vadd.f32 %v5753_v13, %v5752_v44  ;;  %v2206_v3 = vcombine.high %v2204_v63, %v2204_v63  ;;  %v2920_v43 = vsel %vm2718_vm0, %v2205_v51, 0.0 }
  0xf0   :  { %v4830_v23 = vrot.slane %v4699_v42, %v6294_v20  ;;  %v5755_v29 = vsel %vm2718_vm0, %v4822_v8, 0.0  ;;  %v2221_v30 = vrot.slane %v2207_v57, %v6294_v20  ;;  %v7808_v32 = vrot.slane %v7666_v56, %v6294_v20 }
  0xf1   :  { %v2241_v48 = vcombine.high %v7669_v37, %v7669_v37  ;;  %v2919_v35 = vadd.f32 %v2918_v1, %v2917_v47  ;;  %v2222_v31 = vcombine.high %v2214_v18, %v2214_v18  ;;  %v7816_v25 = vrot.slane %v2224_v41, %v6294_v20  ;;  %v7849_v41 = vld [vmem:[%s9072_s1 + $0x21] ss:$2 sm:$0xff] }
  0xf2   :  { %v7820_v52 = vrot.slane %v7669_v37, %v6294_v20  ;;  %v2922_v51 = vsel %vm2718_vm0, %v2204_v63, 0.0  ;;  %v3938_v38 = vrot.slane %v3930_v36, %v6294_v20  ;;  %v3945_v21 = vrot.slane %v3931_v2, %v6294_v20 }
  0xf3   :  { %v2921_v56 = vadd.f32 %v2920_v43, %v2919_v35  ;;  %v5756_v55 = vadd.f32 %v5755_v29, %v5754_v28  ;;  %v2924_v0 = vsel %vm2718_vm0, %v2206_v3, 0.0  ;;  %v4823_v9 = vcombine.high %v4699_v42, %v4699_v42 }
  0xf4   :  { %v4838_v45 = vcombine.high %v4830_v23, %v4830_v23  ;;  %v5757_v53 = vsel %vm2718_vm0, %v4830_v23, 0.0  ;;  %v7828_v44 = vmul.f32 %v7608_v12, %v60_v59  ;;  %v7831_v37 = vrot.slane %v2241_v48, %v6294_v20 }
  0xf5   :  { %v2258_v63 = vcombine.high %v7672_v34, %v7672_v34  ;;  %v2923_v49 = vadd.f32 %v2922_v51, %v2921_v56  ;;  %v2223_v22 = vcombine.high %v2221_v30, %v2221_v30  ;;  %v2239_v8 = vcombine.high %v7808_v32, %v7808_v32 }
  0xf6   :  { %v2240_v42 = vcombine.high %v7816_v25, %v7816_v25  ;;  %v2926_v13 = vsel %vm2718_vm0, %v2214_v18, 0.0  ;;  %v2256_v12 = vcombine.high %v7820_v52, %v7820_v52  ;;  %v7844_v57 = vrot.slane %v7672_v34, %v6294_v20 }
  0xf7   :  { %v2925_v46 = vadd.f32 %v2924_v0, %v2923_v49  ;;  %v5758_v1 = vadd.f32 %v5757_v53, %v5756_v55  ;;  %v2928_v47 = vsel %vm2718_vm0, %v2222_v31, 0.0  ;;  %v3946_v36 = vcombine.low %v3938_v38, %v3945_v21 }
  0xf8   :  { %v4837_v2 = vrot.slane %v4823_v9, %v6294_v20  ;;  %v5759_v18 = vsel %vm2718_vm0, %v4838_v45, 0.0  ;;  %v2257_v28 = vcombine.high %v7831_v37, %v7831_v37  ;;  %v7857_v34 = vrot.slane %v2258_v63, %v6294_v20 }
  0xf9   :  { %v2275_v3 = vcombine.high %v7684_v26, %v7684_v26  ;;  %v2927_v43 = vadd.f32 %v2926_v13, %v2925_v46  ;;  %v7863_v23 = vrot.slane %v7684_v26, %v6294_v20  ;;  %v2930_v29 = vsel %vm2718_vm0, %v2221_v30, 0.0  ;;  %v6183_v26 = vld [vmem:[%s9071_s0 + $0x18] sm:$0xff] }
  0xfa   :  { %v3222_v48 = vrot.slane %v7849_v41, %v6271_v4  ;;  %v3226_v35 = vrot.slane %v7849_v41, %v6273_v5  ;;  %v3230_v31 = vrot.slane %v7849_v41, %v6275_v6  ;;  %v3234_v51 = vrot.slane %v7849_v41, %v6277_v7 }
  0xfb   :  { %v2929_v59 = vadd.f32 %v2928_v47, %v2927_v43  ;;  %v5760_v56 = vadd.f32 %v5759_v18, %v5758_v1  ;;  %v2932_v38 = vsel %vm2718_vm0, %v2223_v22, 0.0  ;;  %v4700_v30 = vmul.f32 %v6183_v26, %v3946_v36 }
  0xfc   :  { %v4839_v21 = vcombine.high %v4837_v2, %v4837_v2  ;;  %v5761_v55 = vsel %vm2718_vm0, %v4837_v2, 0.0  ;;  %v2273_v0 = vcombine.high %v7844_v57, %v7844_v57  ;;  %v7882_v9 = vrot.slane %v2275_v3, %v6294_v20 }
  0xfd   :  { %v2292_v45 = vcombine.high %v7695_v10, %v7695_v10  ;;  %v2931_v53 = vadd.f32 %v2930_v29, %v2929_v59  ;;  %v2274_v63 = vcombine.high %v7857_v34, %v7857_v34  ;;  %v7890_v49 = vrot.slane %v7695_v10, %v6294_v20 }
  0xfe   :  { %v2309_v22 = vcombine.high %v7698_v62, %v7698_v62  ;;  %v2934_v13 = vsel %vm2718_vm0, %v7808_v32, 0.0  ;;  %v3947_v1 = vcombine.low %v3222_v48, %v3226_v35  ;;  %v3948_v47 = vcombine.low %v3230_v31, %v3234_v51 }
  0xff   :  { %v2933_v46 = vadd.f32 %v2932_v38, %v2931_v53  ;;  %v5762_v36 = vadd.f32 %v5761_v55, %v5760_v56  ;;  %v2290_v2 = vcombine.high %v7863_v23, %v7863_v23  ;;  %v2936_v18 = vsel %vm2718_vm0, %v2239_v8, 0.0 }
 0x100   :  { %v4847_v3 = vrot.slane %v4700_v30, %v6294_v20  ;;  %v5763_v10 = vsel %vm2718_vm0, %v4839_v21, 0.0  ;;  %v2291_v43 = vcombine.high %v7882_v9, %v7882_v9  ;;  %v7904_v29 = vrot.slane %v2292_v45, %v6294_v20 }
 0x101   :  { %v7908_v32 = vrot.slane %v7698_v62, %v6294_v20  ;;  %v2935_v48 = vadd.f32 %v2934_v13, %v2933_v46  ;;  %v2307_v35 = vcombine.high %v7890_v49, %v7890_v49  ;;  %v7913_v8 = vrot.slane %v2309_v22, %v6294_v20 }
 0x102   :  { %v2326_v59 = vcombine.high %v7701_v11, %v7701_v11  ;;  %v2938_v31 = vsel %vm2718_vm0, %v7816_v25, 0.0  ;;  %v3955_v56 = vrot.slane %v3947_v1, %v6294_v20  ;;  %v3962_v38 = vrot.slane %v3948_v47, %v6294_v20 }
 0x103   :  { %v2937_v51 = vadd.f32 %v2936_v18, %v2935_v48  ;;  %v5764_v62 = vadd.f32 %v5763_v10, %v5762_v36  ;;  %v2940_v26 = vsel %vm2718_vm0, %v2240_v42, 0.0  ;;  %v4840_v21 = vcombine.high %v4700_v30, %v4700_v30 }
 0x104   :  { %v4855_v55 = vcombine.high %v4847_v3, %v4847_v3  ;;  %v5765_v45 = vsel %vm2718_vm0, %v4847_v3, 0.0  ;;  %v2308_v53 = vcombine.high %v7904_v29, %v7904_v29  ;;  %v7927_v22 = vrot.slane %v7701_v11, %v6294_v20 }
 0x105   :  { %v2343_v25 = vcombine.high %v7710_v33, %v7710_v33  ;;  %v2939_v13 = vadd.f32 %v2938_v31, %v2937_v51  ;;  %v2324_v46 = vcombine.high %v7908_v32, %v7908_v32  ;;  %v2325_v42 = vcombine.high %v7913_v8, %v7913_v8 }
 0x106   :  { %v7936_v30 = vrot.slane %v2326_v59, %v6294_v20  ;;  %v2942_v1 = vsel %vm2718_vm0, %v7820_v52, 0.0  ;;  %v7942_v11 = vrot.slane %v7710_v33, %v6294_v20  ;;  %v2360_v47 = vcombine.high %v7728_v39, %v7728_v39 }
 0x107   :  { %v2941_v36 = vadd.f32 %v2940_v26, %v2939_v13  ;;  %v5766_v18 = vadd.f32 %v5765_v45, %v5764_v62  ;;  %v2944_v3 = vsel %vm2718_vm0, %v2256_v12, 0.0  ;;  %v3963_v10 = vcombine.low %v3955_v56, %v3962_v38 }
 0x108   :  { %v4854_v48 = vrot.slane %v4840_v21, %v6294_v20  ;;  %v5767_v59 = vsel %vm2718_vm0, %v4855_v55, 0.0  ;;  %v2341_v31 = vcombine.high %v7927_v22, %v7927_v22  ;;  %v7955_v33 = vrot.slane %v2343_v25, %v6294_v20  ;;  %v6184_v25 = vld [vmem:[%s9071_s0 + $0x20] sm:$0xff] }
 0x109   :  { %v7959_v51 = vrot.slane %v7728_v39, %v6294_v20  ;;  %v2943_v62 = vadd.f32 %v2942_v1, %v2941_v36  ;;  %v2377_v52 = vcombine.high %v7731_v58, %v7731_v58  ;;  %v2946_v12 = vsel %vm2718_vm0, %v7831_v37, 0.0 }
 0x10a   :  { %v3238_v56 = vrot.slane %v7849_v41, %v6286_v14  ;;  %v3242_v38 = vrot.slane %v7849_v41, %v6288_v15  ;;  %v3246_v21 = vrot.slane %v7849_v41, %v6290_v16  ;;  %v3250_v39 = vrot.slane %v7849_v41, %v6292_v17 }
 0x10b   :  { %v2945_v26 = vadd.f32 %v2944_v3, %v2943_v62  ;;  %v5768_v55 = vadd.f32 %v5767_v59, %v5766_v18  ;;  %v2948_v45 = vsel %vm2718_vm0, %v2257_v28, 0.0  ;;  %v4701_v13 = vmul.f32 %v6184_v25, %v3963_v10 }
 0x10c   :  { %v4856_v1 = vcombine.high %v4854_v48, %v4854_v48  ;;  %v5769_v36 = vsel %vm2718_vm0, %v4854_v48, 0.0  ;;  %v7984_v62 = vrot.slane %v2360_v47, %v6294_v20  ;;  %v7988_v41 = vrot.slane %v7731_v58, %v6294_v20 }
 0x10d   :  { %v2947_v37 = vadd.f32 %v2946_v12, %v2945_v26  ;;  %v2358_v28 = vcombine.high %v7942_v11, %v7942_v11  ;;  %v7995_v10 = vrot.slane %v2377_v52, %v6294_v20  ;;  %v2950_v48 = vsel %vm2718_vm0, %v7844_v57, 0.0 }
 0x10e   :  { %v3964_v47 = vcombine.low %v3238_v56, %v3242_v38  ;;  %v3965_v25 = vcombine.low %v3246_v21, %v3250_v39  ;;  %v5770_v3 = vadd.f32 %v5769_v36, %v5768_v55  ;;  %v2952_v12 = vsel %vm2718_vm0, %v2273_v0, 0.0 }
 0x10f   :  { %v2949_v59 = vadd.f32 %v2948_v45, %v2947_v37  ;;  %v4864_v26 = vrot.slane %v4701_v13, %v6294_v20  ;;  %v5771_v52 = vsel %vm2718_vm0, %v4856_v1, 0.0  ;;  %v2394_v38 = vcombine.high %v7742_v19, %v7742_v19  ;;  %v8026_v1 = vld [vmem:[%s9072_s1 + $0x31] ss:$2 sm:$0xff] }
 0x110   :  { %v8017_v57 = vrot.slane %v7742_v19, %v6294_v20  ;;  %v2411_v0 = vcombine.high %v7745_v50, %v7745_v50  ;;  %v2954_v55 = vsel %vm2718_vm0, %v7857_v34, 0.0  ;;  %v3972_v36 = vrot.slane %v3964_v47, %v6294_v20 }
 0x111   :  { %v2951_v21 = vadd.f32 %v2950_v48, %v2949_v59  ;;  %v3979_v37 = vrot.slane %v3965_v25, %v6294_v20  ;;  %v5772_v48 = vadd.f32 %v5771_v52, %v5770_v3  ;;  %v2956_v19 = vsel %vm2718_vm0, %v2274_v63, 0.0 }
 0x112   :  { %v4857_v59 = vcombine.high %v4701_v13, %v4701_v13  ;;  %v4872_v39 = vcombine.high %v4864_v26, %v4864_v26  ;;  %v5773_v56 = vsel %vm2718_vm0, %v4864_v26, 0.0  ;;  %v2428_v47 = vcombine.high %v7751_v60, %v7751_v60 }
 0x113   :  { %v2953_v45 = vadd.f32 %v2952_v12, %v2951_v21  ;;  %v8036_v12 = vrot.slane %v2394_v38, %v6294_v20  ;;  %v8040_v21 = vrot.slane %v7745_v50, %v6294_v20  ;;  %v2958_v63 = vsel %vm2718_vm0, %v7863_v23, 0.0 }
 0x114   :  { %v3254_v13 = vrot.slane %v8026_v1, %v6271_v4  ;;  %v3258_v25 = vrot.slane %v8026_v1, %v6273_v5  ;;  %v3262_v50 = vrot.slane %v8026_v1, %v6275_v6  ;;  %v3266_v52 = vrot.slane %v8026_v1, %v6277_v7 }
 0x115   :  { %v2955_v3 = vadd.f32 %v2954_v55, %v2953_v45  ;;  %v5774_v38 = vadd.f32 %v5773_v56, %v5772_v48  ;;  %v2960_v55 = vsel %vm2718_vm0, %v2290_v2, 0.0  ;;  %v3980_v45 = vcombine.low %v3972_v36, %v3979_v37 }
 0x116   :  { %v4871_v34 = vrot.slane %v4857_v59, %v6294_v20  ;;  %v5775_v18 = vsel %vm2718_vm0, %v4872_v39, 0.0  ;;  %v8063_v58 = vrot.slane %v2411_v0, %v6294_v20  ;;  %v2445_v56 = vcombine.high %v7757_v24, %v7757_v24 }
 0x117   :  { %v2957_v26 = vadd.f32 %v2956_v19, %v2955_v3  ;;  %v8067_v19 = vrot.slane %v7751_v60, %v6294_v20  ;;  %v8076_v36 = vrot.slane %v2428_v47, %v6294_v20  ;;  %v2962_v39 = vsel %vm2718_vm0, %v7882_v9, 0.0 }
 0x118   :  { %v3981_v37 = vcombine.low %v3254_v13, %v3258_v25  ;;  %v3982_v60 = vcombine.low %v3262_v50, %v3266_v52  ;;  %v5776_v59 = vadd.f32 %v5775_v18, %v5774_v38  ;;  %v2964_v3 = vsel %vm2718_vm0, %v2291_v43, 0.0 }
 0x119   :  { %v2959_v48 = vadd.f32 %v2958_v63, %v2957_v26  ;;  %v6185_v63 = vld [vmem:[%s9071_s0 + $0x28] sm:$0xff]  ;;  %v4873_v2 = vcombine.high %v4871_v34, %v4871_v34  ;;  %v5777_v47 = vsel %vm2718_vm0, %v4871_v34, 0.0  ;;  %v8092_v13 = vrot.slane %v7757_v24, %v6294_v20 }
 0x11a   :  { %v4702_v26 = vmul.f32 %v6185_v63, %v3980_v45  ;;  %v3270_v9 = vrot.slane %v8026_v1, %v6286_v14  ;;  %v2966_v43 = vsel %vm2718_vm0, %v7890_v49, 0.0  ;;  %v3274_v25 = vrot.slane %v8026_v1, %v6288_v15 }
 0x11b   :  { %v2961_v0 = vadd.f32 %v2960_v55, %v2959_v48  ;;  %v3278_v34 = vrot.slane %v8026_v1, %v6290_v16  ;;  %v3282_v50 = vrot.slane %v8026_v1, %v6292_v17  ;;  %v3989_v24 = vrot.slane %v3981_v37, %v6294_v20 }
 0x11c   :  { %v3996_v38 = vrot.slane %v3982_v60, %v6294_v20  ;;  %v5778_v55 = vadd.f32 %v5777_v47, %v5776_v59  ;;  %v2968_v48 = vsel %vm2718_vm0, %v2307_v35, 0.0  ;;  %v8117_v37 = vrot.slane %v2445_v56, %v6294_v20 }
 0x11d   :  { %v2963_v18 = vadd.f32 %v2962_v39, %v2961_v0  ;;  %v4881_v39 = vrot.slane %v4702_v26, %v6294_v20  ;;  %v5779_v0 = vsel %vm2718_vm0, %v4873_v2, 0.0  ;;  %v2462_v60 = vcombine.high %v7760_v54, %v7760_v54  ;;  %v8132_v2 = vld [vmem:[%s9072_s1 + $0x41] ss:$2 sm:$0xff] }
 0x11e   :  { %v8125_v49 = vrot.slane %v7760_v54, %v6294_v20  ;;  %v2970_v35 = vsel %vm2718_vm0, %v7904_v29, 0.0  ;;  %v3998_v56 = vcombine.low %v3270_v9, %v3274_v25  ;;  %v3997_v47 = vcombine.low %v3989_v24, %v3996_v38 }
 0x11f   :  { %v2965_v52 = vadd.f32 %v2964_v3, %v2963_v18  ;;  %v3999_v18 = vcombine.low %v3278_v34, %v3282_v50  ;;  %v4874_v54 = vcombine.high %v4702_v26, %v4702_v26  ;;  %v4889_v3 = vcombine.high %v4881_v39, %v4881_v39 }
 0x120   :  { %v5781_v1 = vsel %vm2718_vm0, %v4881_v39, 0.0  ;;  %v2479_v23 = vcombine.high %v7787_v27, %v7787_v27  ;;  %v3286_v25 = vrot.slane %v8132_v2, %v6271_v4  ;;  %v2974_v34 = vsel %vm2718_vm0, %v7908_v32, 0.0  ;;  %v6186_v39 = vld [vmem:[%s9071_s0 + $0x30] sm:$0xff] }
 0x121   :  { %v2967_v59 = vadd.f32 %v2966_v43, %v2965_v52  ;;  %v5780_v43 = vadd.f32 %v5779_v0, %v5778_v55  ;;  %v2972_v52 = vsel %vm2718_vm0, %v2308_v53, 0.0  ;;  %v3290_v29 = vrot.slane %v8132_v2, %v6273_v5 }
 0x122   :  { %v3294_v53 = vrot.slane %v8132_v2, %v6275_v6  ;;  %v3298_v26 = vrot.slane %v8132_v2, %v6277_v7  ;;  %v4006_v24 = vrot.slane %v3998_v56, %v6294_v20  ;;  %v4013_v38 = vrot.slane %v3999_v18, %v6294_v20 }
 0x123   :  { %v2969_v63 = vadd.f32 %v2968_v48, %v2967_v59  ;;  %v5782_v55 = vadd.f32 %v5781_v1, %v5780_v43  ;;  %v2976_v48 = vsel %vm2718_vm0, %v2324_v46, 0.0  ;;  %v4703_v0 = vmul.f32 %v6186_v39, %v3997_v47 }
 0x124   :  { %v4888_v59 = vrot.slane %v4874_v54, %v6294_v20  ;;  %v8169_v1 = vrot.slane %v7787_v27, %v6294_v20  ;;  %v2496_v32 = vcombine.high %v7790_v61, %v7790_v61  ;;  %v2978_v47 = vsel %vm2718_vm0, %v7913_v8, 0.0 }
 0x125   :  { %v2971_v9 = vadd.f32 %v2970_v35, %v2969_v63  ;;  %v5783_v35 = vsel %vm2718_vm0, %v4889_v3, 0.0  ;;  %v8165_v63 = vrot.slane %v2462_v60, %v6294_v20  ;;  %v4015_v18 = vcombine.low %v3286_v25, %v3290_v29 }
 0x126   :  { %v4016_v43 = vcombine.low %v3294_v53, %v3298_v26  ;;  %v4891_v60 = vcombine.high %v4703_v0, %v4703_v0  ;;  %v5784_v54 = vadd.f32 %v5783_v35, %v5782_v55  ;;  %v2980_v27 = vsel %vm2718_vm0, %v2325_v42, 0.0  ;;  %v8195_v42 = vld [vmem:[%s9072_s1 + $0x51] ss:$2 sm:$0xff] }
 0x127   :  { %v2973_v50 = vadd.f32 %v2972_v52, %v2971_v9  ;;  %v4014_v52 = vcombine.low %v4006_v24, %v4013_v38  ;;  %v4890_v9 = vcombine.high %v4888_v59, %v4888_v59  ;;  %v8184_v39 = vrot.slane %v2479_v23, %v6294_v20  ;;  %v6187_v55 = vld [vmem:[%s9071_s0 + $0x38] sm:$0xff] }
 0x128   :  { %v3302_v25 = vrot.slane %v8132_v2, %v6286_v14  ;;  %v3306_v29 = vrot.slane %v8132_v2, %v6288_v15  ;;  %v2982_v8 = vsel %vm2718_vm0, %v7927_v22, 0.0  ;;  %v3310_v53 = vrot.slane %v8132_v2, %v6290_v16 }
 0x129   :  { %v2975_v46 = vadd.f32 %v2974_v34, %v2973_v50  ;;  %v4898_v34 = vrot.slane %v4703_v0, %v6294_v20  ;;  %v5785_v50 = vsel %vm2718_vm0, %v4888_v59, 0.0  ;;  %v3314_v23 = vrot.slane %v8132_v2, %v6292_v17 }
 0x12a   :  { %v4023_v26 = vrot.slane %v4015_v18, %v6294_v20  ;;  %v4030_v38 = vrot.slane %v4016_v43, %v6294_v20  ;;  %v5786_v0 = vadd.f32 %v5785_v50, %v5784_v54  ;;  %v2984_v59 = vsel %vm2718_vm0, %v2341_v31, 0.0 }
 0x12b   :  { %v2977_v3 = vadd.f32 %v2976_v48, %v2975_v46  ;;  %v4704_v48 = vmul.f32 %v6187_v55, %v4014_v52  ;;  %v4905_v35 = vrot.slane %v4891_v60, %v6294_v20  ;;  %v4906_v46 = vcombine.high %v4898_v34, %v4898_v34 }
 0x12c   :  { %v5787_v2 = vsel %vm2718_vm0, %v4890_v9, 0.0  ;;  %v3318_v43 = vrot.slane %v8195_v42, %v6271_v4  ;;  %v2986_v22 = vsel %vm2718_vm0, %v7936_v30, 0.0  ;;  %v4032_v31 = vcombine.low %v3302_v25, %v3306_v29 }
 0x12d   :  { %v2979_v56 = vadd.f32 %v2978_v47, %v2977_v3  ;;  %v4033_v3 = vcombine.low %v3310_v53, %v3314_v23  ;;  %v5789_v52 = vsel %vm2718_vm0, %v4898_v34, 0.0  ;;  %v4031_v54 = vcombine.low %v4023_v26, %v4030_v38 }
 0x12e   :  { %v5788_v9 = vadd.f32 %v5787_v2, %v5786_v0  ;;  %v9184_v50 = vcombine.high %v7936_v30, %v7936_v30  ;;  %v5791_v45 = vsel %vm2718_vm0, %v4906_v46, 0.0  ;;  %v3322_v25 = vrot.slane %v8195_v42, %v6273_v5  ;;  %v6188_v0 = vld [vmem:[%s9071_s0 + $0x40] sm:$0xff] }
 0x12f   :  { %v2981_v24 = vadd.f32 %v2980_v27, %v2979_v56  ;;  %v8214_v56 = vrot.slane %v7790_v61, %v6294_v20  ;;  %v4908_v27 = vcombine.high %v4704_v48, %v4704_v48  ;;  %v3326_v34 = vrot.slane %v8195_v42, %v6275_v6 }
 0x130   :  { %v2988_v55 = vsel %vm2718_vm0, %v9184_v50, 0.0  ;;  %v5790_v29 = vadd.f32 %v5789_v52, %v5788_v9  ;;  %v2990_v53 = vsel %vm2718_vm0, %v7942_v11, 0.0  ;;  %v3330_v30 = vrot.slane %v8195_v42, %v6277_v7 }
 0x131   :  { %v2983_v18 = vadd.f32 %v2982_v8, %v2981_v24  ;;  %v4907_v8 = vcombine.high %v4905_v35, %v4905_v35  ;;  %v4915_v24 = vrot.slane %v4704_v48, %v6294_v20  ;;  %v4040_v23 = vrot.slane %v4032_v31, %v6294_v20 }
 0x132   :  { %v5793_v26 = vsel %vm2718_vm0, %v4905_v35, 0.0  ;;  %v4047_v48 = vrot.slane %v4033_v3, %v6294_v20  ;;  %v5792_v46 = vadd.f32 %v5791_v45, %v5790_v29  ;;  %v2992_v2 = vsel %vm2718_vm0, %v2358_v28, 0.0 }
 0x133   :  { %v2985_v60 = vadd.f32 %v2984_v59, %v2983_v18  ;;  %v4705_v59 = vmul.f32 %v6188_v0, %v4031_v54  ;;  %v4922_v18 = vrot.slane %v4908_v27, %v6294_v20  ;;  %v5795_v31 = vsel %vm2718_vm0, %v4907_v8, 0.0 }
 0x134   :  { %v2478_v35 = vcombine.high %v8165_v63, %v8165_v63  ;;  %v3334_v3 = vrot.slane %v8195_v42, %v6286_v14  ;;  %v5794_v52 = vadd.f32 %v5793_v26, %v5792_v46  ;;  %v2994_v45 = vsel %vm2718_vm0, %v7955_v33, 0.0  ;;  %v6189_v46 = vld [vmem:[%s9071_s0 + $0x48] sm:$0xff] }
 0x135   :  { %v2987_v47 = vadd.f32 %v2986_v22, %v2985_v60  ;;  %v4923_v22 = vcombine.high %v4915_v24, %v4915_v24  ;;  %v4049_v60 = vcombine.low %v3318_v43, %v3322_v25  ;;  %v4050_v11 = vcombine.low %v3326_v34, %v3330_v30 }
 0x136   :  { %v5797_v28 = vsel %vm2718_vm0, %v4915_v24, 0.0  ;;  %v4048_v27 = vcombine.low %v4040_v23, %v4047_v48  ;;  %v4925_v9 = vcombine.high %v4705_v59, %v4705_v59  ;;  %v5796_v50 = vadd.f32 %v5795_v31, %v5794_v52 }
 0x137   :  { %v2989_v38 = vadd.f32 %v2988_v55, %v2987_v47  ;;  %v9185_v55 = vcombine.high %v7955_v33, %v7955_v33  ;;  %v4924_v29 = vcombine.high %v4922_v18, %v4922_v18  ;;  %v5799_v26 = vsel %vm2718_vm0, %v4923_v22, 0.0  ;;  %v8271_v33 = vld [vmem:[%s9072_s1 + $0x61] ss:$2 sm:$0xff] }
 0x138   :  { %v3338_v43 = vrot.slane %v8195_v42, %v6288_v15  ;;  %v3342_v24 = vrot.slane %v8195_v42, %v6290_v16  ;;  %v5798_v25 = vadd.f32 %v5797_v28, %v5796_v50  ;;  %v2998_v34 = vsel %vm2718_vm0, %v7959_v51, 0.0 }
 0x139   :  { %v2991_v47 = vadd.f32 %v2990_v53, %v2989_v38  ;;  %v2996_v8 = vsel %vm2718_vm0, %v9185_v55, 0.0  ;;  %v4932_v53 = vrot.slane %v4705_v59, %v6294_v20  ;;  %v3346_v30 = vrot.slane %v8195_v42, %v6292_v17 }
 0x13a   :  { %v4057_v23 = vrot.slane %v4049_v60, %v6294_v20  ;;  %v5801_v48 = vsel %vm2718_vm0, %v4922_v18, 0.0  ;;  %v4064_v59 = vrot.slane %v4050_v11, %v6294_v20  ;;  %v5800_v22 = vadd.f32 %v5799_v26, %v5798_v25 }
 0x13b   :  { %v2993_v54 = vadd.f32 %v2992_v2, %v2991_v47  ;;  %v4706_v2 = vmul.f32 %v6189_v46, %v4048_v27  ;;  %v9186_v31 = vcombine.high %v7959_v51, %v7959_v51  ;;  %v4939_v42 = vrot.slane %v4925_v9, %v6294_v20 }
 0x13c   :  { %v4940_v52 = vcombine.high %v4932_v53, %v4932_v53  ;;  %v2494_v18 = vcombine.high %v8169_v1, %v8169_v1  ;;  %v3350_v11 = vrot.slane %v8271_v33, %v6271_v4  ;;  %v5802_v28 = vadd.f32 %v5801_v48, %v5800_v22 }
 0x13d   :  { %v2995_v38 = vadd.f32 %v2994_v45, %v2993_v54  ;;  %v3000_v47 = vsel %vm2718_vm0, %v9186_v31, 0.0  ;;  %v5803_v45 = vsel %vm2718_vm0, %v4924_v29, 0.0  ;;  %v3002_v54 = vsel %vm2718_vm0, %v7984_v62, 0.0 }
 0x13e   :  { %v4066_v27 = vcombine.low %v3334_v3, %v3338_v43  ;;  %v4067_v51 = vcombine.low %v3342_v24, %v3346_v30  ;;  %v5805_v50 = vsel %vm2718_vm0, %v4932_v53, 0.0  ;;  %v4065_v9 = vcombine.low %v4057_v23, %v4064_v59 }
 0x13f   :  { %v2997_v0 = vadd.f32 %v2996_v8, %v2995_v38  ;;  %v4942_v8 = vcombine.high %v4706_v2, %v4706_v2  ;;  %v5804_v26 = vadd.f32 %v5803_v45, %v5802_v28  ;;  %v9187_v29 = vcombine.high %v7984_v62, %v7984_v62 }
 0x140   :  { %v4941_v25 = vcombine.high %v4939_v42, %v4939_v42  ;;  %v5807_v48 = vsel %vm2718_vm0, %v4940_v52, 0.0  ;;  %v3354_v3 = vrot.slane %v8271_v33, %v6273_v5  ;;  %v3358_v53 = vrot.slane %v8271_v33, %v6275_v6 }
 0x141   :  { %v2999_v60 = vadd.f32 %v2998_v34, %v2997_v0  ;;  %v3004_v38 = vsel %vm2718_vm0, %v9187_v29, 0.0  ;;  %v4949_v34 = vrot.slane %v4706_v2, %v6294_v20  ;;  %v5806_v43 = vadd.f32 %v5805_v50, %v5804_v26  ;;  %v6190_v2 = vld [vmem:[%s9071_s0 + $0x50] sm:$0xff] }
 0x142   :  { %v3006_v24 = vsel %vm2718_vm0, %v7988_v41, 0.0  ;;  %v3362_v62 = vrot.slane %v8271_v33, %v6277_v7  ;;  %v4074_v30 = vrot.slane %v4066_v27, %v6294_v20  ;;  %v5809_v23 = vsel %vm2718_vm0, %v4939_v42, 0.0 }
 0x143   :  { %v3001_v55 = vadd.f32 %v3000_v47, %v2999_v60  ;;  %v4081_v46 = vrot.slane %v4067_v51, %v6294_v20  ;;  %v4707_v22 = vmul.f32 %v6190_v2, %v4065_v9  ;;  %v5808_v31 = vadd.f32 %v5807_v48, %v5806_v43 }
 0x144   :  { %v9188_v47 = vcombine.high %v7988_v41, %v7988_v41  ;;  %v4956_v45 = vrot.slane %v4942_v8, %v6294_v20  ;;  %v4957_v60 = vcombine.high %v4949_v34, %v4949_v34  ;;  %v5811_v28 = vsel %vm2718_vm0, %v4941_v25, 0.0 }
 0x145   :  { %v3003_v0 = vadd.f32 %v3002_v54, %v3001_v55  ;;  %v8324_v42 = vrot.slane %v2496_v32, %v6294_v20  ;;  %v3366_v27 = vrot.slane %v8271_v33, %v6286_v14  ;;  %v5810_v51 = vadd.f32 %v5809_v23, %v5808_v31 }
 0x146   :  { %v3008_v52 = vsel %vm2718_vm0, %v9188_v47, 0.0  ;;  %v3010_v41 = vsel %vm2718_vm0, %v7995_v10, 0.0  ;;  %v4083_v50 = vcombine.low %v3350_v11, %v3354_v3  ;;  %v4084_v55 = vcombine.low %v3358_v53, %v3362_v62  ;;  %v6191_v47 = vld [vmem:[%s9071_s0 + $0x58] sm:$0xff] }
 0x147   :  { %v3005_v59 = vadd.f32 %v3004_v38, %v3003_v0  ;;  %v5813_v9 = vsel %vm2718_vm0, %v4949_v34, 0.0  ;;  %v4082_v26 = vcombine.low %v4074_v30, %v4081_v46  ;;  %v4959_v29 = vcombine.high %v4707_v22, %v4707_v22 }
 0x148   :  { %v5812_v38 = vadd.f32 %v5811_v28, %v5810_v51  ;;  %v9189_v61 = vcombine.high %v7995_v10, %v7995_v10  ;;  %v4958_v25 = vcombine.high %v4956_v45, %v4956_v45  ;;  %v4966_v48 = vrot.slane %v4707_v22, %v6294_v20  ;;  %v8346_v10 = vld [vmem:[%s9072_s1 + $0x71] ss:$2 sm:$0xff] }
 0x149   :  { %v3007_v54 = vadd.f32 %v3006_v24, %v3005_v59  ;;  %v5815_v0 = vsel %vm2718_vm0, %v4957_v60, 0.0  ;;  %v3370_v11 = vrot.slane %v8271_v33, %v6288_v15  ;;  %v3374_v34 = vrot.slane %v8271_v33, %v6290_v16 }
 0x14a   :  { %v3012_v32 = vsel %vm2718_vm0, %v9189_v61, 0.0  ;;  %v5814_v3 = vadd.f32 %v5813_v9, %v5812_v38  ;;  %v3014_v53 = vsel %vm2718_vm0, %v8017_v57, 0.0  ;;  %v3378_v24 = vrot.slane %v8271_v33, %v6292_v17 }
 0x14b   :  { %v3009_v8 = vadd.f32 %v3008_v52, %v3007_v54  ;;  %v4091_v62 = vrot.slane %v4083_v50, %v6294_v20  ;;  %v5817_v30 = vsel %vm2718_vm0, %v4956_v45, 0.0  ;;  %v4098_v59 = vrot.slane %v4084_v55, %v6294_v20 }
 0x14c   :  { %v4973_v46 = vrot.slane %v4959_v29, %v6294_v20  ;;  %v5816_v2 = vadd.f32 %v5815_v0, %v5814_v3  ;;  %v9190_v22 = vcombine.high %v8017_v57, %v8017_v57  ;;  %v4708_v33 = vmul.f32 %v6191_v47, %v4082_v26 }
 0x14d   :  { %v3011_v43 = vadd.f32 %v3010_v41, %v3009_v8  ;;  %v4974_v52 = vcombine.high %v4966_v48, %v4966_v48  ;;  %v5819_v60 = vsel %vm2718_vm0, %v4958_v25, 0.0  ;;  %v8364_v45 = vrot.slane %v7795_v40, %v6294_v20 }
 0x14e   :  { %v3016_v31 = vsel %vm2718_vm0, %v9190_v22, 0.0  ;;  %v3382_v54 = vrot.slane %v8346_v10, %v6271_v4  ;;  %v5818_v51 = vadd.f32 %v5817_v30, %v5816_v2  ;;  %v3018_v57 = vsel %vm2718_vm0, %v8036_v12, 0.0  ;;  %v6192_v30 = vld [vmem:[%s9071_s0 + $0x60] sm:$0xff] }
 0x14f   :  { %v3013_v23 = vadd.f32 %v3012_v32, %v3011_v43  ;;  %v4100_v41 = vcombine.low %v3366_v27, %v3370_v11  ;;  %v4101_v50 = vcombine.low %v3374_v34, %v3378_v24  ;;  %v5821_v55 = vsel %vm2718_vm0, %v4966_v48, 0.0 }
 0x150   :  { %v4099_v8 = vcombine.low %v4091_v62, %v4098_v59  ;;  %v4975_v26 = vcombine.high %v4973_v46, %v4973_v46  ;;  %v5820_v29 = vadd.f32 %v5819_v60, %v5818_v51  ;;  %v9191_v38 = vcombine.high %v8036_v12, %v8036_v12 }
 0x151   :  { %v3015_v28 = vadd.f32 %v3014_v53, %v3013_v23  ;;  %v4976_v32 = vcombine.high %v4708_v33, %v4708_v33  ;;  %v4983_v25 = vrot.slane %v4708_v33, %v6294_v20  ;;  %v5823_v0 = vsel %vm2718_vm0, %v4974_v52, 0.0 }
 0x152   :  { %v3020_v61 = vsel %vm2718_vm0, %v9191_v38, 0.0  ;;  %v3386_v27 = vrot.slane %v8346_v10, %v6273_v5  ;;  %v3390_v48 = vrot.slane %v8346_v10, %v6275_v6  ;;  %v5822_v11 = vadd.f32 %v5821_v55, %v5820_v29 }
 0x153   :  { %v3017_v9 = vadd.f32 %v3016_v31, %v3015_v28  ;;  %v3022_v34 = vsel %vm2718_vm0, %v8040_v21, 0.0  ;;  %v3394_v12 = vrot.slane %v8346_v10, %v6277_v7  ;;  %v4108_v3 = vrot.slane %v4100_v41, %v6294_v20 }
 0x154   :  { %v5825_v53 = vsel %vm2718_vm0, %v4973_v46, 0.0  ;;  %v4115_v62 = vrot.slane %v4101_v50, %v6294_v20  ;;  %v4709_v23 = vmul.f32 %v6192_v30, %v4099_v8  ;;  %v5824_v59 = vadd.f32 %v5823_v0, %v5822_v11 }
 0x155   :  { %v3019_v43 = vadd.f32 %v3018_v57, %v3017_v9  ;;  %v9192_v2 = vcombine.high %v8040_v21, %v8040_v21  ;;  %v4990_v31 = vrot.slane %v4976_v32, %v6294_v20  ;;  %v4991_v47 = vcombine.high %v4983_v25, %v4983_v25 }
 0x156   :  { %v5827_v33 = vsel %vm2718_vm0, %v4975_v26, 0.0  ;;  %v2495_v46 = vcombine.high %v8184_v39, %v8184_v39  ;;  %v3398_v60 = vrot.slane %v8346_v10, %v6286_v14  ;;  %v5826_v28 = vadd.f32 %v5825_v53, %v5824_v59  ;;  %v6193_v53 = vld [vmem:[%s9071_s0 + $0x68] sm:$0xff] }
 0x157   :  { %v3021_v24 = vadd.f32 %v3020_v61, %v3019_v43  ;;  %v3024_v22 = vsel %vm2718_vm0, %v9192_v2, 0.0  ;;  %v3026_v51 = vsel %vm2718_vm0, %v8063_v58, 0.0  ;;  %v4117_v57 = vcombine.low %v3382_v54, %v3386_v27 }
 0x158   :  { %v4118_v21 = vcombine.low %v3390_v48, %v3394_v12  ;;  %v5829_v41 = vsel %vm2718_vm0, %v4983_v25, 0.0  ;;  %v4116_v55 = vcombine.low %v4108_v3, %v4115_v62  ;;  %v4993_v9 = vcombine.high %v4709_v23, %v4709_v23 }
 0x159   :  { %v3023_v52 = vadd.f32 %v3022_v34, %v3021_v24  ;;  %v5828_v8 = vadd.f32 %v5827_v33, %v5826_v28  ;;  %v9193_v26 = vcombine.high %v8063_v58, %v8063_v58  ;;  %v4992_v38 = vcombine.high %v4990_v31, %v4990_v31  ;;  %v8419_v58 = vld [vmem:[%s9072_s1 + $0x81] ss:$2 sm:$0xff] }
 0x15a   :  { %v5000_v61 = vrot.slane %v4709_v23, %v6294_v20  ;;  %v5831_v32 = vsel %vm2718_vm0, %v4991_v47, 0.0  ;;  %v3402_v54 = vrot.slane %v8346_v10, %v6288_v15  ;;  %v3406_v25 = vrot.slane %v8346_v10, %v6290_v16 }
 0x15b   :  { %v3025_v50 = vadd.f32 %v3024_v22, %v3023_v52  ;;  %v3028_v29 = vsel %vm2718_vm0, %v9193_v26, 0.0  ;;  %v5830_v43 = vadd.f32 %v5829_v41, %v5828_v8  ;;  %v3030_v27 = vsel %vm2718_vm0, %v8067_v19, 0.0 }
 0x15c   :  { %v3410_v48 = vrot.slane %v8346_v10, %v6292_v17  ;;  %v4125_v11 = vrot.slane %v4117_v57, %v6294_v20  ;;  %v5833_v34 = vsel %vm2718_vm0, %v4990_v31, 0.0  ;;  %v4132_v3 = vrot.slane %v4118_v21, %v6294_v20 }
 0x15d   :  { %v3027_v0 = vadd.f32 %v3026_v51, %v3025_v50  ;;  %v4710_v24 = vmul.f32 %v6193_v53, %v4116_v55  ;;  %v5832_v62 = vadd.f32 %v5831_v32, %v5830_v43  ;;  %v9194_v30 = vcombine.high %v8067_v19, %v8067_v19 }
 0x15e   :  { %v5007_v10 = vrot.slane %v4993_v9, %v6294_v20  ;;  %v5008_v59 = vcombine.high %v5000_v61, %v5000_v61  ;;  %v5835_v2 = vsel %vm2718_vm0, %v4992_v38, 0.0  ;;  %v2511_v22 = vcombine.high %v8214_v56, %v8214_v56 }
 0x15f   :  { %v3029_v12 = vadd.f32 %v3028_v29, %v3027_v0  ;;  %v3032_v23 = vsel %vm2718_vm0, %v9194_v30, 0.0  ;;  %v3414_v47 = vrot.slane %v8419_v58, %v6271_v4  ;;  %v5834_v33 = vadd.f32 %v5833_v34, %v5832_v62 }
 0x160   :  { %v3034_v52 = vsel %vm2718_vm0, %v8076_v36, 0.0  ;;  %v4134_v28 = vcombine.low %v3398_v60, %v3402_v54  ;;  %v4135_v19 = vcombine.low %v3406_v25, %v3410_v48  ;;  %v5837_v51 = vsel %vm2718_vm0, %v5000_v61, 0.0  ;;  %v6194_v48 = vld [vmem:[%s9071_s0 + $0x70] sm:$0xff] }
 0x161   :  { %v3031_v31 = vadd.f32 %v3030_v27, %v3029_v12  ;;  %v4133_v21 = vcombine.low %v4125_v11, %v4132_v3  ;;  %v5010_v41 = vcombine.high %v4710_v24, %v4710_v24  ;;  %v5836_v50 = vadd.f32 %v5835_v2, %v5834_v33 }
 0x162   :  { %v9195_v55 = vcombine.high %v8076_v36, %v8076_v36  ;;  %v5009_v8 = vcombine.high %v5007_v10, %v5007_v10  ;;  %v5017_v26 = vrot.slane %v4710_v24, %v6294_v20  ;;  %v5839_v29 = vsel %vm2718_vm0, %v5008_v59, 0.0 }
 0x163   :  { %v3033_v57 = vadd.f32 %v3032_v23, %v3031_v31  ;;  %v3418_v60 = vrot.slane %v8419_v58, %v6273_v5  ;;  %v3422_v61 = vrot.slane %v8419_v58, %v6275_v6  ;;  %v5838_v32 = vadd.f32 %v5837_v51, %v5836_v50 }
 0x164   :  { %v3036_v9 = vsel %vm2718_vm0, %v9195_v55, 0.0  ;;  %v3038_v0 = vsel %vm2718_vm0, %v8092_v13, 0.0  ;;  %v3426_v36 = vrot.slane %v8419_v58, %v6277_v7  ;;  %v4142_v54 = vrot.slane %v4134_v28, %v6294_v20 }
 0x165   :  { %v3035_v38 = vadd.f32 %v3034_v52, %v3033_v57  ;;  %v5841_v25 = vsel %vm2718_vm0, %v5007_v10, 0.0  ;;  %v4149_v27 = vrot.slane %v4135_v19, %v6294_v20  ;;  %v4711_v11 = vmul.f32 %v6194_v48, %v4133_v21 }
 0x166   :  { %v5840_v34 = vadd.f32 %v5839_v29, %v5838_v32  ;;  %v9196_v12 = vcombine.high %v8092_v13, %v8092_v13  ;;  %v5024_v53 = vrot.slane %v5010_v41, %v6294_v20  ;;  %v5025_v24 = vcombine.high %v5017_v26, %v5017_v26 }
 0x167   :  { %v3037_v43 = vadd.f32 %v3036_v9, %v3035_v38  ;;  %v5843_v62 = vsel %vm2718_vm0, %v5009_v8, 0.0  ;;  %v9197_v30 = vcombine.high %v7795_v40, %v7795_v40  ;;  %v3430_v59 = vrot.slane %v8419_v58, %v6286_v14 }
 0x168   :  { %v3040_v3 = vsel %vm2718_vm0, %v9196_v12, 0.0  ;;  %v5842_v2 = vadd.f32 %v5841_v25, %v5840_v34  ;;  %v3042_v13 = vsel %vm2718_vm0, %v8117_v37, 0.0  ;;  %v4151_v31 = vcombine.low %v3414_v47, %v3418_v60 }
 0x169   :  { %v8472_v23 = vrot.slane %v9197_v30, %v6294_v20  ;;  %v3039_v10 = vadd.f32 %v3038_v0, %v3037_v43  ;;  %v4152_v33 = vcombine.low %v3422_v61, %v3426_v36  ;;  %v5845_v52 = vsel %vm2718_vm0, %v5017_v26, 0.0  ;;  %v6195_v36 = vld [vmem:[%s9071_s0 + $0x78] sm:$0xff] }
 0x16a   :  { %v4150_v19 = vcombine.low %v4142_v54, %v4149_v27  ;;  %v5027_v51 = vcombine.high %v4711_v11, %v4711_v11  ;;  %v5844_v57 = vadd.f32 %v5843_v62, %v5842_v2  ;;  %v9198_v40 = vcombine.high %v8117_v37, %v8117_v37  ;;  %v8494_v37 = vld [vmem:[%s9072_s1 + $0x91] ss:$2 sm:$0xff] }
 0x16b   :  { %v3041_v28 = vadd.f32 %v3040_v3, %v3039_v10  ;;  %v5026_v41 = vcombine.high %v5024_v53, %v5024_v53  ;;  %v5034_v50 = vrot.slane %v4711_v11, %v6294_v20  ;;  %v5847_v55 = vsel %vm2718_vm0, %v5025_v24, 0.0 }
 0x16c   :  { %v3044_v21 = vsel %vm2718_vm0, %v9198_v40, 0.0  ;;  %v3434_v47 = vrot.slane %v8419_v58, %v6288_v15  ;;  %v3438_v8 = vrot.slane %v8419_v58, %v6290_v16  ;;  %v5846_v26 = vadd.f32 %v5845_v52, %v5844_v57 }
 0x16d   :  { %v3043_v9 = vadd.f32 %v3042_v13, %v3041_v28  ;;  %v3046_v29 = vsel %vm2718_vm0, %v8125_v49, 0.0  ;;  %v3442_v38 = vrot.slane %v8419_v58, %v6292_v17  ;;  %v4159_v60 = vrot.slane %v4151_v31, %v6294_v20 }
 0x16e   :  { %v5849_v61 = vsel %vm2718_vm0, %v5024_v53, 0.0  ;;  %v4166_v0 = vrot.slane %v4152_v33, %v6294_v20  ;;  %v4712_v54 = vmul.f32 %v6195_v36, %v4150_v19  ;;  %v5848_v25 = vadd.f32 %v5847_v55, %v5846_v26 }
 0x16f   :  { %v3045_v32 = vadd.f32 %v3044_v21, %v3043_v9  ;;  %v9199_v43 = vcombine.high %v8125_v49, %v8125_v49  ;;  %v5041_v58 = vrot.slane %v5027_v51, %v6294_v20  ;;  %v5042_v48 = vcombine.high %v5034_v50, %v5034_v50  ;;  %v6196_v9 = vld [vmem:[%s9071_s0 + $0x80] sm:$0xff] }
 0x170   :  { %v5851_v11 = vsel %vm2718_vm0, %v5026_v41, 0.0  ;;  %v2512_v34 = vcombine.high %v8324_v42, %v8324_v42  ;;  %v3446_v3 = vrot.slane %v8494_v37, %v6271_v4  ;;  %v5850_v53 = vadd.f32 %v5849_v61, %v5848_v25 }
 0x171   :  { %v3048_v27 = vsel %vm2718_vm0, %v9199_v43, 0.0  ;;  %v3047_v12 = vadd.f32 %v3046_v29, %v3045_v32  ;;  %v3050_v24 = vsel %vm2718_vm0, %v8165_v63, 0.0  ;;  %v4168_v62 = vcombine.low %v3430_v59, %v3434_v47 }
 0x172   :  { %v4169_v49 = vcombine.low %v3438_v8, %v3442_v38  ;;  %v5853_v30 = vsel %vm2718_vm0, %v5034_v50, 0.0  ;;  %v4167_v2 = vcombine.low %v4159_v60, %v4166_v0  ;;  %v5044_v13 = vcombine.high %v4712_v54, %v4712_v54 }
 0x173   :  { %v3049_v10 = vadd.f32 %v3048_v27, %v3047_v12  ;;  %v5852_v31 = vadd.f32 %v5851_v11, %v5850_v53  ;;  %v3052_v33 = vsel %vm2718_vm0, %v2478_v35, 0.0  ;;  %v5043_v52 = vcombine.high %v5041_v58, %v5041_v58 }
 0x174   :  { %v5051_v28 = vrot.slane %v4712_v54, %v6294_v20  ;;  %v5855_v19 = vsel %vm2718_vm0, %v5042_v48, 0.0  ;;  %v3450_v59 = vrot.slane %v8494_v37, %v6273_v5  ;;  %v3454_v57 = vrot.slane %v8494_v37, %v6275_v6 }
 0x175   :  { %v3051_v51 = vadd.f32 %v3050_v24, %v3049_v10  ;;  %v5854_v40 = vadd.f32 %v5853_v30, %v5852_v31  ;;  %v3054_v21 = vsel %vm2718_vm0, %v8169_v1, 0.0  ;;  %v3458_v63 = vrot.slane %v8494_v37, %v6277_v7 }
 0x176   :  { %v4176_v35 = vrot.slane %v4168_v62, %v6294_v20  ;;  %v5857_v41 = vsel %vm2718_vm0, %v5041_v58, 0.0  ;;  %v4183_v55 = vrot.slane %v4169_v49, %v6294_v20  ;;  %v4713_v47 = vmul.f32 %v6196_v9, %v4167_v2 }
 0x177   :  { %v3053_v50 = vadd.f32 %v3052_v33, %v3051_v51  ;;  %v5856_v8 = vadd.f32 %v5855_v19, %v5854_v40  ;;  %v3056_v26 = vsel %vm2718_vm0, %v2494_v18, 0.0  ;;  %v5058_v29 = vrot.slane %v5044_v13, %v6294_v20 }
 0x178   :  { %v5059_v38 = vcombine.high %v5051_v28, %v5051_v28  ;;  %v5859_v60 = vsel %vm2718_vm0, %v5043_v52, 0.0  ;;  %v2528_v61 = vcombine.high %v8364_v45, %v8364_v45  ;;  %v3462_v0 = vrot.slane %v8494_v37, %v6286_v14  ;;  %v6197_v52 = vld [vmem:[%s9071_s0 + $0x88] sm:$0xff] }
 0x179   :  { %v3055_v32 = vadd.f32 %v3054_v21, %v3053_v50  ;;  %v5858_v36 = vadd.f32 %v5857_v41, %v5856_v8  ;;  %v3058_v54 = vsel %vm2718_vm0, %v8184_v39, 0.0  ;;  %v4185_v25 = vcombine.low %v3446_v3, %v3450_v59  ;;  %v8565_v39 = vld [vmem:[%s9072_s1 + $0xa1] ss:$2 sm:$0xff] }
 0x17a   :  { %v4186_v1 = vcombine.low %v3454_v57, %v3458_v63  ;;  %v5861_v18 = vsel %vm2718_vm0, %v5051_v28, 0.0  ;;  %v4184_v27 = vcombine.low %v4176_v35, %v4183_v55  ;;  %v5061_v58 = vcombine.high %v4713_v47, %v4713_v47 }
 0x17b   :  { %v3057_v43 = vadd.f32 %v3056_v26, %v3055_v32  ;;  %v5860_v48 = vadd.f32 %v5859_v60, %v5858_v36  ;;  %v3060_v11 = vsel %vm2718_vm0, %v2495_v46, 0.0  ;;  %v5060_v12 = vcombine.high %v5058_v29, %v5058_v29 }
 0x17c   :  { %v5068_v53 = vrot.slane %v4713_v47, %v6294_v20  ;;  %v5863_v24 = vsel %vm2718_vm0, %v5059_v38, 0.0  ;;  %v3466_v3 = vrot.slane %v8494_v37, %v6288_v15  ;;  %v3470_v49 = vrot.slane %v8494_v37, %v6290_v16 }
 0x17d   :  { %v3059_v62 = vadd.f32 %v3058_v54, %v3057_v43  ;;  %v5862_v30 = vadd.f32 %v5861_v18, %v5860_v48  ;;  %v3062_v10 = vsel %vm2718_vm0, %v8214_v56, 0.0  ;;  %v3474_v46 = vrot.slane %v8494_v37, %v6292_v17 }
 0x17e   :  { %v4193_v2 = vrot.slane %v4185_v25, %v6294_v20  ;;  %v5865_v13 = vsel %vm2718_vm0, %v5058_v29, 0.0  ;;  %v4200_v33 = vrot.slane %v4186_v1, %v6294_v20  ;;  %v4714_v28 = vmul.f32 %v6197_v52, %v4184_v27  ;;  %v6198_v27 = vld [vmem:[%s9071_s0 + $0x90] sm:$0xff] }
 0x17f   :  { %v3061_v31 = vadd.f32 %v3060_v11, %v3059_v62  ;;  %v5864_v19 = vadd.f32 %v5863_v24, %v5862_v30  ;;  %v3064_v51 = vsel %vm2718_vm0, %v2511_v22, 0.0  ;;  %v5075_v37 = vrot.slane %v5061_v58, %v6294_v20 }
 0x180   :  { %v5076_v59 = vcombine.high %v5068_v53, %v5068_v53  ;;  %v5867_v57 = vsel %vm2718_vm0, %v5060_v12, 0.0  ;;  %v3478_v21 = vrot.slane %v8565_v39, %v6271_v4  ;;  %v3482_v63 = vrot.slane %v8565_v39, %v6273_v5 }
 0x181   :  { %v3063_v40 = vadd.f32 %v3062_v10, %v3061_v31  ;;  %v5866_v35 = vadd.f32 %v5865_v13, %v5864_v19  ;;  %v3066_v41 = vsel %vm2718_vm0, %v8324_v42, 0.0  ;;  %v4202_v50 = vcombine.low %v3462_v0, %v3466_v3 }
 0x182   :  { %v4203_v56 = vcombine.low %v3470_v49, %v3474_v46  ;;  %v5869_v22 = vsel %vm2718_vm0, %v5068_v53, 0.0  ;;  %v4201_v9 = vcombine.low %v4193_v2, %v4200_v33  ;;  %v5078_v47 = vcombine.high %v4714_v28, %v4714_v28 }
 0x183   :  { %v3065_v55 = vadd.f32 %v3064_v51, %v3063_v40  ;;  %v5868_v8 = vadd.f32 %v5867_v57, %v5866_v35  ;;  %v3068_v26 = vsel %vm2718_vm0, %v2512_v34, 0.0  ;;  %v5077_v29 = vcombine.high %v5075_v37, %v5075_v37 }
 0x184   :  { %v5085_v38 = vrot.slane %v4714_v28, %v6294_v20  ;;  %v5871_v60 = vsel %vm2718_vm0, %v5076_v59, 0.0  ;;  %v3486_v0 = vrot.slane %v8565_v39, %v6275_v6  ;;  %v3490_v36 = vrot.slane %v8565_v39, %v6277_v7 }
 0x185   :  { %v3067_v32 = vadd.f32 %v3066_v41, %v3065_v55  ;;  %v5870_v54 = vadd.f32 %v5869_v22, %v5868_v8  ;;  %v3070_v25 = vsel %vm2718_vm0, %v8364_v45, 0.0  ;;  %v4210_v42 = vrot.slane %v4202_v50, %v6294_v20 }
 0x186   :  { %v4217_v34 = vrot.slane %v4203_v56, %v6294_v20  ;;  %v5873_v1 = vsel %vm2718_vm0, %v5075_v37, 0.0  ;;  %v2529_v18 = vcombine.high %v8472_v23, %v8472_v23  ;;  %v4715_v58 = vmul.f32 %v6198_v27, %v4201_v9  ;;  %v6199_v56 = vld [vmem:[%s9071_s0 + $0x98] sm:$0xff] }
 0x187   :  { %v3069_v43 = vadd.f32 %v3068_v26, %v3067_v32  ;;  %v5872_v48 = vadd.f32 %v5871_v60, %v5870_v54  ;;  %v3072_v11 = vsel %vm2718_vm0, %v2528_v61, 0.0  ;;  %v5092_v12 = vrot.slane %v5078_v47, %v6294_v20 }
 0x188   :  { %v5093_v53 = vcombine.high %v5085_v38, %v5085_v38  ;;  %v5875_v24 = vsel %vm2718_vm0, %v5077_v29, 0.0  ;;  %v2536_v62 = vrot.slane %v7828_v44, %v6294_v20  ;;  %v4219_v49 = vcombine.low %v3478_v21, %v3482_v63  ;;  %v6165_v29 = vld [vmem:[%s9072_s1 + $0xb1] ss:$2 sm:$0xff] }
 0x189   :  { %v3071_v3 = vadd.f32 %v3070_v25, %v3069_v43  ;;  %v5874_v30 = vadd.f32 %v5873_v1, %v5872_v48  ;;  %v3074_v10 = vsel %vm2718_vm0, %v8472_v23, 0.0  ;;  %v4218_v46 = vcombine.low %v4210_v42, %v4217_v34 }
 0x18a   :  { %v4220_v2 = vcombine.low %v3486_v0, %v3490_v36  ;;  %v5877_v45 = vsel %vm2718_vm0, %v5085_v38, 0.0  ;;  %v5095_v61 = vcombine.high %v4715_v58, %v4715_v58  ;;  %v3076_v33 = vsel %vm2718_vm0, %v2529_v18, 0.0 }
 0x18b   :  { %v3073_v13 = vadd.f32 %v3072_v11, %v3071_v3  ;;  %v5876_v31 = vadd.f32 %v5875_v24, %v5874_v30  ;;  %v5094_v52 = vcombine.high %v5092_v12, %v5092_v12  ;;  %v5102_v28 = vrot.slane %v4715_v58, %v6294_v20 }
 0x18c   :  { %v5879_v44 = vsel %vm2718_vm0, %v5093_v53, 0.0  ;;  %v3494_v51 = vrot.slane %v8565_v39, %v6286_v14  ;;  %v3498_v23 = vrot.slane %v8565_v39, %v6288_v15  ;;  %v3079_v59 = vsel %vm3078_vm1, %v2536_v62, 0.0  ;;  %v6200_v53 = vld [vmem:[%s9071_s0 + $0xa0] sm:$0xff] }
 0x18d   :  { %v3075_v19 = vadd.f32 %v3074_v10, %v3073_v13  ;;  %v5878_v37 = vadd.f32 %v5877_v45, %v5876_v31  ;;  %v3502_v57 = vrot.slane %v8565_v39, %v6290_v16  ;;  %v3506_v40 = vrot.slane %v8565_v39, %v6292_v17 }
 0x18e   :  { %v5881_v21 = vsel %vm2718_vm0, %v5092_v12, 0.0  ;;  %v4227_v35 = vrot.slane %v4219_v49, %v6294_v20  ;;  %v4234_v41 = vrot.slane %v4220_v2, %v6294_v20  ;;  %v4716_v22 = vmul.f32 %v6199_v56, %v4218_v46 }
 0x18f   :  { %v3077_v63 = vadd.f32 %v3076_v33, %v3075_v19  ;;  %v5880_v50 = vadd.f32 %v5879_v44, %v5878_v37  ;;  %v5109_v55 = vrot.slane %v5095_v61, %v6294_v20  ;;  %v5110_v9 = vcombine.high %v5102_v28, %v5102_v28 }
 0x190   :  { %v5883_v47 = vsel %vm2718_vm0, %v5094_v52, 0.0  ;;  %v5885_v26 = vsel %vm2718_vm0, %v5102_v28, 0.0  ;;  %v4235_v38 = vcombine.low %v4227_v35, %v4234_v41  ;;  %v4236_v60 = vcombine.low %v3494_v51, %v3498_v23 }
 0x191   :  { %v3080_v8 = vadd.f32 %v3079_v59, %v3077_v63  ;;  %v5882_v39 = vadd.f32 %v5881_v21, %v5880_v50  ;;  %v4237_v32 = vcombine.low %v3502_v57, %v3506_v40  ;;  %v5111_v36 = vcombine.high %v5109_v55, %v5109_v55  ;;  %v6201_v21 = vld [vmem:[%s9071_s0 + $0xa8] sm:$0xff] }
 0x192   :  { %v5112_v54 = vcombine.high %v4716_v22, %v4716_v22  ;;  %v5119_v25 = vrot.slane %v4716_v22, %v6294_v20  ;;  %v5887_v42 = vsel %vm2718_vm0, %v5110_v9, 0.0  ;;  %v3510_v1 = vrot.slane %v6165_v29, %v6271_v4 }
 0x193   :  { %3081 = vadd.xlane.f32.xlu0 %v3080_v8  ;;  %v5884_v0 = vadd.f32 %v5883_v47, %v5882_v39  ;;  %v3514_v18 = vrot.slane %v6165_v29, %v6273_v5  ;;  %v3518_v43 = vrot.slane %v6165_v29, %v6275_v6  ;;  %v5889_v27 = vsel %vm2718_vm0, %v5109_v55, 0.0  ;;  %v6166_v55 = vld [vmem:[%s9072_s1 + $0xc1] ss:$2 sm:$0xff] }
 0x194   :  { %v3522_v58 = vrot.slane %v6165_v29, %v6277_v7  ;;  %v4244_v48 = vrot.slane %v4236_v60, %v6294_v20  ;;  %v4251_v11 = vrot.slane %v4237_v32, %v6294_v20  ;;  %v4717_v24 = vmul.f32 %v6200_v53, %v4235_v38 }
 0x195   :  { %v5886_v34 = vadd.f32 %v5885_v26, %v5884_v0  ;;  %v5126_v62 = vrot.slane %v5112_v54, %v6294_v20  ;;  %v5127_v3 = vcombine.high %v5119_v25, %v5119_v25  ;;  %v5891_v49 = vsel %vm2718_vm0, %v5111_v36, 0.0 }
 0x196   :  { %v5893_v10 = vsel %vm2718_vm0, %v5119_v25, 0.0  ;;  %v4252_v46 = vcombine.low %v4244_v48, %v4251_v11  ;;  %v4253_v2 = vcombine.low %v3510_v1, %v3514_v18  ;;  %v4254_v45 = vcombine.low %v3518_v43, %v3522_v58  ;;  %v6202_v43 = vld [vmem:[%s9071_s0 + $0xb0] sm:$0xff] }
 0x197   :  { %v5888_v12 = vadd.f32 %v5887_v42, %v5886_v34  ;;  %v5128_v61 = vcombine.high %v5126_v62, %v5126_v62  ;;  %v5129_v31 = vcombine.high %v4717_v24, %v4717_v24  ;;  %v5136_v33 = vrot.slane %v4717_v24, %v6294_v20 }
 0x198   :  { %v5895_v52 = vsel %vm2718_vm0, %v5127_v3, 0.0  ;;  %v3526_v44 = vrot.slane %v6165_v29, %v6286_v14  ;;  %v3530_v19 = vrot.slane %v6165_v29, %v6288_v15  ;;  %v3534_v51 = vrot.slane %v6165_v29, %v6290_v16 }
 0x199   :  { %v5890_v30 = vadd.f32 %v5889_v27, %v5888_v12  ;;  %v5897_v23 = vsel %vm2718_vm0, %v5126_v62, 0.0  ;;  %v3538_v37 = vrot.slane %v6165_v29, %v6292_v17  ;;  %v4261_v59 = vrot.slane %v4253_v2, %v6294_v20 }
 0x19a   :  { %v4268_v57 = vrot.slane %v4254_v45, %v6294_v20  ;;  %v4718_v63 = vmul.f32 %v6201_v21, %v4252_v46  ;;  %v5143_v35 = vrot.slane %v5129_v31, %v6294_v20  ;;  %v5144_v41 = vcombine.high %v5136_v33, %v5136_v33 }
 0x19b   :  { %v5892_v13 = vadd.f32 %v5891_v49, %v5890_v30  ;;  %v5899_v50 = vsel %vm2718_vm0, %v5128_v61, 0.0  ;;  %v5901_v22 = vsel %vm2718_vm0, %v5136_v33, 0.0  ;;  %v4270_v47 = vcombine.low %v3526_v44, %v3530_v19 }
 0x19c   :  { %v4269_v9 = vcombine.low %v4261_v59, %v4268_v57  ;;  %v4271_v8 = vcombine.low %v3534_v51, %v3538_v37  ;;  %v5145_v26 = vcombine.high %v5143_v35, %v5143_v35  ;;  %v5146_v29 = vcombine.high %v4718_v63, %v4718_v63  ;;  %v6203_v51 = vld [vmem:[%s9071_s0 + $0xb8] sm:$0xff] }
 0x19d   :  { %v5894_v28 = vadd.f32 %v5893_v10, %v5892_v13  ;;  %v5153_v38 = vrot.slane %v4718_v63, %v6294_v20  ;;  %v5903_v60 = vsel %vm2718_vm0, %v5144_v41, 0.0  ;;  %v3542_v0 = vrot.slane %v6166_v55, %v6271_v4  ;;  %v6167_v63 = vld [vmem:[%s9072_s1 + $0xd1] ss:$2 sm:$0xff] }
 0x19e   :  { %v3546_v36 = vrot.slane %v6166_v55, %v6273_v5  ;;  %v3550_v54 = vrot.slane %v6166_v55, %v6275_v6  ;;  %v5905_v25 = vsel %vm2718_vm0, %v5143_v35, 0.0  ;;  %v3554_v42 = vrot.slane %v6166_v55, %v6277_v7 }
 0x19f   :  { %v5896_v40 = vadd.f32 %v5895_v52, %v5894_v28  ;;  %v4278_v34 = vrot.slane %v4270_v47, %v6294_v20  ;;  %v4285_v1 = vrot.slane %v4271_v8, %v6294_v20  ;;  %v4719_v27 = vmul.f32 %v6202_v43, %v4269_v9 }
 0x1a0   :  { %v5160_v58 = vrot.slane %v5146_v29, %v6294_v20  ;;  %v5161_v48 = vcombine.high %v5153_v38, %v5153_v38  ;;  %v5907_v11 = vsel %vm2718_vm0, %v5145_v26, 0.0  ;;  %v5909_v53 = vsel %vm2718_vm0, %v5153_v38, 0.0 }
 0x1a1   :  { %v5898_v56 = vadd.f32 %v5897_v23, %v5896_v40  ;;  %v4286_v24 = vcombine.low %v4278_v34, %v4285_v1  ;;  %v4287_v62 = vcombine.low %v3542_v0, %v3546_v36  ;;  %v4288_v3 = vcombine.low %v3550_v54, %v3554_v42  ;;  %v6204_v54 = vld [vmem:[%s9071_s0 + $0xc0] sm:$0xff] }
 0x1a2   :  { %v5162_v30 = vcombine.high %v5160_v58, %v5160_v58  ;;  %v5163_v10 = vcombine.high %v4719_v27, %v4719_v27  ;;  %v5170_v46 = vrot.slane %v4719_v27, %v6294_v20  ;;  %v5911_v2 = vsel %vm2718_vm0, %v5161_v48, 0.0 }
 0x1a3   :  { %v5900_v39 = vadd.f32 %v5899_v50, %v5898_v56  ;;  %v3558_v13 = vrot.slane %v6166_v55, %v6286_v14  ;;  %v3562_v61 = vrot.slane %v6166_v55, %v6288_v15  ;;  %v3566_v31 = vrot.slane %v6166_v55, %v6290_v16 }
 0x1a4   :  { %v5913_v33 = vsel %vm2718_vm0, %v5160_v58, 0.0  ;;  %v3570_v52 = vrot.slane %v6166_v55, %v6292_v17  ;;  %v4295_v28 = vrot.slane %v4287_v62, %v6294_v20  ;;  %v4302_v44 = vrot.slane %v4288_v3, %v6294_v20 }
 0x1a5   :  { %v5902_v32 = vadd.f32 %v5901_v22, %v5900_v39  ;;  %v4720_v23 = vmul.f32 %v6203_v51, %v4286_v24  ;;  %v5177_v37 = vrot.slane %v5163_v10, %v6294_v20  ;;  %v5178_v59 = vcombine.high %v5170_v46, %v5170_v46 }
 0x1a6   :  { %v5915_v57 = vsel %vm2718_vm0, %v5162_v30, 0.0  ;;  %v5917_v21 = vsel %vm2718_vm0, %v5170_v46, 0.0  ;;  %v4303_v35 = vcombine.low %v4295_v28, %v4302_v44  ;;  %v4304_v41 = vcombine.low %v3558_v13, %v3562_v61 }
 0x1a7   :  { %v5904_v18 = vadd.f32 %v5903_v60, %v5902_v32  ;;  %v4305_v50 = vcombine.low %v3566_v31, %v3570_v52  ;;  %v5179_v22 = vcombine.high %v5177_v37, %v5177_v37  ;;  %v5180_v55 = vcombine.high %v4720_v23, %v4720_v23  ;;  %v6205_v31 = vld [vmem:[%s9071_s0 + $0xc8] sm:$0xff] }
 0x1a8   :  { %v5187_v9 = vrot.slane %v4720_v23, %v6294_v20  ;;  %v5919_v47 = vsel %vm2718_vm0, %v5178_v59, 0.0  ;;  %v3574_v39 = vrot.slane %v6167_v63, %v6271_v4  ;;  %v3578_v26 = vrot.slane %v6167_v63, %v6273_v5  ;;  %v6168_v23 = vld [vmem:[%s9072_s1 + $0xe1] ss:$2 sm:$0xff] }
 0x1a9   :  { %v5906_v12 = vadd.f32 %v5905_v25, %v5904_v18  ;;  %v3582_v29 = vrot.slane %v6167_v63, %v6275_v6  ;;  %v5921_v38 = vsel %vm2718_vm0, %v5177_v37, 0.0  ;;  %v3586_v60 = vrot.slane %v6167_v63, %v6277_v7 }
 0x1aa   :  { %v4312_v32 = vrot.slane %v4304_v41, %v6294_v20  ;;  %v4319_v0 = vrot.slane %v4305_v50, %v6294_v20  ;;  %v4721_v25 = vmul.f32 %v6204_v54, %v4303_v35  ;;  %v5194_v42 = vrot.slane %v5180_v55, %v6294_v20 }
 0x1ab   :  { %v5908_v49 = vadd.f32 %v5907_v11, %v5906_v12  ;;  %v5195_v34 = vcombine.high %v5187_v9, %v5187_v9  ;;  %v5923_v1 = vsel %vm2718_vm0, %v5179_v22, 0.0  ;;  %v5925_v43 = vsel %vm2718_vm0, %v5187_v9, 0.0 }
 0x1ac   :  { %v4320_v27 = vcombine.low %v4312_v32, %v4319_v0  ;;  %v4321_v58 = vcombine.low %v3574_v39, %v3578_v26  ;;  %v4322_v48 = vcombine.low %v3582_v29, %v3586_v60  ;;  %v5196_v12 = vcombine.high %v5194_v42, %v5194_v42  ;;  %v6206_v29 = vld [vmem:[%s9071_s0 + $0xd0] sm:$0xff] }
 0x1ad   :  { %v5910_v45 = vadd.f32 %v5909_v53, %v5908_v49  ;;  %v5197_v53 = vcombine.high %v4721_v25, %v4721_v25  ;;  %v5204_v24 = vrot.slane %v4721_v25, %v6294_v20  ;;  %v5927_v62 = vsel %vm2718_vm0, %v5195_v34, 0.0 }
 0x1ae   :  { %v3590_v49 = vrot.slane %v6167_v63, %v6286_v14  ;;  %v3594_v30 = vrot.slane %v6167_v63, %v6288_v15  ;;  %v3598_v10 = vrot.slane %v6167_v63, %v6290_v16  ;;  %v5929_v46 = vsel %vm2718_vm0, %v5194_v42, 0.0 }
 0x1af   :  { %v5912_v19 = vadd.f32 %v5911_v2, %v5910_v45  ;;  %v3602_v2 = vrot.slane %v6167_v63, %v6292_v17  ;;  %v4329_v45 = vrot.slane %v4321_v58, %v6294_v20  ;;  %v4336_v13 = vrot.slane %v4322_v48, %v6294_v20 }
 0x1b0   :  { %v5211_v52 = vrot.slane %v5197_v53, %v6294_v20  ;;  %v5212_v28 = vcombine.high %v5204_v24, %v5204_v24  ;;  %v5931_v44 = vsel %vm2718_vm0, %v5196_v12, 0.0  ;;  %v5933_v51 = vsel %vm2718_vm0, %v5204_v24, 0.0 }
 0x1b1   :  { %v5914_v40 = vadd.f32 %v5913_v33, %v5912_v19  ;;  %v4722_v33 = vmul.f32 %v6205_v31, %v4320_v27  ;;  %v4337_v37 = vcombine.low %v4329_v45, %v4336_v13  ;;  %v4338_v59 = vcombine.low %v3590_v49, %v3594_v30 }
 0x1b2   :  { %v5935_v41 = vsel %vm2718_vm0, %v5212_v28, 0.0  ;;  %v3610_v22 = vrot.slane %v6168_v23, %v6273_v5  ;;  %v3614_v55 = vrot.slane %v6168_v23, %v6275_v6  ;;  %v5937_v9 = vsel %vm2718_vm0, %v5211_v52, 0.0 }
 0x1b3   :  { %v5916_v56 = vadd.f32 %v5915_v57, %v5914_v40  ;;  %v4339_v57 = vcombine.low %v3598_v10, %v3602_v2  ;;  %v5214_v63 = vcombine.high %v4722_v33, %v4722_v33  ;;  %v5221_v35 = vrot.slane %v4722_v33, %v6294_v20  ;;  %v6207_v10 = vld [vmem:[%s9071_s0 + $0xd8] sm:$0xff] }
 0x1b4   :  { %v3626_v12 = vrot.slane %v6168_v23, %v6288_v15  ;;  %v3630_v53 = vrot.slane %v6168_v23, %v6290_v16  ;;  %v6169_v33 = vld [vmem:[%s9072_s1 + $0xf1] ss:$2 sm:$0xff] }
 0x1b5   :  { %v5918_v8 = vadd.f32 %v5917_v21, %v5916_v56  ;;  %v5213_v21 = vcombine.high %v5211_v52, %v5211_v52  ;;  %v3606_v56 = vrot.slane %v6168_v23, %v6271_v4  ;;  %v4353_v39 = vrot.slane %v4339_v57, %v6294_v20 }
 0x1b6   :  { %v5228_v60 = vrot.slane %v5214_v63, %v6294_v20  ;;  %v5229_v32 = vcombine.high %v5221_v35, %v5221_v35  ;;  %v5941_v54 = vsel %vm2718_vm0, %v5221_v35, 0.0  ;;  %v3646_v63 = vrot.slane %v6169_v33, %v6275_v6 }
 0x1b7   :  { %v5920_v36 = vadd.f32 %v5919_v47, %v5918_v8  ;;  %v3618_v47 = vrot.slane %v6168_v23, %v6277_v7  ;;  %v4346_v8 = vrot.slane %v4338_v59, %v6294_v20  ;;  %v5939_v0 = vsel %vm2718_vm0, %v5213_v21, 0.0 }
 0x1b8   :  { %v4355_v42 = vcombine.low %v3606_v56, %v3610_v22  ;;  %v5943_v58 = vsel %vm2718_vm0, %v5229_v32, 0.0  ;;  %v5945_v24 = vsel %vm2718_vm0, %v5228_v60, 0.0  ;;  %v3642_v21 = vrot.slane %v6169_v33, %v6273_v5 }
 0x1b9   :  { %v5922_v18 = vadd.f32 %v5921_v38, %v5920_v36  ;;  %v4723_v38 = vmul.f32 %v6206_v29, %v4337_v37  ;;  %v4354_v25 = vcombine.low %v4346_v8, %v4353_v39  ;;  %v4356_v34 = vcombine.low %v3614_v55, %v3618_v47  ;;  %v6208_v55 = vld [vmem:[%s9071_s0 + $0xe0] sm:$0xff] }
 0x1bb   :  { %v5924_v11 = vadd.f32 %v5923_v1, %v5922_v18  ;;  %v5230_v18 = vcombine.high %v5228_v60, %v5228_v60  ;;  %v5238_v27 = vrot.slane %v4723_v38, %v6294_v20  ;;  %v4370_v49 = vrot.slane %v4356_v34, %v6294_v20 }
 0x1bd   :  { %v5926_v3 = vadd.f32 %v5925_v43, %v5924_v11  ;;  %v5231_v43 = vcombine.high %v4723_v38, %v4723_v38  ;;  %v3622_v11 = vrot.slane %v6168_v23, %v6286_v14  ;;  %v5246_v45 = vcombine.high %v5238_v27, %v5238_v27 }
 0x1be   :  { %v5947_v13 = vsel %vm2718_vm0, %v5230_v18, 0.0  ;;  %v5949_v31 = vsel %vm2718_vm0, %v5238_v27, 0.0  ;;  %v3658_v18 = vrot.slane %v6169_v33, %v6288_v15 }
 0x1bf   :  { %v5928_v61 = vadd.f32 %v5927_v62, %v5926_v3  ;;  %v3634_v62 = vrot.slane %v6168_v23, %v6292_v17  ;;  %v4363_v3 = vrot.slane %v4355_v42, %v6294_v20  ;;  %v5245_v2 = vrot.slane %v5231_v43, %v6294_v20 }
 0x1c0   :  { %v4372_v28 = vcombine.low %v3622_v11, %v3626_v12  ;;  %v5951_v59 = vsel %vm2718_vm0, %v5246_v45, 0.0  ;;  %v3662_v43 = vrot.slane %v6169_v33, %v6290_v16 }
 0x1c1   :  { %v5930_v19 = vadd.f32 %v5929_v46, %v5928_v61  ;;  %v4724_v46 = vmul.f32 %v6207_v10, %v4354_v25  ;;  %v4371_v52 = vcombine.low %v4363_v3, %v4370_v49  ;;  %v5953_v35 = vsel %vm2718_vm0, %v5245_v2, 0.0 }
 0x1c3   :  { %v5932_v40 = vadd.f32 %v5931_v44, %v5930_v19  ;;  %v4373_v44 = vcombine.low %v3630_v53, %v3634_v62  ;;  %v5248_v23 = vcombine.high %v4724_v46, %v4724_v46  ;;  %v5255_v37 = vrot.slane %v4724_v46, %v6294_v20  ;;  %v6209_v53 = vld [vmem:[%s9071_s0 + $0xe8] sm:$0xff] }
 0x1c4   :  { %v6170_v46 = vld [vmem:[%s9072_s1 + $0x101] ss:$2 sm:$0xff] }
 0x1c5   :  { %v5934_v50 = vadd.f32 %v5933_v51, %v5932_v40  ;;  %v5247_v51 = vcombine.high %v5245_v2, %v5245_v2  ;;  %v3638_v40 = vrot.slane %v6169_v33, %v6271_v4  ;;  %v4387_v56 = vrot.slane %v4373_v44, %v6294_v20 }
 0x1c6   :  { %v5262_v47 = vrot.slane %v5248_v23, %v6294_v20  ;;  %v5263_v8 = vcombine.high %v5255_v37, %v5255_v37  ;;  %v5957_v29 = vsel %vm2718_vm0, %v5255_v37, 0.0  ;;  %v3678_v23 = vrot.slane %v6170_v46, %v6275_v6 }
 0x1c7   :  { %v5936_v26 = vadd.f32 %v5935_v41, %v5934_v50  ;;  %v3650_v41 = vrot.slane %v6169_v33, %v6277_v7  ;;  %v4380_v50 = vrot.slane %v4372_v28, %v6294_v20  ;;  %v5955_v39 = vsel %vm2718_vm0, %v5247_v51, 0.0 }
 0x1c8   :  { %v4389_v60 = vcombine.low %v3638_v40, %v3642_v21  ;;  %v5959_v42 = vsel %vm2718_vm0, %v5263_v8, 0.0  ;;  %v5961_v27 = vsel %vm2718_vm0, %v5262_v47, 0.0  ;;  %v3674_v51 = vrot.slane %v6170_v46, %v6273_v5 }
 0x1c9   :  { %v5938_v36 = vadd.f32 %v5937_v9, %v5936_v26  ;;  %v4725_v9 = vmul.f32 %v6208_v55, %v4371_v52  ;;  %v4388_v38 = vcombine.low %v4380_v50, %v4387_v56  ;;  %v4390_v32 = vcombine.low %v3646_v63, %v3650_v41  ;;  %v6210_v63 = vld [vmem:[%s9071_s0 + $0xf0] sm:$0xff] }
 0x1cb   :  { %v5940_v1 = vadd.f32 %v5939_v0, %v5938_v36  ;;  %v5264_v36 = vcombine.high %v5262_v47, %v5262_v47  ;;  %v5272_v25 = vrot.slane %v4725_v9, %v6294_v20  ;;  %v4404_v11 = vrot.slane %v4390_v32, %v6294_v20 }
 0x1cd   :  { %v5942_v48 = vadd.f32 %v5941_v54, %v5940_v1  ;;  %v5265_v54 = vcombine.high %v4725_v9, %v4725_v9  ;;  %v3654_v1 = vrot.slane %v6169_v33, %v6286_v14  ;;  %v5280_v3 = vcombine.high %v5272_v25, %v5272_v25 }
 0x1ce   :  { %v5963_v49 = vsel %vm2718_vm0, %v5264_v36, 0.0  ;;  %v5965_v10 = vsel %vm2718_vm0, %v5272_v25, 0.0  ;;  %v3690_v36 = vrot.slane %v6170_v46, %v6288_v15 }
 0x1cf   :  { %v5944_v30 = vadd.f32 %v5943_v58, %v5942_v48  ;;  %v3666_v58 = vrot.slane %v6169_v33, %v6292_v17  ;;  %v4397_v48 = vrot.slane %v4389_v60, %v6294_v20  ;;  %v5279_v62 = vrot.slane %v5265_v54, %v6294_v20 }
 0x1d0   :  { %v4406_v45 = vcombine.low %v3654_v1, %v3658_v18  ;;  %v5967_v28 = vsel %vm2718_vm0, %v5280_v3, 0.0  ;;  %v3694_v54 = vrot.slane %v6170_v46, %v6290_v16 }
 0x1d1   :  { %v5946_v61 = vadd.f32 %v5945_v24, %v5944_v30  ;;  %v4726_v24 = vmul.f32 %v6209_v53, %v4388_v38  ;;  %v4405_v2 = vcombine.low %v4397_v48, %v4404_v11  ;;  %v5969_v37 = vsel %vm2718_vm0, %v5279_v62, 0.0 }
 0x1d3   :  { %v5948_v19 = vadd.f32 %v5947_v13, %v5946_v61  ;;  %v4407_v13 = vcombine.low %v3662_v43, %v3666_v58  ;;  %v5282_v33 = vcombine.high %v4726_v24, %v4726_v24  ;;  %v5289_v52 = vrot.slane %v4726_v24, %v6294_v20  ;;  %v6211_v43 = vld [vmem:[%s9071_s0 + $0xf8] sm:$0xff] }
 0x1d4   :  { %v6171_v24 = vld [vmem:[%s9072_s1 + $0x111] ss:$2 sm:$0xff] }
 0x1d5   :  { %v5950_v57 = vadd.f32 %v5949_v31, %v5948_v19  ;;  %v5281_v31 = vcombine.high %v5279_v62, %v5279_v62  ;;  %v3670_v19 = vrot.slane %v6170_v46, %v6271_v4  ;;  %v4421_v40 = vrot.slane %v4407_v13, %v6294_v20 }
 0x1d6   :  { %v5296_v41 = vrot.slane %v5282_v33, %v6294_v20  ;;  %v5297_v50 = vcombine.high %v5289_v52, %v5289_v52  ;;  %v5973_v55 = vsel %vm2718_vm0, %v5289_v52, 0.0  ;;  %v3710_v33 = vrot.slane %v6171_v24, %v6275_v6 }
 0x1d7   :  { %v5952_v22 = vadd.f32 %v5951_v59, %v5950_v57  ;;  %v3682_v59 = vrot.slane %v6170_v46, %v6277_v7  ;;  %v4414_v57 = vrot.slane %v4406_v45, %v6294_v20  ;;  %v5971_v56 = vsel %vm2718_vm0, %v5281_v31, 0.0 }
 0x1d8   :  { %v4423_v47 = vcombine.low %v3670_v19, %v3674_v51  ;;  %v5975_v60 = vsel %vm2718_vm0, %v5297_v50, 0.0  ;;  %v5977_v25 = vsel %vm2718_vm0, %v5296_v41, 0.0  ;;  %v3706_v31 = vrot.slane %v6171_v24, %v6273_v5 }
 0x1d9   :  { %v5954_v26 = vadd.f32 %v5953_v35, %v5952_v22  ;;  %v4727_v35 = vmul.f32 %v6210_v63, %v4405_v2  ;;  %v4422_v9 = vcombine.low %v4414_v57, %v4421_v40  ;;  %v4424_v8 = vcombine.low %v3678_v23, %v3682_v59  ;;  %v6212_v23 = vld [vmem:[%s9071_s0 + $0x100] sm:$0xff] }
 0x1db   :  { %v5956_v0 = vadd.f32 %v5955_v39, %v5954_v26  ;;  %v5298_v26 = vcombine.high %v5296_v41, %v5296_v41  ;;  %v5306_v38 = vrot.slane %v4727_v35, %v6294_v20  ;;  %v4438_v1 = vrot.slane %v4424_v8, %v6294_v20 }
 0x1dd   :  { %v5958_v34 = vadd.f32 %v5957_v29, %v5956_v0  ;;  %v5299_v29 = vcombine.high %v4727_v35, %v4727_v35  ;;  %v3686_v0 = vrot.slane %v6170_v46, %v6286_v14  ;;  %v5314_v48 = vcombine.high %v5306_v38, %v5306_v38 }
 0x1de   :  { %v5979_v11 = vsel %vm2718_vm0, %v5298_v26, 0.0  ;;  %v5981_v53 = vsel %vm2718_vm0, %v5306_v38, 0.0  ;;  %v3722_v26 = vrot.slane %v6171_v24, %v6288_v15 }
 0x1df   :  { %v5960_v12 = vadd.f32 %v5959_v42, %v5958_v34  ;;  %v3698_v42 = vrot.slane %v6170_v46, %v6292_v17  ;;  %v4431_v34 = vrot.slane %v4423_v47, %v6294_v20  ;;  %v5313_v58 = vrot.slane %v5299_v29, %v6294_v20 }
 0x1e0   :  { %v4440_v3 = vcombine.low %v3686_v0, %v3690_v36  ;;  %v5983_v45 = vsel %vm2718_vm0, %v5314_v48, 0.0  ;;  %v3726_v29 = vrot.slane %v6171_v24, %v6290_v16 }
 0x1e1   :  { %v5962_v30 = vadd.f32 %v5961_v27, %v5960_v12  ;;  %v4728_v27 = vmul.f32 %v6211_v43, %v4422_v9  ;;  %v4439_v62 = vcombine.low %v4431_v34, %v4438_v1  ;;  %v5985_v52 = vsel %vm2718_vm0, %v5313_v58, 0.0 }
 0x1e3   :  { %v5964_v61 = vadd.f32 %v5963_v49, %v5962_v30  ;;  %v4441_v49 = vcombine.low %v3694_v54, %v3698_v42  ;;  %v5316_v46 = vcombine.high %v4728_v27, %v4728_v27  ;;  %v5323_v2 = vrot.slane %v4728_v27, %v6294_v20  ;;  %v6213_v54 = vld [vmem:[%s9071_s0 + $0x108] sm:$0xff] }
 0x1e4   :  { %v6172_v27 = vld [vmem:[%s9072_s1 + $0x121] ss:$2 sm:$0xff] }
 0x1e5   :  { %v5966_v44 = vadd.f32 %v5965_v10, %v5964_v61  ;;  %v5315_v10 = vcombine.high %v5313_v58, %v5313_v58  ;;  %v3702_v61 = vrot.slane %v6171_v24, %v6271_v4  ;;  %v4455_v19 = vrot.slane %v4441_v49, %v6294_v20 }
 0x1e6   :  { %v5330_v59 = vrot.slane %v5316_v46, %v6294_v20  ;;  %v5331_v57 = vcombine.high %v5323_v2, %v5323_v2  ;;  %v5989_v63 = vsel %vm2718_vm0, %v5323_v2, 0.0  ;;  %v3742_v46 = vrot.slane %v6172_v27, %v6275_v6 }
 0x1e7   :  { %v5968_v21 = vadd.f32 %v5967_v28, %v5966_v44  ;;  %v3714_v28 = vrot.slane %v6171_v24, %v6277_v7  ;;  %v4448_v44 = vrot.slane %v4440_v3, %v6294_v20  ;;  %v5987_v40 = vsel %vm2718_vm0, %v5315_v10, 0.0 }
 0x1e8   :  { %v4457_v41 = vcombine.low %v3702_v61, %v3706_v31  ;;  %v5991_v47 = vsel %vm2718_vm0, %v5331_v57, 0.0  ;;  %v5993_v38 = vsel %vm2718_vm0, %v5330_v59, 0.0  ;;  %v3738_v10 = vrot.slane %v6172_v27, %v6273_v5 }
 0x1e9   :  { %v5970_v22 = vadd.f32 %v5969_v37, %v5968_v21  ;;  %v4729_v37 = vmul.f32 %v6212_v23, %v4439_v62  ;;  %v4456_v35 = vcombine.low %v4448_v44, %v4455_v19  ;;  %v4458_v50 = vcombine.low %v3710_v33, %v3714_v28  ;;  %v6214_v33 = vld [vmem:[%s9071_s0 + $0x110] sm:$0xff] }
 0x1eb   :  { %v5972_v39 = vadd.f32 %v5971_v56, %v5970_v22  ;;  %v5332_v22 = vcombine.high %v5330_v59, %v5330_v59  ;;  %v5340_v9 = vrot.slane %v4729_v37, %v6294_v20  ;;  %v4472_v0 = vrot.slane %v4458_v50, %v6294_v20 }
 0x1ed   :  { %v5974_v32 = vadd.f32 %v5973_v55, %v5972_v39  ;;  %v5333_v55 = vcombine.high %v4729_v37, %v4729_v37  ;;  %v3718_v39 = vrot.slane %v6171_v24, %v6286_v14  ;;  %v5348_v34 = vcombine.high %v5340_v9, %v5340_v9 }
 0x1ee   :  { %v5995_v1 = vsel %vm2718_vm0, %v5332_v22, 0.0  ;;  %v5997_v43 = vsel %vm2718_vm0, %v5340_v9, 0.0  ;;  %v3754_v22 = vrot.slane %v6172_v27, %v6288_v15 }
 0x1ef   :  { %v5976_v18 = vadd.f32 %v5975_v60, %v5974_v32  ;;  %v3730_v60 = vrot.slane %v6171_v24, %v6292_v17  ;;  %v4465_v32 = vrot.slane %v4457_v41, %v6294_v20  ;;  %v5347_v42 = vrot.slane %v5333_v55, %v6294_v20 }
 0x1f0   :  { %v4474_v48 = vcombine.low %v3718_v39, %v3722_v26  ;;  %v5999_v3 = vsel %vm2718_vm0, %v5348_v34, 0.0  ;;  %v3758_v55 = vrot.slane %v6172_v27, %v6290_v16 }
 0x1f1   :  { %v5978_v12 = vadd.f32 %v5977_v25, %v5976_v18  ;;  %v4730_v25 = vmul.f32 %v6213_v54, %v4456_v35  ;;  %v4473_v58 = vcombine.low %v4465_v32, %v4472_v0  ;;  %v6001_v2 = vsel %vm2718_vm0, %v5347_v42, 0.0 }
 0x1f3   :  { %v5980_v30 = vadd.f32 %v5979_v11, %v5978_v12  ;;  %v4475_v11 = vcombine.low %v3726_v29, %v3730_v60  ;;  %v5350_v24 = vcombine.high %v4730_v25, %v4730_v25  ;;  %v5357_v62 = vrot.slane %v4730_v25, %v6294_v20  ;;  %v6215_v29 = vld [vmem:[%s9071_s0 + $0x118] sm:$0xff] }
 0x1f4   :  { %v6173_v25 = vld [vmem:[%s9072_s1 + $0x131] ss:$2 sm:$0xff] }
 0x1f5   :  { %v5982_v13 = vadd.f32 %v5981_v53, %v5980_v30  ;;  %v5349_v53 = vcombine.high %v5347_v42, %v5347_v42  ;;  %v3734_v30 = vrot.slane %v6172_v27, %v6271_v4  ;;  %v4489_v61 = vrot.slane %v4475_v11, %v6294_v20 }
 0x1f6   :  { %v5364_v28 = vrot.slane %v5350_v24, %v6294_v20  ;;  %v5365_v44 = vcombine.high %v5357_v62, %v5357_v62  ;;  %v6005_v23 = vsel %vm2718_vm0, %v5357_v62, 0.0  ;;  %v3774_v24 = vrot.slane %v6173_v25, %v6275_v6 }
 0x1f7   :  { %v5984_v51 = vadd.f32 %v5983_v45, %v5982_v13  ;;  %v3746_v45 = vrot.slane %v6172_v27, %v6277_v7  ;;  %v4482_v13 = vrot.slane %v4474_v48, %v6294_v20  ;;  %v6003_v19 = vsel %vm2718_vm0, %v5349_v53, 0.0 }
 0x1f8   :  { %v4491_v59 = vcombine.low %v3734_v30, %v3738_v10  ;;  %v6007_v41 = vsel %vm2718_vm0, %v5365_v44, 0.0  ;;  %v6009_v9 = vsel %vm2718_vm0, %v5364_v28, 0.0  ;;  %v3770_v53 = vrot.slane %v6173_v25, %v6273_v5 }
 0x1f9   :  { %v5986_v21 = vadd.f32 %v5985_v52, %v5984_v51  ;;  %v4731_v52 = vmul.f32 %v6214_v33, %v4473_v58  ;;  %v4490_v37 = vcombine.low %v4482_v13, %v4489_v61  ;;  %v4492_v57 = vcombine.low %v3742_v46, %v3746_v45  ;;  %v6216_v46 = vld [vmem:[%s9071_s0 + $0x120] sm:$0xff] }
 0x1fb   :  { %v5988_v56 = vadd.f32 %v5987_v40, %v5986_v21  ;;  %v5366_v21 = vcombine.high %v5364_v28, %v5364_v28  ;;  %v5374_v35 = vrot.slane %v4731_v52, %v6294_v20  ;;  %v4506_v39 = vrot.slane %v4492_v57, %v6294_v20 }
 0x1fd   :  { %v5990_v8 = vadd.f32 %v5989_v63, %v5988_v56  ;;  %v5367_v63 = vcombine.high %v4731_v52, %v4731_v52  ;;  %v3750_v56 = vrot.slane %v6172_v27, %v6286_v14  ;;  %v5382_v32 = vcombine.high %v5374_v35, %v5374_v35 }
 0x1fe   :  { %v6011_v0 = vsel %vm2718_vm0, %v5366_v21, 0.0  ;;  %v6013_v54 = vsel %vm2718_vm0, %v5374_v35, 0.0  ;;  %v3786_v21 = vrot.slane %v6173_v25, %v6288_v15 }
 0x1ff   :  { %v5992_v36 = vadd.f32 %v5991_v47, %v5990_v8  ;;  %v3762_v47 = vrot.slane %v6172_v27, %v6292_v17  ;;  %v4499_v8 = vrot.slane %v4491_v59, %v6294_v20  ;;  %v5381_v60 = vrot.slane %v5367_v63, %v6294_v20 }
 0x200   :  { %v4508_v34 = vcombine.low %v3750_v56, %v3754_v22  ;;  %v6015_v48 = vsel %vm2718_vm0, %v5382_v32, 0.0  ;;  %v3790_v63 = vrot.slane %v6173_v25, %v6290_v16 }
 0x201   :  { %v5994_v18 = vadd.f32 %v5993_v38, %v5992_v36  ;;  %v4732_v38 = vmul.f32 %v6215_v29, %v4490_v37  ;;  %v4507_v42 = vcombine.low %v4499_v8, %v4506_v39  ;;  %v6017_v62 = vsel %vm2718_vm0, %v5381_v60, 0.0 }
 0x203   :  { %v5996_v12 = vadd.f32 %v5995_v1, %v5994_v18  ;;  %v4509_v1 = vcombine.low %v3758_v55, %v3762_v47  ;;  %v5384_v27 = vcombine.high %v4732_v38, %v4732_v38  ;;  %v5391_v58 = vrot.slane %v4732_v38, %v6294_v20  ;;  %v6217_v55 = vld [vmem:[%s9071_s0 + $0x128] sm:$0xff] }
 0x204   :  { %v6174_v38 = vld [vmem:[%s9072_s1 + $0x141] ss:$2 sm:$0xff] }
 0x205   :  { %v5998_v49 = vadd.f32 %v5997_v43, %v5996_v12  ;;  %v5383_v43 = vcombine.high %v5381_v60, %v5381_v60  ;;  %v3766_v12 = vrot.slane %v6173_v25, %v6271_v4  ;;  %v4523_v30 = vrot.slane %v4509_v1, %v6294_v20 }
 0x206   :  { %v5398_v45 = vrot.slane %v5384_v27, %v6294_v20  ;;  %v5399_v13 = vcombine.high %v5391_v58, %v5391_v58  ;;  %v6021_v33 = vsel %vm2718_vm0, %v5391_v58, 0.0  ;;  %v3806_v27 = vrot.slane %v6174_v38, %v6275_v6 }
 0x207   :  { %v6000_v31 = vadd.f32 %v5999_v3, %v5998_v49  ;;  %v3778_v3 = vrot.slane %v6173_v25, %v6277_v7  ;;  %v4516_v49 = vrot.slane %v4508_v34, %v6294_v20  ;;  %v6019_v61 = vsel %vm2718_vm0, %v5383_v43, 0.0 }
 0x208   :  { %v4525_v28 = vcombine.low %v3766_v12, %v3770_v53  ;;  %v6023_v59 = vsel %vm2718_vm0, %v5399_v13, 0.0  ;;  %v6025_v35 = vsel %vm2718_vm0, %v5398_v45, 0.0  ;;  %v3802_v43 = vrot.slane %v6174_v38, %v6273_v5 }
 0x209   :  { %v6002_v51 = vadd.f32 %v6001_v2, %v6000_v31  ;;  %v4733_v2 = vmul.f32 %v6216_v46, %v4507_v42  ;;  %v4524_v52 = vcombine.low %v4516_v49, %v4523_v30  ;;  %v4526_v44 = vcombine.low %v3774_v24, %v3778_v3  ;;  %v6218_v24 = vld [vmem:[%s9071_s0 + $0x130] sm:$0xff] }
 0x20b   :  { %v6004_v40 = vadd.f32 %v6003_v19, %v6002_v51  ;;  %v5400_v51 = vcombine.high %v5398_v45, %v5398_v45  ;;  %v5408_v37 = vrot.slane %v4733_v2, %v6294_v20  ;;  %v4540_v56 = vrot.slane %v4526_v44, %v6294_v20 }
 0x20d   :  { %v6006_v50 = vadd.f32 %v6005_v23, %v6004_v40  ;;  %v5401_v23 = vcombine.high %v4733_v2, %v4733_v2  ;;  %v3782_v40 = vrot.slane %v6173_v25, %v6286_v14  ;;  %v5416_v8 = vcombine.high %v5408_v37, %v5408_v37 }
 0x20e   :  { %v6027_v39 = vsel %vm2718_vm0, %v5400_v51, 0.0  ;;  %v6029_v29 = vsel %vm2718_vm0, %v5408_v37, 0.0  ;;  %v3818_v51 = vrot.slane %v6174_v38, %v6288_v15 }
 0x20f   :  { %v6008_v26 = vadd.f32 %v6007_v41, %v6006_v50  ;;  %v3794_v41 = vrot.slane %v6173_v25, %v6292_v17  ;;  %v4533_v50 = vrot.slane %v4525_v28, %v6294_v20  ;;  %v5415_v47 = vrot.slane %v5401_v23, %v6294_v20 }
 0x210   :  { %v4542_v32 = vcombine.low %v3782_v40, %v3786_v21  ;;  %v6031_v34 = vsel %vm2718_vm0, %v5416_v8, 0.0  ;;  %v3822_v23 = vrot.slane %v6174_v38, %v6290_v16 }
 0x211   :  { %v6010_v36 = vadd.f32 %v6009_v9, %v6008_v26  ;;  %v4734_v9 = vmul.f32 %v6217_v55, %v4524_v52  ;;  %v4541_v60 = vcombine.low %v4533_v50, %v4540_v56  ;;  %v6033_v58 = vsel %vm2718_vm0, %v5415_v47, 0.0 }
 0x213   :  { %v6012_v18 = vadd.f32 %v6011_v0, %v6010_v36  ;;  %v4543_v0 = vcombine.low %v3790_v63, %v3794_v41  ;;  %v5418_v25 = vcombine.high %v4734_v9, %v4734_v9  ;;  %v5425_v42 = vrot.slane %v4734_v9, %v6294_v20  ;;  %v6219_v63 = vld [vmem:[%s9071_s0 + $0x138] sm:$0xff] }
 0x214   :  { %v6175_v9 = vld [vmem:[%s9072_s1 + $0x151] ss:$2 sm:$0xff] }
 0x215   :  { %v6014_v11 = vadd.f32 %v6013_v54, %v6012_v18  ;;  %v5417_v54 = vcombine.high %v5415_v47, %v5415_v47  ;;  %v3798_v18 = vrot.slane %v6174_v38, %v6271_v4  ;;  %v4557_v12 = vrot.slane %v4543_v0, %v6294_v20 }
 0x216   :  { %v5432_v3 = vrot.slane %v5418_v25, %v6294_v20  ;;  %v5433_v49 = vcombine.high %v5425_v42, %v5425_v42  ;;  %v6037_v46 = vsel %vm2718_vm0, %v5425_v42, 0.0  ;;  %v3838_v25 = vrot.slane %v6175_v9, %v6275_v6 }
 0x217   :  { %v6016_v10 = vadd.f32 %v6015_v48, %v6014_v11  ;;  %v3810_v48 = vrot.slane %v6174_v38, %v6277_v7  ;;  %v4550_v11 = vrot.slane %v4542_v32, %v6294_v20  ;;  %v6035_v30 = vsel %vm2718_vm0, %v5417_v54, 0.0 }
 0x218   :  { %v4559_v45 = vcombine.low %v3798_v18, %v3802_v43  ;;  %v6039_v28 = vsel %vm2718_vm0, %v5433_v49, 0.0  ;;  %v6041_v37 = vsel %vm2718_vm0, %v5432_v3, 0.0  ;;  %v3834_v54 = vrot.slane %v6175_v9, %v6273_v5 }
 0x219   :  { %v6018_v31 = vadd.f32 %v6017_v62, %v6016_v10  ;;  %v4735_v62 = vmul.f32 %v6218_v24, %v4541_v60  ;;  %v4558_v2 = vcombine.low %v4550_v11, %v4557_v12  ;;  %v4560_v13 = vcombine.low %v3806_v27, %v3810_v48  ;;  %v6220_v27 = vld [vmem:[%s9071_s0 + $0x140] sm:$0xff] }
 0x21b   :  { %v6020_v19 = vadd.f32 %v6019_v61, %v6018_v31  ;;  %v5434_v31 = vcombine.high %v5432_v3, %v5432_v3  ;;  %v5442_v52 = vrot.slane %v4735_v62, %v6294_v20  ;;  %v4574_v40 = vrot.slane %v4560_v13, %v6294_v20 }
 0x21d   :  { %v6022_v57 = vadd.f32 %v6021_v33, %v6020_v19  ;;  %v5435_v33 = vcombine.high %v4735_v62, %v4735_v62  ;;  %v3814_v19 = vrot.slane %v6174_v38, %v6286_v14  ;;  %v5450_v50 = vcombine.high %v5442_v52, %v5442_v52 }
 0x21e   :  { %v6043_v56 = vsel %vm2718_vm0, %v5434_v31, 0.0  ;;  %v6045_v55 = vsel %vm2718_vm0, %v5442_v52, 0.0  ;;  %v3850_v31 = vrot.slane %v6175_v9, %v6288_v15 }
 0x21f   :  { %v6024_v22 = vadd.f32 %v6023_v59, %v6022_v57  ;;  %v3826_v59 = vrot.slane %v6174_v38, %v6292_v17  ;;  %v4567_v57 = vrot.slane %v4559_v45, %v6294_v20  ;;  %v5449_v41 = vrot.slane %v5435_v33, %v6294_v20 }
 0x220   :  { %v4576_v8 = vcombine.low %v3814_v19, %v3818_v51  ;;  %v6047_v32 = vsel %vm2718_vm0, %v5450_v50, 0.0  ;;  %v3854_v33 = vrot.slane %v6175_v9, %v6290_v16 }
 0x221   :  { %v6026_v26 = vadd.f32 %v6025_v35, %v6024_v22  ;;  %v4736_v35 = vmul.f32 %v6219_v63, %v4558_v2  ;;  %v4575_v47 = vcombine.low %v4567_v57, %v4574_v40  ;;  %v6049_v42 = vsel %vm2718_vm0, %v5449_v41, 0.0 }
 0x223   :  { %v6028_v36 = vadd.f32 %v6027_v39, %v6026_v26  ;;  %v4577_v39 = vcombine.low %v3822_v23, %v3826_v59  ;;  %v5452_v38 = vcombine.high %v4736_v35, %v4736_v35  ;;  %v5459_v60 = vrot.slane %v4736_v35, %v6294_v20  ;;  %v6221_v23 = vld [vmem:[%s9071_s0 + $0x148] sm:$0xff] }
 0x225   :  { %v6030_v1 = vadd.f32 %v6029_v29, %v6028_v36  ;;  %v5451_v29 = vcombine.high %v5449_v41, %v5449_v41  ;;  %v3830_v36 = vrot.slane %v6175_v9, %v6271_v4  ;;  %v4591_v18 = vrot.slane %v4577_v39, %v6294_v20 }
 0x226   :  { %v5466_v48 = vrot.slane %v5452_v38, %v6294_v20  ;;  %v5467_v11 = vcombine.high %v5459_v60, %v5459_v60  ;;  %v6053_v24 = vsel %vm2718_vm0, %v5459_v60, 0.0 }
 0x227   :  { %v6032_v53 = vadd.f32 %v6031_v34, %v6030_v1  ;;  %v3842_v34 = vrot.slane %v6175_v9, %v6277_v7  ;;  %v4584_v1 = vrot.slane %v4576_v8, %v6294_v20  ;;  %v6051_v12 = vsel %vm2718_vm0, %v5451_v29, 0.0 }
 0x228   :  { %v4593_v3 = vcombine.low %v3830_v36, %v3834_v54  ;;  %v6055_v45 = vsel %vm2718_vm0, %v5467_v11, 0.0  ;;  %v6057_v52 = vsel %vm2718_vm0, %v5466_v48, 0.0 }
 0x229   :  { %v6034_v10 = vadd.f32 %v6033_v58, %v6032_v53  ;;  %v4737_v58 = vmul.f32 %v6220_v27, %v4575_v47  ;;  %v4592_v62 = vcombine.low %v4584_v1, %v4591_v18  ;;  %v4594_v49 = vcombine.low %v3838_v25, %v3842_v34 }
 0x22b   :  { %v6036_v61 = vadd.f32 %v6035_v30, %v6034_v10  ;;  %v5468_v10 = vcombine.high %v5466_v48, %v5466_v48  ;;  %v5476_v2 = vrot.slane %v4737_v58, %v6294_v20  ;;  %v4608_v19 = vrot.slane %v4594_v49, %v6294_v20 }
 0x22d   :  { %v6038_v44 = vadd.f32 %v6037_v46, %v6036_v61  ;;  %v5469_v46 = vcombine.high %v4737_v58, %v4737_v58  ;;  %v3846_v61 = vrot.slane %v6175_v9, %v6286_v14  ;;  %v5484_v57 = vcombine.high %v5476_v2, %v5476_v2 }
 0x22e   :  { %v6059_v15 = vsel %vm2718_vm0, %v5468_v10, 0.0  ;;  %v6061_v40 = vsel %vm2718_vm0, %v5476_v2, 0.0 }
 0x22f   :  { %v6040_v21 = vadd.f32 %v6039_v28, %v6038_v44  ;;  %v3858_v28 = vrot.slane %v6175_v9, %v6292_v17  ;;  %v4601_v44 = vrot.slane %v4593_v3, %v6294_v20  ;;  %v5483_v59 = vrot.slane %v5469_v46, %v6294_v20  ;;  %v9006_v17 = vld [vmem:[%s9072_s1 + $0x161] ss:$2 sm:$0x1f] }
 0x230   :  { %v4610_v63 = vcombine.low %v3846_v61, %v3850_v31  ;;  %v3862_v47 = vrot.slane %v9006_v17, %v6271_v4  ;;  %v3866_v8 = vrot.slane %v9006_v17, %v6273_v5  ;;  %v3870_v39 = vrot.slane %v9006_v17, %v6275_v6  ;;  %v6222_v4 = vld [vmem:[%s9071_s0 + $0x150] sm:$0xff] }
 0x231   :  { %v6042_v22 = vadd.f32 %v6041_v37, %v6040_v21  ;;  %v4738_v37 = vmul.f32 %v6221_v23, %v4592_v62  ;;  %v4609_v21 = vcombine.low %v4601_v44, %v4608_v19  ;;  %v4611_v35 = vcombine.low %v3854_v33, %v3858_v28  ;;  %v6223_v62 = vld [vmem:[%s9071_s0 + $0x158] sm:$0xff] }
 0x232   :  { %v5485_v50 = vcombine.high %v5483_v59, %v5483_v59  ;;  %v3874_v29 = vrot.slane %v9006_v17, %v6277_v7  ;;  %v4618_v38 = vrot.slane %v4610_v63, %v6294_v20  ;;  %v4627_v7 = vcombine.low %v3862_v47, %v3866_v8 }
 0x233   :  { %v6044_v26 = vadd.f32 %v6043_v56, %v6042_v22  ;;  %v5486_v56 = vcombine.high %v4738_v37, %v4738_v37  ;;  %v5493_v22 = vrot.slane %v4738_v37, %v6294_v20  ;;  %v4625_v60 = vrot.slane %v4611_v35, %v6294_v20 }
 0x234   :  { %v6067_v6 = vsel %vm2718_vm0, %v5485_v50, 0.0  ;;  %v4628_v34 = vcombine.low %v3870_v39, %v3874_v29  ;;  %v6225_v39 = vld [vmem:[%s9071_s0 + $0x168] sm:$0x3] }
 0x235   :  { %v6046_v0 = vadd.f32 %v6045_v55, %v6044_v26  ;;  %v6063_v55 = vsel %vm2718_vm0, %v5484_v57, 0.0  ;;  %v6065_v26 = vsel %vm2718_vm0, %v5483_v59, 0.0  ;;  %v5500_v5 = vrot.slane %v5486_v56, %v6294_v20 }
 0x236   :  { %v5501_v36 = vcombine.high %v5493_v22, %v5493_v22  ;;  %v6069_v25 = vsel %vm2718_vm0, %v5493_v22, 0.0 }
 0x237   :  { %v6048_v43 = vadd.f32 %v6047_v32, %v6046_v0  ;;  %v4739_v0 = vmul.f32 %v6222_v4, %v4609_v21  ;;  %v5502_v18 = vcombine.high %v5500_v5, %v5500_v5  ;;  %v6073_v11 = vsel %vm2718_vm0, %v5500_v5, 0.0 }
 0x238   :  { %v6071_v58 = vsel %vm2718_vm0, %v5501_v36, 0.0 }
 0x239   :  { %v6050_v53 = vadd.f32 %v6049_v42, %v6048_v43  ;;  %v4626_v42 = vcombine.low %v4618_v38, %v4625_v60  ;;  %v5503_v43 = vcombine.high %v4739_v0, %v4739_v0  ;;  %v5510_v27 = vrot.slane %v4739_v0, %v6294_v20 }
 0x23a   :  { %v6075_v10 = vsel %vm2718_vm0, %v5502_v18, 0.0 }
 0x23b   :  { %v6052_v30 = vadd.f32 %v6051_v12, %v6050_v53  ;;  %v4635_v12 = vrot.slane %v4627_v7, %v6294_v20  ;;  %v4642_v53 = vrot.slane %v4628_v34, %v6294_v20  ;;  %v4740_v3 = vmul.f32 %v6223_v62, %v4626_v42  ;;  %v3082_v34 = vpop.xlane.xlu0 %3081 }
 0x23c   :  { %v5517_v49 = vrot.slane %v5503_v43, %v6294_v20  ;;  %v6077_v2 = vsel %vm2718_vm0, %v5510_v27, 0.0 }
 0x23d   :  { %v6054_v13 = vadd.f32 %v6053_v24, %v6052_v30  ;;  %v5518_v30 = vcombine.high %v5510_v27, %v5510_v27  ;;  %v5520_v31 = vcombine.high %v4740_v3, %v4740_v3  ;;  %v5527_v33 = vrot.slane %v4740_v3, %v6294_v20 }
 0x23e   :  { %v5519_v61 = vcombine.high %v5517_v49, %v5517_v49  ;;  %v6081_v44 = vsel %vm2718_vm0, %v5517_v49, 0.0 }
 0x23f   :  { %v6056_v51 = vadd.f32 %v6055_v45, %v6054_v13  ;;  %v4643_v45 = vcombine.low %v4635_v12, %v4642_v53  ;;  %v5534_v37 = vrot.slane %v5520_v31, %v6294_v20  ;;  %v5535_v59 = vcombine.high %v5527_v33, %v5527_v33 }
 0x240   :  { %v6083_v57 = vsel %vm2718_vm0, %v5519_v61, 0.0 }
 0x241   :  { %v6058_v16 = vadd.f32 %v6057_v52, %v6056_v51  ;;  %v6079_v52 = vsel %vm2718_vm0, %v5518_v30, 0.0  ;;  %v6224_v51 = vld [vmem:[%s9071_s0 + $0x160] sm:$0xff]  ;;  %v5536_v63 = vcombine.high %v5534_v37, %v5534_v37  ;;  %v6087_v50 = vsel %vm2718_vm0, %v5535_v59, 0.0 }
 0x242   :  { %v4741_v23 = vmul.f32 %v6224_v51, %v4643_v45 }
 0x243   :  { %v6060_v41 = vadd.f32 %v6059_v15, %v6058_v16  ;;  %v3878_v16 = vrot.slane %v9006_v17, %v6286_v14  ;;  %v6091_v14 = vsel %vm2718_vm0, %v5536_v63, 0.0 }
 0x244   :  { %v5537_v35 = vcombine.high %v4741_v23, %v4741_v23 }
 0x245   :  { %v6062_v9 = vadd.f32 %v6061_v40, %v6060_v41  ;;  %v6085_v40 = vsel %vm2718_vm0, %v5527_v33, 0.0  ;;  %v5544_v41 = vrot.slane %v4741_v23, %v6294_v20  ;;  %v4650_v22 = vrot.slane %v3878_v16, %v6294_v20 }
 0x246   :  { %v5551_v47 = vrot.slane %v5537_v35, %v6294_v20 }
 0x247   :  { %v6064_v32 = vadd.f32 %v6063_v55, %v6062_v9  ;;  %v6089_v55 = vsel %vm2718_vm0, %v5534_v37, 0.0  ;;  %v5552_v8 = vcombine.high %v5544_v41, %v5544_v41  ;;  %v6093_v29 = vsel %vm2718_vm0, %v5544_v41, 0.0 }
 0x248   :  { %v5553_v60 = vcombine.high %v5551_v47, %v5551_v47  ;;  %v6097_v5 = vsel %vm2718_vm0, %v5551_v47, 0.0 }
 0x249   :  { %v6066_v54 = vadd.f32 %v6065_v26, %v6064_v32  ;;  %v4742_v26 = vmul.f32 %v6225_v39, %v4650_v22  ;;  %v6095_v32 = vsel %vm2718_vm0, %v5552_v8, 0.0 }
 0x24b   :  { %v6068_v1 = vadd.f32 %v6067_v6, %v6066_v54  ;;  %v5560_v0 = vrot.slane %v4742_v26, %v6294_v20  ;;  %v6099_v6 = vsel %vm2718_vm0, %v5553_v60, 0.0  ;;  %v6177_v20 = vld [vmem:[%s9073_s2] ss:$0 sm:$0xff] }
 0x24d   :  { %v6070_v48 = vadd.f32 %v6069_v25, %v6068_v1  ;;  %v6101_v25 = vsel %vm3078_vm1, %v5560_v0, 0.0  ;;  %v9200_v1 = vlaneseq }
 0x24f   :  { %v6072_v24 = vadd.f32 %v6071_v58, %v6070_v48  ;;  %v62_v18 = vand.u32 127, %v9200_v1 }
 0x251   :  { %v6074_v46 = vadd.f32 %v6073_v11, %v6072_v24  ;;  %vm3083_vm2 = vcmp.eq.s32.totalorder %v62_v18, 0  ;;  %vm6105_vm3 = vcmp.eq.s32.totalorder %v62_v18, 1 }
 0x252   :  { %v3084_v27 = vsel %vm3083_vm2, %v3082_v34, 0.0 }
 0x253   :  { %v6076_v13 = vadd.f32 %v6075_v10, %v6074_v46 }
 0x255   :  { %v6078_v28 = vadd.f32 %v6077_v2, %v6076_v13 }
 0x257   :  { %v6080_v19 = vadd.f32 %v6079_v52, %v6078_v28 }
 0x259   :  { %v6082_v15 = vadd.f32 %v6081_v44, %v6080_v19 }
 0x25b   :  { %v6084_v21 = vadd.f32 %v6083_v57, %v6082_v15 }
 0x25d   :  { %v6086_v56 = vadd.f32 %v6085_v40, %v6084_v21 }
 0x25f   :  { %v6088_v9 = vadd.f32 %v6087_v50, %v6086_v56 }
 0x261   :  { %v6090_v17 = vadd.f32 %v6089_v55, %v6088_v9 }
 0x263   :  { %v6092_v38 = vadd.f32 %v6091_v14, %v6090_v17 }
 0x265   :  { %v6094_v4 = vadd.f32 %v6093_v29, %v6092_v38 }
 0x267   :  { %v6096_v36 = vadd.f32 %v6095_v32, %v6094_v4 }
 0x269   :  { %v6098_v54 = vadd.f32 %v6097_v5, %v6096_v36 }
 0x26b   :  { %v6100_v42 = vadd.f32 %v6099_v6, %v6098_v54 }
 0x26d   :  { %v6102_v7 = vadd.f32 %v6101_v25, %v6100_v42 }
 0x26f   :  { %6103 = vadd.xlane.f32.xlu0 %v6102_v7 }
 0x2f8   :  { %v6104_v43 = vpop.xlane.xlu0 %6103 }
 0x2f9   :  { %v6106_v58 = vsel %vm6105_vm3, %v6104_v43, 0.0 }
 0x2fa   :  { %v6107_v48 = vadd.f32 %v6106_v58, %v3084_v27 }
 0x2fc   :  { %v6115_v11 = vadd.f32 %v6177_v20, %v6107_v48 }
 0x2fe   :  { %6117 = vst.msk [vmem:[#allocation2] sm:$0x3] %vm6116_vm4, %v6115_v11 }
 0x2ff   :  { %6237 = shalt.err (!%p6234_p4)
}
 0x300   :  { %6127 = dma.vmem_to_hbm [thread:$0]  %s6125_s19, 32, %s9074_s3, [#allocation3]  }
 0x301   :  { %6246 = dma.done.wait [#allocation3], 32  }
 0x302   :  { %6247 = vsyncadd [#allocation3], 4294967264 }
 0x303   :  { %6131 = vsyncpa [#allocation3], 1 }

</bundles_post_ra>
